<compile_context>
chip_gen: v7x
topology: tpu7x:2x2x1
jax: 0.10.0
libtpu: 0.0.40
codegen_flags: <defaults>
</compile_context>

<pallas_src>
import jax
import jax.numpy as jnp
from jax.experimental import pallas as pl
from jax.experimental.pallas import tpu as pltpu


def _make_gru_chunk_kernel(T, S_total, Hp, needs_mask, unroll):
    """Kernel closure over static chunk size / true sequence length."""

    def kernel(
        gi_ref,            # (T, Bp, 3*Hp) bf16  precomputed x@W_ih^T + biases
        whh_ref,           # (Hp, 3*Hp)    f32   gate-blocked, pre-transposed W_hh
        bhn_ref,           # (1, Hp)       f32   recurrent bias of n gate
        demo_logits_ref,   # (Bp, O)       f32   demo @ W_lin_demo^T + b_lin
        wlh_ref,           # (Hp, O)       f32   linear cols hitting the hidden state
        rnn_out_ref,       # (T, Bp, Hp)   bf16  per-timestep GRU outputs (this chunk)
        probs_ref,         # (Bp, O)       f32   softmax output (written at last chunk)
        liny_ref,          # (Bp, O)       f32   pre-softmax logits (last chunk)
        h_scratch,         # VMEM (Bp, Hp) f32   hidden state carried across chunks
    ):
        c = pl.program_id(0)

        @pl.when(c == 0)
        def _():
            h_scratch[...] = jnp.zeros_like(h_scratch)

        Bp = h_scratch.shape[0]
        # Hoisted bias broadcast (1 vreg).  The (Hp, 3*Hp) recurrent weight is
        # deliberately NOT hoisted: materializing it would pin ~48 vregs and
        # spill on the serial critical path; streaming it from VMEM per step
        # rides the spare vld slots instead.
        b_hn = jnp.broadcast_to(bhn_ref[...], (Bp, Hp))

        if needs_mask:
            # Valid (un-padded) timesteps in this chunk; only the last chunk
            # can be partial.
            valid = jnp.int32(S_total) - c * T

        def step(t, h_prev):
            gi = gi_ref[t].astype(jnp.float32)             # (Bp, 3*Hp), bf16 in HBM
            gh = jnp.dot(h_prev, whh_ref[...],
                         preferred_element_type=jnp.float32,
                         precision=jax.lax.Precision.HIGHEST)
            # PyTorch GRU gate order: r, z, n.  Slices land on Hp (=k*128) lanes.
            r = jax.nn.sigmoid(gi[:, 0:Hp] + gh[:, 0:Hp])
            z = jax.nn.sigmoid(gi[:, Hp:2 * Hp] + gh[:, Hp:2 * Hp])
            n = jnp.tanh(gi[:, 2 * Hp:3 * Hp] + r * (gh[:, 2 * Hp:3 * Hp] + b_hn))
            h_new = (1.0 - z) * n + z * h_prev
            if needs_mask:
                # Arithmetic blend (scalar f32 broadcast) — padded timesteps
                # keep h unchanged, so the carried state stays exact.
                keep = (t < valid).astype(jnp.float32)
                h_new = keep * h_new + (1.0 - keep) * h_prev
            rnn_out_ref[t] = h_new.astype(rnn_out_ref.dtype)
            return h_new

        h_last = jax.lax.fori_loop(0, T, step, h_scratch[...], unroll=unroll)
        h_scratch[...] = h_last

        @pl.when(c == pl.num_programs(0) - 1)
        def _():
            # Linear over cat([h_last, demo]); the demo/bias part was
            # precomputed in the wrapper (padded hidden rows of wlh are zero).
            logits = (
                jnp.dot(h_last, wlh_ref[...],
                        preferred_element_type=jnp.float32,
                        precision=jax.lax.Precision.HIGHEST)
                + demo_logits_ref[...]
            )
            liny_ref[...] = logits.astype(liny_ref.dtype)
            m = jnp.max(logits, axis=-1, keepdims=True)
            e = jnp.exp(logits - m)
            s = jnp.sum(e, axis=-1, keepdims=True)
            probs_ref[...] = (e / s).astype(probs_ref.dtype)   # exact softmax

    return kernel


def rnn_model_forward(inputs, inputs_demoips, params, *, max_chunk=256):
    """inputs: (B, S, I) batch_first; inputs_demoips: (B, 3).
    Returns (out, [states_rnn, embedding, linear_y])."""
    B, S, I = inputs.shape
    H = params["w_hh"].shape[1]
    O = params["b_lin"].shape[0]

    Bp = ((B + 7) // 8) * 8            # sublane-pad batch
    Hp = ((H + 127) // 128) * 128      # lane-pad each gate
    T = min(S, max_chunk)              # fixed chunk size; never degrades to T=1
    num_chunks = -(-S // T)            # cdiv
    S_pad = num_chunks * T
    needs_mask = (S_pad != S)
    unroll = min(T, 8)

    f32, bf16 = jnp.float32, jnp.bfloat16
    hi = jax.lax.Precision.HIGHEST

    x_seq = jnp.transpose(inputs, (1, 0, 2)).astype(f32)     # (S, B, I) seq-major

    w_ih = params["w_ih"].astype(f32)   # (3H, I)
    w_hh = params["w_hh"].astype(f32)   # (3H, H)
    b_ih = params["b_ih"].astype(f32)   # (3H,)
    b_hh = params["b_hh"].astype(f32)   # (3H,)

    # --- Hoisted input projection for all timesteps (one big XLA matmul). ---
    # Fold b_ih fully; fold the r/z recurrent biases too (they sit outside the
    # r*(...) term).  Only b_hn must stay inside the recurrence.
    gi = jnp.einsum("sbi,gi->sbg", x_seq, w_ih, precision=hi) + b_ih[None, None, :]
    gi = gi.at[..., : 2 * H].add(b_hh[: 2 * H])
    gi = gi.reshape(S, B, 3, H)
    gi = jnp.pad(gi, ((0, S_pad - S), (0, Bp - B), (0, 0), (0, Hp - H)))
    gi_all = gi.reshape(S_pad, Bp, 3 * Hp).astype(bf16)       # bf16 HBM stream

    # --- Pre-transposed, gate-blocked, lane-padded recurrent weights (f32). ---
    w_hh_g = jnp.transpose(w_hh.reshape(3, H, H), (2, 0, 1))  # (in, gate, out)
    w_hh_g = jnp.pad(w_hh_g, ((0, Hp - H), (0, 0), (0, Hp - H)))
    w_hh_t = w_hh_g.reshape(Hp, 3 * Hp)                       # (Hp, 3*Hp)

    b_hn = jnp.pad(b_hh[2 * H:].reshape(1, H), ((0, 0), (0, Hp - H)))      # (1, Hp)

    w_lin = params["w_lin"].astype(f32)                                    # (O, H+3)
    w_lin_h = jnp.pad(w_lin[:, :H].T, ((0, Hp - H), (0, 0)))               # (Hp, O)
    b_lin = params["b_lin"].astype(f32).reshape(1, O)                      # (1, O)

    # Demo-feature contribution of the linear layer precomputed here.
    demo_p = jnp.pad(inputs_demoips.astype(f32), ((0, Bp - B), (0, 0)))    # (Bp, 3)
    demo_logits = jnp.dot(demo_p, w_lin[:, H:].T, precision=hi) + b_lin    # (Bp, O)

    kernel = _make_gru_chunk_kernel(T, S, Hp, needs_mask, unroll)
    const2 = lambda c: (0, 0)

    rnn_out_p, probs_p, liny_p = pl.pallas_call(
        kernel,
        out_shape=(
            jax.ShapeDtypeStruct((S_pad, Bp, Hp), bf16),   # GRU outputs, seq-major
            jax.ShapeDtypeStruct((Bp, O), f32),            # softmax probs
            jax.ShapeDtypeStruct((Bp, O), f32),            # logits
        ),
        grid_spec=pltpu.PrefetchScalarGridSpec(
            num_scalar_prefetch=0,
            grid=(num_chunks,),
            in_specs=[
                pl.BlockSpec((T, Bp, 3 * Hp), lambda c: (c, 0, 0)),   # gi chunk (bf16)
                pl.BlockSpec((Hp, 3 * Hp), const2),                   # w_hh^T (resident)
                pl.BlockSpec((1, Hp), const2),                        # b_hn
                pl.BlockSpec((Bp, O), const2),                        # demo logits
                pl.BlockSpec((Hp, O), const2),                        # w_lin (hidden part)
            ],
            out_specs=[
                pl.BlockSpec((T, Bp, Hp), lambda c: (c, 0, 0)),       # hidden chunk (bf16)
                pl.BlockSpec((Bp, O), const2),                        # probs (last chunk)
                pl.BlockSpec((Bp, O), const2),                        # logits (last chunk)
            ],
            scratch_shapes=[pltpu.VMEM((Bp, Hp), f32)],               # carried h (f32)
        ),
        compiler_params=pltpu.CompilerParams(
            dimension_semantics=("arbitrary",),  # carried hidden state => sequential
        ),
    )(gi_all, w_hh_t, b_hn, demo_logits, w_lin_h)

    # Un-pad and go back to batch_first (B, S, H).
    states_rnn = jnp.transpose(rnn_out_p[:S, :B, :H], (1, 0, 2)).astype(f32)
    out = probs_p[:B]
    linear_y = liny_p[:B]
    return out, [states_rnn, inputs, linear_y]


def _reference_forward(inputs, demo, params):
    """Pure-JAX reference of the PyTorch module's forward (eval mode)."""
    B, S, I = inputs.shape
    H = params["w_hh"].shape[1]
    w_ih, w_hh = params["w_ih"], params["w_hh"]
    b_ih, b_hh = params["b_ih"], params["b_hh"]
    h = jnp.zeros((B, H), jnp.float32)
    outs = []
    for t in range(S):
        x = inputs[:, t, :]
        gi = x @ w_ih.T + b_ih
        gh = h @ w_hh.T + b_hh
        i_r, i_z, i_n = jnp.split(gi, 3, axis=-1)
        h_r, h_z, h_n = jnp.split(gh, 3, axis=-1)
        r = jax.nn.sigmoid(i_r + h_r)
        z = jax.nn.sigmoid(i_z + h_z)
        n = jnp.tanh(i_n + r * h_n)
        h = (1.0 - z) * n + z * h
        outs.append(h)
    states = jnp.stack(outs, axis=1)
    logits = jnp.concatenate([h, demo], axis=-1) @ params["w_lin"].T + params["b_lin"]
    probs = jax.nn.softmax(logits, axis=-1)
    return probs, states, logits


def init_params(key, input_size, hidden_size, output_size, initrange=0.1):
    """Deterministic uniform(-initrange, initrange) init, matching init_weights()."""
    ks = jax.random.split(key, 6)
    u = lambda k, shape: jax.random.uniform(
        k, shape, dtype=jnp.float32, minval=-initrange, maxval=initrange)
    return {
        "w_ih": u(ks[0], (3 * hidden_size, input_size)),
        "w_hh": u(ks[1], (3 * hidden_size, hidden_size)),
        "b_ih": u(ks[2], (3 * hidden_size,)),
        "b_hh": u(ks[3], (3 * hidden_size,)),
        "w_lin": u(ks[4], (output_size, hidden_size + 3)),
        "b_lin": u(ks[5], (output_size,)),
    }


if __name__ == "__main__":
    # Small shapes consistent with the module's forward.
    batch, seq_len, input_size, hidden_size, output_size = 2, 8, 4, 32, 5

    key = jax.random.PRNGKey(0)
    k_param, k_x, k_demo = jax.random.split(key, 3)

    params = init_params(k_param, input_size, hidden_size, output_size, initrange=0.1)
    inputs = jax.random.normal(k_x, (batch, seq_len, input_size), dtype=jnp.float32)
    inputs_demoips = jax.random.normal(k_demo, (batch, 3), dtype=jnp.float32)

    fwd = jax.jit(rnn_model_forward, static_argnames=("max_chunk",))

    out, (states_rnn, embedding, linear_y) = fwd(inputs, inputs_demoips, params)
    jax.block_until_ready((out, states_rnn, linear_y))

    assert out.shape == (batch, output_size)
    assert states_rnn.shape == (batch, seq_len, hidden_size)
    assert linear_y.shape == (batch, output_size)
    assert bool(jnp.all(jnp.isfinite(out)))
    assert bool(jnp.allclose(jnp.sum(out, axis=-1), 1.0, atol=1e-3))   # exact softmax

    # Pure-JAX reference check (tolerance covers bf16 gi / rnn_out streams).
    ref_out, ref_states, ref_lin = _reference_forward(inputs, inputs_demoips, params)
    assert bool(jnp.allclose(states_rnn, ref_states, atol=2e-2, rtol=2e-2))
    assert bool(jnp.allclose(linear_y, ref_lin, atol=2e-2, rtol=2e-2))
    assert bool(jnp.allclose(out, ref_out, atol=2e-2, rtol=2e-2))

    # Exercise the fixed-chunk + masked-remainder path (S not divisible by T).
    inputs7 = inputs[:, :7, :]
    out7, (states7, _, lin7) = fwd(inputs7, inputs_demoips, params, max_chunk=4)
    jax.block_until_ready((out7, states7, lin7))
    ref_out7, ref_states7, ref_lin7 = _reference_forward(inputs7, inputs_demoips, params)
    assert states7.shape == (batch, 7, hidden_size)
    assert bool(jnp.allclose(states7, ref_states7, atol=2e-2, rtol=2e-2))
    assert bool(jnp.allclose(lin7, ref_lin7, atol=2e-2, rtol=2e-2))
    assert bool(jnp.allclose(out7, ref_out7, atol=2e-2, rtol=2e-2))

    print("KERNEL_OK")
</pallas_src>

<mosaic_0001>
module attributes {stable_mosaic.version = 11 : i64} {
  func.func @kernel(%arg0: i32, %arg1: memref<8x8x384xbf16, #tpu.memory_space<vmem>>, %arg2: memref<128x384xf32, #tpu.memory_space<vmem>>, %arg3: memref<1x128xf32, #tpu.memory_space<vmem>>, %arg4: memref<8x5xf32, #tpu.memory_space<vmem>>, %arg5: memref<128x5xf32, #tpu.memory_space<vmem>>, %arg6: memref<8x8x128xbf16, #tpu.memory_space<vmem>>, %arg7: memref<8x5xf32, #tpu.memory_space<vmem>>, %arg8: memref<8x5xf32, #tpu.memory_space<vmem>>, %arg9: memref<8x128xf32, #tpu.memory_space<vmem>>) attributes {dimension_semantics = [#tpu.dimension_semantics<arbitrary>], iteration_bounds = array<i64: 1>, scalar_prefetch = 0 : i64, scratch_operands = 1 : i64, tpu.core_type = #tpu.core_type<tc>, window_params = [{transform_indices = @transform_0, window_bounds = array<i64: 8, 8, 384>}, {pipeline_mode = #tpu.pipeline_mode<synchronous>, transform_indices = @transform_1, window_bounds = array<i64: 128, 384>}, {pipeline_mode = #tpu.pipeline_mode<synchronous>, transform_indices = @transform_2, window_bounds = array<i64: 1, 128>}, {pipeline_mode = #tpu.pipeline_mode<synchronous>, transform_indices = @transform_3, window_bounds = array<i64: 8, 5>}, {pipeline_mode = #tpu.pipeline_mode<synchronous>, transform_indices = @transform_4, window_bounds = array<i64: 128, 5>}, {transform_indices = @transform_5, window_bounds = array<i64: 8, 8, 128>}, {pipeline_mode = #tpu.pipeline_mode<synchronous>, transform_indices = @transform_6, window_bounds = array<i64: 8, 5>}, {pipeline_mode = #tpu.pipeline_mode<synchronous>, transform_indices = @transform_7, window_bounds = array<i64: 8, 5>}]} {
    %c0_i32 = arith.constant 0 : i32
    %0 = arith.cmpi eq, %arg0, %c0_i32 : i32
    %1 = arith.extui %0 : i1 to i32
    %c0_i32_0 = arith.constant 0 : i32
    %2 = arith.cmpi ne, %1, %c0_i32_0 : i32
    scf.if %2 {
      %cst_88 = arith.constant 0.000000e+00 : f32
      %315 = vector.broadcast %cst_88 : f32 to vector<8x128xf32>
      %c0_89 = arith.constant 0 : index
      %c0_90 = arith.constant 0 : index
      %316 = vector.load %arg9[%c0_89, %c0_90] : memref<8x128xf32, #tpu.memory_space<vmem>>, vector<8x128xf32>
      tpu.vector_store %arg9[%c0_89, %c0_90], %315 {strides = array<i32>} : memref<8x128xf32, #tpu.memory_space<vmem>>, vector<8x128xf32>,
    } else {
    }
    %c0 = arith.constant 0 : index
    %c0_1 = arith.constant 0 : index
    %3 = vector.load %arg3[%c0, %c0_1] : memref<1x128xf32, #tpu.memory_space<vmem>>, vector<1x128xf32>
    %4 = vector.shape_cast %3 : vector<1x128xf32> to vector<1x128xf32>
    %5 = vector.broadcast %4 : vector<1x128xf32> to vector<8x128xf32>
    %c0_2 = arith.constant 0 : index
    %c0_3 = arith.constant 0 : index
    %6 = vector.load %arg9[%c0_2, %c0_3] : memref<8x128xf32, #tpu.memory_space<vmem>>, vector<8x128xf32>
    %c0_i32_4 = arith.constant 0 : i32
    %7 = arith.index_cast %c0_i32_4 : i32 to index
    %c0_5 = arith.constant 0 : index
    %c0_6 = arith.constant 0 : index
    %8 = vector.load %arg1[%7, %c0_5, %c0_6] : memref<8x8x384xbf16, #tpu.memory_space<vmem>>, vector<1x8x384xbf16>
    %9 = vector.shape_cast %8 : vector<1x8x384xbf16> to vector<8x384xbf16>
    %10 = arith.extf %9 : vector<8x384xbf16> to vector<8x384xf32>
    %c0_7 = arith.constant 0 : index
    %c0_8 = arith.constant 0 : index
    %11 = vector.load %arg2[%c0_7, %c0_8] : memref<128x384xf32, #tpu.memory_space<vmem>>, vector<128x384xf32>
    %cst = arith.constant dense<0.000000e+00> : vector<8x384xf32>
    %12 = tpu.matmul %6, %11, %cst {dimension_numbers = #tpu.dot_dimension_numbers<[1], [0], [0], [1], [0, 0, 1, 1], [], []>, precision = #tpu.contract_precision<fp32>} : vector<8x128xf32>, vector<128x384xf32>, vector<8x384xf32> -> vector<8x384xf32>
    %13 = vector.extract_strided_slice %10 {offsets = [0, 0], sizes = [8, 128], strides = [1, 1]} : vector<8x384xf32> to vector<8x128xf32>
    %14 = vector.extract_strided_slice %12 {offsets = [0, 0], sizes = [8, 128], strides = [1, 1]} : vector<8x384xf32> to vector<8x128xf32>
    %15 = arith.addf %13, %14 : vector<8x128xf32>
    %16 = arith.negf %15 : vector<8x128xf32>
    %17 = math.exp %16 : vector<8x128xf32>
    %cst_9 = arith.constant 1.000000e+00 : f32
    %18 = vector.broadcast %cst_9 : f32 to vector<8x128xf32>
    %19 = arith.addf %18, %17 : vector<8x128xf32>
    %20 = arith.divf %18, %19 : vector<8x128xf32>
    %21 = vector.extract_strided_slice %10 {offsets = [0, 128], sizes = [8, 128], strides = [1, 1]} : vector<8x384xf32> to vector<8x128xf32>
    %22 = vector.extract_strided_slice %12 {offsets = [0, 128], sizes = [8, 128], strides = [1, 1]} : vector<8x384xf32> to vector<8x128xf32>
    %23 = arith.addf %21, %22 : vector<8x128xf32>
    %24 = arith.negf %23 : vector<8x128xf32>
    %25 = math.exp %24 : vector<8x128xf32>
    %cst_10 = arith.constant 1.000000e+00 : f32
    %26 = vector.broadcast %cst_10 : f32 to vector<8x128xf32>
    %27 = arith.addf %26, %25 : vector<8x128xf32>
    %28 = arith.divf %26, %27 : vector<8x128xf32>
    %29 = vector.extract_strided_slice %10 {offsets = [0, 256], sizes = [8, 128], strides = [1, 1]} : vector<8x384xf32> to vector<8x128xf32>
    %30 = vector.extract_strided_slice %12 {offsets = [0, 256], sizes = [8, 128], strides = [1, 1]} : vector<8x384xf32> to vector<8x128xf32>
    %31 = arith.addf %30, %5 : vector<8x128xf32>
    %32 = arith.mulf %20, %31 : vector<8x128xf32>
    %33 = arith.addf %29, %32 : vector<8x128xf32>
    %34 = math.tanh %33 : vector<8x128xf32>
    %cst_11 = arith.constant 1.000000e+00 : f32
    %35 = vector.broadcast %cst_11 : f32 to vector<8x128xf32>
    %36 = arith.subf %35, %28 : vector<8x128xf32>
    %37 = arith.mulf %36, %34 : vector<8x128xf32>
    %38 = arith.mulf %28, %6 : vector<8x128xf32>
    %39 = arith.addf %37, %38 : vector<8x128xf32>
    %40 = arith.truncf %39 : vector<8x128xf32> to vector<8x128xbf16>
    %41 = arith.index_cast %c0_i32_4 : i32 to index
    %c0_12 = arith.constant 0 : index
    %c0_13 = arith.constant 0 : index
    %42 = vector.load %arg6[%41, %c0_12, %c0_13] : memref<8x8x128xbf16, #tpu.memory_space<vmem>>, vector<1x8x128xbf16>
    %43 = vector.shape_cast %42 : vector<1x8x128xbf16> to vector<8x128xbf16>
    %44 = vector.shape_cast %40 : vector<8x128xbf16> to vector<1x8x128xbf16>
    tpu.vector_store %arg6[%41, %c0_12, %c0_13], %44 {strides = array<i32>} : memref<8x8x128xbf16, #tpu.memory_space<vmem>>, vector<1x8x128xbf16>,
    %c1_i32 = arith.constant 1 : i32
    %45 = arith.index_cast %c1_i32 : i32 to index
    %c0_14 = arith.constant 0 : index
    %c0_15 = arith.constant 0 : index
    %46 = vector.load %arg1[%45, %c0_14, %c0_15] : memref<8x8x384xbf16, #tpu.memory_space<vmem>>, vector<1x8x384xbf16>
    %47 = vector.shape_cast %46 : vector<1x8x384xbf16> to vector<8x384xbf16>
    %48 = arith.extf %47 : vector<8x384xbf16> to vector<8x384xf32>
    %c0_16 = arith.constant 0 : index
    %c0_17 = arith.constant 0 : index
    %49 = vector.load %arg2[%c0_16, %c0_17] : memref<128x384xf32, #tpu.memory_space<vmem>>, vector<128x384xf32>
    %cst_18 = arith.constant dense<0.000000e+00> : vector<8x384xf32>
    %50 = tpu.matmul %39, %49, %cst_18 {dimension_numbers = #tpu.dot_dimension_numbers<[1], [0], [0], [1], [0, 0, 1, 1], [], []>, precision = #tpu.contract_precision<fp32>} : vector<8x128xf32>, vector<128x384xf32>, vector<8x384xf32> -> vector<8x384xf32>
    %51 = vector.extract_strided_slice %48 {offsets = [0, 0], sizes = [8, 128], strides = [1, 1]} : vector<8x384xf32> to vector<8x128xf32>
    %52 = vector.extract_strided_slice %50 {offsets = [0, 0], sizes = [8, 128], strides = [1, 1]} : vector<8x384xf32> to vector<8x128xf32>
    %53 = arith.addf %51, %52 : vector<8x128xf32>
    %54 = arith.negf %53 : vector<8x128xf32>
    %55 = math.exp %54 : vector<8x128xf32>
    %cst_19 = arith.constant 1.000000e+00 : f32
    %56 = vector.broadcast %cst_19 : f32 to vector<8x128xf32>
    %57 = arith.addf %56, %55 : vector<8x128xf32>
    %58 = arith.divf %56, %57 : vector<8x128xf32>
    %59 = vector.extract_strided_slice %48 {offsets = [0, 128], sizes = [8, 128], strides = [1, 1]} : vector<8x384xf32> to vector<8x128xf32>
    %60 = vector.extract_strided_slice %50 {offsets = [0, 128], sizes = [8, 128], strides = [1, 1]} : vector<8x384xf32> to vector<8x128xf32>
    %61 = arith.addf %59, %60 : vector<8x128xf32>
    %62 = arith.negf %61 : vector<8x128xf32>
    %63 = math.exp %62 : vector<8x128xf32>
    %cst_20 = arith.constant 1.000000e+00 : f32
    %64 = vector.broadcast %cst_20 : f32 to vector<8x128xf32>
    %65 = arith.addf %64, %63 : vector<8x128xf32>
    %66 = arith.divf %64, %65 : vector<8x128xf32>
    %67 = vector.extract_strided_slice %48 {offsets = [0, 256], sizes = [8, 128], strides = [1, 1]} : vector<8x384xf32> to vector<8x128xf32>
    %68 = vector.extract_strided_slice %50 {offsets = [0, 256], sizes = [8, 128], strides = [1, 1]} : vector<8x384xf32> to vector<8x128xf32>
    %69 = arith.addf %68, %5 : vector<8x128xf32>
    %70 = arith.mulf %58, %69 : vector<8x128xf32>
    %71 = arith.addf %67, %70 : vector<8x128xf32>
    %72 = math.tanh %71 : vector<8x128xf32>
    %cst_21 = arith.constant 1.000000e+00 : f32
    %73 = vector.broadcast %cst_21 : f32 to vector<8x128xf32>
    %74 = arith.subf %73, %66 : vector<8x128xf32>
    %75 = arith.mulf %74, %72 : vector<8x128xf32>
    %76 = arith.mulf %66, %39 : vector<8x128xf32>
    %77 = arith.addf %75, %76 : vector<8x128xf32>
    %78 = arith.truncf %77 : vector<8x128xf32> to vector<8x128xbf16>
    %79 = arith.index_cast %c1_i32 : i32 to index
    %c0_22 = arith.constant 0 : index
    %c0_23 = arith.constant 0 : index
    %80 = vector.load %arg6[%79, %c0_22, %c0_23] : memref<8x8x128xbf16, #tpu.memory_space<vmem>>, vector<1x8x128xbf16>
    %81 = vector.shape_cast %80 : vector<1x8x128xbf16> to vector<8x128xbf16>
    %82 = vector.shape_cast %78 : vector<8x128xbf16> to vector<1x8x128xbf16>
    tpu.vector_store %arg6[%79, %c0_22, %c0_23], %82 {strides = array<i32>} : memref<8x8x128xbf16, #tpu.memory_space<vmem>>, vector<1x8x128xbf16>,
    %c2_i32 = arith.constant 2 : i32
    %83 = arith.index_cast %c2_i32 : i32 to index
    %c0_24 = arith.constant 0 : index
    %c0_25 = arith.constant 0 : index
    %84 = vector.load %arg1[%83, %c0_24, %c0_25] : memref<8x8x384xbf16, #tpu.memory_space<vmem>>, vector<1x8x384xbf16>
    %85 = vector.shape_cast %84 : vector<1x8x384xbf16> to vector<8x384xbf16>
    %86 = arith.extf %85 : vector<8x384xbf16> to vector<8x384xf32>
    %c0_26 = arith.constant 0 : index
    %c0_27 = arith.constant 0 : index
    %87 = vector.load %arg2[%c0_26, %c0_27] : memref<128x384xf32, #tpu.memory_space<vmem>>, vector<128x384xf32>
    %cst_28 = arith.constant dense<0.000000e+00> : vector<8x384xf32>
    %88 = tpu.matmul %77, %87, %cst_28 {dimension_numbers = #tpu.dot_dimension_numbers<[1], [0], [0], [1], [0, 0, 1, 1], [], []>, precision = #tpu.contract_precision<fp32>} : vector<8x128xf32>, vector<128x384xf32>, vector<8x384xf32> -> vector<8x384xf32>
    %89 = vector.extract_strided_slice %86 {offsets = [0, 0], sizes = [8, 128], strides = [1, 1]} : vector<8x384xf32> to vector<8x128xf32>
    %90 = vector.extract_strided_slice %88 {offsets = [0, 0], sizes = [8, 128], strides = [1, 1]} : vector<8x384xf32> to vector<8x128xf32>
    %91 = arith.addf %89, %90 : vector<8x128xf32>
    %92 = arith.negf %91 : vector<8x128xf32>
    %93 = math.exp %92 : vector<8x128xf32>
    %cst_29 = arith.constant 1.000000e+00 : f32
    %94 = vector.broadcast %cst_29 : f32 to vector<8x128xf32>
    %95 = arith.addf %94, %93 : vector<8x128xf32>
    %96 = arith.divf %94, %95 : vector<8x128xf32>
    %97 = vector.extract_strided_slice %86 {offsets = [0, 128], sizes = [8, 128], strides = [1, 1]} : vector<8x384xf32> to vector<8x128xf32>
    %98 = vector.extract_strided_slice %88 {offsets = [0, 128], sizes = [8, 128], strides = [1, 1]} : vector<8x384xf32> to vector<8x128xf32>
    %99 = arith.addf %97, %98 : vector<8x128xf32>
    %100 = arith.negf %99 : vector<8x128xf32>
    %101 = math.exp %100 : vector<8x128xf32>
    %cst_30 = arith.constant 1.000000e+00 : f32
    %102 = vector.broadcast %cst_30 : f32 to vector<8x128xf32>
    %103 = arith.addf %102, %101 : vector<8x128xf32>
    %104 = arith.divf %102, %103 : vector<8x128xf32>
    %105 = vector.extract_strided_slice %86 {offsets = [0, 256], sizes = [8, 128], strides = [1, 1]} : vector<8x384xf32> to vector<8x128xf32>
    %106 = vector.extract_strided_slice %88 {offsets = [0, 256], sizes = [8, 128], strides = [1, 1]} : vector<8x384xf32> to vector<8x128xf32>
    %107 = arith.addf %106, %5 : vector<8x128xf32>
    %108 = arith.mulf %96, %107 : vector<8x128xf32>
    %109 = arith.addf %105, %108 : vector<8x128xf32>
    %110 = math.tanh %109 : vector<8x128xf32>
    %cst_31 = arith.constant 1.000000e+00 : f32
    %111 = vector.broadcast %cst_31 : f32 to vector<8x128xf32>
    %112 = arith.subf %111, %104 : vector<8x128xf32>
    %113 = arith.mulf %112, %110 : vector<8x128xf32>
    %114 = arith.mulf %104, %77 : vector<8x128xf32>
    %115 = arith.addf %113, %114 : vector<8x128xf32>
    %116 = arith.truncf %115 : vector<8x128xf32> to vector<8x128xbf16>
    %117 = arith.index_cast %c2_i32 : i32 to index
    %c0_32 = arith.constant 0 : index
    %c0_33 = arith.constant 0 : index
    %118 = vector.load %arg6[%117, %c0_32, %c0_33] : memref<8x8x128xbf16, #tpu.memory_space<vmem>>, vector<1x8x128xbf16>
    %119 = vector.shape_cast %118 : vector<1x8x128xbf16> to vector<8x128xbf16>
    %120 = vector.shape_cast %116 : vector<8x128xbf16> to vector<1x8x128xbf16>
    tpu.vector_store %arg6[%117, %c0_32, %c0_33], %120 {strides = array<i32>} : memref<8x8x128xbf16, #tpu.memory_space<vmem>>, vector<1x8x128xbf16>,
    %c3_i32 = arith.constant 3 : i32
    %121 = arith.index_cast %c3_i32 : i32 to index
    %c0_34 = arith.constant 0 : index
    %c0_35 = arith.constant 0 : index
    %122 = vector.load %arg1[%121, %c0_34, %c0_35] : memref<8x8x384xbf16, #tpu.memory_space<vmem>>, vector<1x8x384xbf16>
    %123 = vector.shape_cast %122 : vector<1x8x384xbf16> to vector<8x384xbf16>
    %124 = arith.extf %123 : vector<8x384xbf16> to vector<8x384xf32>
    %c0_36 = arith.constant 0 : index
    %c0_37 = arith.constant 0 : index
    %125 = vector.load %arg2[%c0_36, %c0_37] : memref<128x384xf32, #tpu.memory_space<vmem>>, vector<128x384xf32>
    %cst_38 = arith.constant dense<0.000000e+00> : vector<8x384xf32>
    %126 = tpu.matmul %115, %125, %cst_38 {dimension_numbers = #tpu.dot_dimension_numbers<[1], [0], [0], [1], [0, 0, 1, 1], [], []>, precision = #tpu.contract_precision<fp32>} : vector<8x128xf32>, vector<128x384xf32>, vector<8x384xf32> -> vector<8x384xf32>
    %127 = vector.extract_strided_slice %124 {offsets = [0, 0], sizes = [8, 128], strides = [1, 1]} : vector<8x384xf32> to vector<8x128xf32>
    %128 = vector.extract_strided_slice %126 {offsets = [0, 0], sizes = [8, 128], strides = [1, 1]} : vector<8x384xf32> to vector<8x128xf32>
    %129 = arith.addf %127, %128 : vector<8x128xf32>
    %130 = arith.negf %129 : vector<8x128xf32>
    %131 = math.exp %130 : vector<8x128xf32>
    %cst_39 = arith.constant 1.000000e+00 : f32
    %132 = vector.broadcast %cst_39 : f32 to vector<8x128xf32>
    %133 = arith.addf %132, %131 : vector<8x128xf32>
    %134 = arith.divf %132, %133 : vector<8x128xf32>
    %135 = vector.extract_strided_slice %124 {offsets = [0, 128], sizes = [8, 128], strides = [1, 1]} : vector<8x384xf32> to vector<8x128xf32>
    %136 = vector.extract_strided_slice %126 {offsets = [0, 128], sizes = [8, 128], strides = [1, 1]} : vector<8x384xf32> to vector<8x128xf32>
    %137 = arith.addf %135, %136 : vector<8x128xf32>
    %138 = arith.negf %137 : vector<8x128xf32>
    %139 = math.exp %138 : vector<8x128xf32>
    %cst_40 = arith.constant 1.000000e+00 : f32
    %140 = vector.broadcast %cst_40 : f32 to vector<8x128xf32>
    %141 = arith.addf %140, %139 : vector<8x128xf32>
    %142 = arith.divf %140, %141 : vector<8x128xf32>
    %143 = vector.extract_strided_slice %124 {offsets = [0, 256], sizes = [8, 128], strides = [1, 1]} : vector<8x384xf32> to vector<8x128xf32>
    %144 = vector.extract_strided_slice %126 {offsets = [0, 256], sizes = [8, 128], strides = [1, 1]} : vector<8x384xf32> to vector<8x128xf32>
    %145 = arith.addf %144, %5 : vector<8x128xf32>
    %146 = arith.mulf %134, %145 : vector<8x128xf32>
    %147 = arith.addf %143, %146 : vector<8x128xf32>
    %148 = math.tanh %147 : vector<8x128xf32>
    %cst_41 = arith.constant 1.000000e+00 : f32
    %149 = vector.broadcast %cst_41 : f32 to vector<8x128xf32>
    %150 = arith.subf %149, %142 : vector<8x128xf32>
    %151 = arith.mulf %150, %148 : vector<8x128xf32>
    %152 = arith.mulf %142, %115 : vector<8x128xf32>
    %153 = arith.addf %151, %152 : vector<8x128xf32>
    %154 = arith.truncf %153 : vector<8x128xf32> to vector<8x128xbf16>
    %155 = arith.index_cast %c3_i32 : i32 to index
    %c0_42 = arith.constant 0 : index
    %c0_43 = arith.constant 0 : index
    %156 = vector.load %arg6[%155, %c0_42, %c0_43] : memref<8x8x128xbf16, #tpu.memory_space<vmem>>, vector<1x8x128xbf16>
    %157 = vector.shape_cast %156 : vector<1x8x128xbf16> to vector<8x128xbf16>
    %158 = vector.shape_cast %154 : vector<8x128xbf16> to vector<1x8x128xbf16>
    tpu.vector_store %arg6[%155, %c0_42, %c0_43], %158 {strides = array<i32>} : memref<8x8x128xbf16, #tpu.memory_space<vmem>>, vector<1x8x128xbf16>,
    %c4_i32 = arith.constant 4 : i32
    %159 = arith.index_cast %c4_i32 : i32 to index
    %c0_44 = arith.constant 0 : index
    %c0_45 = arith.constant 0 : index
    %160 = vector.load %arg1[%159, %c0_44, %c0_45] : memref<8x8x384xbf16, #tpu.memory_space<vmem>>, vector<1x8x384xbf16>
    %161 = vector.shape_cast %160 : vector<1x8x384xbf16> to vector<8x384xbf16>
    %162 = arith.extf %161 : vector<8x384xbf16> to vector<8x384xf32>
    %c0_46 = arith.constant 0 : index
    %c0_47 = arith.constant 0 : index
    %163 = vector.load %arg2[%c0_46, %c0_47] : memref<128x384xf32, #tpu.memory_space<vmem>>, vector<128x384xf32>
    %cst_48 = arith.constant dense<0.000000e+00> : vector<8x384xf32>
    %164 = tpu.matmul %153, %163, %cst_48 {dimension_numbers = #tpu.dot_dimension_numbers<[1], [0], [0], [1], [0, 0, 1, 1], [], []>, precision = #tpu.contract_precision<fp32>} : vector<8x128xf32>, vector<128x384xf32>, vector<8x384xf32> -> vector<8x384xf32>
    %165 = vector.extract_strided_slice %162 {offsets = [0, 0], sizes = [8, 128], strides = [1, 1]} : vector<8x384xf32> to vector<8x128xf32>
    %166 = vector.extract_strided_slice %164 {offsets = [0, 0], sizes = [8, 128], strides = [1, 1]} : vector<8x384xf32> to vector<8x128xf32>
    %167 = arith.addf %165, %166 : vector<8x128xf32>
    %168 = arith.negf %167 : vector<8x128xf32>
    %169 = math.exp %168 : vector<8x128xf32>
    %cst_49 = arith.constant 1.000000e+00 : f32
    %170 = vector.broadcast %cst_49 : f32 to vector<8x128xf32>
    %171 = arith.addf %170, %169 : vector<8x128xf32>
    %172 = arith.divf %170, %171 : vector<8x128xf32>
    %173 = vector.extract_strided_slice %162 {offsets = [0, 128], sizes = [8, 128], strides = [1, 1]} : vector<8x384xf32> to vector<8x128xf32>
    %174 = vector.extract_strided_slice %164 {offsets = [0, 128], sizes = [8, 128], strides = [1, 1]} : vector<8x384xf32> to vector<8x128xf32>
    %175 = arith.addf %173, %174 : vector<8x128xf32>
    %176 = arith.negf %175 : vector<8x128xf32>
    %177 = math.exp %176 : vector<8x128xf32>
    %cst_50 = arith.constant 1.000000e+00 : f32
    %178 = vector.broadcast %cst_50 : f32 to vector<8x128xf32>
    %179 = arith.addf %178, %177 : vector<8x128xf32>
    %180 = arith.divf %178, %179 : vector<8x128xf32>
    %181 = vector.extract_strided_slice %162 {offsets = [0, 256], sizes = [8, 128], strides = [1, 1]} : vector<8x384xf32> to vector<8x128xf32>
    %182 = vector.extract_strided_slice %164 {offsets = [0, 256], sizes = [8, 128], strides = [1, 1]} : vector<8x384xf32> to vector<8x128xf32>
    %183 = arith.addf %182, %5 : vector<8x128xf32>
    %184 = arith.mulf %172, %183 : vector<8x128xf32>
    %185 = arith.addf %181, %184 : vector<8x128xf32>
    %186 = math.tanh %185 : vector<8x128xf32>
    %cst_51 = arith.constant 1.000000e+00 : f32
    %187 = vector.broadcast %cst_51 : f32 to vector<8x128xf32>
    %188 = arith.subf %187, %180 : vector<8x128xf32>
    %189 = arith.mulf %188, %186 : vector<8x128xf32>
    %190 = arith.mulf %180, %153 : vector<8x128xf32>
    %191 = arith.addf %189, %190 : vector<8x128xf32>
    %192 = arith.truncf %191 : vector<8x128xf32> to vector<8x128xbf16>
    %193 = arith.index_cast %c4_i32 : i32 to index
    %c0_52 = arith.constant 0 : index
    %c0_53 = arith.constant 0 : index
    %194 = vector.load %arg6[%193, %c0_52, %c0_53] : memref<8x8x128xbf16, #tpu.memory_space<vmem>>, vector<1x8x128xbf16>
    %195 = vector.shape_cast %194 : vector<1x8x128xbf16> to vector<8x128xbf16>
    %196 = vector.shape_cast %192 : vector<8x128xbf16> to vector<1x8x128xbf16>
    tpu.vector_store %arg6[%193, %c0_52, %c0_53], %196 {strides = array<i32>} : memref<8x8x128xbf16, #tpu.memory_space<vmem>>, vector<1x8x128xbf16>,
    %c5_i32 = arith.constant 5 : i32
    %197 = arith.index_cast %c5_i32 : i32 to index
    %c0_54 = arith.constant 0 : index
    %c0_55 = arith.constant 0 : index
    %198 = vector.load %arg1[%197, %c0_54, %c0_55] : memref<8x8x384xbf16, #tpu.memory_space<vmem>>, vector<1x8x384xbf16>
    %199 = vector.shape_cast %198 : vector<1x8x384xbf16> to vector<8x384xbf16>
    %200 = arith.extf %199 : vector<8x384xbf16> to vector<8x384xf32>
    %c0_56 = arith.constant 0 : index
    %c0_57 = arith.constant 0 : index
    %201 = vector.load %arg2[%c0_56, %c0_57] : memref<128x384xf32, #tpu.memory_space<vmem>>, vector<128x384xf32>
    %cst_58 = arith.constant dense<0.000000e+00> : vector<8x384xf32>
    %202 = tpu.matmul %191, %201, %cst_58 {dimension_numbers = #tpu.dot_dimension_numbers<[1], [0], [0], [1], [0, 0, 1, 1], [], []>, precision = #tpu.contract_precision<fp32>} : vector<8x128xf32>, vector<128x384xf32>, vector<8x384xf32> -> vector<8x384xf32>
    %203 = vector.extract_strided_slice %200 {offsets = [0, 0], sizes = [8, 128], strides = [1, 1]} : vector<8x384xf32> to vector<8x128xf32>
    %204 = vector.extract_strided_slice %202 {offsets = [0, 0], sizes = [8, 128], strides = [1, 1]} : vector<8x384xf32> to vector<8x128xf32>
    %205 = arith.addf %203, %204 : vector<8x128xf32>
    %206 = arith.negf %205 : vector<8x128xf32>
    %207 = math.exp %206 : vector<8x128xf32>
    %cst_59 = arith.constant 1.000000e+00 : f32
    %208 = vector.broadcast %cst_59 : f32 to vector<8x128xf32>
    %209 = arith.addf %208, %207 : vector<8x128xf32>
    %210 = arith.divf %208, %209 : vector<8x128xf32>
    %211 = vector.extract_strided_slice %200 {offsets = [0, 128], sizes = [8, 128], strides = [1, 1]} : vector<8x384xf32> to vector<8x128xf32>
    %212 = vector.extract_strided_slice %202 {offsets = [0, 128], sizes = [8, 128], strides = [1, 1]} : vector<8x384xf32> to vector<8x128xf32>
    %213 = arith.addf %211, %212 : vector<8x128xf32>
    %214 = arith.negf %213 : vector<8x128xf32>
    %215 = math.exp %214 : vector<8x128xf32>
    %cst_60 = arith.constant 1.000000e+00 : f32
    %216 = vector.broadcast %cst_60 : f32 to vector<8x128xf32>
    %217 = arith.addf %216, %215 : vector<8x128xf32>
    %218 = arith.divf %216, %217 : vector<8x128xf32>
    %219 = vector.extract_strided_slice %200 {offsets = [0, 256], sizes = [8, 128], strides = [1, 1]} : vector<8x384xf32> to vector<8x128xf32>
    %220 = vector.extract_strided_slice %202 {offsets = [0, 256], sizes = [8, 128], strides = [1, 1]} : vector<8x384xf32> to vector<8x128xf32>
    %221 = arith.addf %220, %5 : vector<8x128xf32>
    %222 = arith.mulf %210, %221 : vector<8x128xf32>
    %223 = arith.addf %219, %222 : vector<8x128xf32>
    %224 = math.tanh %223 : vector<8x128xf32>
    %cst_61 = arith.constant 1.000000e+00 : f32
    %225 = vector.broadcast %cst_61 : f32 to vector<8x128xf32>
    %226 = arith.subf %225, %218 : vector<8x128xf32>
    %227 = arith.mulf %226, %224 : vector<8x128xf32>
    %228 = arith.mulf %218, %191 : vector<8x128xf32>
    %229 = arith.addf %227, %228 : vector<8x128xf32>
    %230 = arith.truncf %229 : vector<8x128xf32> to vector<8x128xbf16>
    %231 = arith.index_cast %c5_i32 : i32 to index
    %c0_62 = arith.constant 0 : index
    %c0_63 = arith.constant 0 : index
    %232 = vector.load %arg6[%231, %c0_62, %c0_63] : memref<8x8x128xbf16, #tpu.memory_space<vmem>>, vector<1x8x128xbf16>
    %233 = vector.shape_cast %232 : vector<1x8x128xbf16> to vector<8x128xbf16>
    %234 = vector.shape_cast %230 : vector<8x128xbf16> to vector<1x8x128xbf16>
    tpu.vector_store %arg6[%231, %c0_62, %c0_63], %234 {strides = array<i32>} : memref<8x8x128xbf16, #tpu.memory_space<vmem>>, vector<1x8x128xbf16>,
    %c6_i32 = arith.constant 6 : i32
    %235 = arith.index_cast %c6_i32 : i32 to index
    %c0_64 = arith.constant 0 : index
    %c0_65 = arith.constant 0 : index
    %236 = vector.load %arg1[%235, %c0_64, %c0_65] : memref<8x8x384xbf16, #tpu.memory_space<vmem>>, vector<1x8x384xbf16>
    %237 = vector.shape_cast %236 : vector<1x8x384xbf16> to vector<8x384xbf16>
    %238 = arith.extf %237 : vector<8x384xbf16> to vector<8x384xf32>
    %c0_66 = arith.constant 0 : index
    %c0_67 = arith.constant 0 : index
    %239 = vector.load %arg2[%c0_66, %c0_67] : memref<128x384xf32, #tpu.memory_space<vmem>>, vector<128x384xf32>
    %cst_68 = arith.constant dense<0.000000e+00> : vector<8x384xf32>
    %240 = tpu.matmul %229, %239, %cst_68 {dimension_numbers = #tpu.dot_dimension_numbers<[1], [0], [0], [1], [0, 0, 1, 1], [], []>, precision = #tpu.contract_precision<fp32>} : vector<8x128xf32>, vector<128x384xf32>, vector<8x384xf32> -> vector<8x384xf32>
    %241 = vector.extract_strided_slice %238 {offsets = [0, 0], sizes = [8, 128], strides = [1, 1]} : vector<8x384xf32> to vector<8x128xf32>
    %242 = vector.extract_strided_slice %240 {offsets = [0, 0], sizes = [8, 128], strides = [1, 1]} : vector<8x384xf32> to vector<8x128xf32>
    %243 = arith.addf %241, %242 : vector<8x128xf32>
    %244 = arith.negf %243 : vector<8x128xf32>
    %245 = math.exp %244 : vector<8x128xf32>
    %cst_69 = arith.constant 1.000000e+00 : f32
    %246 = vector.broadcast %cst_69 : f32 to vector<8x128xf32>
    %247 = arith.addf %246, %245 : vector<8x128xf32>
    %248 = arith.divf %246, %247 : vector<8x128xf32>
    %249 = vector.extract_strided_slice %238 {offsets = [0, 128], sizes = [8, 128], strides = [1, 1]} : vector<8x384xf32> to vector<8x128xf32>
    %250 = vector.extract_strided_slice %240 {offsets = [0, 128], sizes = [8, 128], strides = [1, 1]} : vector<8x384xf32> to vector<8x128xf32>
    %251 = arith.addf %249, %250 : vector<8x128xf32>
    %252 = arith.negf %251 : vector<8x128xf32>
    %253 = math.exp %252 : vector<8x128xf32>
    %cst_70 = arith.constant 1.000000e+00 : f32
    %254 = vector.broadcast %cst_70 : f32 to vector<8x128xf32>
    %255 = arith.addf %254, %253 : vector<8x128xf32>
    %256 = arith.divf %254, %255 : vector<8x128xf32>
    %257 = vector.extract_strided_slice %238 {offsets = [0, 256], sizes = [8, 128], strides = [1, 1]} : vector<8x384xf32> to vector<8x128xf32>
    %258 = vector.extract_strided_slice %240 {offsets = [0, 256], sizes = [8, 128], strides = [1, 1]} : vector<8x384xf32> to vector<8x128xf32>
    %259 = arith.addf %258, %5 : vector<8x128xf32>
    %260 = arith.mulf %248, %259 : vector<8x128xf32>
    %261 = arith.addf %257, %260 : vector<8x128xf32>
    %262 = math.tanh %261 : vector<8x128xf32>
    %cst_71 = arith.constant 1.000000e+00 : f32
    %263 = vector.broadcast %cst_71 : f32 to vector<8x128xf32>
    %264 = arith.subf %263, %256 : vector<8x128xf32>
    %265 = arith.mulf %264, %262 : vector<8x128xf32>
    %266 = arith.mulf %256, %229 : vector<8x128xf32>
    %267 = arith.addf %265, %266 : vector<8x128xf32>
    %268 = arith.truncf %267 : vector<8x128xf32> to vector<8x128xbf16>
    %269 = arith.index_cast %c6_i32 : i32 to index
    %c0_72 = arith.constant 0 : index
    %c0_73 = arith.constant 0 : index
    %270 = vector.load %arg6[%269, %c0_72, %c0_73] : memref<8x8x128xbf16, #tpu.memory_space<vmem>>, vector<1x8x128xbf16>
    %271 = vector.shape_cast %270 : vector<1x8x128xbf16> to vector<8x128xbf16>
    %272 = vector.shape_cast %268 : vector<8x128xbf16> to vector<1x8x128xbf16>
    tpu.vector_store %arg6[%269, %c0_72, %c0_73], %272 {strides = array<i32>} : memref<8x8x128xbf16, #tpu.memory_space<vmem>>, vector<1x8x128xbf16>,
    %c7_i32 = arith.constant 7 : i32
    %273 = arith.index_cast %c7_i32 : i32 to index
    %c0_74 = arith.constant 0 : index
    %c0_75 = arith.constant 0 : index
    %274 = vector.load %arg1[%273, %c0_74, %c0_75] : memref<8x8x384xbf16, #tpu.memory_space<vmem>>, vector<1x8x384xbf16>
    %275 = vector.shape_cast %274 : vector<1x8x384xbf16> to vector<8x384xbf16>
    %276 = arith.extf %275 : vector<8x384xbf16> to vector<8x384xf32>
    %c0_76 = arith.constant 0 : index
    %c0_77 = arith.constant 0 : index
    %277 = vector.load %arg2[%c0_76, %c0_77] : memref<128x384xf32, #tpu.memory_space<vmem>>, vector<128x384xf32>
    %cst_78 = arith.constant dense<0.000000e+00> : vector<8x384xf32>
    %278 = tpu.matmul %267, %277, %cst_78 {dimension_numbers = #tpu.dot_dimension_numbers<[1], [0], [0], [1], [0, 0, 1, 1], [], []>, precision = #tpu.contract_precision<fp32>} : vector<8x128xf32>, vector<128x384xf32>, vector<8x384xf32> -> vector<8x384xf32>
    %279 = vector.extract_strided_slice %276 {offsets = [0, 0], sizes = [8, 128], strides = [1, 1]} : vector<8x384xf32> to vector<8x128xf32>
    %280 = vector.extract_strided_slice %278 {offsets = [0, 0], sizes = [8, 128], strides = [1, 1]} : vector<8x384xf32> to vector<8x128xf32>
    %281 = arith.addf %279, %280 : vector<8x128xf32>
    %282 = arith.negf %281 : vector<8x128xf32>
    %283 = math.exp %282 : vector<8x128xf32>
    %cst_79 = arith.constant 1.000000e+00 : f32
    %284 = vector.broadcast %cst_79 : f32 to vector<8x128xf32>
    %285 = arith.addf %284, %283 : vector<8x128xf32>
    %286 = arith.divf %284, %285 : vector<8x128xf32>
    %287 = vector.extract_strided_slice %276 {offsets = [0, 128], sizes = [8, 128], strides = [1, 1]} : vector<8x384xf32> to vector<8x128xf32>
    %288 = vector.extract_strided_slice %278 {offsets = [0, 128], sizes = [8, 128], strides = [1, 1]} : vector<8x384xf32> to vector<8x128xf32>
    %289 = arith.addf %287, %288 : vector<8x128xf32>
    %290 = arith.negf %289 : vector<8x128xf32>
    %291 = math.exp %290 : vector<8x128xf32>
    %cst_80 = arith.constant 1.000000e+00 : f32
    %292 = vector.broadcast %cst_80 : f32 to vector<8x128xf32>
    %293 = arith.addf %292, %291 : vector<8x128xf32>
    %294 = arith.divf %292, %293 : vector<8x128xf32>
    %295 = vector.extract_strided_slice %276 {offsets = [0, 256], sizes = [8, 128], strides = [1, 1]} : vector<8x384xf32> to vector<8x128xf32>
    %296 = vector.extract_strided_slice %278 {offsets = [0, 256], sizes = [8, 128], strides = [1, 1]} : vector<8x384xf32> to vector<8x128xf32>
    %297 = arith.addf %296, %5 : vector<8x128xf32>
    %298 = arith.mulf %286, %297 : vector<8x128xf32>
    %299 = arith.addf %295, %298 : vector<8x128xf32>
    %300 = math.tanh %299 : vector<8x128xf32>
    %cst_81 = arith.constant 1.000000e+00 : f32
    %301 = vector.broadcast %cst_81 : f32 to vector<8x128xf32>
    %302 = arith.subf %301, %294 : vector<8x128xf32>
    %303 = arith.mulf %302, %300 : vector<8x128xf32>
    %304 = arith.mulf %294, %267 : vector<8x128xf32>
    %305 = arith.addf %303, %304 : vector<8x128xf32>
    %306 = arith.truncf %305 : vector<8x128xf32> to vector<8x128xbf16>
    %307 = arith.index_cast %c7_i32 : i32 to index
    %c0_82 = arith.constant 0 : index
    %c0_83 = arith.constant 0 : index
    %308 = vector.load %arg6[%307, %c0_82, %c0_83] : memref<8x8x128xbf16, #tpu.memory_space<vmem>>, vector<1x8x128xbf16>
    %309 = vector.shape_cast %308 : vector<1x8x128xbf16> to vector<8x128xbf16>
    %310 = vector.shape_cast %306 : vector<8x128xbf16> to vector<1x8x128xbf16>
    tpu.vector_store %arg6[%307, %c0_82, %c0_83], %310 {strides = array<i32>} : memref<8x8x128xbf16, #tpu.memory_space<vmem>>, vector<1x8x128xbf16>,
    %c8_i32 = arith.constant 8 : i32
    %c0_84 = arith.constant 0 : index
    %c0_85 = arith.constant 0 : index
    %311 = vector.load %arg9[%c0_84, %c0_85] : memref<8x128xf32, #tpu.memory_space<vmem>>, vector<8x128xf32>
    tpu.vector_store %arg9[%c0_84, %c0_85], %305 {strides = array<i32>} : memref<8x128xf32, #tpu.memory_space<vmem>>, vector<8x128xf32>,
    %c0_i32_86 = arith.constant 0 : i32
    %312 = arith.cmpi eq, %arg0, %c0_i32_86 : i32
    %313 = arith.extui %312 : i1 to i32
    %c0_i32_87 = arith.constant 0 : i32
    %314 = arith.cmpi ne, %313, %c0_i32_87 : i32
    scf.if %314 {
      %c0_88 = arith.constant 0 : index
      %c0_89 = arith.constant 0 : index
      %315 = vector.load %arg5[%c0_88, %c0_89] : memref<128x5xf32, #tpu.memory_space<vmem>>, vector<128x5xf32>
      %cst_90 = arith.constant dense<0.000000e+00> : vector<8x5xf32>
      %316 = tpu.matmul %305, %315, %cst_90 {dimension_numbers = #tpu.dot_dimension_numbers<[1], [0], [0], [1], [0, 0, 1, 1], [], []>, precision = #tpu.contract_precision<fp32>} : vector<8x128xf32>, vector<128x5xf32>, vector<8x5xf32> -> vector<8x5xf32>
      %c0_91 = arith.constant 0 : index
      %c0_92 = arith.constant 0 : index
      %317 = vector.load %arg4[%c0_91, %c0_92] : memref<8x5xf32, #tpu.memory_space<vmem>>, vector<8x5xf32>
      %318 = arith.addf %316, %317 : vector<8x5xf32>
      %c0_93 = arith.constant 0 : index
      %c0_94 = arith.constant 0 : index
      %319 = vector.load %arg8[%c0_93, %c0_94] : memref<8x5xf32, #tpu.memory_space<vmem>>, vector<8x5xf32>
      tpu.vector_store %arg8[%c0_93, %c0_94], %318 {strides = array<i32>} : memref<8x5xf32, #tpu.memory_space<vmem>>, vector<8x5xf32>,
      %cst_95 = arith.constant dense<0xFF800000> : vector<8xf32>
      %320 = vector.multi_reduction <maximumf>, %318, %cst_95 [1] : vector<8x5xf32> to vector<8xf32>
      %321 = vector.shape_cast %320 : vector<8xf32> to vector<8x1xf32>
      %322 = vector.broadcast %321 : vector<8x1xf32> to vector<8x5xf32>
      %323 = arith.subf %318, %322 : vector<8x5xf32>
      %324 = math.exp %323 : vector<8x5xf32>
      %cst_96 = arith.constant dense<0.000000e+00> : vector<8xf32>
      %325 = vector.multi_reduction <add>, %324, %cst_96 [1] : vector<8x5xf32> to vector<8xf32>
      %326 = vector.shape_cast %325 : vector<8xf32> to vector<8x1xf32>
      %327 = vector.broadcast %326 : vector<8x1xf32> to vector<8x5xf32>
      %328 = arith.divf %324, %327 : vector<8x5xf32>
      %c0_97 = arith.constant 0 : index
      %c0_98 = arith.constant 0 : index
      %329 = vector.load %arg7[%c0_97, %c0_98] : memref<8x5xf32, #tpu.memory_space<vmem>>, vector<8x5xf32>
      tpu.vector_store %arg7[%c0_97, %c0_98], %328 {strides = array<i32>} : memref<8x5xf32, #tpu.memory_space<vmem>>, vector<8x5xf32>,
    } else {
    }
    return
  }
  func.func @transform_0(%arg0: i32) -> (i32, i32, i32) {
    %c0_i32 = arith.constant 0 : i32
    %c0_i32_0 = arith.constant 0 : i32
    %c0_i32_1 = arith.constant 0 : i32
    return %arg0, %c0_i32, %c0_i32_0 : i32, i32, i32
  }
  func.func @transform_1(%arg0: i32) -> (i32, i32) {
    %c0_i32 = arith.constant 0 : i32
    %c0_i32_0 = arith.constant 0 : i32
    %c0_i32_1 = arith.constant 0 : i32
    return %c0_i32, %c0_i32_0 : i32, i32
  }
  func.func @transform_2(%arg0: i32) -> (i32, i32) {
    %c0_i32 = arith.constant 0 : i32
    %c0_i32_0 = arith.constant 0 : i32
    %c0_i32_1 = arith.constant 0 : i32
    return %c0_i32, %c0_i32_0 : i32, i32
  }
  func.func @transform_3(%arg0: i32) -> (i32, i32) {
    %c0_i32 = arith.constant 0 : i32
    %c0_i32_0 = arith.constant 0 : i32
    %c0_i32_1 = arith.constant 0 : i32
    return %c0_i32, %c0_i32_0 : i32, i32
  }
  func.func @transform_4(%arg0: i32) -> (i32, i32) {
    %c0_i32 = arith.constant 0 : i32
    %c0_i32_0 = arith.constant 0 : i32
    %c0_i32_1 = arith.constant 0 : i32
    return %c0_i32, %c0_i32_0 : i32, i32
  }
  func.func @transform_5(%arg0: i32) -> (i32, i32, i32) {
    %c0_i32 = arith.constant 0 : i32
    %c0_i32_0 = arith.constant 0 : i32
    %c0_i32_1 = arith.constant 0 : i32
    return %arg0, %c0_i32, %c0_i32_0 : i32, i32, i32
  }
  func.func @transform_6(%arg0: i32) -> (i32, i32) {
    %c0_i32 = arith.constant 0 : i32
    %c0_i32_0 = arith.constant 0 : i32
    %c0_i32_1 = arith.constant 0 : i32
    return %c0_i32, %c0_i32_0 : i32, i32
  }
  func.func @transform_7(%arg0: i32) -> (i32, i32) {
    %c0_i32 = arith.constant 0 : i32
    %c0_i32_0 = arith.constant 0 : i32
    %c0_i32_1 = arith.constant 0 : i32
    return %c0_i32, %c0_i32_0 : i32, i32
  }
}

</mosaic_0001>

<bundles_post_ra>
// kernel: rnn_model_forward.1
= control target key start
LH: loop header
LB: loop body
LE: loop exit
PB: predicated region body
PF: predicated region fallthrough
CT: control target
= control target key end

     0   :  { %v28710_v3 = vmov 0.0   ;;  %vm19186_vm0 = vmmov 0   ;;  %vm13296_vm1 = vcmask 39936   ;;  %s28702_s1 = inlined_call_operand.vmem [shape: f32[128,384], index: 1, kind: input, shape index: {}]   ;;  %s28703_s0 = inlined_call_operand.vmem [shape: bf16[8,8,384], index: 0, kind: input, shape index: {}]   ;;  %s28704_s2 = inlined_call_operand.vmem [shape: f32[1,128], index: 2, kind: input, shape index: {}]   ;;  %s28705_s5 = inlined_call_operand.vmem [shape: bf16[8,8,128], index: 5, kind: output, shape index: {0}]   ;;  %s28706_s4 = inlined_call_operand.vmem [shape: f32[128,5], index: 4, kind: input, shape index: {}]   ;;  %s28707_s3 = inlined_call_operand.vmem [shape: f32[8,5], index: 3, kind: input, shape index: {}]   ;;  %s28708_s7 = inlined_call_operand.vmem [shape: f32[8,5], index: 7, kind: output, shape index: {2}]   ;;  %s28709_s6 = inlined_call_operand.vmem [shape: f32[8,5], index: 6, kind: output, shape index: {1}]  }
   0x1   :  { %v42_v0 = vld [vmem:[%s28702_s1 + $0x8] sm:$0xff]  ;;  %v45_v1 = vld [vmem:[%s28702_s1 + $0x20] sm:$0xff]  ;;  %185 = vmatprep.mubr.f32.mxu1 %v28710_v3  ;;  %662 = vmatprep.mubr.f32.mxu0 %v28710_v3  ;;  %v44_v6 = vld [vmem:[%s28702_s1 + $0x18] sm:$0xff] }
   0x2   :  { %v41_v2 = vld [vmem:[%s28702_s1] sm:$0xff]  ;;  %v89_v4 = vand.u32 4294901760, %v42_v0  ;;  %v93_v5 = vand.u32 4294901760, %v45_v1  ;;  %v48_v8 = vld [vmem:[%s28702_s1 + $0x38] sm:$0xff]  ;;  %v51_v9 = vld [vmem:[%s28702_s1 + $0x50] sm:$0xff]  ;;  %v95_v10 = vand.u32 4294901760, %v44_v6 }
   0x3   :  { %v91_v7 = vand.u32 4294901760, %v41_v2  ;;  %v97_v11 = vand.u32 4294901760, %v48_v8  ;;  %v101_v12 = vand.u32 4294901760, %v51_v9  ;;  %v47_v13 = vld [vmem:[%s28702_s1 + $0x30] sm:$0xff]  ;;  %v50_v14 = vld [vmem:[%s28702_s1 + $0x48] sm:$0xff]  ;;  %v57_v17 = vld [vmem:[%s28702_s1 + $0x80] sm:$0xff] }
   0x4   :  { %v54_v15 = vld [vmem:[%s28702_s1 + $0x68] sm:$0xff]  ;;  %v19256_v16 = vpack.c.bf16 %v93_v5, %v89_v4  ;;  %v53_v18 = vld [vmem:[%s28702_s1 + $0x60] sm:$0xff]  ;;  %v56_v19 = vld [vmem:[%s28702_s1 + $0x78] sm:$0xff]  ;;  %v99_v24 = vand.u32 4294901760, %v47_v13  ;;  %v103_v25 = vand.u32 4294901760, %v50_v14  ;;  %v109_v27 = vand.u32 4294901760, %v57_v17 }
   0x5   :  { %v19267_v20 = vpack.c.bf16 %v95_v10, %v91_v7  ;;  %v19269_v21 = vpack.c.bf16 %v101_v12, %v97_v11  ;;  %v60_v22 = vld [vmem:[%s28702_s1 + $0x98] sm:$0xff]  ;;  %v63_v23 = vld [vmem:[%s28702_s1 + $0xb0] sm:$0xff]  ;;  %v105_v26 = vand.u32 4294901760, %v54_v15  ;;  %v107_v28 = vand.u32 4294901760, %v53_v18  ;;  %v62_v34 = vld [vmem:[%s28702_s1 + $0xa8] sm:$0xff] }
   0x6   :  { %16169 = vmatprep.subr.bf16.mxu1 %v19256_v16  ;;  %16265 = vmatprep.subr.bf16.mxu0 %v19256_v16  ;;  %v111_v29 = vand.u32 4294901760, %v56_v19  ;;  %v19283_v30 = vpack.c.bf16 %v103_v25, %v99_v24  ;;  %v113_v31 = vand.u32 4294901760, %v60_v22  ;;  %v117_v32 = vand.u32 4294901760, %v63_v23  ;;  %v59_v33 = vld [vmem:[%s28702_s1 + $0x90] sm:$0xff]  ;;  %v66_v38 = vld [vmem:[%s28702_s1 + $0xc8] sm:$0xff]  ;;  %v69_v39 = vld [vmem:[%s28702_s1 + $0xe0] sm:$0xff] }
   0x7   :  { %29846 = vst [vmem:[#allocation3_spill] sm:$0xff] %v19267_v20  ;;  %29847 = vst [vmem:[#allocation4_spill] sm:$0xff] %v19269_v21  ;;  %16171 = vmatpush1.bf16.msra.mxu1 %v19267_v20  ;;  %16267 = vmatpush1.bf16.msra.mxu0 %v19267_v20  ;;  %v19291_v35 = vsub.f32 %v42_v0, %v89_v4  ;;  %v19293_v36 = vsub.f32 %v45_v1, %v93_v5  ;;  %v115_v46 = vand.u32 4294901760, %v59_v33  ;;  %v65_v48 = vld [vmem:[%s28702_s1 + $0xc0] sm:$0xff]  ;;  %v68_v49 = vld [vmem:[%s28702_s1 + $0xd8] sm:$0xff] }
   0x8   :  { %16173 = vmatprep.subr.bf16.mxu1 %v19269_v21  ;;  %16269 = vmatprep.subr.bf16.mxu0 %v19269_v21  ;;  %29848 = vst [vmem:[#allocation5_spill] sm:$0xff] %v19283_v30  ;;  %v19295_v37 = vpack.c.bf16 %v109_v27, %v105_v26  ;;  %v19303_v40 = vsub.f32 %v41_v2, %v91_v7  ;;  %v119_v47 = vand.u32 4294901760, %v62_v34  ;;  %v121_v52 = vand.u32 4294901760, %v66_v38  ;;  %v72_v54 = vld [vmem:[%s28702_s1 + $0xf8] sm:$0xff]  ;;  %v75_v55 = vld [vmem:[%s28702_s1 + $0x110] sm:$0xff]  ;;  %v74_v61 = vld [vmem:[%s28702_s1 + $0x108] sm:$0xff] }
   0x9   :  { %v19305_v41 = vsub.f32 %v44_v6, %v95_v10  ;;  %v19307_v42 = vsub.f32 %v48_v8, %v97_v11  ;;  %v19309_v43 = vsub.f32 %v51_v9, %v101_v12  ;;  %v19312_v44 = vsub.f32 %v47_v13, %v99_v24  ;;  %v71_v60 = vld [vmem:[%s28702_s1 + $0xf0] sm:$0xff]  ;;  %v78_v2 = vld [vmem:[%s28702_s1 + $0x128] sm:$0xff]  ;;  %v81_v4 = vld [vmem:[%s28702_s1 + $0x140] sm:$0xff] }
   0xa   :  { %29849 = vst [vmem:[#allocation6_spill] sm:$0xff] %v19295_v37  ;;  %v19315_v45 = vpack.c.bf16 %v111_v29, %v107_v28  ;;  %v19323_v50 = vsub.f32 %v50_v14, %v103_v25  ;;  %v19327_v51 = vpack.c.bf16 %v117_v32, %v113_v31  ;;  %v125_v53 = vand.u32 4294901760, %v69_v39  ;;  %v77_v13 = vld [vmem:[%s28702_s1 + $0x120] sm:$0xff]  ;;  %v80_v14 = vld [vmem:[%s28702_s1 + $0x138] sm:$0xff] }
   0xb   :  { %29850 = vst [vmem:[#allocation7_spill] sm:$0xff] %v19309_v43  ;;  %16175 = vmatpush1.bf16.msra.mxu1 %v19283_v30  ;;  %29851 = vst [vmem:[#allocation8_spill] sm:$0xff] %v19312_v44  ;;  %16271 = vmatpush1.bf16.msra.mxu0 %v19283_v30  ;;  %v19335_v56 = vsub.f32 %v54_v15, %v105_v26  ;;  %v19337_v57 = vsub.f32 %v57_v17, %v109_v27  ;;  %v123_v0 = vand.u32 4294901760, %v65_v48 }
   0xc   :  { %29852 = vst [vmem:[#allocation9_spill] sm:$0xff] %v19315_v45  ;;  %29853 = vst [vmem:[#allocation10_spill] sm:$0xff] %v19323_v50  ;;  %16177 = vmatprep.subr.bf16.mxu1 %v19295_v37  ;;  %16273 = vmatprep.subr.bf16.mxu0 %v19295_v37  ;;  %v19339_v58 = vsub.f32 %v53_v18, %v107_v28  ;;  %v19341_v59 = vsub.f32 %v56_v19, %v111_v29  ;;  %v127_v1 = vand.u32 4294901760, %v68_v49 }
   0xd   :  { %29854 = vst [vmem:[#allocation11_spill] sm:$0xff] %v19327_v51  ;;  %29855 = vst [vmem:[#allocation12_spill] sm:$0xff] %v19335_v56  ;;  %v19349_v62 = vsub.f32 %v60_v22, %v113_v31  ;;  %v19351_v63 = vsub.f32 %v63_v23, %v117_v32  ;;  %v19361_v5 = vpack.c.bf16 %v119_v47, %v115_v46  ;;  %v129_v7 = vand.u32 4294901760, %v72_v54  ;;  %v84_v31 = vld [vmem:[%s28702_s1 + $0x158] sm:$0xff]  ;;  %v87_v32 = vld [vmem:[%s28702_s1 + $0x170] sm:$0xff] }
   0xe   :  { %29856 = vst [vmem:[#allocation13_spill] sm:$0xff] %v19337_v57  ;;  %v19363_v6 = vsub.f32 %v59_v33, %v115_v46  ;;  %v133_v8 = vand.u32 4294901760, %v75_v55  ;;  %v19367_v9 = vsub.f32 %v62_v34, %v119_v47  ;;  %v19369_v10 = vpack.c.bf16 %v125_v53, %v121_v52  ;;  %v86_v46 = vld [vmem:[%s28702_s1 + $0x168] sm:$0xff] }
   0xf   :  { %16179 = vmatpush1.bf16.msra.mxu1 %v19315_v45  ;;  %16275 = vmatpush1.bf16.msra.mxu0 %v19315_v45  ;;  %29857 = vst [vmem:[#allocation14_spill] sm:$0xff] %v19361_v5  ;;  %v131_v11 = vand.u32 4294901760, %v71_v60  ;;  %v135_v12 = vand.u32 4294901760, %v74_v61  ;;  %v19377_v15 = vsub.f32 %v66_v38, %v121_v52  ;;  %v19379_v17 = vsub.f32 %v69_v39, %v125_v53  ;;  %v83_v39 = vld [vmem:[%s28702_s1 + $0x150] sm:$0xff] }
  0x10   :  { %16181 = vmatprep.subr.bf16.mxu1 %v19327_v51  ;;  %16277 = vmatprep.subr.bf16.mxu0 %v19327_v51  ;;  %29858 = vst [vmem:[#allocation15_spill] sm:$0xff] %v19369_v10  ;;  %v137_v18 = vand.u32 4294901760, %v78_v2  ;;  %v141_v19 = vand.u32 4294901760, %v81_v4  ;;  %v19381_v22 = vpack.c.bf16 %v127_v1, %v123_v0  ;;  %v19383_v23 = vsub.f32 %v65_v48, %v123_v0 }
  0x11   :  { %v19385_v24 = vsub.f32 %v68_v49, %v127_v1  ;;  %v19387_v25 = vsub.f32 %v72_v54, %v129_v7  ;;  %v19391_v26 = vpack.c.bf16 %v133_v8, %v129_v7  ;;  %v19393_v27 = vsub.f32 %v75_v55, %v133_v8 }
  0x12   :  { %29859 = vst [vmem:[#allocation16_spill] sm:$0xff] %v19381_v22  ;;  %v139_v28 = vand.u32 4294901760, %v77_v13  ;;  %v143_v29 = vand.u32 4294901760, %v80_v14  ;;  %v19403_v33 = vpack.c.bf16 %v135_v12, %v131_v11  ;;  %v19405_v34 = vsub.f32 %v71_v60, %v131_v11 }
  0x13   :  { %29860 = vst [vmem:[#allocation17_spill] sm:$0xff] %v19385_v24  ;;  %29861 = vst [vmem:[#allocation18_spill] sm:$0xff] %v19387_v25  ;;  %16183 = vmatpush1.bf16.msra.mxu1 %v19361_v5  ;;  %16279 = vmatpush1.bf16.msra.mxu0 %v19361_v5  ;;  %v19407_v38 = vsub.f32 %v74_v61, %v135_v12  ;;  %v19415_v47 = vpack.c.bf16 %v141_v19, %v137_v18  ;;  %v199_v48 = vand.u32 4294901760, %v19291_v35 }
  0x14   :  { %29862 = vst [vmem:[#allocation19_spill] sm:$0xff] %v19391_v26  ;;  %29863 = vst [vmem:[#allocation20_spill] sm:$0xff] %v19393_v27  ;;  %16185 = vmatprep.subr.bf16.mxu1 %v19369_v10  ;;  %16281 = vmatprep.subr.bf16.mxu0 %v19369_v10  ;;  %v211_v49 = vand.u32 4294901760, %v19293_v36  ;;  %v205_v52 = vand.u32 4294901760, %v19303_v40  ;;  %v19420_v53 = vsub.f32 %v78_v2, %v137_v18  ;;  %v145_v55 = vand.u32 4294901760, %v84_v31 }
  0x15   :  { %29864 = vst [vmem:[#allocation21_spill] sm:$0xff] %v19403_v33  ;;  %29865 = vst [vmem:[#allocation22_spill] sm:$0xff] %v19415_v47  ;;  %v19422_v54 = vsub.f32 %v81_v4, %v141_v19  ;;  %v149_v60 = vand.u32 4294901760, %v87_v32  ;;  %v19426_v61 = vpack.c.bf16 %v143_v29, %v139_v28  ;;  %v147_v0 = vand.u32 4294901760, %v83_v39 }
  0x16   :  { %v151_v1 = vand.u32 4294901760, %v86_v46  ;;  %v217_v7 = vand.u32 4294901760, %v19305_v41  ;;  %v200_v2 = vsub.f32 %v19291_v35, %v199_v48  ;;  %v212_v4 = vsub.f32 %v19293_v36, %v211_v49 }
  0x17   :  { %16187 = vmatpush1.bf16.msra.mxu1 %v19381_v22  ;;  %16283 = vmatpush1.bf16.msra.mxu0 %v19381_v22  ;;  %29866 = vst [vmem:[#allocation23_spill] sm:$0xff] %v19426_v61  ;;  %v223_v8 = vand.u32 4294901760, %v19307_v42  ;;  %v235_v11 = vand.u32 4294901760, %v19309_v43  ;;  %v19435_v12 = vsub.f32 %v77_v13, %v139_v28  ;;  %v19437_v18 = vsub.f32 %v80_v14, %v143_v29 }
  0x18   :  { %16189 = vmatprep.subr.bf16.mxu1 %v19391_v26  ;;  %16285 = vmatprep.subr.bf16.mxu0 %v19391_v26  ;;  %v206_v19 = vsub.f32 %v19303_v40, %v205_v52  ;;  %v218_v3 = vsub.f32 %v19305_v41, %v217_v7  ;;  %v19441_v22 = vpack.c.bf16 %v149_v60, %v145_v55  ;;  %v229_v28 = vand.u32 4294901760, %v19312_v44 }
  0x19   :  { %v19443_v10 = vsub.f32 %v84_v31, %v145_v55  ;;  %v224_v26 = vsub.f32 %v19307_v42, %v223_v8  ;;  %v236_v5 = vsub.f32 %v19309_v43, %v235_v11  ;;  %v19449_v13 = vsub.f32 %v87_v32, %v149_v60 }
  0x1a   :  { %29867 = vst [vmem:[#allocation24_spill] sm:$0xff] %v19441_v22  ;;  %v19451_v14 = vpack.c.bf16 %v151_v1, %v147_v0  ;;  %v241_v29 = vand.u32 4294901760, %v19323_v50  ;;  %v201_v31 = vand.u32 4294901760, %v200_v2  ;;  %v213_v55 = vand.u32 4294901760, %v212_v4 }
  0x1b   :  { %16191 = vmatpush1.bf16.msra.mxu1 %v19403_v33  ;;  %16287 = vmatpush1.bf16.msra.mxu0 %v19403_v33  ;;  %v247_v51 = vand.u32 4294901760, %v19335_v56  ;;  %v259_v45 = vand.u32 4294901760, %v19337_v57  ;;  %v19459_v37 = vsub.f32 %v83_v39, %v147_v0  ;;  %v19461_v32 = vsub.f32 %v86_v46, %v151_v1 }
  0x1c   :  { %29868 = vst [vmem:[#allocation25_spill] sm:$0xff] %v19451_v14  ;;  %16193 = vmatprep.subr.bf16.mxu1 %v19415_v47  ;;  %16289 = vmatprep.subr.bf16.mxu0 %v19415_v47  ;;  %v207_v60 = vand.u32 4294901760, %v206_v19  ;;  %v219_v33 = vand.u32 4294901760, %v218_v3  ;;  %v225_v30 = vand.u32 4294901760, %v224_v26  ;;  %v237_v21 = vand.u32 4294901760, %v236_v5 }
  0x1d   :  { %v230_v20 = vsub.f32 %v19312_v44, %v229_v28  ;;  %v242_v43 = vsub.f32 %v19323_v50, %v241_v29  ;;  %v248_v2 = vsub.f32 %v19335_v56, %v247_v51  ;;  %v260_v4 = vsub.f32 %v19337_v57, %v259_v45 }
  0x1e   :  { %v253_v39 = vand.u32 4294901760, %v19339_v58  ;;  %v265_v46 = vand.u32 4294901760, %v19341_v59  ;;  %v16200_v3 = vpack.c.bf16 %v213_v55, %v201_v31  ;;  %v16296_v5 = vpack.c.bf16 %v211_v49, %v199_v48 }
  0x1f   :  { %16195 = vmatpush1.bf16.msra.mxu1 %v19426_v61  ;;  %16291 = vmatpush1.bf16.msra.mxu0 %v19426_v61  ;;  %v28730_v26 = vand.u32 4294901760, %v19349_v62  ;;  %v283_v0 = vand.u32 4294901760, %v19351_v63  ;;  %v16298_v1 = vpack.c.bf16 %v217_v7, %v205_v52  ;;  %v16300_v19 = vpack.c.bf16 %v235_v11, %v223_v8 }
  0x20   :  { %16197 = vmatprep.subr.bf16.mxu1 %v19441_v22  ;;  %16293 = vmatprep.subr.bf16.mxu0 %v19441_v22  ;;  %v254_v61 = vsub.f32 %v19339_v58, %v253_v39  ;;  %v266_v47 = vsub.f32 %v19341_v59, %v265_v46  ;;  %v16202_v57 = vpack.c.bf16 %v219_v33, %v207_v60  ;;  %v231_v50 = vand.u32 4294901760, %v230_v20 }
  0x21   :  { %v16204_v56 = vpack.c.bf16 %v237_v21, %v225_v30  ;;  %v243_v44 = vand.u32 4294901760, %v242_v43  ;;  %v249_v31 = vand.u32 4294901760, %v248_v2  ;;  %v261_v48 = vand.u32 4294901760, %v260_v4 }
  0x22   :  { %v277_v49 = vand.u32 4294901760, %v19363_v6  ;;  %v289_v55 = vand.u32 4294901760, %v19367_v9  ;;  %v272_v52 = vsub.f32 %v19349_v62, %v28730_v26  ;;  %v284_v21 = vsub.f32 %v19351_v63, %v283_v0 }
  0x23   :  { %16199 = vmatpush1.bf16.msra.mxu1 %v19451_v14  ;;  %16295 = vmatpush1.bf16.msra.mxu0 %v19451_v14  ;;  %v295_v20 = vand.u32 4294901760, %v19377_v15  ;;  %v307_v30 = vand.u32 4294901760, %v19379_v17  ;;  %v16302_v43 = vpack.c.bf16 %v241_v29, %v229_v28  ;;  %v16304_v33 = vpack.c.bf16 %v259_v45, %v247_v51 }
  0x24   :  { %16201 = vmatprep.subr.bf16.mxu1 %v16200_v3  ;;  %16297 = vmatprep.subr.bf16.mxu0 %v16296_v5  ;;  %v255_v7 = vand.u32 4294901760, %v254_v61  ;;  %v267_v8 = vand.u32 4294901760, %v266_v47  ;;  %v29869_v11 = vmov 0.0   ;;  %v16206_v60 = vpack.c.bf16 %v243_v44, %v231_v50 }
  0x25   :  { %v278_v2 = vsub.f32 %v19363_v6, %v277_v49  ;;  %v290_v4 = vsub.f32 %v19367_v9, %v289_v55  ;;  %v301_v3 = vand.u32 4294901760, %v19383_v23  ;;  %v16306_v5 = vpack.c.bf16 %v265_v46, %v253_v39 }
  0x26   :  { %191 = vmatmul.mubr.f32.vlgmr.msra.gmra.mrb[0].mxu1 %v29869_v11  ;;  %666 = vmatmul.mubr.f32.vlgmr.msra.gmra.mrb[0].mxu0 %v29869_v11  ;;  %v296_v26 = vsub.f32 %v19377_v15, %v295_v20  ;;  %v308_v45 = vsub.f32 %v19379_v17, %v307_v30  ;;  %v313_v51 = vand.u32 4294901760, %v19385_v24  ;;  %v16208_v47 = vpack.c.bf16 %v261_v48, %v249_v31 }
  0x27   :  { %16203 = vmatpush1.bf16.msra.mxu1 %v16202_v57  ;;  %16299 = vmatpush1.bf16.msra.mxu0 %v16298_v1  ;;  %v273_v61 = vand.u32 4294901760, %v272_v52  ;;  %v285_v44 = vand.u32 4294901760, %v284_v21  ;;  %v319_v50 = vand.u32 4294901760, %v19387_v25  ;;  %v16210_v28 = vpack.c.bf16 %v267_v8, %v255_v7 }
  0x28   :  { %16205 = vmatprep.subr.bf16.mxu1 %v16204_v56  ;;  %16301 = vmatprep.subr.bf16.mxu0 %v16300_v19  ;;  %v302_v29 = vsub.f32 %v19383_v23, %v301_v3  ;;  %v314_v57 = vsub.f32 %v19385_v24, %v313_v51  ;;  %v331_v39 = vand.u32 4294901760, %v19393_v27  ;;  %v279_v46 = vand.u32 4294901760, %v278_v2 }
  0x29   :  { %421 = vmatprep.mubr.f32.mxu1 %v29869_v11  ;;  %832 = vmatprep.mubr.f32.mxu0 %v29869_v11  ;;  %v291_v1 = vand.u32 4294901760, %v290_v4  ;;  %v320_v56 = vsub.f32 %v19387_v25, %v319_v50  ;;  %v325_v19 = vand.u32 4294901760, %v19405_v34  ;;  %v297_v31 = vand.u32 4294901760, %v296_v26 }
  0x2a   :  { %v309_v48 = vand.u32 4294901760, %v308_v45  ;;  %v332_v52 = vsub.f32 %v19393_v27, %v331_v39  ;;  %v337_v21 = vand.u32 4294901760, %v19407_v38  ;;  %v16212_v7 = vpack.c.bf16 %v285_v44, %v273_v61 }
  0x2b   :  { %16207 = vmatpush1.bf16.msra.mxu1 %v16206_v60  ;;  %16303 = vmatpush1.bf16.msra.mxu0 %v16302_v43  ;;  %v29870_v8 = vand.u32 4294901760, %v19349_v62  ;;  %v343_v2 = vand.u32 4294901760, %v19420_v53  ;;  %v355_v4 = vand.u32 4294901760, %v19422_v54  ;;  %v16310_v22 = vpack.c.bf16 %v289_v55, %v277_v49 }
  0x2c   :  { %16209 = vmatprep.subr.bf16.mxu1 %v16208_v47  ;;  %16305 = vmatprep.subr.bf16.mxu0 %v16304_v33  ;;  %v16312_v25 = vpack.c.bf16 %v307_v30, %v295_v20  ;;  %v303_v60 = vand.u32 4294901760, %v302_v29  ;;  %v315_v43 = vand.u32 4294901760, %v314_v57  ;;  %v321_v26 = vand.u32 4294901760, %v320_v56 }
  0x2d   :  { %v16308_v14 = vpack.c.bf16 %v283_v0, %v29870_v8  ;;  %v333_v45 = vand.u32 4294901760, %v332_v52  ;;  %v326_v27 = vsub.f32 %v19405_v34, %v325_v19  ;;  %v338_v24 = vsub.f32 %v19407_v38, %v337_v21 }
  0x2e   :  { %v16214_v33 = vpack.c.bf16 %v291_v1, %v279_v46  ;;  %v16216_v47 = vpack.c.bf16 %v309_v48, %v297_v31  ;;  %v349_v0 = vand.u32 4294901760, %v19435_v12  ;;  %v361_v61 = vand.u32 4294901760, %v19437_v18 }
  0x2f   :  { %16211 = vmatpush1.bf16.msra.mxu1 %v16210_v28  ;;  %16307 = vmatpush1.bf16.msra.mxu0 %v16306_v5  ;;  %v344_v49 = vsub.f32 %v19420_v53, %v343_v2  ;;  %v356_v55 = vsub.f32 %v19422_v54, %v355_v4  ;;  %v367_v20 = vand.u32 4294901760, %v19443_v10  ;;  %v379_v30 = vand.u32 4294901760, %v19449_v13 }
  0x30   :  { %16213 = vmatprep.subr.bf16.mxu1 %v16212_v7  ;;  %16309 = vmatprep.subr.bf16.mxu0 %v16308_v14  ;;  %v16314_v44 = vpack.c.bf16 %v313_v51, %v301_v3  ;;  %v16316_v29 = vpack.c.bf16 %v331_v39, %v319_v50  ;;  %v16218_v28 = vpack.c.bf16 %v315_v43, %v303_v60  ;;  %v327_v57 = vand.u32 4294901760, %v326_v27 }
  0x31   :  { %v16220_v5 = vpack.c.bf16 %v333_v45, %v321_v26  ;;  %v339_v46 = vand.u32 4294901760, %v338_v24  ;;  %v350_v1 = vsub.f32 %v19435_v12, %v349_v0  ;;  %v362_v14 = vsub.f32 %v19437_v18, %v361_v61 }
  0x32   :  { %v373_v56 = vand.u32 4294901760, %v19459_v37  ;;  %v385_v31 = vand.u32 4294901760, %v19461_v32  ;;  %v345_v48 = vand.u32 4294901760, %v344_v49  ;;  %v357_v52 = vand.u32 4294901760, %v356_v55 }
  0x33   :  { %16215 = vmatpush1.bf16.msra.mxu1 %v16214_v33  ;;  %16311 = vmatpush1.bf16.msra.mxu0 %v16310_v22  ;;  %v368_v3 = vsub.f32 %v19443_v10, %v367_v20  ;;  %v380_v51 = vsub.f32 %v19449_v13, %v379_v30  ;;  %v16222_v27 = vpack.c.bf16 %v339_v46, %v327_v57  ;;  %v351_v22 = vand.u32 4294901760, %v350_v1  ;;  %v29880_v57 = vld [vmem:[#allocation9_spill] sm:$0xff]  ;;  %v29881_v1 = vld [vmem:[#allocation11_spill] sm:$0xff] }
  0x34   :  { %16217 = vmatprep.subr.bf16.mxu1 %v16216_v47  ;;  %16313 = vmatprep.subr.bf16.mxu0 %v16312_v25  ;;  %v16318_v24 = vpack.c.bf16 %v337_v21, %v325_v19  ;;  %v363_v50 = vand.u32 4294901760, %v362_v14  ;;  %v374_v39 = vsub.f32 %v19459_v37, %v373_v56  ;;  %v386_v7 = vsub.f32 %v19461_v32, %v385_v31 }
  0x35   :  { %v16224_v8 = vpack.c.bf16 %v357_v52, %v345_v48  ;;  %v16320_v25 = vpack.c.bf16 %v355_v4, %v343_v2  ;;  %v369_v60 = vand.u32 4294901760, %v368_v3  ;;  %v381_v43 = vand.u32 4294901760, %v380_v51  ;;  %v29890_v3 = vld [vmem:[#allocation22_spill] sm:$0xff] }
  0x36   :  { %v16226_v26 = vpack.c.bf16 %v363_v50, %v351_v22  ;;  %v16322_v45 = vpack.c.bf16 %v361_v61, %v349_v0  ;;  %v375_v33 = vand.u32 4294901760, %v374_v39  ;;  %v387_v19 = vand.u32 4294901760, %v386_v7  ;;  %v29871_v0 = vld [vmem:[#allocation7_spill] sm:$0xff]  ;;  %v55_v39 = vld [vmem:[%s28702_s1 + $0x70] sm:$0xff]  ;;  %v58_v7 = vld [vmem:[%s28702_s1 + $0x88] sm:$0xff] }
  0x37   :  { %16219 = vmatpush1.bf16.msra.mxu1 %v16218_v28  ;;  %16315 = vmatpush1.bf16.msra.mxu0 %v16314_v44  ;;  %v16228_v21 = vpack.c.bf16 %v381_v43, %v369_v60  ;;  %v16324_v47 = vpack.c.bf16 %v379_v30, %v367_v20  ;;  %v16326_v55 = vpack.c.bf16 %v385_v31, %v373_v56  ;;  %v29872_v20 = vld [vmem:[#allocation3_spill] sm:$0xff]  ;;  %v29873_v30 = vld [vmem:[#allocation8_spill] sm:$0xff]  ;;  %v29879_v28 = vld [vmem:[#allocation6_spill] sm:$0xff]  ;;  %v960_v60 = vand.u32 4294901760, %v58_v7 }
  0x38   :  { %16221 = vmatprep.subr.bf16.mxu1 %v16220_v5  ;;  %16317 = vmatprep.subr.bf16.mxu0 %v16316_v29  ;;  %v16230_v49 = vpack.c.bf16 %v387_v19, %v375_v33  ;;  %v16232_v2 = vpack.c.bf16 %v19293_v36, %v19291_v35  ;;  %v16234_v4 = vpack.c.bf16 %v19305_v41, %v19303_v40  ;;  %v29874_v35 = vld [vmem:[#allocation10_spill] sm:$0xff]  ;;  %v29875_v44 = vld [vmem:[#allocation4_spill] sm:$0xff]  ;;  %v29877_v41 = vld [vmem:[#allocation13_spill] sm:$0xff] }
  0x39   :  { %v16236_v61 = vpack.c.bf16 %v29871_v0, %v19307_v42  ;;  %v16238_v36 = vpack.c.bf16 %v29874_v35, %v29873_v30  ;;  %v29876_v40 = vld [vmem:[#allocation12_spill] sm:$0xff]  ;;  %v16242_v42 = vpack.c.bf16 %v19341_v59, %v19339_v58  ;;  %v16244_v5 = vpack.c.bf16 %v19351_v63, %v19349_v62  ;;  %v29882_v58 = vld [vmem:[#allocation14_spill] sm:$0xff]  ;;  %v29883_v59 = vld [vmem:[#allocation17_spill] sm:$0xff] }
  0x3a   :  { %v16240_v29 = vpack.c.bf16 %v29877_v41, %v29876_v40  ;;  %v16246_v46 = vpack.c.bf16 %v19367_v9, %v19363_v6  ;;  %v16248_v14 = vpack.c.bf16 %v19379_v17, %v19377_v15  ;;  %v16250_v56 = vpack.c.bf16 %v29883_v59, %v19383_v23  ;;  %v29884_v62 = vld [vmem:[#allocation15_spill] sm:$0xff]  ;;  %v29885_v63 = vld [vmem:[#allocation18_spill] sm:$0xff]  ;;  %v29886_v31 = vld [vmem:[#allocation20_spill] sm:$0xff] }
  0x3b   :  { %16223 = vmatpush1.bf16.msra.mxu1 %v16222_v27  ;;  %16319 = vmatpush1.bf16.msra.mxu0 %v16318_v24  ;;  %v16252_v48 = vpack.c.bf16 %v29886_v31, %v29885_v63  ;;  %v29887_v6 = vld [vmem:[#allocation16_spill] sm:$0xff]  ;;  %v16254_v9 = vpack.c.bf16 %v19407_v38, %v19405_v34  ;;  %v29888_v15 = vld [vmem:[#allocation19_spill] sm:$0xff]  ;;  %v16256_v17 = vpack.c.bf16 %v19422_v54, %v19420_v53  ;;  %v29889_v23 = vld [vmem:[#allocation21_spill] sm:$0xff] }
  0x3c   :  { %16225 = vmatprep.subr.bf16.mxu1 %v16224_v8  ;;  %16321 = vmatprep.subr.bf16.mxu0 %v16320_v25  ;;  %v16258_v52 = vpack.c.bf16 %v19437_v18, %v19435_v12  ;;  %v16260_v51 = vpack.c.bf16 %v19449_v13, %v19443_v10  ;;  %v43_v34 = vld [vmem:[%s28702_s1 + $0x10] sm:$0xff]  ;;  %v46_v38 = vld [vmem:[%s28702_s1 + $0x28] sm:$0xff]  ;;  %v29891_v53 = vld [vmem:[#allocation23_spill] sm:$0xff]  ;;  %v16262_v54 = vpack.c.bf16 %v19461_v32, %v19459_v37  ;;  %v28736_v32 = vmov 0.0|0.0  }
  0x3d   :  { %v945_v12 = vand.u32 4294901760, %v43_v34  ;;  %v948_v18 = vand.u32 4294901760, %v46_v38  ;;  %v29892_v27 = vld [vmem:[#allocation24_spill] sm:$0xff]  ;;  %v49_v10 = vld [vmem:[%s28702_s1 + $0x40] sm:$0xff]  ;;  %v52_v13 = vld [vmem:[%s28702_s1 + $0x58] sm:$0xff]  ;;  %v957_v25 = vand.u32 4294901760, %v55_v39 }
  0x3e   :  { %v29893_v24 = vld [vmem:[#allocation25_spill] sm:$0xff]  ;;  %v951_v50 = vand.u32 4294901760, %v49_v10  ;;  %v954_v37 = vand.u32 4294901760, %v52_v13  ;;  %v61_v43 = vld [vmem:[%s28702_s1 + $0xa0] sm:$0xff]  ;;  %v82_v35 = vld [vmem:[%s28702_s1 + $0x148] sm:$0xff] }
  0x3f   :  { %16227 = vmatpush1.bf16.msra.mxu1 %v16226_v26  ;;  %16323 = vmatpush1.bf16.msra.mxu0 %v16322_v45  ;;  %v19589_v22 = vpack.c.bf16 %v948_v18, %v945_v12  ;;  %v64_v26 = vld [vmem:[%s28702_s1 + $0xb8] sm:$0xff]  ;;  %v19614_v45 = vpack.c.bf16 %v960_v60, %v957_v25  ;;  %v963_v33 = vand.u32 4294901760, %v61_v43  ;;  %v79_v30 = vld [vmem:[%s28702_s1 + $0x130] sm:$0xff]  ;;  %v19649_v40 = vsub.f32 %v43_v34, %v945_v12 }
  0x40   :  { %16229 = vmatprep.subr.bf16.mxu1 %v16228_v21  ;;  %16325 = vmatprep.subr.bf16.mxu0 %v16324_v47  ;;  %v19601_v8 = vpack.c.bf16 %v954_v37, %v951_v50  ;;  %v966_v19 = vand.u32 4294901760, %v64_v26  ;;  %v19620_v21 = vld [vmem:[%s28702_s1 + $0xd0] sm:$0xff]  ;;  %v19625_v47 = vld [vmem:[%s28702_s1 + $0xe8] sm:$0xff]  ;;  %v19651_v41 = vsub.f32 %v46_v38, %v948_v18  ;;  %v19671_v59 = vsub.f32 %v52_v13, %v954_v37 }
  0x41   :  { %29894 = vst [vmem:[#allocation7_spill] sm:$0xff] %v19589_v22  ;;  %29896 = vst [vmem:[#allocation8_spill] sm:$0xff] %v19614_v45  ;;  %v972_v0 = vand.u32 4294901760, %v19625_v47  ;;  %v19713_v18 = vsub.f32 %v61_v43, %v963_v33 }
  0x42   :  { %29895 = vst [vmem:[#allocation3_spill] sm:$0xff] %v19601_v8  ;;  %v1045_v63 = vand.u32 4294901760, %v19651_v41 }
  0x43   :  { %16231 = vmatpush1.bf16.msra.mxu1 %v16230_v49  ;;  %16327 = vmatpush1.bf16.msra.mxu0 %v16326_v55  ;;  %v73_v49 = vld [vmem:[%s28702_s1 + $0x100] sm:$0xff]  ;;  %v76_v55 = vld [vmem:[%s28702_s1 + $0x118] sm:$0xff] }
  0x44   :  { %16233 = vmatprep.subr.bf16.mxu1 %v16232_v2  ;;  %16329 = vmatprep.subr.bf16.mxu0 %v19256_v16  ;;  %v29878_v16 = vld [vmem:[#allocation5_spill] sm:$0xff]  ;;  %v19634_v2 = vpack.c.bf16 %v966_v19, %v963_v33  ;;  %v19737_v33 = vsub.f32 %v19625_v47, %v972_v0 }
  0x46   :  { %423 = vmatmul.mubr.f32.vlgmr.msra.gmra.mrb[0].mxu1 %v29869_v11  ;;  %834 = vmatmul.mubr.f32.vlgmr.msra.gmra.mrb[0].mxu0 %v29869_v11  ;;  %29897 = vst [vmem:[#allocation10_spill] sm:$0xff] %v19634_v2 }
  0x47   :  { %16235 = vmatpush1.bf16.msra.mxu1 %v16234_v4  ;;  %16331 = vmatpush1.bf16.msra.mxu0 %v29872_v20  ;;  %v969_v4 = vand.u32 4294901760, %v19620_v21  ;;  %v978_v20 = vand.u32 4294901760, %v76_v55 }
  0x48   :  { %16237 = vmatprep.subr.bf16.mxu1 %v16236_v61  ;;  %16333 = vmatprep.subr.bf16.mxu0 %v29875_v44  ;;  %v975_v61 = vand.u32 4294901760, %v73_v49 }
  0x49   :  { %557 = vmatprep.mubr.f32.mxu1 %v29869_v11  ;;  %936 = vmatprep.mubr.f32.mxu0 %v29869_v11  ;;  %v19647_v44 = vsub.f32 %v76_v55, %v978_v20 }
  0x4b   :  { %16239 = vmatpush1.bf16.msra.mxu1 %v16238_v36  ;;  %16335 = vmatpush1.bf16.msra.mxu0 %v29878_v16  ;;  %v19645_v36 = vsub.f32 %v73_v49, %v975_v61  ;;  %v981_v16 = vand.u32 4294901760, %v79_v30  ;;  %v1080_v49 = vand.u32 4294901760, %v19713_v18 }
  0x4c   :  { %16241 = vmatprep.subr.bf16.mxu1 %v16240_v29  ;;  %16337 = vmatprep.subr.bf16.mxu0 %v29879_v28  ;;  %v19654_v29 = vpack.c.bf16 %v972_v0, %v969_v4  ;;  %v19657_v28 = vsub.f32 %v49_v10, %v951_v50 }
  0x4e   :  { %29898 = vst [vmem:[#allocation4_spill] sm:$0xff] %v19654_v29 }
  0x4f   :  { %16243 = vmatpush1.bf16.msra.mxu1 %v16242_v42  ;;  %16339 = vmatpush1.bf16.msra.mxu0 %v29880_v57  ;;  %v984_v42 = vand.u32 4294901760, %v82_v35  ;;  %v88_v57 = vld [vmem:[%s28702_s1 + $0x178] sm:$0xff] }
  0x50   :  { %16245 = vmatprep.subr.bf16.mxu1 %v16244_v5  ;;  %16341 = vmatprep.subr.bf16.mxu0 %v29881_v1  ;;  %v85_v5 = vld [vmem:[%s28702_s1 + $0x160] sm:$0xff] }
  0x51   :  { %v19667_v1 = vsub.f32 %v82_v35, %v984_v42  ;;  %v987_v31 = vand.u32 4294901760, %v85_v5  ;;  %v19697_v34 = vpack.c.bf16 %v984_v42, %v981_v16 }
  0x53   :  { %16247 = vmatpush1.bf16.msra.mxu1 %v16246_v46  ;;  %16343 = vmatpush1.bf16.msra.mxu0 %v29882_v58  ;;  %v19665_v46 = vsub.f32 %v79_v30, %v981_v16  ;;  %v1115_v58 = vand.u32 4294901760, %v19647_v44  ;;  %29901 = vst [vmem:[#allocation5_spill] sm:$0xff] %v19697_v34 }
  0x54   :  { %16249 = vmatprep.subr.bf16.mxu1 %v16248_v14  ;;  %16345 = vmatprep.subr.bf16.mxu0 %v29884_v62  ;;  %v1108_v14 = vand.u32 4294901760, %v19645_v36  ;;  %v1038_v62 = vand.u32 4294901760, %v19649_v40 }
  0x56   :  { %v1039_v38 = vsub.f32 %v19649_v40, %v1038_v62 }
  0x57   :  { %16251 = vmatpush1.bf16.msra.mxu1 %v16250_v56  ;;  %16347 = vmatpush1.bf16.msra.mxu0 %v29887_v6  ;;  %v19674_v56 = vpack.c.bf16 %v978_v20, %v975_v61  ;;  %v19683_v6 = vpack.c.bf16 %v1115_v58, %v1108_v14 }
  0x58   :  { %16253 = vmatprep.subr.bf16.mxu1 %v16252_v48  ;;  %16349 = vmatprep.subr.bf16.mxu0 %v29888_v15  ;;  %v990_v48 = vand.u32 4294901760, %v88_v57  ;;  %v19687_v15 = vsub.f32 %v58_v7, %v960_v60 }
  0x59   :  { %29899 = vst [vmem:[#allocation12_spill] sm:$0xff] %v19674_v56  ;;  %29900 = vst [vmem:[#allocation13_spill] sm:$0xff] %v19683_v6 }
  0x5a   :  { %v19717_v10 = vpack.c.bf16 %v990_v48, %v987_v31  ;;  %v1073_v60 = vand.u32 4294901760, %v19687_v15 }
  0x5b   :  { %16255 = vmatpush1.bf16.msra.mxu1 %v16254_v9  ;;  %16351 = vmatpush1.bf16.msra.mxu0 %v29889_v23  ;;  %v19685_v9 = vsub.f32 %v55_v39, %v957_v25  ;;  %v19690_v23 = vsub.f32 %v85_v5, %v987_v31  ;;  %v1040_v39 = vand.u32 4294901760, %v1039_v38  ;;  %v1101_v5 = vand.u32 4294901760, %v19737_v33 }
  0x5c   :  { %16257 = vmatprep.subr.bf16.mxu1 %v16256_v17  ;;  %16353 = vmatprep.subr.bf16.mxu0 %v29890_v3  ;;  %v1052_v17 = vand.u32 4294901760, %v19657_v28  ;;  %v1122_v3 = vand.u32 4294901760, %v19665_v46  ;;  %29903 = vst [vmem:[#allocation9_spill] sm:$0xff] %v19717_v10 }
  0x5d   :  { %v1136_v50 = vand.u32 4294901760, %v19690_v23 }
  0x5e   :  { %v1053_v13 = vsub.f32 %v19657_v28, %v1052_v17 }
  0x5f   :  { %16259 = vmatpush1.bf16.msra.mxu1 %v16258_v52  ;;  %16355 = vmatpush1.bf16.msra.mxu0 %v29891_v53  ;;  %v19692_v52 = vsub.f32 %v88_v57, %v990_v48  ;;  %v1046_v53 = vsub.f32 %v19651_v41, %v1045_v63 }
  0x60   :  { %16261 = vmatprep.subr.bf16.mxu1 %v16260_v51  ;;  %16357 = vmatprep.subr.bf16.mxu0 %v29892_v27  ;;  %v1129_v51 = vand.u32 4294901760, %v19667_v1  ;;  %v19715_v27 = vsub.f32 %v64_v26, %v966_v19  ;;  %v19734_v26 = vsub.f32 %v19620_v21, %v969_v4  ;;  %v1054_v20 = vand.u32 4294901760, %v1053_v13 }
  0x61   :  { %v1143_v37 = vand.u32 4294901760, %v19692_v52  ;;  %v1047_v7 = vand.u32 4294901760, %v1046_v53  ;;  %v1074_v21 = vsub.f32 %v19687_v15, %v1073_v60  ;;  %v1081_v4 = vsub.f32 %v19713_v18, %v1080_v49 }
  0x62   :  { %v19711_v12 = vpack.c.bf16 %v1129_v51, %v1122_v3  ;;  %v1087_v55 = vand.u32 4294901760, %v19715_v27  ;;  %v1094_v42 = vand.u32 4294901760, %v19734_v26  ;;  %v1102_v53 = vsub.f32 %v19737_v33, %v1101_v5 }
  0x63   :  { %16263 = vmatpush1.bf16.msra.mxu1 %v16262_v54  ;;  %16359 = vmatpush1.bf16.msra.mxu0 %v29893_v24  ;;  %v1059_v54 = vand.u32 4294901760, %v19671_v59  ;;  %v1066_v24 = vand.u32 4294901760, %v19685_v9  ;;  %v19731_v43 = vpack.c.bf16 %v1143_v37, %v1136_v50  ;;  %v19745_v61 = vpack.c.bf16 %v1047_v7, %v1040_v39 }
  0x64   :  { %16360 = vmatprep.subr.bf16.mxu1 %v28736_v32  ;;  %29902 = vst [vmem:[#allocation6_spill] sm:$0xff] %v19711_v12  ;;  %v1088_v0 = vsub.f32 %v19715_v27, %v1087_v55  ;;  %v1075_v16 = vand.u32 4294901760, %v1074_v21  ;;  %v1082_v57 = vand.u32 4294901760, %v1081_v4  ;;  %v1095_v38 = vsub.f32 %v19734_v26, %v1094_v42 }
  0x65   :  { %v1060_v25 = vsub.f32 %v19671_v59, %v1059_v54  ;;  %29904 = vst [vmem:[#allocation11_spill] sm:$0xff] %v19731_v43  ;;  %v1067_v19 = vsub.f32 %v19685_v9, %v1066_v24  ;;  %v1109_v13 = vsub.f32 %v19645_v36, %v1108_v14  ;;  %v1123_v14 = vsub.f32 %v19665_v46, %v1122_v3 }
  0x66   :  { %560 = vmatmul.mubr.f32.vlgmr.msra.gmra.mrb[0].mxu1 %v29869_v11  ;;  %938 = vmatmul.mubr.f32.vlgmr.msra.gmra.mrb[0].mxu0 %v29869_v11  ;;  %v1089_v48 = vand.u32 4294901760, %v1088_v0  ;;  %v1096_v7 = vand.u32 4294901760, %v1095_v38  ;;  %v19820_v38 = vpack.c.bf16 %v19671_v59, %v19657_v28  ;;  %v19920_v28 = vpack.c.bf16 %v1101_v5, %v1094_v42  ;;  %v20012_v42 = vld [vmem:[%s28702_s1 + $0x38] sm:$0xff]  ;;  %v20017_v5 = vld [vmem:[%s28702_s1 + $0x50] sm:$0xff] }
  0x67   :  { %16362 = vmatpush3.bf16.msra.mxu1 %v19589_v22  ;;  %14310 = vmatprep.mubr.msk.f32.mxu1 %vm19186_vm0, %v29869_v11  ;;  %v1061_v30 = vand.u32 4294901760, %v1060_v25  ;;  %v1068_v47 = vand.u32 4294901760, %v1067_v19  ;;  %v1103_v25 = vand.u32 4294901760, %v1102_v53  ;;  %v1116_v19 = vsub.f32 %v19647_v44, %v1115_v58 }
  0x68   :  { %16363 = vmatprep.subr.bf16.mxu1 %v28736_v32  ;;  %1759 = vmatprep.mubr.f32.mxu0 %v29869_v11  ;;  %v19780_v39 = vpack.c.bf16 %v1089_v48, %v1082_v57  ;;  %v1137_v58 = vsub.f32 %v19690_v23, %v1136_v50  ;;  %v1124_v0 = vand.u32 4294901760, %v1123_v14  ;;  %v1144_v57 = vsub.f32 %v19692_v52, %v1143_v37 }
  0x69   :  { %v19759_v35 = vpack.c.bf16 %v1061_v30, %v1054_v20  ;;  %v19767_v31 = vpack.c.bf16 %v1075_v16, %v1068_v47  ;;  %v1110_v20 = vand.u32 4294901760, %v1109_v13  ;;  %v19787_v30 = vpack.c.bf16 %v1103_v25, %v1096_v7  ;;  %29911 = vst [vmem:[#allocation19_spill] sm:$0xff] %v19820_v38  ;;  %29922 = vst [vmem:[#allocation31_spill] sm:$0xff] %v19920_v28 }
  0x6a   :  { %29905 = vst [vmem:[#allocation14_spill] sm:$0xff] %v19780_v39  ;;  %v1117_v21 = vand.u32 4294901760, %v1116_v19  ;;  %v1130_v47 = vsub.f32 %v19667_v1, %v1129_v51  ;;  %v1138_v48 = vand.u32 4294901760, %v1137_v58  ;;  %v1145_v51 = vand.u32 4294901760, %v1144_v57 }
  0x6b   :  { %16365 = vmatpush3.bf16.msra.mxu1 %v19601_v8  ;;  %29906 = vst [vmem:[#allocation17_spill] sm:$0xff] %v19787_v30  ;;  %v19813_v37 = vpack.c.bf16 %v19651_v41, %v19649_v40  ;;  %v19828_v53 = vpack.c.bf16 %v19687_v15, %v19685_v9  ;;  %v19834_v13 = vpack.c.bf16 %v19715_v27, %v19713_v18  ;;  %v19988_v27 = vld [vmem:[%s28702_s1] sm:$0xff]  ;;  %v28740_v58 = vand.u32 4294901760, %v20017_v5 }
  0x6c   :  { %16366 = vmatprep.subr.bf16.mxu1 %v28736_v32  ;;  %v19798_v4 = vpack.c.bf16 %v1117_v21, %v1110_v20  ;;  %v1131_v16 = vand.u32 4294901760, %v1130_v47  ;;  %v19807_v50 = vpack.c.bf16 %v1145_v51, %v1138_v48  ;;  %v19840_v7 = vpack.c.bf16 %v19737_v33, %v19734_v26 }
  0x6d   :  { %29910 = vst [vmem:[#allocation16_spill] sm:$0xff] %v19813_v37  ;;  %29912 = vst [vmem:[#allocation21_spill] sm:$0xff] %v19828_v53  ;;  %v19846_v25 = vpack.c.bf16 %v19647_v44, %v19645_v36  ;;  %v19852_v19 = vpack.c.bf16 %v19667_v1, %v19665_v46  ;;  %v19858_v20 = vpack.c.bf16 %v19692_v52, %v19690_v23  ;;  %v19976_v23 = vld [vmem:[%s28702_s1 + $0x8] sm:$0xff]  ;;  %v19981_v52 = vld [vmem:[%s28702_s1 + $0x20] sm:$0xff]  ;;  %v28741_v47 = vand.u32 4294901760, %v20012_v42 }
  0x6e   :  { %29907 = vst [vmem:[#allocation15_spill] sm:$0xff] %v19798_v4  ;;  %v19803_v3 = vpack.c.bf16 %v1131_v16, %v1124_v0  ;;  %29909 = vst [vmem:[#allocation20_spill] sm:$0xff] %v19807_v50  ;;  %v19885_v36 = vpack.c.bf16 %v1045_v63, %v1038_v62  ;;  %v19894_v44 = vpack.c.bf16 %v1059_v54, %v1052_v17  ;;  %v28749_v54 = vand.u32 4294901760, %v19976_v23  ;;  %v20027_v0 = vld [vmem:[%s28702_s1 + $0x30] sm:$0xff]  ;;  %v20032_v16 = vld [vmem:[%s28702_s1 + $0x48] sm:$0xff] }
  0x6f   :  { %16368 = vmatpush3.bf16.msra.mxu1 %v19614_v45  ;;  %29913 = vst [vmem:[#allocation22_spill] sm:$0xff] %v19834_v13  ;;  %29914 = vst [vmem:[#allocation23_spill] sm:$0xff] %v19840_v7  ;;  %v19904_v40 = vpack.c.bf16 %v1073_v60, %v1066_v24  ;;  %v19912_v41 = vpack.c.bf16 %v1087_v55, %v1080_v49  ;;  %v28748_v18 = vand.u32 4294901760, %v19981_v52  ;;  %v19993_v24 = vld [vmem:[%s28702_s1 + $0x18] sm:$0xff]  ;;  %v28747_v60 = vand.u32 4294901760, %v19988_v27 }
  0x70   :  { %16369 = vmatprep.subr.bf16.mxu1 %v28736_v32  ;;  %29908 = vst [vmem:[#allocation18_spill] sm:$0xff] %v19803_v3  ;;  %29915 = vst [vmem:[#allocation24_spill] sm:$0xff] %v19846_v25  ;;  %v28746_v26 = vand.u32 4294901760, %v19993_v24  ;;  %v28739_v57 = vand.u32 4294901760, %v20027_v0  ;;  %v28738_v48 = vand.u32 4294901760, %v20032_v16  ;;  %v20041_v51 = vpack.c.bf16 %v28740_v58, %v28741_v47  ;;  %v20090_v58 = vld [vmem:[%s28702_s1 + $0x98] sm:$0xff] }
  0x71   :  { %29916 = vst [vmem:[#allocation25_spill] sm:$0xff] %v19852_v19  ;;  %29917 = vst [vmem:[#allocation26_spill] sm:$0xff] %v19858_v20  ;;  %v20001_v33 = vpack.c.bf16 %v28748_v18, %v28749_v54  ;;  %v20095_v47 = vld [vmem:[%s28702_s1 + $0xb0] sm:$0xff] }
  0x72   :  { %29918 = vst [vmem:[#allocation27_spill] sm:$0xff] %v19885_v36  ;;  %29919 = vst [vmem:[#allocation28_spill] sm:$0xff] %v19894_v44  ;;  %v20007_v55 = vpack.c.bf16 %v28746_v26, %v28747_v60 }
  0x73   :  { %16371 = vmatpush3.bf16.msra.mxu1 %v19634_v2  ;;  %29920 = vst [vmem:[#allocation29_spill] sm:$0xff] %v19904_v40  ;;  %29921 = vst [vmem:[#allocation30_spill] sm:$0xff] %v19912_v41  ;;  %16505 = vmatprep.subr.bf16.mxu0 %v20001_v33 }
  0x74   :  { %16372 = vmatprep.subr.bf16.mxu1 %v28736_v32  ;;  %29923 = vst [vmem:[#allocation32_spill] sm:$0xff] %v20001_v33  ;;  %29924 = vst [vmem:[#allocation33_spill] sm:$0xff] %v20007_v55  ;;  %16507 = vmatpush1.bf16.msra.mxu0 %v20007_v55 }
  0x75   :  { %29925 = vst [vmem:[#allocation34_spill] sm:$0xff] %v20041_v51  ;;  %16509 = vmatprep.subr.bf16.mxu0 %v20041_v51 }
  0x77   :  { %16374 = vmatpush3.bf16.msra.mxu1 %v19654_v29 }
  0x78   :  { %16375 = vmatprep.subr.bf16.mxu1 %v28736_v32 }
  0x7b   :  { %16377 = vmatpush3.bf16.msra.mxu1 %v19674_v56 }
  0x7c   :  { %16378 = vmatprep.subr.bf16.mxu1 %v28736_v32 }
  0x7f   :  { %16380 = vmatpush3.bf16.msra.mxu1 %v19697_v34 }
  0x80   :  { %16381 = vmatprep.subr.bf16.mxu1 %v28736_v32 }
  0x83   :  { %16383 = vmatpush3.bf16.msra.mxu1 %v19717_v10 }
  0x84   :  { %16384 = vmatprep.subr.bf16.mxu1 %v28736_v32 }
  0x86   :  { %14311 = vmatmul.mubr.f32.vlgmr.msra.gmra.mrb[2].mxu1 %v29869_v11 }
  0x87   :  { %16386 = vmatpush3.bf16.msra.mxu1 %v19745_v61  ;;  %14345 = vmatprep.mubr.msk.f32.mxu1 %vm19186_vm0, %v29869_v11 }
  0x88   :  { %16387 = vmatprep.subr.bf16.mxu1 %v28736_v32 }
  0x8b   :  { %16389 = vmatpush3.bf16.msra.mxu1 %v19759_v35 }
  0x8c   :  { %16390 = vmatprep.subr.bf16.mxu1 %v28736_v32 }
  0x8f   :  { %16392 = vmatpush3.bf16.msra.mxu1 %v19767_v31 }
  0x90   :  { %16393 = vmatprep.subr.bf16.mxu1 %v28736_v32 }
  0x93   :  { %16395 = vmatpush3.bf16.msra.mxu1 %v19780_v39 }
  0x94   :  { %16396 = vmatprep.subr.bf16.mxu1 %v28736_v32 }
  0x97   :  { %16398 = vmatpush3.bf16.msra.mxu1 %v19787_v30  ;;  %v29944_v30 = vand.u32 4294901760, %v20032_v16 }
  0x98   :  { %16399 = vmatprep.subr.bf16.mxu1 %v28736_v32 }
  0x9b   :  { %16401 = vmatpush3.bf16.msra.mxu1 %v19798_v4  ;;  %v29943_v4 = vand.u32 4294901760, %v20027_v0 }
  0x9c   :  { %16402 = vmatprep.subr.bf16.mxu1 %v28736_v32 }
  0x9f   :  { %16404 = vmatpush3.bf16.msra.mxu1 %v19803_v3 }
  0xa0   :  { %16405 = vmatprep.subr.bf16.mxu1 %v28736_v32 }
  0xa3   :  { %16407 = vmatpush3.bf16.msra.mxu1 %v19807_v50  ;;  %v29942_v50 = vand.u32 4294901760, %v20017_v5 }
  0xa4   :  { %16408 = vmatprep.subr.bf16.mxu1 %v28736_v32 }
  0xa5   :  { %v20212_v3 = vsub.f32 %v20017_v5, %v29942_v50 }
  0xa6   :  { %14346 = vmatmul.mubr.f32.vlgmr.msra.gmra.mrb[4].mxu1 %v29869_v11 }
  0xa7   :  { %16410 = vmatpush3.bf16.msra.mxu1 %v19813_v37  ;;  %14380 = vmatprep.mubr.msk.f32.mxu1 %vm19186_vm0, %v29869_v11 }
  0xa8   :  { %16411 = vmatprep.subr.bf16.mxu1 %v28736_v32 }
  0xab   :  { %16413 = vmatpush3.bf16.msra.mxu1 %v19820_v38 }
  0xac   :  { %16414 = vmatprep.subr.bf16.mxu1 %v28736_v32 }
  0xaf   :  { %16416 = vmatpush3.bf16.msra.mxu1 %v19828_v53 }
  0xb0   :  { %16417 = vmatprep.subr.bf16.mxu1 %v28736_v32 }
  0xb3   :  { %16419 = vmatpush3.bf16.msra.mxu1 %v19834_v13  ;;  %v29938_v13 = vand.u32 4294901760, %v19988_v27 }
  0xb4   :  { %16420 = vmatprep.subr.bf16.mxu1 %v28736_v32 }
  0xb5   :  { %v20186_v53 = vsub.f32 %v19988_v27, %v29938_v13  ;;  %v20222_v27 = vsub.f32 %v20032_v16, %v29944_v30 }
  0xb7   :  { %16422 = vmatpush3.bf16.msra.mxu1 %v19840_v7 }
  0xb8   :  { %16423 = vmatprep.subr.bf16.mxu1 %v28736_v32 }
  0xbb   :  { %16425 = vmatpush3.bf16.msra.mxu1 %v19846_v25 }
  0xbc   :  { %16426 = vmatprep.subr.bf16.mxu1 %v28736_v32 }
  0xbf   :  { %16428 = vmatpush3.bf16.msra.mxu1 %v19852_v19 }
  0xc0   :  { %16429 = vmatprep.subr.bf16.mxu1 %v28736_v32 }
  0xc3   :  { %16431 = vmatpush3.bf16.msra.mxu1 %v19858_v20  ;;  %v29935_v20 = vand.u32 4294901760, %v19976_v23 }
  0xc4   :  { %16432 = vmatprep.subr.bf16.mxu1 %v28736_v32 }
  0xc5   :  { %v20174_v19 = vsub.f32 %v19976_v23, %v29935_v20  ;;  %v1658_v20 = vld [vmem:[%s28702_s1 + $0x158] sm:$0xff]  ;;  %v1661_v23 = vld [vmem:[%s28702_s1 + $0x170] sm:$0xff] }
  0xc6   :  { %14381 = vmatmul.mubr.f32.vlgmr.msra.gmra.mrb[6].mxu1 %v29869_v11  ;;  %v1723_v13 = vand.u32 4294901760, %v1661_v23 }
  0xc7   :  { %16434 = vmatpush3.bf16.msra.mxu1 %v19589_v22  ;;  %14415 = vmatprep.mubr.msk.f32.mxu1 %vm19186_vm0, %v29869_v11 }
  0xc8   :  { %16435 = vmatprep.subr.bf16.mxu1 %v28736_v32 }
  0xcb   :  { %16437 = vmatpush3.bf16.msra.mxu1 %v19601_v8 }
  0xcc   :  { %16438 = vmatprep.subr.bf16.mxu1 %v28736_v32 }
  0xcf   :  { %16440 = vmatpush3.bf16.msra.mxu1 %v19614_v45 }
  0xd0   :  { %16441 = vmatprep.subr.bf16.mxu1 %v28736_v32 }
  0xd3   :  { %16443 = vmatpush3.bf16.msra.mxu1 %v19634_v2 }
  0xd4   :  { %16444 = vmatprep.subr.bf16.mxu1 %v28736_v32 }
  0xd7   :  { %16446 = vmatpush3.bf16.msra.mxu1 %v19654_v29 }
  0xd8   :  { %16447 = vmatprep.subr.bf16.mxu1 %v28736_v32 }
  0xdb   :  { %16449 = vmatpush3.bf16.msra.mxu1 %v19674_v56 }
  0xdc   :  { %16450 = vmatprep.subr.bf16.mxu1 %v28736_v32 }
  0xdf   :  { %16452 = vmatpush3.bf16.msra.mxu1 %v19697_v34 }
  0xe0   :  { %16453 = vmatprep.subr.bf16.mxu1 %v28736_v32 }
  0xe3   :  { %16455 = vmatpush3.bf16.msra.mxu1 %v19717_v10 }
  0xe4   :  { %16456 = vmatprep.subr.bf16.mxu1 %v28736_v32 }
  0xe6   :  { %14416 = vmatmul.mubr.f32.vlgmr.msra.gmra.mrb[8].mxu1 %v29869_v11 }
  0xe7   :  { %16458 = vmatpush3.bf16.msra.mxu1 %v19885_v36  ;;  %14450 = vmatprep.mubr.msk.f32.mxu1 %vm19186_vm0, %v29869_v11 }
  0xe8   :  { %16459 = vmatprep.subr.bf16.mxu1 %v28736_v32 }
  0xeb   :  { %16461 = vmatpush3.bf16.msra.mxu1 %v19894_v44 }
  0xec   :  { %16462 = vmatprep.subr.bf16.mxu1 %v28736_v32 }
  0xef   :  { %16464 = vmatpush3.bf16.msra.mxu1 %v19904_v40 }
  0xf0   :  { %16465 = vmatprep.subr.bf16.mxu1 %v28736_v32 }
  0xf3   :  { %16467 = vmatpush3.bf16.msra.mxu1 %v19912_v41  ;;  %v1639_v41 = vld [vmem:[%s28702_s1 + $0xc0] sm:$0xff] }
  0xf4   :  { %16468 = vmatprep.subr.bf16.mxu1 %v28736_v32 }
  0xf7   :  { %16470 = vmatpush3.bf16.msra.mxu1 %v19920_v28 }
  0xf8   :  { %16471 = vmatprep.subr.bf16.mxu1 %v28736_v32 }
  0xfb   :  { %16473 = vmatpush3.bf16.msra.mxu1 %v19683_v6 }
  0xfc   :  { %16474 = vmatprep.subr.bf16.mxu1 %v28736_v32 }
  0xff   :  { %16476 = vmatpush3.bf16.msra.mxu1 %v19711_v12  ;;  %v1643_v12 = vld [vmem:[%s28702_s1 + $0xe0] sm:$0xff] }
 0x100   :  { %16477 = vmatprep.subr.bf16.mxu1 %v28736_v32  ;;  %v1699_v28 = vand.u32 4294901760, %v1643_v12 }
 0x103   :  { %16479 = vmatpush3.bf16.msra.mxu1 %v19731_v43  ;;  %v1640_v43 = vld [vmem:[%s28702_s1 + $0xc8] sm:$0xff] }
 0x104   :  { %16480 = vmatprep.subr.bf16.mxu1 %v28736_v32  ;;  %v1695_v6 = vand.u32 4294901760, %v1640_v43 }
 0x106   :  { %14451 = vmatmul.mubr.f32.vlgmr.msra.gmra.mrb[10].mxu1 %v29869_v11  ;;  %v20135_v44 = vpack.c.bf16 %v1699_v28, %v1695_v6 }
 0x107   :  { %16482 = vmatpush3.bf16.msra.mxu1 %v19589_v22  ;;  %14485 = vmatprep.mubr.msk.f32.mxu1 %vm19186_vm0, %v29869_v11 }
 0x108   :  { %16483 = vmatprep.subr.bf16.mxu1 %v28736_v32  ;;  %29931 = vst [vmem:[#allocation40_spill] sm:$0xff] %v20135_v44 }
 0x10b   :  { %16485 = vmatpush3.bf16.msra.mxu1 %v19601_v8 }
 0x10c   :  { %16486 = vmatprep.subr.bf16.mxu1 %v28736_v32 }
 0x10f   :  { %16488 = vmatpush3.bf16.msra.mxu1 %v19614_v45 }
 0x110   :  { %16489 = vmatprep.subr.bf16.mxu1 %v28736_v32 }
 0x113   :  { %16491 = vmatpush3.bf16.msra.mxu1 %v19634_v2 }
 0x114   :  { %16492 = vmatprep.subr.bf16.mxu1 %v28736_v32 }
 0x117   :  { %16494 = vmatpush3.bf16.msra.mxu1 %v19654_v29 }
 0x118   :  { %16495 = vmatprep.subr.bf16.mxu1 %v28736_v32 }
 0x11b   :  { %16497 = vmatpush3.bf16.msra.mxu1 %v19674_v56 }
 0x11c   :  { %16498 = vmatprep.subr.bf16.mxu1 %v28736_v32 }
 0x11f   :  { %16500 = vmatpush3.bf16.msra.mxu1 %v19697_v34 }
 0x120   :  { %16501 = vmatprep.subr.bf16.mxu1 %v28736_v32 }
 0x123   :  { %16503 = vmatpush3.bf16.msra.mxu1 %v19717_v10 }
 0x124   :  { %16696 = vmatprep.subr.bf16.mxu1 %v28736_v32 }
 0x126   :  { %14486 = vmatmul.mubr.f32.vlgmr.msra.gmra.mrb[12].mxu1 %v29869_v11 }
 0x127   :  { %16698 = vmatpush3.bf16.msra.mxu1 %v19589_v22  ;;  %14520 = vmatprep.mubr.msk.f32.mxu1 %vm19186_vm0, %v29869_v11  ;;  %v1654_v22 = vld [vmem:[%s28702_s1 + $0x138] sm:$0xff] }
 0x128   :  { %16699 = vmatprep.subr.bf16.mxu1 %v28736_v32  ;;  %v1717_v33 = vand.u32 4294901760, %v1654_v22 }
 0x12b   :  { %16701 = vmatpush3.bf16.msra.mxu1 %v19601_v8  ;;  %v1655_v8 = vld [vmem:[%s28702_s1 + $0x140] sm:$0xff] }
 0x12c   :  { %16702 = vmatprep.subr.bf16.mxu1 %v28736_v32  ;;  %v1715_v51 = vand.u32 4294901760, %v1655_v8 }
 0x12f   :  { %16704 = vmatpush3.bf16.msra.mxu1 %v19614_v45 }
 0x130   :  { %16705 = vmatprep.subr.bf16.mxu1 %v28736_v32 }
 0x133   :  { %16707 = vmatpush3.bf16.msra.mxu1 %v19634_v2  ;;  %v1645_v2 = vld [vmem:[%s28702_s1 + $0xf0] sm:$0xff] }
 0x134   :  { %16708 = vmatprep.subr.bf16.mxu1 %v28736_v32 }
 0x137   :  { %16710 = vmatpush3.bf16.msra.mxu1 %v19654_v29 }
 0x138   :  { %16711 = vmatprep.subr.bf16.mxu1 %v28736_v32 }
 0x139   :  { %v561_v46 = vpop.f32.mrb[0].mxu1  ;;  %v939_v1 = vpop.f32.mrb[0].mxu0 }
 0x13a   :  { %v19963_v59 = vadd.f32 %v939_v1, %v561_v46  ;;  %v563_v62 = vpop.f32.mrb[1].mxu1  ;;  %v941_v63 = vpop.f32.mrb[1].mxu0  ;;  %v20047_v46 = vpack.c.bf16 %v28738_v48, %v28739_v57  ;;  %v20052_v1 = vld [vmem:[%s28702_s1 + $0x68] sm:$0xff] }
 0x13b   :  { %v19965_v9 = vadd.f32 %v941_v63, %v563_v62  ;;  %16713 = vmatpush3.bf16.msra.mxu1 %v19674_v56  ;;  %v20057_v62 = vld [vmem:[%s28702_s1 + $0x80] sm:$0xff]  ;;  %v28743_v63 = vand.u32 4294901760, %v20052_v1 }
 0x13c   :  { %16714 = vmatprep.subr.bf16.mxu1 %v28736_v32  ;;  %29926 = vst [vmem:[#allocation35_spill] sm:$0xff] %v20047_v46  ;;  %16511 = vmatpush1.bf16.msra.mxu0 %v20047_v46  ;;  %v29946_v50 = vand.u32 4294901760, %v20057_v62 }
 0x13e   :  { %v20233_v5 = vsub.f32 %v20057_v62, %v29946_v50 }
 0x13f   :  { %16716 = vmatpush3.bf16.msra.mxu1 %v19697_v34  ;;  %v1649_v34 = vld [vmem:[%s28702_s1 + $0x110] sm:$0xff] }
 0x140   :  { %16717 = vmatprep.subr.bf16.mxu1 %v28736_v32  ;;  %v1707_v29 = vand.u32 4294901760, %v1649_v34 }
 0x143   :  { %16719 = vmatpush3.bf16.msra.mxu1 %v19717_v10  ;;  %v1646_v10 = vld [vmem:[%s28702_s1 + $0xf8] sm:$0xff] }
 0x144   :  { %16720 = vmatprep.subr.bf16.mxu1 %v28736_v32  ;;  %v1703_v56 = vand.u32 4294901760, %v1646_v10 }
 0x159   :  { %v1031_v15 = vpop.f32.mrb[2].mxu1 }
 0x15a   :  { %v14312_v17 = vpop.f32.mrb[3].mxu1 }
 0x15b   :  { %v20065_v17 = vld [vmem:[%s28702_s1 + $0x60] sm:$0xff] }
 0x179   :  { %v1182_v49 = vpop.f32.mrb[4].mxu1 }
 0x17a   :  { %v20019_v21 = vadd.f32 %v1182_v49, %v1031_v15  ;;  %v14347_v14 = vpop.f32.mrb[5].mxu1  ;;  %v28742_v15 = vand.u32 4294901760, %v20057_v62  ;;  %v20070_v49 = vld [vmem:[%s28702_s1 + $0x78] sm:$0xff] }
 0x17b   :  { %v28745_v14 = vand.u32 4294901760, %v20065_v17  ;;  %v28744_v32 = vand.u32 4294901760, %v20070_v49  ;;  %v29948_v30 = vand.u32 4294901760, %v20070_v49 }
 0x17c   :  { %v20079_v48 = vpack.c.bf16 %v28742_v15, %v28743_v63  ;;  %v28756_v15 = vand.u32 4294901760, %v20090_v58  ;;  %v28755_v63 = vand.u32 4294901760, %v20095_v47 }
 0x17d   :  { %v20085_v57 = vpack.c.bf16 %v28744_v32, %v28745_v14  ;;  %v20103_v32 = vld [vmem:[%s28702_s1 + $0x90] sm:$0xff]  ;;  %v20108_v14 = vld [vmem:[%s28702_s1 + $0xa8] sm:$0xff]  ;;  %v20243_v16 = vsub.f32 %v20070_v49, %v29948_v30  ;;  %v20263_v49 = vsub.f32 %v1643_v12, %v1699_v28 }
 0x17e   :  { %29927 = vst [vmem:[#allocation36_spill] sm:$0xff] %v20079_v48  ;;  %16513 = vmatprep.subr.bf16.mxu0 %v20079_v48  ;;  %v1689_v26 = vand.u32 4294901760, %v20103_v32  ;;  %v1693_v60 = vand.u32 4294901760, %v20108_v14  ;;  %v20117_v18 = vpack.c.bf16 %v28755_v63, %v28756_v15  ;;  %v1642_v63 = vld [vmem:[%s28702_s1 + $0xd8] sm:$0xff]  ;;  %v1697_v15 = vand.u32 4294901760, %v1639_v41 }
 0x17f   :  { %29928 = vst [vmem:[#allocation37_spill] sm:$0xff] %v20085_v57  ;;  %16515 = vmatpush1.bf16.msra.mxu0 %v20085_v57  ;;  %v1701_v40 = vand.u32 4294901760, %v1642_v63  ;;  %v20153_v57 = vpack.c.bf16 %v1707_v29, %v1703_v56 }
 0x180   :  { %29929 = vst [vmem:[#allocation38_spill] sm:$0xff] %v20117_v18  ;;  %v20119_v54 = vpack.c.bf16 %v1693_v60, %v1689_v26  ;;  %16517 = vmatprep.subr.bf16.mxu0 %v20117_v18  ;;  %v1705_v18 = vand.u32 4294901760, %v1645_v2  ;;  %v20256_v50 = vsub.f32 %v20103_v32, %v1689_v26  ;;  %v20265_v30 = vsub.f32 %v1639_v41, %v1697_v15 }
 0x181   :  { %v20137_v36 = vpack.c.bf16 %v1701_v40, %v1697_v15  ;;  %29933 = vst [vmem:[#allocation42_spill] sm:$0xff] %v20153_v57  ;;  %v20289_v41 = vsub.f32 %v1654_v22, %v1717_v33  ;;  %v28831_v26 = vand.u32 4294901760, %v20186_v53 }
 0x182   :  { %29930 = vst [vmem:[#allocation39_spill] sm:$0xff] %v20119_v54  ;;  %v20276_v32 = vsub.f32 %v1645_v2, %v1705_v18  ;;  %v20295_v2 = vsub.f32 %v1661_v23, %v1723_v13  ;;  %v28821_v23 = vand.u32 4294901760, %v20212_v3 }
 0x183   :  { %16519 = vmatpush1.bf16.msra.mxu0 %v20119_v54  ;;  %29932 = vst [vmem:[#allocation41_spill] sm:$0xff] %v20137_v36  ;;  %v1648_v54 = vld [vmem:[%s28702_s1 + $0x108] sm:$0xff]  ;;  %v1780_v15 = vsub.f32 %v20186_v53, %v28831_v26 }
 0x184   :  { %16521 = vmatprep.subr.bf16.mxu0 %v20135_v44  ;;  %v1709_v45 = vand.u32 4294901760, %v1648_v54  ;;  %v1652_v44 = vld [vmem:[%s28702_s1 + $0x128] sm:$0xff] }
 0x185   :  { %v1711_v46 = vand.u32 4294901760, %v1652_v44 }
 0x186   :  { %v20155_v48 = vpack.c.bf16 %v1709_v45, %v1705_v18 }
 0x187   :  { %16523 = vmatpush1.bf16.msra.mxu0 %v20137_v36  ;;  %v1651_v36 = vld [vmem:[%s28702_s1 + $0x120] sm:$0xff]  ;;  %v20181_v7 = vpack.c.bf16 %v1715_v51, %v1711_v46  ;;  %v20283_v12 = vsub.f32 %v1652_v44, %v1711_v46 }
 0x188   :  { %29934 = vst [vmem:[#allocation43_spill] sm:$0xff] %v20155_v48  ;;  %16525 = vmatprep.subr.bf16.mxu0 %v20153_v57  ;;  %v1713_v55 = vand.u32 4294901760, %v1651_v36  ;;  %v29936_v57 = vand.u32 4294901760, %v19981_v52 }
 0x189   :  { %29937 = vst [vmem:[#allocation44_spill] sm:$0xff] %v20181_v7 }
 0x18a   :  { %v20179_v25 = vsub.f32 %v19981_v52, %v29936_v57  ;;  %v20193_v37 = vpack.c.bf16 %v1717_v33, %v1713_v55  ;;  %v1719_v52 = vand.u32 4294901760, %v1658_v20  ;;  %v29949_v57 = vand.u32 4294901760, %v20090_v58 }
 0x18b   :  { %16527 = vmatpush1.bf16.msra.mxu0 %v20155_v48  ;;  %v29939_v48 = vand.u32 4294901760, %v19993_v24 }
 0x18c   :  { %29940 = vst [vmem:[#allocation45_spill] sm:$0xff] %v20193_v37  ;;  %16529 = vmatprep.subr.bf16.mxu0 %v20181_v7  ;;  %v20217_v7 = vsub.f32 %v20027_v0, %v29943_v4  ;;  %v29947_v4 = vand.u32 4294901760, %v20065_v17  ;;  %v29955_v22 = vand.u32 4294901760, %v20179_v25 }
 0x18d   :  { %v20191_v38 = vsub.f32 %v19993_v24, %v29939_v48  ;;  %v29941_v24 = vand.u32 4294901760, %v20012_v42 }
 0x18e   :  { %v20238_v0 = vsub.f32 %v20065_v17, %v29947_v4  ;;  %v20259_v17 = vsub.f32 %v20108_v14, %v1693_v60  ;;  %v20261_v4 = vsub.f32 %v1640_v43, %v1695_v6  ;;  %v20278_v60 = vsub.f32 %v1648_v54, %v1709_v45  ;;  %v1660_v6 = vld [vmem:[%s28702_s1 + $0x168] sm:$0xff] }
 0x18f   :  { %v20207_v48 = vsub.f32 %v20012_v42, %v29941_v24  ;;  %16531 = vmatpush1.bf16.msra.mxu0 %v20193_v37  ;;  %v29945_v42 = vand.u32 4294901760, %v20052_v1  ;;  %v20267_v37 = vsub.f32 %v1642_v63, %v1701_v40  ;;  %v20285_v43 = vsub.f32 %v1655_v8, %v1715_v51 }
 0x190   :  { %v20287_v40 = vsub.f32 %v1651_v36, %v1713_v55  ;;  %v1725_v44 = vand.u32 4294901760, %v1660_v6  ;;  %v29954_v8 = vand.u32 4294901760, %v20174_v19  ;;  %v1786_v54 = vsub.f32 %v20179_v25, %v29955_v22 }
 0x191   :  { %v20228_v24 = vsub.f32 %v20052_v1, %v29945_v42  ;;  %v20248_v1 = vsub.f32 %v20090_v58, %v29949_v57  ;;  %v29950_v42 = vand.u32 4294901760, %v20095_v47  ;;  %v1657_v58 = vld [vmem:[%s28702_s1 + $0x150] sm:$0xff]  ;;  %v20274_v57 = vsub.f32 %v1649_v34, %v1707_v29 }
 0x192   :  { %29951 = vst [vmem:[#allocation46_spill] sm:$0xff] %v20287_v40  ;;  %v20293_v29 = vsub.f32 %v1658_v20, %v1719_v52  ;;  %v1721_v45 = vand.u32 4294901760, %v1657_v58  ;;  %v1774_v36 = vsub.f32 %v20174_v19, %v29954_v8  ;;  %v28828_v33 = vand.u32 4294901760, %v20191_v38 }
 0x193   :  { %v20253_v62 = vsub.f32 %v20095_v47, %v29950_v42  ;;  %v20272_v47 = vsub.f32 %v1646_v10, %v1703_v56  ;;  %v20291_v10 = vpack.c.bf16 %v1723_v13, %v1719_v52  ;;  %v28825_v55 = vand.u32 4294901760, %v20207_v48 }
 0x194   :  { %29953 = vst [vmem:[#allocation48_spill] sm:$0xff] %v20293_v29  ;;  %v20307_v18 = vsub.f32 %v1657_v58, %v1721_v45  ;;  %v20314_v51 = vsub.f32 %v1660_v6, %v1725_v44  ;;  %v1775_v46 = vand.u32 4294901760, %v1774_v36  ;;  %v1787_v63 = vand.u32 4294901760, %v1786_v54 }
 0x195   :  { %29952 = vst [vmem:[#allocation47_spill] sm:$0xff] %v20291_v10  ;;  %16533 = vmatprep.subr.bf16.mxu0 %v20291_v10  ;;  %v1792_v14 = vsub.f32 %v20191_v38, %v28828_v33  ;;  %v1798_v20 = vsub.f32 %v20207_v48, %v28825_v55  ;;  %v28817_v13 = vand.u32 4294901760, %v20217_v7  ;;  %v28816_v42 = vand.u32 4294901760, %v20222_v27 }
 0x196   :  { %29956 = vst [vmem:[#allocation49_spill] sm:$0xff] %v20307_v18  ;;  %29958 = vst [vmem:[#allocation51_spill] sm:$0xff] %v20314_v51  ;;  %v16536_v52 = vpack.c.bf16 %v1787_v63, %v1775_v46  ;;  %v28818_v58 = vand.u32 4294901760, %v20228_v24  ;;  %v1781_v6 = vand.u32 4294901760, %v1780_v15  ;;  %v28819_v22 = vand.u32 4294901760, %v20233_v5 }
 0x197   :  { %v1816_v8 = vsub.f32 %v20222_v27, %v28816_v42  ;;  %v28820_v63 = vand.u32 4294901760, %v20238_v0  ;;  %v28823_v15 = vand.u32 4294901760, %v20243_v16  ;;  %v28832_v55 = vand.u32 4294901760, %v20265_v30 }
 0x198   :  { %v1822_v36 = vsub.f32 %v20228_v24, %v28818_v58  ;;  %v1834_v42 = vsub.f32 %v20233_v5, %v28819_v22  ;;  %v28843_v10 = vand.u32 4294901760, %v20285_v43 }
 0x199   :  { %v1286_v56 = vpop.f32.mrb[6].mxu1  ;;  %v1828_v58 = vsub.f32 %v20238_v0, %v28820_v63  ;;  %v28827_v63 = vand.u32 4294901760, %v20259_v17 }
 0x19a   :  { %v20298_v34 = vadd.f32 %v1286_v56, %v20019_v21  ;;  %v14382_v28 = vpop.f32.mrb[7].mxu1  ;;  %v20312_v21 = vpack.c.bf16 %v1725_v44, %v1721_v45  ;;  %v1793_v56 = vand.u32 4294901760, %v1792_v14  ;;  %v1799_v45 = vand.u32 4294901760, %v1798_v20 }
 0x19b   :  { %v1810_v28 = vsub.f32 %v20212_v3, %v28821_v23  ;;  %v1804_v44 = vsub.f32 %v20217_v7, %v28817_v13  ;;  %v1817_v20 = vand.u32 4294901760, %v1816_v8  ;;  %v28824_v8 = vand.u32 4294901760, %v20253_v62 }
 0x19c   :  { %29957 = vst [vmem:[#allocation50_spill] sm:$0xff] %v20312_v21  ;;  %16535 = vmatpush1.bf16.msra.mxu0 %v20312_v21  ;;  %v20343_v54 = vpack.c.bf16 %v1793_v56, %v1781_v6  ;;  %v1840_v6 = vsub.f32 %v20243_v16, %v28823_v15  ;;  %v28822_v56 = vand.u32 4294901760, %v20248_v1  ;;  %v1829_v22 = vand.u32 4294901760, %v1828_v58 }
 0x19d   :  { %16537 = vmatprep.subr.bf16.mxu0 %v16536_v52  ;;  %v1811_v46 = vand.u32 4294901760, %v1810_v28  ;;  %v1805_v14 = vand.u32 4294901760, %v1804_v44  ;;  %v1823_v52 = vand.u32 4294901760, %v1822_v36  ;;  %v1835_v44 = vand.u32 4294901760, %v1834_v42 }
 0x19e   :  { %v28826_v36 = vand.u32 4294901760, %v20256_v50 }
 0x19f   :  { %v20350_v13 = vpack.c.bf16 %v1811_v46, %v1799_v45  ;;  %v20359_v28 = vpack.c.bf16 %v1817_v20, %v1805_v14  ;;  %v1841_v45 = vand.u32 4294901760, %v1840_v6  ;;  %v1846_v46 = vsub.f32 %v20248_v1, %v28822_v56 }
 0x1a0   :  { %v20367_v23 = vpack.c.bf16 %v1835_v44, %v1823_v52  ;;  %v1858_v14 = vsub.f32 %v20253_v62, %v28824_v8  ;;  %v1852_v42 = vsub.f32 %v20256_v50, %v28826_v36  ;;  %v28829_v20 = vand.u32 4294901760, %v20261_v4 }
 0x1a1   :  { %v20376_v58 = vpack.c.bf16 %v1841_v45, %v1829_v22  ;;  %v1847_v6 = vand.u32 4294901760, %v1846_v46  ;;  %v1864_v56 = vsub.f32 %v20259_v17, %v28827_v63  ;;  %v28830_v52 = vand.u32 4294901760, %v20263_v49 }
 0x1a2   :  { %v1859_v44 = vand.u32 4294901760, %v1858_v14  ;;  %v1853_v15 = vand.u32 4294901760, %v1852_v42  ;;  %v1870_v8 = vsub.f32 %v20261_v4, %v28829_v20  ;;  %v28835_v45 = vand.u32 4294901760, %v20267_v37 }
 0x1a3   :  { %v1865_v36 = vand.u32 4294901760, %v1864_v56  ;;  %v1882_v22 = vsub.f32 %v20263_v49, %v28830_v52  ;;  %v28836_v46 = vand.u32 4294901760, %v20272_v47  ;;  %v1876_v14 = vsub.f32 %v20265_v30, %v28832_v55 }
 0x1a4   :  { %v20391_v63 = vpack.c.bf16 %v1859_v44, %v1847_v6  ;;  %v1871_v33 = vand.u32 4294901760, %v1870_v8  ;;  %v28837_v42 = vand.u32 4294901760, %v20274_v57  ;;  %v1888_v52 = vsub.f32 %v20267_v37, %v28835_v45 }
 0x1a5   :  { %v20397_v20 = vpack.c.bf16 %v1865_v36, %v1853_v15  ;;  %v1883_v56 = vand.u32 4294901760, %v1882_v22  ;;  %v1894_v26 = vsub.f32 %v20272_v47, %v28836_v46  ;;  %v1877_v6 = vand.u32 4294901760, %v1876_v14 }
 0x1a6   :  { %v1906_v8 = vsub.f32 %v20274_v57, %v28837_v42  ;;  %v28842_v44 = vand.u32 4294901760, %v20276_v32  ;;  %v28841_v55 = vand.u32 4294901760, %v20278_v60  ;;  %v1889_v36 = vand.u32 4294901760, %v1888_v52 }
 0x1a7   :  { %v20410_v15 = vpack.c.bf16 %v1883_v56, %v1871_v33  ;;  %v1895_v22 = vand.u32 4294901760, %v1894_v26  ;;  %v28846_v42 = vand.u32 4294901760, %v20283_v12  ;;  %v1930_v56 = vsub.f32 %v20285_v43, %v28843_v10 }
 0x1a8   :  { %v1907_v21 = vand.u32 4294901760, %v1906_v8  ;;  %v1900_v45 = vsub.f32 %v20276_v32, %v28842_v44  ;;  %v1912_v14 = vsub.f32 %v20278_v60, %v28841_v55  ;;  %v20418_v46 = vpack.c.bf16 %v1889_v36, %v1877_v6 }
 0x1a9   :  { %v1918_v26 = vsub.f32 %v20283_v12, %v28846_v42  ;;  %v28844_v8 = vand.u32 4294901760, %v20287_v40  ;;  %v28845_v36 = vand.u32 4294901760, %v20289_v41  ;;  %v1931_v44 = vand.u32 4294901760, %v1930_v56 }
 0x1aa   :  { %v20422_v39 = vpack.c.bf16 %v1907_v21, %v1895_v22  ;;  %v1901_v33 = vand.u32 4294901760, %v1900_v45  ;;  %v1913_v52 = vand.u32 4294901760, %v1912_v14  ;;  %v28847_v22 = vand.u32 4294901760, %v20293_v29 }
 0x1ab   :  { %v1919_v55 = vand.u32 4294901760, %v1918_v26  ;;  %v1924_v21 = vsub.f32 %v20287_v40, %v28844_v8  ;;  %v1936_v45 = vsub.f32 %v20289_v41, %v28845_v36  ;;  %v28849_v56 = vand.u32 4294901760, %v20307_v18 }
 0x1ac   :  { %29959 = vst [vmem:[#allocation52_spill] sm:$0xff] %v20422_v39  ;;  %v20431_v6 = vpack.c.bf16 %v1913_v52, %v1901_v33  ;;  %v28848_v33 = vand.u32 4294901760, %v20295_v2  ;;  %v1942_v26 = vsub.f32 %v20293_v29, %v28847_v22  ;;  %v28850_v36 = vand.u32 4294901760, %v20314_v51 }
 0x1ad   :  { %v20441_v14 = vpack.c.bf16 %v1931_v44, %v1919_v55  ;;  %v1925_v10 = vand.u32 4294901760, %v1924_v21  ;;  %v1937_v52 = vand.u32 4294901760, %v1936_v45  ;;  %v1948_v44 = vsub.f32 %v20307_v18, %v28849_v56 }
 0x1ae   :  { %29960 = vst [vmem:[#allocation53_spill] sm:$0xff] %v20431_v6  ;;  %v1954_v8 = vsub.f32 %v20295_v2, %v28848_v33  ;;  %v1943_v55 = vand.u32 4294901760, %v1942_v26  ;;  %v1960_v22 = vsub.f32 %v20314_v51, %v28850_v36 }
 0x1af   :  { %29961 = vst [vmem:[#allocation54_spill] sm:$0xff] %v20441_v14  ;;  %v20452_v42 = vpack.c.bf16 %v1937_v52, %v1925_v10  ;;  %v1949_v39 = vand.u32 4294901760, %v1948_v44 }
 0x1b0   :  { %v1955_v45 = vand.u32 4294901760, %v1954_v8  ;;  %v1961_v52 = vand.u32 4294901760, %v1960_v22 }
 0x1b2   :  { %v20463_v10 = vpack.c.bf16 %v1955_v45, %v1943_v55  ;;  %v20469_v56 = vpack.c.bf16 %v1961_v52, %v1949_v39  ;;  %v36_v55 = vld [vmem:[%s28703_s0] sm:$0xff] }
 0x1b3   :  { %v39_v8 = vunpack.c.h.bf16 %v36_v55  ;;  %v13322_v39 = vld [vmem:[%s28704_s2] ss:$0 sm:$0xff] }
 0x1b5   :  { %v1592_v22 = vadd.f32 %v19965_v9, %v39_v8 }
 0x1b7   :  { %v13324_v26 = vmul.f32 -1.442695, %v1592_v22 }
 0x1b9   :  { %v1375_v21 = vpop.f32.mrb[8].mxu1 }
 0x1ba   :  { %v1376_v14 = vadd.f32 %v1375_v21, %v20298_v34  ;;  %v14417_v6 = vpop.f32.mrb[9].mxu1  ;;  %v38_v21 = vunpack.c.l.bf16 %v36_v55 }
 0x1bc   :  { %v1585_v45 = vadd.f32 %v19963_v59, %v38_v21  ;;  %v37_v59 = vld [vmem:[%s28703_s0 + $0x8] sm:$0xf] }
 0x1bd   :  { %v40_v21 = vunpack.c.l.bf16 %v37_v59 }
 0x1be   :  { %v13323_v52 = vmul.f32 -1.442695, %v1585_v45 }
 0x1c0   :  { %19094 = vpow2.f32 %v13323_v52 }
 0x1c1   :  { %19096 = vpow2.f32 %v13324_v26 }
 0x1ca   :  { %v19095_v33 = vpop.eup %19094 }
 0x1cb   :  { %v1589_v40 = vadd.f32 1.0, %v19095_v33  ;;  %v19097_v44 = vpop.eup %19096 }
 0x1cd   :  { %19098 = vrcp.f32 %v1589_v40 }
 0x1d7   :  { %v19099_v8 = vpop.eup %19098 }
 0x1d9   :  { %v1494_v6 = vpop.f32.mrb[10].mxu1 }
 0x1da   :  { %v1495_v34 = vadd.f32 %v1494_v6, %v1376_v14  ;;  %v14452_v36 = vpop.f32.mrb[11].mxu1  ;;  %v1596_v14 = vadd.f32 1.0, %v19097_v44 }
 0x1dc   :  { %19100 = vrcp.f32 %v1596_v14  ;;  %v29980_v14 = vld [vmem:[#allocation21_spill] sm:$0xff] }
 0x1e6   :  { %v19101_v40 = vpop.eup %19100 }
 0x1e7   :  { %v1603_v22 = vsub.f32 1.0, %v19101_v40  ;;  %v1605_v52 = vmul.f32 0.0, %v19101_v40  ;;  %v29988_v40 = vpack.c.bf16 %v20278_v60, %v20276_v32 }
 0x1f9   :  { %v1581_v36 = vpop.f32.mrb[12].mxu1 }
 0x1fa   :  { %v1582_v6 = vadd.f32 %v1581_v36, %v1495_v34  ;;  %v14487_v55 = vpop.f32.mrb[13].mxu1  ;;  %v29979_v36 = vpack.c.bf16 %v20243_v16, %v20238_v0 }
 0x1fb   :  { %v29982_v55 = vpack.c.bf16 %v20259_v17, %v20256_v50 }
 0x1fc   :  { %v1599_v9 = vadd.f32 %v13322_v39, %v1582_v6  ;;  %v29981_v6 = vpack.c.bf16 %v20253_v62, %v20248_v1 }
 0x1fe   :  { %v1600_v26 = vmul.f32 %v19099_v8, %v1599_v9  ;;  %v29984_v9 = vpack.c.bf16 %v20263_v49, %v20261_v4  ;;  %v29985_v8 = vpack.c.bf16 %v20267_v37, %v20265_v30 }
 0x200   :  { %v1601_v33 = vadd.f32 %v1600_v26, %v40_v21  ;;  %v29983_v21 = vld [vmem:[#allocation22_spill] sm:$0xff]  ;;  %v29986_v26 = vld [vmem:[#allocation23_spill] sm:$0xff] }
 0x202   :  { %19102 = vtanh.f32 %v1601_v33  ;;  %v29987_v33 = vpack.c.bf16 %v20274_v57, %v20272_v47 }
 0x20c   :  { %v19103_v45 = vpop.eup %19102 }
 0x20d   :  { %v1604_v18 = vmul.f32 %v19103_v45, %v1603_v22  ;;  %v29989_v22 = vld [vmem:[#allocation24_spill] sm:$0xff]  ;;  %v29990_v45 = vpack.c.bf16 %v20285_v43, %v20283_v12 }
 0x20f   :  { %v20508_v51 = vadd.f32 %v1605_v52, %v1604_v18  ;;  %v29991_v52 = vld [vmem:[#allocation46_spill] sm:$0xff] }
 0x211   :  { %29962 = vst [vmem:[#allocation55_spill] sm:$0xff] %v20508_v51  ;;  %v1607_v29 = vpack.c.bf16 %v20508_v51, %v20508_v51  ;;  %v20513_v34 = vand.u32 4294901760, %v20508_v51 }
 0x213   :  { %1608 = vst [vmem:[%s28705_s5] sm:$0xf] %v1607_v29  ;;  %v20520_v44 = vsub.f32 %v20508_v51, %v20513_v34  ;;  %v29963_v29 = vmov 0.0|0.0   ;;  %v30026_v51 = vand.u32 4294901760, %v20186_v53 }
 0x215   :  { %v20523_v39 = vand.u32 4294901760, %v20520_v44 }
 0x217   :  { %v1763_v18 = vsub.f32 %v20520_v44, %v20523_v39 }
 0x219   :  { %v1764_v59 = vand.u32 4294901760, %v1763_v18  ;;  %v29992_v18 = vpack.c.bf16 %v20289_v41, %v29991_v52 }
 0x21b   :  { %1765 = vmatmul.mubr.f32.vlgmr.msra.gmra.mrb[2].mxu0 %v1764_v59  ;;  %14521 = vmatmul.mubr.f32.vlgmr.msra.gmra.mrb[14].mxu1 %v1764_v59  ;;  %v29993_v59 = vld [vmem:[#allocation25_spill] sm:$0xff] }
 0x21c   :  { %16539 = vmatpush1.bf16.msra.mxu0 %v20343_v54  ;;  %16722 = vmatpush3.bf16.msra.mxu1 %v19745_v61  ;;  %v29964_v61 = vld [vmem:[#allocation14_spill] sm:$0xff] }
 0x21d   :  { %16541 = vmatprep.subr.bf16.mxu0 %v20350_v13  ;;  %16723 = vmatprep.subr.bf16.mxu1 %v29963_v29  ;;  %v29968_v13 = vld [vmem:[#allocation15_spill] sm:$0xff]  ;;  %v29969_v54 = vld [vmem:[#allocation54_spill] sm:$0xff] }
 0x21e   :  { %1995 = vmatprep.mubr.f32.mxu0 %v29869_v11  ;;  %14555 = vmatprep.mubr.msk.f32.mxu1 %vm19186_vm0, %v29869_v11 }
 0x220   :  { %16543 = vmatpush1.bf16.msra.mxu0 %v20359_v28  ;;  %16725 = vmatpush3.bf16.msra.mxu1 %v19759_v35  ;;  %v29965_v35 = vld [vmem:[#allocation17_spill] sm:$0xff]  ;;  %v29971_v28 = vld [vmem:[#allocation20_spill] sm:$0xff] }
 0x221   :  { %16545 = vmatprep.subr.bf16.mxu0 %v20367_v23  ;;  %16726 = vmatprep.subr.bf16.mxu1 %v29963_v29  ;;  %v29966_v23 = vld [vmem:[#allocation52_spill] sm:$0xff] }
 0x224   :  { %16547 = vmatpush1.bf16.msra.mxu0 %v20376_v58  ;;  %16728 = vmatpush3.bf16.msra.mxu1 %v19767_v31  ;;  %v29967_v31 = vld [vmem:[#allocation53_spill] sm:$0xff]  ;;  %v29973_v58 = vpack.c.bf16 %v20191_v38, %v20186_v53  ;;  %v30031_v53 = vand.u32 4294901760, %v20217_v7 }
 0x225   :  { %16549 = vmatprep.subr.bf16.mxu0 %v20391_v63  ;;  %16729 = vmatprep.subr.bf16.mxu1 %v29963_v29  ;;  %v29970_v63 = vld [vmem:[#allocation18_spill] sm:$0xff] }
 0x228   :  { %16551 = vmatpush1.bf16.msra.mxu0 %v20397_v20  ;;  %16731 = vmatpush3.bf16.msra.mxu1 %v29964_v61  ;;  %v29972_v20 = vpack.c.bf16 %v20179_v25, %v20174_v19  ;;  %v29994_v61 = vld [vmem:[#allocation48_spill] sm:$0xff] }
 0x229   :  { %16553 = vmatprep.subr.bf16.mxu0 %v20410_v15  ;;  %16732 = vmatprep.subr.bf16.mxu1 %v29963_v29  ;;  %v29976_v15 = vpack.c.bf16 %v20222_v27, %v20217_v7  ;;  %v30036_v7 = vand.u32 4294901760, %v20238_v0  ;;  %v30043_v0 = vand.u32 4294901760, %v20261_v4  ;;  %v30050_v4 = vld [vmem:[#allocation31_spill] sm:$0xff] }
 0x22c   :  { %16555 = vmatpush1.bf16.msra.mxu0 %v20418_v46  ;;  %16734 = vmatpush3.bf16.msra.mxu1 %v29965_v35  ;;  %v29974_v46 = vld [vmem:[#allocation16_spill] sm:$0xff]  ;;  %v29995_v35 = vpack.c.bf16 %v20295_v2, %v29994_v61 }
 0x22d   :  { %16557 = vmatprep.subr.bf16.mxu0 %v29966_v23  ;;  %16735 = vmatprep.subr.bf16.mxu1 %v29963_v29  ;;  %v29996_v23 = vld [vmem:[#allocation51_spill] sm:$0xff] }
 0x230   :  { %16559 = vmatpush1.bf16.msra.mxu0 %v29967_v31  ;;  %16737 = vmatpush3.bf16.msra.mxu1 %v29968_v13  ;;  %v29997_v31 = vld [vmem:[#allocation49_spill] sm:$0xff] }
 0x231   :  { %16561 = vmatprep.subr.bf16.mxu0 %v29969_v54  ;;  %16738 = vmatprep.subr.bf16.mxu1 %v29963_v29  ;;  %v29998_v13 = vpack.c.bf16 %v29996_v23, %v29997_v31  ;;  %v29999_v54 = vld [vmem:[#allocation26_spill] sm:$0xff] }
 0x234   :  { %16563 = vmatpush1.bf16.msra.mxu0 %v20452_v42  ;;  %16740 = vmatpush3.bf16.msra.mxu1 %v29970_v63  ;;  %v29975_v42 = vpack.c.bf16 %v20212_v3, %v20207_v48  ;;  %v30000_v63 = vld [vmem:[#allocation32_spill] sm:$0xff] }
 0x235   :  { %16565 = vmatprep.subr.bf16.mxu0 %v20463_v10  ;;  %16741 = vmatprep.subr.bf16.mxu1 %v29963_v29  ;;  %v29978_v10 = vpack.c.bf16 %v20233_v5, %v20228_v24 }
 0x238   :  { %16567 = vmatpush1.bf16.msra.mxu0 %v20469_v56  ;;  %16743 = vmatpush3.bf16.msra.mxu1 %v29971_v28  ;;  %v29977_v56 = vld [vmem:[#allocation19_spill] sm:$0xff]  ;;  %v30001_v28 = vld [vmem:[#allocation33_spill] sm:$0xff] }
 0x239   :  { %16569 = vmatprep.subr.bf16.mxu0 %v29972_v20  ;;  %16744 = vmatprep.subr.bf16.mxu1 %v29963_v29  ;;  %v30002_v20 = vld [vmem:[#allocation7_spill] sm:$0xff] }
 0x23b   :  { %1997 = vmatmul.mubr.f32.vlgmr.msra.gmra.mrb[2].mxu0 %v20513_v34  ;;  %14556 = vmatmul.mubr.f32.vlgmr.msra.gmra.mrb[16].mxu1 %v20513_v34 }
 0x23c   :  { %16571 = vmatpush1.bf16.msra.mxu0 %v29973_v58  ;;  %16746 = vmatpush3.bf16.msra.mxu1 %v29974_v46  ;;  %v30003_v58 = vld [vmem:[#allocation34_spill] sm:$0xff]  ;;  %v30004_v46 = vld [vmem:[#allocation35_spill] sm:$0xff] }
 0x23d   :  { %16573 = vmatprep.subr.bf16.mxu0 %v29975_v42  ;;  %16747 = vmatprep.subr.bf16.mxu1 %v29963_v29  ;;  %v30005_v42 = vld [vmem:[#allocation3_spill] sm:$0xff] }
 0x23e   :  { %2131 = vmatprep.mubr.f32.mxu0 %v29869_v11  ;;  %14590 = vmatprep.mubr.msk.f32.mxu1 %vm19186_vm0, %v29869_v11 }
 0x240   :  { %16575 = vmatpush1.bf16.msra.mxu0 %v29976_v15  ;;  %16749 = vmatpush3.bf16.msra.mxu1 %v29977_v56  ;;  %v30006_v15 = vld [vmem:[#allocation36_spill] sm:$0xff] }
 0x241   :  { %16577 = vmatprep.subr.bf16.mxu0 %v29978_v10  ;;  %16750 = vmatprep.subr.bf16.mxu1 %v29963_v29  ;;  %v30008_v56 = vld [vmem:[#allocation8_spill] sm:$0xff]  ;;  %v30009_v10 = vld [vmem:[#allocation38_spill] sm:$0xff] }
 0x244   :  { %16579 = vmatpush1.bf16.msra.mxu0 %v29979_v36  ;;  %16752 = vmatpush3.bf16.msra.mxu1 %v29980_v14  ;;  %v30010_v36 = vld [vmem:[#allocation39_spill] sm:$0xff]  ;;  %v30011_v14 = vld [vmem:[#allocation10_spill] sm:$0xff] }
 0x245   :  { %16581 = vmatprep.subr.bf16.mxu0 %v29981_v6  ;;  %16753 = vmatprep.subr.bf16.mxu1 %v29963_v29  ;;  %v30012_v6 = vld [vmem:[#allocation40_spill] sm:$0xff] }
 0x248   :  { %16583 = vmatpush1.bf16.msra.mxu0 %v29982_v55  ;;  %16755 = vmatpush3.bf16.msra.mxu1 %v29983_v21  ;;  %v30013_v55 = vld [vmem:[#allocation41_spill] sm:$0xff]  ;;  %v30014_v21 = vld [vmem:[#allocation4_spill] sm:$0xff] }
 0x249   :  { %16585 = vmatprep.subr.bf16.mxu0 %v29984_v9  ;;  %16756 = vmatprep.subr.bf16.mxu1 %v29963_v29  ;;  %v30015_v9 = vld [vmem:[#allocation42_spill] sm:$0xff] }
 0x24c   :  { %16587 = vmatpush1.bf16.msra.mxu0 %v29985_v8  ;;  %16758 = vmatpush3.bf16.msra.mxu1 %v29986_v26  ;;  %v30016_v8 = vld [vmem:[#allocation43_spill] sm:$0xff]  ;;  %v30017_v26 = vld [vmem:[#allocation12_spill] sm:$0xff] }
 0x24d   :  { %16589 = vmatprep.subr.bf16.mxu0 %v29987_v33  ;;  %16759 = vmatprep.subr.bf16.mxu1 %v29963_v29  ;;  %v30018_v33 = vld [vmem:[#allocation44_spill] sm:$0xff] }
 0x250   :  { %16591 = vmatpush1.bf16.msra.mxu0 %v29988_v40  ;;  %16761 = vmatpush3.bf16.msra.mxu1 %v29989_v22  ;;  %v30019_v40 = vld [vmem:[#allocation45_spill] sm:$0xff] }
 0x251   :  { %16593 = vmatprep.subr.bf16.mxu0 %v29990_v45  ;;  %16762 = vmatprep.subr.bf16.mxu1 %v29963_v29  ;;  %v30020_v22 = vld [vmem:[#allocation5_spill] sm:$0xff]  ;;  %v30021_v45 = vld [vmem:[#allocation47_spill] sm:$0xff] }
 0x254   :  { %16595 = vmatpush1.bf16.msra.mxu0 %v29992_v18  ;;  %16764 = vmatpush3.bf16.msra.mxu1 %v29993_v59  ;;  %v30022_v18 = vand.u32 4294901760, %v20174_v19  ;;  %v30023_v59 = vand.u32 4294901760, %v20179_v25  ;;  %v30030_v25 = vld [vmem:[#allocation27_spill] sm:$0xff] }
 0x255   :  { %16597 = vmatprep.subr.bf16.mxu0 %v29995_v35  ;;  %16765 = vmatprep.subr.bf16.mxu1 %v29963_v29 }
 0x256   :  { %v16632_v35 = vpack.c.bf16 %v30023_v59, %v30022_v18  ;;  %v30041_v18 = vand.u32 4294901760, %v20256_v50  ;;  %v30042_v59 = vand.u32 4294901760, %v20259_v17  ;;  %v30048_v50 = vand.u32 4294901760, %v20272_v47  ;;  %v30055_v47 = vld [vmem:[#allocation13_spill] sm:$0xff] }
 0x257   :  { %v30049_v17 = vand.u32 4294901760, %v20274_v57  ;;  %v30056_v57 = vand.u32 4294901760, %v29991_v52  ;;  %v30065_v52 = vld [vmem:[#allocation45_spill] sm:$0xff] }
 0x258   :  { %16599 = vmatpush1.bf16.msra.mxu0 %v29998_v13  ;;  %16767 = vmatpush3.bf16.msra.mxu1 %v29999_v54  ;;  %v30024_v13 = vld [vmem:[#allocation50_spill] sm:$0xff]  ;;  %v30025_v54 = vld [vmem:[#allocation9_spill] sm:$0xff] }
 0x259   :  { %16601 = vmatprep.subr.bf16.mxu0 %v30000_v63  ;;  %16768 = vmatprep.subr.bf16.mxu1 %v29963_v29 }
 0x25b   :  { %2134 = vmatmul.mubr.f32.vlgmr.msra.gmra.mrb[2].mxu0 %v20520_v44  ;;  %14591 = vmatmul.mubr.f32.vlgmr.msra.gmra.mrb[18].mxu1 %v20520_v44  ;;  %v30007_v44 = vld [vmem:[#allocation37_spill] sm:$0xff] }
 0x25c   :  { %16603 = vmatpush1.bf16.msra.mxu0 %v30001_v28  ;;  %16770 = vmatpush3.bf16.msra.mxu1 %v30002_v20 }
 0x25d   :  { %16605 = vmatprep.subr.bf16.mxu0 %v30003_v58  ;;  %16771 = vmatprep.subr.bf16.mxu1 %v29963_v29 }
 0x25e   :  { %2236 = vmatprep.mubr.f32.mxu0 %v29869_v11  ;;  %14625 = vmatprep.mubr.msk.f32.mxu1 %vm19186_vm0, %v29869_v11 }
 0x260   :  { %16607 = vmatpush1.bf16.msra.mxu0 %v30004_v46  ;;  %16773 = vmatpush3.bf16.msra.mxu1 %v30005_v42 }
 0x261   :  { %16609 = vmatprep.subr.bf16.mxu0 %v30006_v15  ;;  %16774 = vmatprep.subr.bf16.mxu1 %v29963_v29 }
 0x264   :  { %16611 = vmatpush1.bf16.msra.mxu0 %v30007_v44  ;;  %16776 = vmatpush3.bf16.msra.mxu1 %v30008_v56 }
 0x265   :  { %16613 = vmatprep.subr.bf16.mxu0 %v30009_v10  ;;  %16777 = vmatprep.subr.bf16.mxu1 %v29963_v29 }
 0x268   :  { %16615 = vmatpush1.bf16.msra.mxu0 %v30010_v36  ;;  %16779 = vmatpush3.bf16.msra.mxu1 %v30011_v14 }
 0x269   :  { %16617 = vmatprep.subr.bf16.mxu0 %v30012_v6  ;;  %16780 = vmatprep.subr.bf16.mxu1 %v29963_v29 }
 0x26c   :  { %16619 = vmatpush1.bf16.msra.mxu0 %v30013_v55  ;;  %16782 = vmatpush3.bf16.msra.mxu1 %v30014_v21 }
 0x26d   :  { %16621 = vmatprep.subr.bf16.mxu0 %v30015_v9  ;;  %16783 = vmatprep.subr.bf16.mxu1 %v29963_v29 }
 0x270   :  { %16623 = vmatpush1.bf16.msra.mxu0 %v30016_v8  ;;  %16785 = vmatpush3.bf16.msra.mxu1 %v30017_v26 }
 0x271   :  { %16625 = vmatprep.subr.bf16.mxu0 %v30018_v33  ;;  %16786 = vmatprep.subr.bf16.mxu1 %v29963_v29  ;;  %v30027_v33 = vand.u32 4294901760, %v20191_v38  ;;  %v30032_v38 = vand.u32 4294901760, %v20222_v27  ;;  %v30037_v27 = vand.u32 4294901760, %v20243_v16  ;;  %v30044_v16 = vand.u32 4294901760, %v20263_v49 }
 0x272   :  { %v30051_v49 = vand.u32 4294901760, %v20276_v32  ;;  %v30058_v32 = vand.u32 4294901760, %v29994_v61  ;;  %v30066_v61 = vld [vmem:[#allocation5_spill] sm:$0xff] }
 0x274   :  { %16627 = vmatpush1.bf16.msra.mxu0 %v30019_v40  ;;  %16788 = vmatpush3.bf16.msra.mxu1 %v30020_v22  ;;  %v16634_v40 = vpack.c.bf16 %v30027_v33, %v30026_v51  ;;  %v30029_v22 = vand.u32 4294901760, %v20212_v3  ;;  %v16638_v51 = vpack.c.bf16 %v30032_v38, %v30031_v53  ;;  %v30034_v3 = vand.u32 4294901760, %v20233_v5 }
 0x275   :  { %16629 = vmatprep.subr.bf16.mxu0 %v30021_v45  ;;  %16789 = vmatprep.subr.bf16.mxu1 %v29963_v29  ;;  %v30028_v45 = vand.u32 4294901760, %v20207_v48  ;;  %v30033_v48 = vand.u32 4294901760, %v20228_v24  ;;  %v30038_v24 = vand.u32 4294901760, %v20248_v1  ;;  %v30039_v5 = vand.u32 4294901760, %v20253_v62  ;;  %v30045_v1 = vld [vmem:[#allocation30_spill] sm:$0xff] }
 0x276   :  { %v30046_v62 = vand.u32 4294901760, %v20265_v30  ;;  %v16652_v38 = vpack.c.bf16 %v30049_v17, %v30048_v50  ;;  %v30054_v30 = vand.u32 4294901760, %v20285_v43  ;;  %v30061_v43 = vand.u32 4294901760, %v29997_v31 }
 0x277   :  { %v16636_v19 = vpack.c.bf16 %v30029_v22, %v30028_v45  ;;  %v16640_v33 = vpack.c.bf16 %v30034_v3, %v30033_v48  ;;  %v16644_v22 = vpack.c.bf16 %v30039_v5, %v30038_v24  ;;  %v30040_v45 = vld [vmem:[#allocation29_spill] sm:$0xff] }
 0x278   :  { %16631 = vmatpush1.bf16.msra.mxu0 %v30024_v13  ;;  %16791 = vmatpush3.bf16.msra.mxu1 %v30025_v54 }
 0x279   :  { %16633 = vmatprep.subr.bf16.mxu0 %v16632_v35  ;;  %16792 = vmatprep.subr.bf16.mxu1 %v29963_v29  ;;  %v16646_v35 = vpack.c.bf16 %v30042_v59, %v30041_v18  ;;  %v20874_v18 = vld [vmem:[%s28702_s1 + $0x40] sm:$0xff] }
 0x27b   :  { %2240 = vmatmul.mubr.f32.vlgmr.msra.gmra.mrb[2].mxu0 %v20523_v39  ;;  %14626 = vmatmul.mubr.f32.vlgmr.msra.gmra.mrb[20].mxu1 %v20523_v39  ;;  %v30035_v39 = vld [vmem:[#allocation28_spill] sm:$0xff] }
 0x27c   :  { %16635 = vmatpush1.bf16.msra.mxu0 %v16634_v40  ;;  %16794 = vmatpush3.bf16.msra.mxu1 %v30030_v25  ;;  %v16642_v40 = vpack.c.bf16 %v30037_v27, %v30036_v7  ;;  %v30047_v25 = vand.u32 4294901760, %v20267_v37  ;;  %v30053_v37 = vand.u32 4294901760, %v20283_v12  ;;  %v30060_v12 = vld [vmem:[#allocation6_spill] sm:$0xff]  ;;  %v30062_v27 = vand.u32 4294901760, %v29996_v23  ;;  %v30067_v23 = vld [vmem:[#allocation47_spill] sm:$0xff] }
 0x27d   :  { %16637 = vmatprep.subr.bf16.mxu0 %v16636_v19  ;;  %16795 = vmatprep.subr.bf16.mxu1 %v29963_v29  ;;  %v16648_v19 = vpack.c.bf16 %v30044_v16, %v30043_v0  ;;  %v20882_v0 = vld [vmem:[%s28702_s1 + $0x58] sm:$0xff]  ;;  %v28873_v16 = vand.u32 4294901760, %v20874_v18 }
 0x27e   :  { %2406 = vmatprep.mubr.f32.mxu0 %v29869_v11  ;;  %14660 = vmatprep.mubr.msk.f32.mxu1 %vm19186_vm0, %v29869_v11  ;;  %v16650_v53 = vpack.c.bf16 %v30047_v25, %v30046_v62  ;;  %v16656_v3 = vpack.c.bf16 %v30054_v30, %v30053_v37  ;;  %v20903_v25 = vld [vmem:[%s28702_s1 + $0x68] sm:$0xff] }
 0x27f   :  { %v28871_v17 = vand.u32 4294901760, %v20903_v25  ;;  %v20940_v30 = vld [vmem:[%s28702_s1 + $0x88] sm:$0xff] }
 0x280   :  { %16639 = vmatpush1.bf16.msra.mxu0 %v16638_v51  ;;  %16797 = vmatpush3.bf16.msra.mxu1 %v30035_v39  ;;  %v30052_v51 = vand.u32 4294901760, %v20278_v60  ;;  %v30059_v60 = vand.u32 4294901760, %v20295_v2  ;;  %v30064_v2 = vld [vmem:[#allocation44_spill] sm:$0xff] }
 0x281   :  { %16641 = vmatprep.subr.bf16.mxu0 %v16640_v33  ;;  %16798 = vmatprep.subr.bf16.mxu1 %v29963_v29  ;;  %v30057_v33 = vand.u32 4294901760, %v20289_v41  ;;  %v30063_v41 = vld [vmem:[#allocation11_spill] sm:$0xff] }
 0x282   :  { %v16654_v48 = vpack.c.bf16 %v30052_v51, %v30051_v49  ;;  %v16660_v7 = vpack.c.bf16 %v30059_v60, %v30058_v32  ;;  %v20927_v49 = vld [vmem:[%s28702_s1 + $0x78] sm:$0xff]  ;;  %v20932_v51 = vld [vmem:[%s28702_s1 + $0x70] sm:$0xff] }
 0x283   :  { %v16658_v39 = vpack.c.bf16 %v30057_v33, %v30056_v57  ;;  %v28868_v37 = vand.u32 4294901760, %v20927_v49  ;;  %v28864_v57 = vand.u32 4294901760, %v20940_v30  ;;  %v20961_v32 = vld [vmem:[%s28702_s1 + $0x98] sm:$0xff]  ;;  %v20966_v60 = vld [vmem:[%s28702_s1 + $0xb0] sm:$0xff] }
 0x284   :  { %16643 = vmatpush1.bf16.msra.mxu0 %v16642_v40  ;;  %16800 = vmatpush3.bf16.msra.mxu1 %v30040_v45  ;;  %v16662_v40 = vpack.c.bf16 %v30062_v27, %v30061_v43  ;;  %v20869_v45 = vld [vmem:[%s28702_s1 + $0x48] sm:$0xff]  ;;  %v28863_v27 = vand.u32 4294901760, %v20961_v32 }
 0x285   :  { %16645 = vmatprep.subr.bf16.mxu0 %v16644_v22  ;;  %16801 = vmatprep.subr.bf16.mxu1 %v29963_v29  ;;  %v20864_v22 = vld [vmem:[%s28702_s1 + $0x30] sm:$0xff] }
 0x286   :  { %v28879_v59 = vand.u32 4294901760, %v20864_v22 }
 0x288   :  { %16647 = vmatpush1.bf16.msra.mxu0 %v16646_v35  ;;  %16803 = vmatpush3.bf16.msra.mxu1 %v30045_v1  ;;  %v28878_v35 = vand.u32 4294901760, %v20869_v45  ;;  %v28872_v1 = vand.u32 4294901760, %v20882_v0 }
 0x289   :  { %16649 = vmatprep.subr.bf16.mxu0 %v16648_v19  ;;  %16804 = vmatprep.subr.bf16.mxu1 %v29963_v29 }
 0x28a   :  { %v20898_v62 = vpack.c.bf16 %v28878_v35, %v28879_v59  ;;  %v20915_v50 = vpack.c.bf16 %v28872_v1, %v28873_v16  ;;  %v21079_v16 = vld [vmem:[%s28702_s1 + $0xf8] sm:$0xff]  ;;  %v21098_v35 = vld [vmem:[%s28702_s1 + $0xf0] sm:$0xff]  ;;  %v21103_v59 = vld [vmem:[%s28702_s1 + $0x108] sm:$0xff] }
 0x28c   :  { %16651 = vmatpush1.bf16.msra.mxu0 %v16650_v53  ;;  %16806 = vmatpush3.bf16.msra.mxu1 %v30050_v4  ;;  %30072 = vst [vmem:[#allocation15_spill] sm:$0xff] %v20898_v62  ;;  %v20908_v53 = vld [vmem:[%s28702_s1 + $0x80] sm:$0xff]  ;;  %30073 = vst [vmem:[#allocation54_spill] sm:$0xff] %v20915_v50 }
 0x28d   :  { %16653 = vmatprep.subr.bf16.mxu0 %v16652_v38  ;;  %16807 = vmatprep.subr.bf16.mxu1 %v29963_v29  ;;  %v28870_v38 = vand.u32 4294901760, %v20908_v53  ;;  %v20922_v4 = vld [vmem:[%s28702_s1 + $0x60] sm:$0xff] }
 0x290   :  { %16655 = vmatpush1.bf16.msra.mxu0 %v16654_v48  ;;  %16809 = vmatpush3.bf16.msra.mxu1 %v30055_v47  ;;  %v28869_v48 = vand.u32 4294901760, %v20922_v4  ;;  %v20948_v47 = vpack.c.bf16 %v28870_v38, %v28871_v17 }
 0x291   :  { %16657 = vmatprep.subr.bf16.mxu0 %v16656_v3  ;;  %16810 = vmatprep.subr.bf16.mxu1 %v29963_v29  ;;  %v28865_v3 = vand.u32 4294901760, %v20932_v51 }
 0x292   :  { %30074 = vst [vmem:[#allocation18_spill] sm:$0xff] %v20948_v47 }
 0x293   :  { %v20975_v43 = vpack.c.bf16 %v28864_v57, %v28865_v3  ;;  %v21045_v57 = vld [vmem:[%s28702_s1 + $0xd8] sm:$0xff]  ;;  %v21050_v3 = vld [vmem:[%s28702_s1 + $0xd0] sm:$0xff] }
 0x294   :  { %16659 = vmatpush1.bf16.msra.mxu0 %v16658_v39  ;;  %16812 = vmatpush3.bf16.msra.mxu1 %v30060_v12  ;;  %v20956_v39 = vpack.c.bf16 %v28868_v37, %v28869_v48  ;;  %v21058_v37 = vld [vmem:[%s28702_s1 + $0xe8] sm:$0xff]  ;;  %v28882_v48 = vand.u32 4294901760, %v21050_v3 }
 0x295   :  { %16661 = vmatprep.subr.bf16.mxu0 %v16660_v7  ;;  %16813 = vmatprep.subr.bf16.mxu1 %v29963_v29  ;;  %30077 = vst [vmem:[#allocation19_spill] sm:$0xff] %v20975_v43  ;;  %v28881_v17 = vand.u32 4294901760, %v21058_v37 }
 0x296   :  { %30075 = vst [vmem:[#allocation20_spill] sm:$0xff] %v20956_v39 }
 0x298   :  { %16663 = vmatpush1.bf16.msra.mxu0 %v16662_v40  ;;  %16815 = vmatpush3.bf16.msra.mxu1 %v30063_v41  ;;  %v28860_v40 = vand.u32 4294901760, %v20966_v60  ;;  %v20982_v41 = vld [vmem:[%s28702_s1 + $0x90] sm:$0xff] }
 0x299   :  { %16665 = vmatprep.subr.bf16.mxu0 %v30000_v63  ;;  %16816 = vmatprep.subr.bf16.mxu1 %v29963_v29 }
 0x29b   :  { %2408 = vmatmul.mubr.f32.vlgmr.msra.gmra.mrb[2].mxu0 %v20513_v34  ;;  %14661 = vmatmul.mubr.f32.vlgmr.msra.gmra.mrb[22].mxu1 %v20513_v34 }
 0x29c   :  { %16667 = vmatpush1.bf16.msra.mxu0 %v30001_v28  ;;  %16818 = vmatpush3.bf16.msra.mxu1 %v30002_v20 }
 0x29d   :  { %16669 = vmatprep.subr.bf16.mxu0 %v30003_v58  ;;  %16819 = vmatprep.subr.bf16.mxu1 %v29963_v29 }
 0x29e   :  { %2510 = vmatprep.mubr.f32.mxu0 %v29869_v11  ;;  %14695 = vmatprep.mubr.msk.f32.mxu1 %vm19186_vm0, %v29869_v11 }
 0x2a0   :  { %16671 = vmatpush1.bf16.msra.mxu0 %v30004_v46  ;;  %16821 = vmatpush3.bf16.msra.mxu1 %v30005_v42  ;;  %v20797_v46 = vld [vmem:[%s28702_s1 + $0x8] sm:$0xff]  ;;  %v20802_v42 = vld [vmem:[%s28702_s1 + $0x20] sm:$0xff] }
 0x2a1   :  { %16673 = vmatprep.subr.bf16.mxu0 %v30006_v15  ;;  %16822 = vmatprep.subr.bf16.mxu1 %v29963_v29  ;;  %v28888_v15 = vand.u32 4294901760, %v20802_v42 }
 0x2a4   :  { %16675 = vmatpush1.bf16.msra.mxu0 %v30007_v44  ;;  %16824 = vmatpush3.bf16.msra.mxu1 %v30008_v56  ;;  %v20809_v44 = vld [vmem:[%s28702_s1] sm:$0xff]  ;;  %v20814_v56 = vld [vmem:[%s28702_s1 + $0x18] sm:$0xff] }
 0x2a5   :  { %16677 = vmatprep.subr.bf16.mxu0 %v30009_v10  ;;  %16825 = vmatprep.subr.bf16.mxu1 %v29963_v29  ;;  %v20819_v10 = vld [vmem:[%s28702_s1 + $0x10] sm:$0xff] }
 0x2a8   :  { %16679 = vmatpush1.bf16.msra.mxu0 %v30010_v36  ;;  %16827 = vmatpush3.bf16.msra.mxu1 %v30011_v14  ;;  %v28887_v36 = vand.u32 4294901760, %v20809_v44  ;;  %v28886_v14 = vand.u32 4294901760, %v20814_v56 }
 0x2a9   :  { %16681 = vmatprep.subr.bf16.mxu0 %v30012_v6  ;;  %16828 = vmatprep.subr.bf16.mxu1 %v29963_v29  ;;  %v20826_v6 = vld [vmem:[%s28702_s1 + $0x28] sm:$0xff] }
 0x2ac   :  { %16683 = vmatpush1.bf16.msra.mxu0 %v30013_v55  ;;  %16830 = vmatpush3.bf16.msra.mxu1 %v30014_v21  ;;  %v28885_v55 = vand.u32 4294901760, %v20819_v10 }
 0x2ad   :  { %16685 = vmatprep.subr.bf16.mxu0 %v30015_v9  ;;  %16831 = vmatprep.subr.bf16.mxu1 %v29963_v29  ;;  %v28884_v9 = vand.u32 4294901760, %v20826_v6 }
 0x2b0   :  { %16687 = vmatpush1.bf16.msra.mxu0 %v30016_v8  ;;  %16833 = vmatpush3.bf16.msra.mxu1 %v30017_v26  ;;  %v20840_v8 = vpack.c.bf16 %v28886_v14, %v28887_v36  ;;  %v20845_v26 = vld [vmem:[%s28702_s1 + $0x38] sm:$0xff] }
 0x2b1   :  { %16689 = vmatprep.subr.bf16.mxu0 %v30064_v2  ;;  %16834 = vmatprep.subr.bf16.mxu1 %v29963_v29  ;;  %v28883_v24 = vand.u32 4294901760, %v20845_v26  ;;  %v20987_v2 = vld [vmem:[%s28702_s1 + $0xa8] sm:$0xff] }
 0x2b2   :  { %30069 = vst [vmem:[#allocation17_spill] sm:$0xff] %v20840_v8 }
 0x2b4   :  { %16691 = vmatpush1.bf16.msra.mxu0 %v30065_v52  ;;  %16836 = vmatpush3.bf16.msra.mxu1 %v30066_v61  ;;  %v20992_v52 = vld [vmem:[%s28702_s1 + $0xa0] sm:$0xff]  ;;  %v28862_v61 = vand.u32 4294901760, %v20982_v41 }
 0x2b5   :  { %16693 = vmatprep.subr.bf16.mxu0 %v30067_v23  ;;  %16837 = vmatprep.subr.bf16.mxu1 %v29963_v29  ;;  %v28861_v23 = vand.u32 4294901760, %v20987_v2 }
 0x2b8   :  { %16695 = vmatpush1.bf16.msra.mxu0 %v30024_v13  ;;  %16839 = vmatpush3.bf16.msra.mxu1 %v30025_v54  ;;  %v20850_v13 = vld [vmem:[%s28702_s1 + $0x50] sm:$0xff]  ;;  %v20857_v54 = vpack.c.bf16 %v28884_v9, %v28885_v55 }
 0x2b9   :  { %17032 = vmatprep.subr.bf16.mxu1 %v29963_v29  ;;  %v28880_v5 = vand.u32 4294901760, %v20850_v13 }
 0x2ba   :  { %30070 = vst [vmem:[#allocation52_spill] sm:$0xff] %v20857_v54 }
 0x2bb   :  { %2512 = vmatmul.mubr.f32.vlgmr.msra.gmra.mrb[2].mxu0 %v20513_v34  ;;  %14696 = vmatmul.mubr.f32.vlgmr.msra.gmra.mrb[24].mxu1 %v20513_v34  ;;  %v28893_v34 = vand.u32 4294901760, %v20797_v46  ;;  %v20890_v19 = vpack.c.bf16 %v28880_v5, %v28883_v24  ;;  %v21108_v5 = vld [vmem:[%s28702_s1 + $0x100] sm:$0xff]  ;;  %v21116_v24 = vld [vmem:[%s28702_s1 + $0x118] sm:$0xff] }
 0x2bc   :  { %3334 = vmatprep.mubr.f32.mxu0 %v29869_v11  ;;  %14730 = vmatprep.mubr.msk.f32.mxu1 %vm19186_vm0, %v29869_v11  ;;  %v28899_v9 = vand.u32 4294901760, %v21108_v5  ;;  %v28898_v14 = vand.u32 4294901760, %v21116_v24 }
 0x2bd   :  { %v20833_v21 = vpack.c.bf16 %v28888_v15, %v28893_v34  ;;  %17034 = vmatpush3.bf16.msra.mxu1 %v20857_v54  ;;  %30071 = vst [vmem:[#allocation53_spill] sm:$0xff] %v20890_v19  ;;  %v21137_v15 = vld [vmem:[%s28702_s1 + $0x128] sm:$0xff]  ;;  %v21156_v34 = vld [vmem:[%s28702_s1 + $0x120] sm:$0xff] }
 0x2be   :  { %17035 = vmatprep.subr.bf16.mxu1 %v29963_v29 }
 0x2bf   :  { %30068 = vst [vmem:[#allocation14_spill] sm:$0xff] %v20833_v21  ;;  %16841 = vmatprep.subr.bf16.mxu0 %v20833_v21  ;;  %v30099_v21 = vand.u32 4294901760, %v20869_v45 }
 0x2c0   :  { %16843 = vmatpush1.bf16.msra.mxu0 %v20840_v8  ;;  %v30098_v8 = vand.u32 4294901760, %v20864_v22 }
 0x2c1   :  { %16845 = vmatprep.subr.bf16.mxu0 %v20890_v19  ;;  %17037 = vmatpush3.bf16.msra.mxu1 %v20915_v50  ;;  %v30097_v19 = vand.u32 4294901760, %v20850_v13  ;;  %v21238_v11 = vsub.f32 %v20869_v45, %v30099_v21  ;;  %v30106_v45 = vand.u32 4294901760, %v20922_v4 }
 0x2c2   :  { %17038 = vmatprep.subr.bf16.mxu1 %v29963_v29 }
 0x2c3   :  { %v21228_v54 = vsub.f32 %v20850_v13, %v30097_v19  ;;  %v30103_v19 = vand.u32 4294901760, %v20903_v25 }
 0x2c4   :  { %16847 = vmatpush1.bf16.msra.mxu0 %v20898_v62  ;;  %v30091_v62 = vand.u32 4294901760, %v20814_v56 }
 0x2c5   :  { %16849 = vmatprep.subr.bf16.mxu0 %v20948_v47  ;;  %17040 = vmatpush3.bf16.msra.mxu1 %v20975_v43  ;;  %v30090_v47 = vand.u32 4294901760, %v20809_v44 }
 0x2c6   :  { %17041 = vmatprep.subr.bf16.mxu1 %v29963_v29 }
 0x2c7   :  { %v21191_v50 = vsub.f32 %v20809_v44, %v30090_v47  ;;  %v3233_v44 = vld [vmem:[%s28702_s1 + $0x158] sm:$0xff] }
 0x2c8   :  { %16851 = vmatpush1.bf16.msra.mxu0 %v20956_v39  ;;  %v3294_v47 = vand.u32 4294901760, %v3233_v44 }
 0x2ee   :  { %v2605_v31 = vpop.f32.mrb[14].mxu1 }
 0x2ef   :  { %v14522_v63 = vpop.f32.mrb[15].mxu1 }
 0x2f0   :  { %v28867_v63 = vand.u32 4294901760, %v20992_v52 }
 0x30e   :  { %v2756_v28 = vpop.f32.mrb[16].mxu1 }
 0x30f   :  { %v2757_v20 = vadd.f32 %v2756_v28, %v2605_v31  ;;  %v14557_v58 = vpop.f32.mrb[17].mxu1  ;;  %v21000_v31 = vld [vmem:[%s28702_s1 + $0xb8] sm:$0xff]  ;;  %v21008_v28 = vpack.c.bf16 %v28860_v40, %v28863_v27  ;;  %v21040_v27 = vld [vmem:[%s28702_s1 + $0xc0] sm:$0xff] }
 0x310   :  { %v21016_v58 = vpack.c.bf16 %v28861_v23, %v28862_v61 }
 0x311   :  { %30078 = vst [vmem:[#allocation21_spill] sm:$0xff] %v21008_v28  ;;  %16853 = vmatprep.subr.bf16.mxu0 %v21008_v28  ;;  %v30088_v28 = vand.u32 4294901760, %v20802_v42 }
 0x312   :  { %30079 = vst [vmem:[#allocation22_spill] sm:$0xff] %v21016_v58  ;;  %16855 = vmatpush1.bf16.msra.mxu0 %v21016_v58 }
 0x313   :  { %v21183_v43 = vsub.f32 %v20802_v42, %v30088_v28  ;;  %v30093_v28 = vand.u32 4294901760, %v20826_v6 }
 0x32e   :  { %v2860_v33 = vpop.f32.mrb[18].mxu1 }
 0x32f   :  { %v20968_v7 = vadd.f32 %v2860_v33, %v2757_v20  ;;  %v14592_v12 = vpop.f32.mrb[19].mxu1  ;;  %v28866_v20 = vand.u32 4294901760, %v21000_v31  ;;  %v21021_v33 = vld [vmem:[%s28702_s1 + $0xc8] sm:$0xff] }
 0x330   :  { %v21026_v12 = vld [vmem:[%s28702_s1 + $0xe0] sm:$0xff]  ;;  %v28875_v23 = vand.u32 4294901760, %v21021_v33 }
 0x331   :  { %30076 = vst [vmem:[#allocation16_spill] sm:$0xff] %v20968_v7  ;;  %v21033_v40 = vpack.c.bf16 %v28866_v20, %v28867_v63  ;;  %v28874_v61 = vand.u32 4294901760, %v21026_v12  ;;  %v28877_v20 = vand.u32 4294901760, %v21040_v27  ;;  %v28876_v63 = vand.u32 4294901760, %v21045_v57 }
 0x332   :  { %v30100_v7 = vand.u32 4294901760, %v20874_v18 }
 0x333   :  { %30080 = vst [vmem:[#allocation23_spill] sm:$0xff] %v21033_v40  ;;  %17043 = vmatpush3.bf16.msra.mxu1 %v21033_v40  ;;  %v21066_v38 = vpack.c.bf16 %v28874_v61, %v28875_v23  ;;  %v21074_v1 = vpack.c.bf16 %v28876_v63, %v28877_v20  ;;  %v21084_v61 = vld [vmem:[%s28702_s1 + $0x110] sm:$0xff]  ;;  %v21091_v23 = vpack.c.bf16 %v28881_v17, %v28882_v48  ;;  %v28890_v63 = vand.u32 4294901760, %v21079_v16 }
 0x334   :  { %17044 = vmatprep.subr.bf16.mxu1 %v29963_v29  ;;  %v28889_v20 = vand.u32 4294901760, %v21084_v61  ;;  %v28892_v17 = vand.u32 4294901760, %v21098_v35  ;;  %v28891_v48 = vand.u32 4294901760, %v21103_v59  ;;  %v30087_v40 = vand.u32 4294901760, %v20797_v46 }
 0x335   :  { %30081 = vst [vmem:[#allocation24_spill] sm:$0xff] %v21066_v38  ;;  %30082 = vst [vmem:[#allocation46_spill] sm:$0xff] %v21074_v1  ;;  %16857 = vmatprep.subr.bf16.mxu0 %v21066_v38 }
 0x336   :  { %30083 = vst [vmem:[#allocation25_spill] sm:$0xff] %v21091_v23  ;;  %16859 = vmatpush1.bf16.msra.mxu0 %v21074_v1  ;;  %v21124_v55 = vpack.c.bf16 %v28889_v20, %v28890_v63  ;;  %v21132_v36 = vpack.c.bf16 %v28891_v48, %v28892_v17  ;;  %v21142_v20 = vld [vmem:[%s28702_s1 + $0x140] sm:$0xff]  ;;  %v21149_v63 = vpack.c.bf16 %v28898_v14, %v28899_v9  ;;  %v3286_v48 = vand.u32 4294901760, %v21137_v15  ;;  %v3231_v1 = vld [vmem:[%s28702_s1 + $0x148] sm:$0xff] }
 0x337   :  { %17046 = vmatpush3.bf16.msra.mxu1 %v21091_v23  ;;  %v3290_v17 = vand.u32 4294901760, %v21142_v20  ;;  %v21161_v23 = vld [vmem:[%s28702_s1 + $0x138] sm:$0xff]  ;;  %v3288_v14 = vand.u32 4294901760, %v21156_v34  ;;  %v21178_v58 = vsub.f32 %v20797_v46, %v30087_v40  ;;  %v4133_v39 = vand.u32 4294901760, %v3231_v1 }
 0x338   :  { %30084 = vst [vmem:[#allocation48_spill] sm:$0xff] %v21124_v55  ;;  %17047 = vmatprep.subr.bf16.mxu1 %v29963_v29  ;;  %30085 = vst [vmem:[#allocation51_spill] sm:$0xff] %v21132_v36  ;;  %16861 = vmatprep.subr.bf16.mxu0 %v21124_v55  ;;  %v21166_v55 = vld [vmem:[%s28702_s1 + $0x130] sm:$0xff]  ;;  %v3292_v9 = vand.u32 4294901760, %v21161_v23  ;;  %v21196_v46 = vsub.f32 %v20814_v56, %v30091_v62  ;;  %v30092_v40 = vand.u32 4294901760, %v20819_v10 }
 0x339   :  { %30086 = vst [vmem:[#allocation49_spill] sm:$0xff] %v21149_v63  ;;  %v4130_v38 = vand.u32 4294901760, %v21166_v55  ;;  %v3236_v56 = vld [vmem:[%s28702_s1 + $0x170] sm:$0xff] }
 0x33a   :  { %16863 = vmatpush1.bf16.msra.mxu0 %v21132_v36  ;;  %v21186_v36 = vpack.c.bf16 %v3290_v17, %v3286_v48  ;;  %v21201_v42 = vsub.f32 %v20819_v10, %v30092_v40  ;;  %v21216_v62 = vpack.c.bf16 %v3292_v9, %v3288_v14  ;;  %v3298_v40 = vand.u32 4294901760, %v3236_v56 }
 0x33b   :  { %17049 = vmatpush3.bf16.msra.mxu1 %v21149_v63  ;;  %v21206_v63 = vsub.f32 %v20826_v6, %v30093_v28  ;;  %v21218_v10 = vpack.c.bf16 %v4133_v39, %v4130_v38  ;;  %v30096_v6 = vand.u32 4294901760, %v20845_v26 }
 0x33c   :  { %30089 = vst [vmem:[#allocation26_spill] sm:$0xff] %v21186_v36  ;;  %17050 = vmatprep.subr.bf16.mxu1 %v29963_v29  ;;  %16865 = vmatprep.subr.bf16.mxu0 %v21186_v36  ;;  %30094 = vst [vmem:[#allocation32_spill] sm:$0xff] %v21216_v62  ;;  %v21233_v36 = vsub.f32 %v20864_v22, %v30098_v8  ;;  %v21253_v8 = vsub.f32 %v20903_v25, %v30103_v19  ;;  %v30104_v22 = vand.u32 4294901760, %v20908_v53 }
 0x33d   :  { %30095 = vst [vmem:[#allocation33_spill] sm:$0xff] %v21218_v10  ;;  %v21223_v28 = vsub.f32 %v20845_v26, %v30096_v6  ;;  %v21243_v26 = vsub.f32 %v20874_v18, %v30100_v7  ;;  %v30102_v6 = vand.u32 4294901760, %v20882_v0  ;;  %v21264_v18 = vsub.f32 %v20922_v4, %v30106_v45 }
 0x33e   :  { %v21258_v21 = vsub.f32 %v20908_v53, %v30104_v22  ;;  %16867 = vmatpush1.bf16.msra.mxu0 %v21216_v62  ;;  %v30108_v25 = vand.u32 4294901760, %v20932_v51  ;;  %v30109_v53 = vand.u32 4294901760, %v20940_v30  ;;  %v30110_v4 = vand.u32 4294901760, %v20961_v32 }
 0x33f   :  { %30101 = vst [vmem:[#allocation7_spill] sm:$0xff] %v21243_v26  ;;  %v21248_v13 = vsub.f32 %v20882_v0, %v30102_v6  ;;  %v30107_v0 = vand.u32 4294901760, %v20927_v49  ;;  %17052 = vmatpush3.bf16.msra.mxu1 %v21218_v10 }
 0x340   :  { %30105 = vst [vmem:[#allocation34_spill] sm:$0xff] %v21258_v21  ;;  %v21274_v6 = vsub.f32 %v20932_v51, %v30108_v25  ;;  %v21279_v19 = vsub.f32 %v20940_v30, %v30109_v53  ;;  %v21285_v22 = vsub.f32 %v20961_v32, %v30110_v4  ;;  %v30112_v51 = vand.u32 4294901760, %v20982_v41  ;;  %17053 = vmatprep.subr.bf16.mxu1 %v29963_v29 }
 0x341   :  { %v21269_v7 = vsub.f32 %v20927_v49, %v30107_v0  ;;  %v30111_v49 = vand.u32 4294901760, %v20966_v60  ;;  %v30113_v30 = vand.u32 4294901760, %v20987_v2  ;;  %v30114_v32 = vand.u32 4294901760, %v20992_v52 }
 0x342   :  { %v21295_v0 = vsub.f32 %v20982_v41, %v30112_v51  ;;  %v30116_v41 = vand.u32 4294901760, %v21021_v33 }
 0x343   :  { %v21290_v45 = vsub.f32 %v20966_v60, %v30111_v49  ;;  %v21300_v25 = vsub.f32 %v20987_v2, %v30113_v30  ;;  %v21306_v53 = vsub.f32 %v20992_v52, %v30114_v32  ;;  %v30115_v60 = vand.u32 4294901760, %v21000_v31 }
 0x344   :  { %v21316_v49 = vsub.f32 %v21021_v33, %v30116_v41  ;;  %v30117_v2 = vand.u32 4294901760, %v21026_v12  ;;  %v30118_v30 = vand.u32 4294901760, %v21040_v27  ;;  %v30119_v32 = vand.u32 4294901760, %v21045_v57 }
 0x345   :  { %v21311_v4 = vsub.f32 %v21000_v31, %v30115_v60  ;;  %v30120_v60 = vand.u32 4294901760, %v21050_v3  ;;  %v30121_v41 = vand.u32 4294901760, %v21058_v37 }
 0x346   :  { %v21321_v51 = vsub.f32 %v21026_v12, %v30117_v2  ;;  %v21326_v52 = vsub.f32 %v21040_v27, %v30118_v30  ;;  %v21331_v31 = vsub.f32 %v21045_v57, %v30119_v32  ;;  %v30122_v2 = vand.u32 4294901760, %v21079_v16 }
 0x347   :  { %v21336_v33 = vsub.f32 %v21050_v3, %v30120_v60  ;;  %v21341_v12 = vsub.f32 %v21058_v37, %v30121_v41  ;;  %v30123_v30 = vand.u32 4294901760, %v21084_v61  ;;  %v30124_v32 = vand.u32 4294901760, %v21098_v35 }
 0x348   :  { %v21346_v27 = vsub.f32 %v21079_v16, %v30122_v2  ;;  %v30125_v60 = vand.u32 4294901760, %v21103_v59  ;;  %v3232_v16 = vld [vmem:[%s28702_s1 + $0x150] sm:$0xff]  ;;  %v30126_v41 = vand.u32 4294901760, %v21108_v5 }
 0x349   :  { %v21351_v57 = vsub.f32 %v21084_v61, %v30123_v30  ;;  %v21356_v3 = vsub.f32 %v21098_v35, %v30124_v32  ;;  %v30127_v61 = vand.u32 4294901760, %v21116_v24  ;;  %v21377_v35 = vsub.f32 %v21137_v15, %v3286_v48  ;;  %v3235_v32 = vld [vmem:[%s28702_s1 + $0x168] sm:$0xff] }
 0x34a   :  { %v21361_v37 = vsub.f32 %v21103_v59, %v30125_v60  ;;  %v21369_v2 = vsub.f32 %v21108_v5, %v30126_v41  ;;  %v21380_v59 = vsub.f32 %v21142_v20, %v3290_v17  ;;  %v3234_v5 = vld [vmem:[%s28702_s1 + $0x160] sm:$0xff]  ;;  %v3237_v60 = vld [vmem:[%s28702_s1 + $0x178] sm:$0xff]  ;;  %v21395_v15 = vsub.f32 %v21161_v23, %v3292_v9 }
 0x34b   :  { %v21374_v30 = vsub.f32 %v21116_v24, %v30127_v61  ;;  %30129 = vst [vmem:[#allocation3_spill] sm:$0xff] %v21377_v35  ;;  %v21392_v24 = vsub.f32 %v21156_v34, %v3288_v14  ;;  %v21398_v17 = vsub.f32 %v21166_v55, %v4130_v38  ;;  %v21400_v48 = vsub.f32 %v3231_v1, %v4133_v39 }
 0x34c   :  { %30130 = vst [vmem:[#allocation36_spill] sm:$0xff] %v21380_v59  ;;  %30132 = vst [vmem:[#allocation8_spill] sm:$0xff] %v21395_v15  ;;  %v21402_v20 = vpack.c.bf16 %v3298_v40, %v3294_v47  ;;  %v21404_v41 = vsub.f32 %v3233_v44, %v3294_v47  ;;  %v21406_v61 = vsub.f32 %v3236_v56, %v3298_v40  ;;  %v3296_v10 = vand.u32 4294901760, %v3232_v16 }
 0x34d   :  { %30128 = vst [vmem:[#allocation35_spill] sm:$0xff] %v21374_v30  ;;  %30131 = vst [vmem:[#allocation37_spill] sm:$0xff] %v21392_v24  ;;  %v3300_v62 = vand.u32 4294901760, %v3235_v32  ;;  %v4136_v59 = vand.u32 4294901760, %v3234_v5  ;;  %v4139_v35 = vand.u32 4294901760, %v3237_v60  ;;  %v28943_v34 = vand.u32 4294901760, %v21178_v58 }
 0x34e   :  { %30133 = vst [vmem:[#allocation38_spill] sm:$0xff] %v21398_v17  ;;  %30134 = vst [vmem:[#allocation39_spill] sm:$0xff] %v21400_v48  ;;  %16869 = vmatprep.subr.bf16.mxu0 %v21402_v20  ;;  %v21410_v14 = vsub.f32 %v3232_v16, %v3296_v10  ;;  %v28941_v55 = vand.u32 4294901760, %v21183_v43  ;;  %v28942_v9 = vand.u32 4294901760, %v21191_v50  ;;  %v28948_v1 = vand.u32 4294901760, %v21196_v46 }
 0x34f   :  { %30135 = vst [vmem:[#allocation10_spill] sm:$0xff] %v21402_v20  ;;  %30136 = vst [vmem:[#allocation40_spill] sm:$0xff] %v21404_v41  ;;  %v21415_v38 = vpack.c.bf16 %v3300_v62, %v3296_v10  ;;  %v21417_v39 = vsub.f32 %v3235_v32, %v3300_v62  ;;  %v21419_v23 = vpack.c.bf16 %v4139_v35, %v4136_v59  ;;  %v2949_v62 = vpop.f32.mrb[20].mxu1  ;;  %v28954_v32 = vand.u32 4294901760, %v21223_v28 }
 0x350   :  { %30137 = vst [vmem:[#allocation41_spill] sm:$0xff] %v21410_v14  ;;  %v21421_v44 = vsub.f32 %v3234_v5, %v4136_v59  ;;  %v21423_v56 = vsub.f32 %v3237_v60, %v4139_v35  ;;  %v3349_v47 = vsub.f32 %v21178_v58, %v28943_v34  ;;  %v3361_v40 = vsub.f32 %v21183_v43, %v28941_v55  ;;  %v30143_v5 = vld [vmem:[#allocation16_spill] sm:$0xff]  ;;  %v14627_v55 = vpop.f32.mrb[21].mxu1 }
 0x351   :  { %30138 = vst [vmem:[#allocation4_spill] sm:$0xff] %v21415_v38  ;;  %30139 = vst [vmem:[#allocation42_spill] sm:$0xff] %v21417_v39  ;;  %v3355_v10 = vsub.f32 %v21191_v50, %v28942_v9  ;;  %16871 = vmatpush1.bf16.msra.mxu0 %v21415_v38  ;;  %17055 = vmatpush3.bf16.msra.mxu1 %v21419_v23  ;;  %v3367_v16 = vsub.f32 %v21196_v46, %v28948_v1  ;;  %v28952_v35 = vand.u32 4294901760, %v21201_v42 }
 0x352   :  { %30140 = vst [vmem:[#allocation43_spill] sm:$0xff] %v21419_v23  ;;  %30141 = vst [vmem:[#allocation12_spill] sm:$0xff] %v21421_v44  ;;  %v28953_v59 = vand.u32 4294901760, %v21206_v63  ;;  %v21443_v60 = vadd.f32 %v2949_v62, %v30143_v5  ;;  %v3350_v9 = vand.u32 4294901760, %v3349_v47  ;;  %v3362_v34 = vand.u32 4294901760, %v3361_v40  ;;  %17056 = vmatprep.subr.bf16.mxu1 %v29963_v29 }
 0x353   :  { %30142 = vst [vmem:[#allocation50_spill] sm:$0xff] %v21423_v56  ;;  %v3356_v38 = vand.u32 4294901760, %v3355_v10  ;;  %v3368_v23 = vand.u32 4294901760, %v3367_v16  ;;  %v4188_v1 = vsub.f32 %v21201_v42, %v28952_v35  ;;  %v3373_v62 = vsub.f32 %v21223_v28, %v28954_v32 }
 0x354   :  { %v4195_v20 = vsub.f32 %v21206_v63, %v28953_v59  ;;  %v16872_v5 = vpack.c.bf16 %v3362_v34, %v3350_v9  ;;  %v28955_v55 = vand.u32 4294901760, %v21228_v54  ;;  %v28956_v47 = vand.u32 4294901760, %v21233_v36 }
 0x355   :  { %v28957_v40 = vand.u32 4294901760, %v21238_v11  ;;  %v21458_v10 = vpack.c.bf16 %v3368_v23, %v3356_v38  ;;  %v4189_v16 = vand.u32 4294901760, %v4188_v1  ;;  %v3374_v35 = vand.u32 4294901760, %v3373_v62 }
 0x356   :  { %v4196_v29 = vand.u32 4294901760, %v4195_v20  ;;  %16873 = vmatprep.subr.bf16.mxu0 %v16872_v5  ;;  %v3385_v59 = vsub.f32 %v21228_v54, %v28955_v55  ;;  %v3379_v34 = vsub.f32 %v21233_v36, %v28956_v47  ;;  %v28958_v32 = vand.u32 4294901760, %v21243_v26 }
 0x357   :  { %30144 = vst [vmem:[#allocation9_spill] sm:$0xff] %v21458_v10  ;;  %v3391_v9 = vsub.f32 %v21238_v11, %v28957_v40  ;;  %v28961_v20 = vand.u32 4294901760, %v21248_v13  ;;  %v28962_v1 = vand.u32 4294901760, %v21253_v8  ;;  %v28963_v23 = vand.u32 4294901760, %v21258_v21 }
 0x358   :  { %v21470_v38 = vpack.c.bf16 %v4196_v29, %v4189_v16  ;;  %v3386_v62 = vand.u32 4294901760, %v3385_v59  ;;  %v3380_v5 = vand.u32 4294901760, %v3379_v34  ;;  %v4202_v47 = vsub.f32 %v21243_v26, %v28958_v32 }
 0x359   :  { %v3392_v55 = vand.u32 4294901760, %v3391_v9  ;;  %v4209_v40 = vsub.f32 %v21248_v13, %v28961_v20  ;;  %v3397_v29 = vsub.f32 %v21253_v8, %v28962_v1  ;;  %v3409_v16 = vsub.f32 %v21258_v21, %v28963_v23 }
 0x35a   :  { %30145 = vst [vmem:[#allocation27_spill] sm:$0xff] %v21470_v38  ;;  %v28967_v59 = vand.u32 4294901760, %v21264_v18  ;;  %v21488_v34 = vpack.c.bf16 %v3386_v62, %v3374_v35  ;;  %v4203_v38 = vand.u32 4294901760, %v4202_v47  ;;  %v28966_v32 = vand.u32 4294901760, %v21269_v7 }
 0x35b   :  { %v21490_v9 = vpack.c.bf16 %v3392_v55, %v3380_v5  ;;  %v4210_v10 = vand.u32 4294901760, %v4209_v40  ;;  %v3398_v26 = vand.u32 4294901760, %v3397_v29  ;;  %v3410_v20 = vand.u32 4294901760, %v3409_v16 }
 0x35c   :  { %30146 = vst [vmem:[#allocation28_spill] sm:$0xff] %v21488_v34  ;;  %v3403_v1 = vsub.f32 %v21264_v18, %v28967_v59  ;;  %v3415_v23 = vsub.f32 %v21269_v7, %v28966_v32  ;;  %v28968_v21 = vand.u32 4294901760, %v21274_v6  ;;  %v28969_v35 = vand.u32 4294901760, %v21279_v19 }
 0x35d   :  { %30147 = vst [vmem:[#allocation29_spill] sm:$0xff] %v21490_v9  ;;  %v28970_v55 = vand.u32 4294901760, %v21285_v22  ;;  %v21502_v47 = vpack.c.bf16 %v4210_v10, %v4203_v38  ;;  %v21504_v62 = vpack.c.bf16 %v3410_v20, %v3398_v26  ;;  %v28971_v5 = vand.u32 4294901760, %v21290_v45 }
 0x35e   :  { %v3404_v40 = vand.u32 4294901760, %v3403_v1  ;;  %v3416_v29 = vand.u32 4294901760, %v3415_v23  ;;  %v4216_v16 = vsub.f32 %v21274_v6, %v28968_v21  ;;  %v4223_v32 = vsub.f32 %v21279_v19, %v28969_v35 }
 0x35f   :  { %30148 = vst [vmem:[#allocation30_spill] sm:$0xff] %v21502_v47  ;;  %30149 = vst [vmem:[#allocation31_spill] sm:$0xff] %v21504_v62  ;;  %v3421_v59 = vsub.f32 %v21285_v22, %v28970_v55  ;;  %v3433_v26 = vsub.f32 %v21290_v45, %v28971_v5  ;;  %v28972_v10 = vand.u32 4294901760, %v21295_v0  ;;  %v28973_v38 = vand.u32 4294901760, %v21300_v25 }
 0x360   :  { %v28974_v20 = vand.u32 4294901760, %v21306_v53  ;;  %v21522_v1 = vpack.c.bf16 %v3416_v29, %v3404_v40  ;;  %v4217_v23 = vand.u32 4294901760, %v4216_v16  ;;  %v4224_v21 = vand.u32 4294901760, %v4223_v32 }
 0x361   :  { %v3422_v62 = vand.u32 4294901760, %v3421_v59  ;;  %v3434_v35 = vand.u32 4294901760, %v3433_v26  ;;  %v3427_v55 = vsub.f32 %v21295_v0, %v28972_v10  ;;  %v3439_v5 = vsub.f32 %v21300_v25, %v28973_v38 }
 0x362   :  { %30150 = vst [vmem:[#allocation13_spill] sm:$0xff] %v21522_v1  ;;  %v4230_v47 = vsub.f32 %v21306_v53, %v28974_v20  ;;  %v21533_v9 = vpack.c.bf16 %v4224_v21, %v4217_v23  ;;  %v28975_v40 = vand.u32 4294901760, %v21311_v4  ;;  %v28976_v32 = vand.u32 4294901760, %v21316_v49 }
 0x363   :  { %v28977_v59 = vand.u32 4294901760, %v21321_v51  ;;  %v21538_v29 = vpack.c.bf16 %v3434_v35, %v3422_v62  ;;  %v3428_v16 = vand.u32 4294901760, %v3427_v55  ;;  %v3440_v26 = vand.u32 4294901760, %v3439_v5 }
 0x364   :  { %30151 = vst [vmem:[#allocation6_spill] sm:$0xff] %v21533_v9  ;;  %v4231_v10 = vand.u32 4294901760, %v4230_v47  ;;  %v4237_v38 = vsub.f32 %v21311_v4, %v28975_v40  ;;  %v3445_v21 = vsub.f32 %v21316_v49, %v28976_v32  ;;  %v28978_v20 = vand.u32 4294901760, %v21326_v52 }
 0x365   :  { %30152 = vst [vmem:[#allocation11_spill] sm:$0xff] %v21538_v29  ;;  %v3457_v23 = vsub.f32 %v21321_v51, %v28977_v59  ;;  %v21550_v9 = vpack.c.bf16 %v3440_v26, %v3428_v16  ;;  %v28979_v35 = vand.u32 4294901760, %v21331_v31  ;;  %v28980_v55 = vand.u32 4294901760, %v21336_v33 }
 0x366   :  { %v28981_v47 = vand.u32 4294901760, %v21341_v12  ;;  %v4238_v62 = vand.u32 4294901760, %v4237_v38  ;;  %v3446_v5 = vand.u32 4294901760, %v3445_v21  ;;  %v3451_v32 = vsub.f32 %v21326_v52, %v28978_v20 }
 0x367   :  { %30153 = vst [vmem:[#allocation44_spill] sm:$0xff] %v21550_v9  ;;  %v3458_v40 = vand.u32 4294901760, %v3457_v23  ;;  %v3463_v59 = vsub.f32 %v21331_v31, %v28979_v35  ;;  %v4244_v16 = vsub.f32 %v21336_v33, %v28980_v55  ;;  %v28983_v38 = vand.u32 4294901760, %v21346_v27 }
 0x368   :  { %v4251_v26 = vsub.f32 %v21341_v12, %v28981_v47  ;;  %v21568_v21 = vpack.c.bf16 %v4238_v62, %v4231_v10  ;;  %v3452_v9 = vand.u32 4294901760, %v3451_v32  ;;  %v28982_v20 = vand.u32 4294901760, %v21351_v57 }
 0x369   :  { %v21570_v23 = vpack.c.bf16 %v3458_v40, %v3446_v5  ;;  %v3464_v29 = vand.u32 4294901760, %v3463_v59  ;;  %v4245_v1 = vand.u32 4294901760, %v4244_v16  ;;  %v3469_v55 = vsub.f32 %v21346_v27, %v28983_v38 }
 0x36a   :  { %30154 = vst [vmem:[#allocation45_spill] sm:$0xff] %v21568_v21  ;;  %v4252_v35 = vand.u32 4294901760, %v4251_v26  ;;  %v3481_v47 = vsub.f32 %v21351_v57, %v28982_v20  ;;  %v28984_v34 = vand.u32 4294901760, %v21356_v3  ;;  %v28985_v10 = vand.u32 4294901760, %v21361_v37 }
 0x36b   :  { %30155 = vst [vmem:[#allocation5_spill] sm:$0xff] %v21570_v23  ;;  %v28986_v40 = vand.u32 4294901760, %v21369_v2  ;;  %v21582_v32 = vpack.c.bf16 %v3464_v29, %v3452_v9  ;;  %v3470_v59 = vand.u32 4294901760, %v3469_v55  ;;  %v28987_v5 = vand.u32 4294901760, %v21374_v30 }
 0x36c   :  { %v21584_v62 = vpack.c.bf16 %v4252_v35, %v4245_v1  ;;  %v3482_v16 = vand.u32 4294901760, %v3481_v47  ;;  %v3475_v26 = vsub.f32 %v21356_v3, %v28984_v34  ;;  %v3487_v20 = vsub.f32 %v21361_v37, %v28985_v10  ;;  %v30158_v1 = vld [vmem:[#allocation3_spill] sm:$0xff]  ;;  %v30159_v35 = vld [vmem:[#allocation36_spill] sm:$0xff] }
 0x36d   :  { %30156 = vst [vmem:[#allocation47_spill] sm:$0xff] %v21582_v32  ;;  %v4258_v38 = vsub.f32 %v21369_v2, %v28986_v40  ;;  %v4265_v9 = vsub.f32 %v21374_v30, %v28987_v5  ;;  %v28990_v29 = vand.u32 4294901760, %v30158_v1  ;;  %v28991_v55 = vand.u32 4294901760, %v30159_v35 }
 0x36e   :  { %30157 = vst [vmem:[#allocation16_spill] sm:$0xff] %v21584_v62  ;;  %v28993_v47 = vand.u32 4294901760, %v21392_v24  ;;  %v21602_v62 = vpack.c.bf16 %v3482_v16, %v3470_v59  ;;  %v3476_v34 = vand.u32 4294901760, %v3475_v26  ;;  %v3488_v32 = vand.u32 4294901760, %v3487_v20  ;;  %v3068_v16 = vpop.f32.mrb[22].mxu1 }
 0x36f   :  { %v4259_v23 = vand.u32 4294901760, %v4258_v38  ;;  %v4266_v10 = vand.u32 4294901760, %v4265_v9  ;;  %v3493_v40 = vsub.f32 %v30158_v1, %v28990_v29  ;;  %v3505_v5 = vsub.f32 %v30159_v35, %v28991_v55  ;;  %v14662_v35 = vpop.f32.mrb[23].mxu1 }
 0x370   :  { %30160 = vst [vmem:[#allocation3_spill] sm:$0xff] %v21602_v62  ;;  %v3499_v21 = vsub.f32 %v21392_v24, %v28993_v47  ;;  %v21613_v30 = vpack.c.bf16 %v3488_v32, %v3476_v34  ;;  %v28996_v59 = vand.u32 4294901760, %v21395_v15  ;;  %v28994_v20 = vand.u32 4294901760, %v21398_v17 }
 0x371   :  { %v28995_v38 = vand.u32 4294901760, %v21400_v48  ;;  %v21618_v26 = vpack.c.bf16 %v4266_v10, %v4259_v23  ;;  %v3494_v9 = vand.u32 4294901760, %v3493_v40  ;;  %v3506_v29 = vand.u32 4294901760, %v3505_v5 }
 0x372   :  { %v3500_v62 = vand.u32 4294901760, %v3499_v21  ;;  %v3069_v55 = vadd.f32 %v3068_v16, %v21443_v60  ;;  %v3511_v34 = vsub.f32 %v21395_v15, %v28996_v59  ;;  %v4272_v32 = vsub.f32 %v21398_v17, %v28994_v20 }
 0x373   :  { %30161 = vst [vmem:[#allocation56_spill] sm:$0xff] %v21618_v26  ;;  %v4279_v47 = vsub.f32 %v21400_v48, %v28995_v38  ;;  %v21630_v23 = vpack.c.bf16 %v3506_v29, %v3494_v9  ;;  %v28997_v10 = vand.u32 4294901760, %v21404_v41  ;;  %v28998_v21 = vand.u32 4294901760, %v21406_v61 }
 0x374   :  { %v28999_v60 = vand.u32 4294901760, %v21410_v14  ;;  %v3512_v40 = vand.u32 4294901760, %v3511_v34  ;;  %v4273_v5 = vand.u32 4294901760, %v4272_v32  ;;  %v29002_v16 = vand.u32 4294901760, %v21417_v39 }
 0x375   :  { %30162 = vst [vmem:[#allocation57_spill] sm:$0xff] %v21630_v23  ;;  %v4280_v35 = vand.u32 4294901760, %v4279_v47  ;;  %v3517_v20 = vsub.f32 %v21404_v41, %v28997_v10  ;;  %v3529_v29 = vsub.f32 %v21406_v61, %v28998_v21  ;;  %v29000_v38 = vand.u32 4294901760, %v21421_v44 }
 0x376   :  { %v3523_v9 = vsub.f32 %v21410_v14, %v28999_v60  ;;  %v21646_v59 = vpack.c.bf16 %v3512_v40, %v3500_v62  ;;  %v3535_v47 = vsub.f32 %v21417_v39, %v29002_v16  ;;  %v29001_v32 = vand.u32 4294901760, %v21423_v56  ;;  %v30163_v16 = vld [vmem:[#allocation7_spill] sm:$0xff]  ;;  %v30166_v40 = vld [vmem:[#allocation36_spill] sm:$0xff] }
 0x377   :  { %v21648_v34 = vpack.c.bf16 %v4280_v35, %v4273_v5  ;;  %v3518_v10 = vand.u32 4294901760, %v3517_v20  ;;  %v3530_v23 = vand.u32 4294901760, %v3529_v29  ;;  %v4286_v21 = vsub.f32 %v21421_v44, %v29000_v38  ;;  %v30164_v5 = vld [vmem:[#allocation34_spill] sm:$0xff]  ;;  %v13326_v44 = vld [vmem:[%s28703_s0 + $0x14] sm:$0xf] }
 0x378   :  { %v3524_v26 = vand.u32 4294901760, %v3523_v9  ;;  %v3536_v60 = vand.u32 4294901760, %v3535_v47  ;;  %v4293_v62 = vsub.f32 %v21423_v56, %v29001_v32  ;;  %v1614_v39 = vunpack.c.l.bf16 %v13326_v44 }
 0x379   :  { %v21664_v35 = vpack.c.bf16 %v3530_v23, %v3518_v10  ;;  %v4287_v20 = vand.u32 4294901760, %v4286_v21 }
 0x37a   :  { %v21670_v47 = vpack.c.bf16 %v3536_v60, %v3524_v26  ;;  %v4294_v38 = vand.u32 4294901760, %v4293_v62  ;;  %v13325_v62 = vld [vmem:[%s28703_s0 + $0xc] sm:$0xff] }
 0x37b   :  { %v1612_v32 = vunpack.c.l.bf16 %v13325_v62  ;;  %v1613_v23 = vunpack.c.h.bf16 %v13325_v62 }
 0x37c   :  { %v21684_v60 = vpack.c.bf16 %v4294_v38, %v4287_v20  ;;  %v30165_v20 = vld [vmem:[#allocation35_spill] sm:$0xff] }
 0x38e   :  { %v2513_v9 = vpop.f32.mrb[2].mxu0  ;;  %v3155_v29 = vpop.f32.mrb[24].mxu1 }
 0x38f   :  { %v3159_v24 = vadd.f32 %v2513_v9, %v1612_v32  ;;  %v3156_v15 = vadd.f32 %v3155_v29, %v3069_v55  ;;  %v2515_v10 = vpop.f32.mrb[3].mxu0  ;;  %v14697_v17 = vpop.f32.mrb[25].mxu1  ;;  %v19178_v55 = vld [vmem:[%s28704_s2] ss:$0 sm:$0xff] }
 0x390   :  { %v3166_v21 = vadd.f32 %v2515_v10, %v1613_v23  ;;  %v30167_v23 = vld [vmem:[#allocation55_spill] sm:$0xff] }
 0x391   :  { %v13327_v48 = vmul.f32 -1.442695, %v3159_v24  ;;  %v3173_v17 = vadd.f32 %v19178_v55, %v3156_v15  ;;  %v30170_v55 = vld [vmem:[#allocation27_spill] sm:$0xff] }
 0x392   :  { %v13328_v41 = vmul.f32 -1.442695, %v3166_v21 }
 0x393   :  { %19104 = vpow2.f32 %v13327_v48 }
 0x394   :  { %19106 = vpow2.f32 %v13328_v41 }
 0x39d   :  { %v19105_v26 = vpop.eup %19104 }
 0x39e   :  { %v3163_v14 = vadd.f32 1.0, %v19105_v26  ;;  %v19107_v38 = vpop.eup %19106 }
 0x39f   :  { %v3170_v56 = vadd.f32 1.0, %v19107_v38  ;;  %v30169_v38 = vld [vmem:[#allocation9_spill] sm:$0xff] }
 0x3a0   :  { %19108 = vrcp.f32 %v3163_v14 }
 0x3a1   :  { %19110 = vrcp.f32 %v3170_v56 }
 0x3aa   :  { %v19109_v24 = vpop.eup %19108 }
 0x3ab   :  { %v3174_v32 = vmul.f32 %v19109_v24, %v3173_v17  ;;  %v19111_v41 = vpop.eup %19110  ;;  %v30171_v17 = vld [vmem:[#allocation28_spill] sm:$0xff]  ;;  %v30172_v24 = vmov 0.0|0.0  }
 0x3ac   :  { %v3177_v29 = vsub.f32 1.0, %v19111_v41  ;;  %v3179_v10 = vmul.f32 %v19111_v41, %v30167_v23  ;;  %v30175_v41 = vld [vmem:[#allocation30_spill] sm:$0xff]  ;;  %v30179_v23 = vld [vmem:[#allocation11_spill] sm:$0xff] }
 0x3ad   :  { %v3175_v48 = vadd.f32 %v3174_v32, %v1614_v39  ;;  %v30173_v32 = vmov 0.0  }
 0x3af   :  { %19112 = vtanh.f32 %v3175_v48  ;;  %v30174_v48 = vld [vmem:[#allocation29_spill] sm:$0xff] }
 0x3b9   :  { %v19113_v14 = vpop.eup %19112 }
 0x3ba   :  { %v3178_v9 = vmul.f32 %v19113_v14, %v3177_v29  ;;  %v30176_v29 = vld [vmem:[#allocation31_spill] sm:$0xff]  ;;  %v30177_v14 = vld [vmem:[#allocation13_spill] sm:$0xff] }
 0x3bc   :  { %v21724_v21 = vadd.f32 %v3179_v10, %v3178_v9  ;;  %v30178_v9 = vld [vmem:[#allocation6_spill] sm:$0xff]  ;;  %v30180_v10 = vld [vmem:[#allocation44_spill] sm:$0xff] }
 0x3be   :  { %30168 = vst [vmem:[#allocation7_spill] sm:$0xff] %v21724_v21  ;;  %v3181_v44 = vpack.c.bf16 %v21724_v21, %v21724_v21  ;;  %v21729_v26 = vand.u32 4294901760, %v21724_v21 }
 0x3c0   :  { %13329 = vst [vmem:[%s28705_s5 + $0x4] sm:$0xf] %v3181_v44  ;;  %v21736_v15 = vsub.f32 %v21724_v21, %v21729_v26  ;;  %v30181_v44 = vld [vmem:[#allocation45_spill] sm:$0xff]  ;;  %v30232_v21 = vld [vmem:[#allocation23_spill] sm:$0xff] }
 0x3c2   :  { %v21739_v39 = vand.u32 4294901760, %v21736_v15 }
 0x3c4   :  { %v3338_v56 = vsub.f32 %v21736_v15, %v21739_v39 }
 0x3c6   :  { %v3339_v62 = vand.u32 4294901760, %v3338_v56  ;;  %v30182_v56 = vld [vmem:[#allocation5_spill] sm:$0xff] }
 0x3c8   :  { %3340 = vmatmul.mubr.f32.vlgmr.msra.gmra.mrb[4].mxu0 %v3339_v62  ;;  %14731 = vmatmul.mubr.f32.vlgmr.msra.gmra.mrb[26].mxu1 %v3339_v62  ;;  %v30183_v62 = vld [vmem:[#allocation47_spill] sm:$0xff] }
 0x3c9   :  { %16875 = vmatpush1.bf16.msra.mxu0 %v30169_v38  ;;  %17058 = vmatpush3.bf16.msra.mxu1 %v30170_v55  ;;  %v30184_v38 = vld [vmem:[#allocation16_spill] sm:$0xff]  ;;  %v30185_v55 = vld [vmem:[#allocation3_spill] sm:$0xff] }
 0x3ca   :  { %16877 = vmatprep.subr.bf16.mxu0 %v30171_v17  ;;  %17059 = vmatprep.subr.bf16.mxu1 %v30172_v24  ;;  %v30186_v17 = vld [vmem:[#allocation56_spill] sm:$0xff] }
 0x3cb   :  { %3570 = vmatprep.mubr.f32.mxu0 %v30173_v32  ;;  %14765 = vmatprep.mubr.msk.f32.mxu1 %vm19186_vm0, %v30173_v32 }
 0x3cd   :  { %16879 = vmatpush1.bf16.msra.mxu0 %v30174_v48  ;;  %17061 = vmatpush3.bf16.msra.mxu1 %v30175_v41  ;;  %v30187_v48 = vld [vmem:[#allocation57_spill] sm:$0xff]  ;;  %v30194_v41 = vpack.c.bf16 %v30164_v5, %v21253_v8 }
 0x3ce   :  { %16881 = vmatprep.subr.bf16.mxu0 %v30176_v29  ;;  %17062 = vmatprep.subr.bf16.mxu1 %v30172_v24  ;;  %v30195_v29 = vpack.c.bf16 %v21269_v7, %v21264_v18 }
 0x3d1   :  { %16883 = vmatpush1.bf16.msra.mxu0 %v30177_v14  ;;  %17064 = vmatpush3.bf16.msra.mxu1 %v30178_v9  ;;  %v30196_v14 = vpack.c.bf16 %v21279_v19, %v21274_v6  ;;  %v30197_v9 = vpack.c.bf16 %v21290_v45, %v21285_v22 }
 0x3d2   :  { %16885 = vmatprep.subr.bf16.mxu0 %v30179_v23  ;;  %17065 = vmatprep.subr.bf16.mxu1 %v30172_v24  ;;  %v30198_v23 = vpack.c.bf16 %v21300_v25, %v21295_v0 }
 0x3d5   :  { %16887 = vmatpush1.bf16.msra.mxu0 %v30180_v10  ;;  %17067 = vmatpush3.bf16.msra.mxu1 %v30181_v44  ;;  %v30199_v10 = vpack.c.bf16 %v21311_v4, %v21306_v53  ;;  %v30200_v44 = vpack.c.bf16 %v21321_v51, %v21316_v49 }
 0x3d6   :  { %16889 = vmatprep.subr.bf16.mxu0 %v30182_v56  ;;  %17068 = vmatprep.subr.bf16.mxu1 %v30172_v24  ;;  %v30201_v56 = vpack.c.bf16 %v21331_v31, %v21326_v52 }
 0x3d9   :  { %16891 = vmatpush1.bf16.msra.mxu0 %v30183_v62  ;;  %17070 = vmatpush3.bf16.msra.mxu1 %v30184_v38  ;;  %v30202_v62 = vpack.c.bf16 %v21341_v12, %v21336_v33  ;;  %v30203_v38 = vpack.c.bf16 %v21351_v57, %v21346_v27 }
 0x3da   :  { %16893 = vmatprep.subr.bf16.mxu0 %v30185_v55  ;;  %17071 = vmatprep.subr.bf16.mxu1 %v30172_v24  ;;  %v30204_v55 = vpack.c.bf16 %v21361_v37, %v21356_v3 }
 0x3dd   :  { %16895 = vmatpush1.bf16.msra.mxu0 %v21613_v30  ;;  %17073 = vmatpush3.bf16.msra.mxu1 %v30186_v17  ;;  %v30188_v30 = vpack.c.bf16 %v21183_v43, %v21178_v58  ;;  %v30205_v17 = vpack.c.bf16 %v30165_v20, %v21369_v2 }
 0x3de   :  { %16897 = vmatprep.subr.bf16.mxu0 %v30187_v48  ;;  %17074 = vmatprep.subr.bf16.mxu1 %v30172_v24  ;;  %v30206_v48 = vpack.c.bf16 %v30166_v40, %v30158_v1 }
 0x3e1   :  { %16899 = vmatpush1.bf16.msra.mxu0 %v21646_v59  ;;  %17076 = vmatpush3.bf16.msra.mxu1 %v21648_v34  ;;  %v30189_v59 = vpack.c.bf16 %v21196_v46, %v21191_v50  ;;  %v30190_v34 = vpack.c.bf16 %v21206_v63, %v21201_v42 }
 0x3e2   :  { %16901 = vmatprep.subr.bf16.mxu0 %v21664_v35  ;;  %17077 = vmatprep.subr.bf16.mxu1 %v30172_v24  ;;  %v30191_v35 = vpack.c.bf16 %v21228_v54, %v21223_v28 }
 0x3e5   :  { %16903 = vmatpush1.bf16.msra.mxu0 %v21670_v47  ;;  %17079 = vmatpush3.bf16.msra.mxu1 %v21684_v60  ;;  %v30192_v47 = vpack.c.bf16 %v21238_v11, %v21233_v36  ;;  %v30193_v60 = vpack.c.bf16 %v21248_v13, %v30163_v16 }
 0x3e6   :  { %16905 = vmatprep.subr.bf16.mxu0 %v30188_v30  ;;  %17080 = vmatprep.subr.bf16.mxu1 %v30172_v24  ;;  %v30207_v30 = vld [vmem:[#allocation8_spill] sm:$0xff] }
 0x3e8   :  { %3572 = vmatmul.mubr.f32.vlgmr.msra.gmra.mrb[4].mxu0 %v21729_v26  ;;  %14766 = vmatmul.mubr.f32.vlgmr.msra.gmra.mrb[28].mxu1 %v21729_v26 }
 0x3e9   :  { %16907 = vmatpush1.bf16.msra.mxu0 %v30189_v59  ;;  %17082 = vmatpush3.bf16.msra.mxu1 %v30190_v34  ;;  %v30208_v59 = vld [vmem:[#allocation37_spill] sm:$0xff] }
 0x3ea   :  { %16909 = vmatprep.subr.bf16.mxu0 %v30191_v35  ;;  %17083 = vmatprep.subr.bf16.mxu1 %v30172_v24  ;;  %v30209_v34 = vpack.c.bf16 %v30207_v30, %v30208_v59  ;;  %v30210_v35 = vld [vmem:[#allocation39_spill] sm:$0xff] }
 0x3eb   :  { %3706 = vmatprep.mubr.f32.mxu0 %v30173_v32  ;;  %14800 = vmatprep.mubr.msk.f32.mxu1 %vm19186_vm0, %v30173_v32 }
 0x3ed   :  { %16911 = vmatpush1.bf16.msra.mxu0 %v30192_v47  ;;  %17085 = vmatpush3.bf16.msra.mxu1 %v30193_v60  ;;  %v30211_v47 = vld [vmem:[#allocation38_spill] sm:$0xff] }
 0x3ee   :  { %16913 = vmatprep.subr.bf16.mxu0 %v30194_v41  ;;  %17086 = vmatprep.subr.bf16.mxu1 %v30172_v24  ;;  %v30212_v60 = vpack.c.bf16 %v30210_v35, %v30211_v47  ;;  %v30213_v41 = vld [vmem:[#allocation40_spill] sm:$0xff] }
 0x3f1   :  { %16915 = vmatpush1.bf16.msra.mxu0 %v30195_v29  ;;  %17088 = vmatpush3.bf16.msra.mxu1 %v30196_v14  ;;  %v30214_v29 = vpack.c.bf16 %v21406_v61, %v30213_v41  ;;  %v30215_v14 = vld [vmem:[#allocation42_spill] sm:$0xff] }
 0x3f2   :  { %16917 = vmatprep.subr.bf16.mxu0 %v30197_v9  ;;  %17089 = vmatprep.subr.bf16.mxu1 %v30172_v24  ;;  %v30216_v9 = vld [vmem:[#allocation41_spill] sm:$0xff] }
 0x3f5   :  { %16919 = vmatpush1.bf16.msra.mxu0 %v30198_v23  ;;  %17091 = vmatpush3.bf16.msra.mxu1 %v30199_v10  ;;  %v30217_v23 = vpack.c.bf16 %v30215_v14, %v30216_v9  ;;  %v30218_v10 = vld [vmem:[#allocation50_spill] sm:$0xff] }
 0x3f6   :  { %16921 = vmatprep.subr.bf16.mxu0 %v30200_v44  ;;  %17092 = vmatprep.subr.bf16.mxu1 %v30172_v24  ;;  %v30219_v44 = vld [vmem:[#allocation12_spill] sm:$0xff] }
 0x3f9   :  { %16923 = vmatpush1.bf16.msra.mxu0 %v30201_v56  ;;  %17094 = vmatpush3.bf16.msra.mxu1 %v30202_v62  ;;  %v30220_v56 = vpack.c.bf16 %v30218_v10, %v30219_v44  ;;  %v30221_v62 = vld [vmem:[#allocation14_spill] sm:$0xff] }
 0x3fa   :  { %16925 = vmatprep.subr.bf16.mxu0 %v30203_v38  ;;  %17095 = vmatprep.subr.bf16.mxu1 %v30172_v24  ;;  %v30222_v38 = vld [vmem:[#allocation17_spill] sm:$0xff] }
 0x3fd   :  { %16927 = vmatpush1.bf16.msra.mxu0 %v30204_v55  ;;  %17097 = vmatpush3.bf16.msra.mxu1 %v30205_v17  ;;  %v30223_v55 = vld [vmem:[#allocation52_spill] sm:$0xff]  ;;  %v30224_v17 = vld [vmem:[#allocation53_spill] sm:$0xff] }
 0x3fe   :  { %16929 = vmatprep.subr.bf16.mxu0 %v30206_v48  ;;  %17098 = vmatprep.subr.bf16.mxu1 %v30172_v24  ;;  %v30225_v48 = vld [vmem:[#allocation15_spill] sm:$0xff] }
 0x401   :  { %16931 = vmatpush1.bf16.msra.mxu0 %v30209_v34  ;;  %17100 = vmatpush3.bf16.msra.mxu1 %v30212_v60  ;;  %v30226_v34 = vld [vmem:[#allocation54_spill] sm:$0xff] }
 0x402   :  { %16933 = vmatprep.subr.bf16.mxu0 %v30214_v29  ;;  %17101 = vmatprep.subr.bf16.mxu1 %v30172_v24  ;;  %v30227_v60 = vld [vmem:[#allocation18_spill] sm:$0xff]  ;;  %v30229_v29 = vld [vmem:[#allocation19_spill] sm:$0xff] }
 0x405   :  { %16935 = vmatpush1.bf16.msra.mxu0 %v30217_v23  ;;  %17103 = vmatpush3.bf16.msra.mxu1 %v30220_v56  ;;  %v30230_v23 = vld [vmem:[#allocation21_spill] sm:$0xff]  ;;  %v30231_v56 = vld [vmem:[#allocation22_spill] sm:$0xff] }
 0x406   :  { %16937 = vmatprep.subr.bf16.mxu0 %v30221_v62  ;;  %17104 = vmatprep.subr.bf16.mxu1 %v30172_v24 }
 0x408   :  { %3709 = vmatmul.mubr.f32.vlgmr.msra.gmra.mrb[4].mxu0 %v21736_v15  ;;  %14801 = vmatmul.mubr.f32.vlgmr.msra.gmra.mrb[30].mxu1 %v21736_v15  ;;  %v30228_v15 = vld [vmem:[#allocation20_spill] sm:$0xff] }
 0x409   :  { %16939 = vmatpush1.bf16.msra.mxu0 %v30222_v38  ;;  %17106 = vmatpush3.bf16.msra.mxu1 %v30223_v55  ;;  %v30248_v55 = vand.u32 4294901760, %v21196_v46  ;;  %v30254_v46 = vand.u32 4294901760, %v21238_v11  ;;  %v30259_v11 = vand.u32 4294901760, %v21264_v18  ;;  %v30265_v18 = vand.u32 4294901760, %v21295_v0 }
 0x40a   :  { %16941 = vmatprep.subr.bf16.mxu0 %v30224_v17  ;;  %17107 = vmatprep.subr.bf16.mxu1 %v30172_v24  ;;  %v30233_v17 = vld [vmem:[#allocation24_spill] sm:$0xff]  ;;  %v30271_v0 = vand.u32 4294901760, %v21326_v52  ;;  %v30277_v52 = vand.u32 4294901760, %v21356_v3  ;;  %v30283_v3 = vand.u32 4294901760, %v30208_v59  ;;  %v30289_v59 = vand.u32 4294901760, %v30216_v9  ;;  %v30296_v9 = vld [vmem:[#allocation15_spill] sm:$0xff] }
 0x40b   :  { %3811 = vmatprep.mubr.f32.mxu0 %v30173_v32  ;;  %14835 = vmatprep.mubr.msk.f32.mxu1 %vm19186_vm0, %v30173_v32 }
 0x40d   :  { %16943 = vmatpush1.bf16.msra.mxu0 %v30225_v48  ;;  %17109 = vmatpush3.bf16.msra.mxu1 %v30226_v34  ;;  %v30234_v34 = vld [vmem:[#allocation46_spill] sm:$0xff]  ;;  %v30236_v48 = vld [vmem:[#allocation48_spill] sm:$0xff] }
 0x40e   :  { %16945 = vmatprep.subr.bf16.mxu0 %v30227_v60  ;;  %17110 = vmatprep.subr.bf16.mxu1 %v30172_v24  ;;  %v30235_v60 = vld [vmem:[#allocation25_spill] sm:$0xff] }
 0x411   :  { %16947 = vmatpush1.bf16.msra.mxu0 %v30228_v15  ;;  %17112 = vmatpush3.bf16.msra.mxu1 %v30229_v29  ;;  %v30237_v29 = vld [vmem:[#allocation51_spill] sm:$0xff]  ;;  %v30239_v15 = vld [vmem:[#allocation26_spill] sm:$0xff] }
 0x412   :  { %16949 = vmatprep.subr.bf16.mxu0 %v30230_v23  ;;  %17113 = vmatprep.subr.bf16.mxu1 %v30172_v24  ;;  %v30238_v23 = vld [vmem:[#allocation49_spill] sm:$0xff] }
 0x415   :  { %16951 = vmatpush1.bf16.msra.mxu0 %v30231_v56  ;;  %17115 = vmatpush3.bf16.msra.mxu1 %v30232_v21  ;;  %v30240_v21 = vld [vmem:[#allocation32_spill] sm:$0xff]  ;;  %v30242_v56 = vld [vmem:[#allocation10_spill] sm:$0xff] }
 0x416   :  { %16953 = vmatprep.subr.bf16.mxu0 %v30233_v17  ;;  %17116 = vmatprep.subr.bf16.mxu1 %v30172_v24  ;;  %v30241_v17 = vld [vmem:[#allocation33_spill] sm:$0xff] }
 0x419   :  { %16955 = vmatpush1.bf16.msra.mxu0 %v30234_v34  ;;  %17118 = vmatpush3.bf16.msra.mxu1 %v30235_v60  ;;  %v30244_v60 = vand.u32 4294901760, %v21183_v43  ;;  %v30251_v43 = vand.u32 4294901760, %v21223_v28  ;;  %v30258_v28 = vand.u32 4294901760, %v30164_v5  ;;  %v30263_v5 = vand.u32 4294901760, %v21285_v22 }
 0x41a   :  { %16957 = vmatprep.subr.bf16.mxu0 %v30236_v48  ;;  %17119 = vmatprep.subr.bf16.mxu1 %v30172_v24  ;;  %v30243_v48 = vand.u32 4294901760, %v21178_v58  ;;  %v30252_v58 = vand.u32 4294901760, %v21228_v54  ;;  %v30257_v54 = vand.u32 4294901760, %v21253_v8  ;;  %v30269_v22 = vand.u32 4294901760, %v21316_v49 }
 0x41b   :  { %v30275_v49 = vand.u32 4294901760, %v21346_v27  ;;  %v30281_v27 = vand.u32 4294901760, %v30158_v1  ;;  %v30287_v1 = vand.u32 4294901760, %v30213_v41  ;;  %v30294_v41 = vld [vmem:[#allocation52_spill] sm:$0xff] }
 0x41c   :  { %v16968_v34 = vpack.c.bf16 %v30244_v60, %v30243_v48  ;;  %v16972_v48 = vpack.c.bf16 %v30252_v58, %v30251_v43 }
 0x41d   :  { %16959 = vmatpush1.bf16.msra.mxu0 %v30237_v29  ;;  %17121 = vmatpush3.bf16.msra.mxu1 %v30238_v23  ;;  %v30245_v29 = vld [vmem:[#allocation4_spill] sm:$0xff]  ;;  %v30246_v23 = vld [vmem:[#allocation43_spill] sm:$0xff] }
 0x41e   :  { %16961 = vmatprep.subr.bf16.mxu0 %v30239_v15  ;;  %17122 = vmatprep.subr.bf16.mxu1 %v30172_v24  ;;  %v30247_v15 = vand.u32 4294901760, %v21191_v50  ;;  %v30253_v50 = vand.u32 4294901760, %v21233_v36  ;;  %v30260_v36 = vand.u32 4294901760, %v21269_v7  ;;  %v30266_v7 = vand.u32 4294901760, %v21300_v25 }
 0x41f   :  { %v30272_v25 = vand.u32 4294901760, %v21331_v31  ;;  %v30278_v31 = vand.u32 4294901760, %v21361_v37  ;;  %v30284_v37 = vand.u32 4294901760, %v30207_v30  ;;  %v30290_v30 = vand.u32 4294901760, %v30215_v14  ;;  %v30295_v14 = vld [vmem:[#allocation53_spill] sm:$0xff] }
 0x420   :  { %v16982_v60 = vpack.c.bf16 %v30266_v7, %v30265_v18  ;;  %v30310_v18 = vld [vmem:[#allocation26_spill] sm:$0xff]  ;;  %v30311_v7 = vld [vmem:[#allocation32_spill] sm:$0xff] }
 0x421   :  { %16963 = vmatpush1.bf16.msra.mxu0 %v30240_v21  ;;  %17124 = vmatpush3.bf16.msra.mxu1 %v30241_v17  ;;  %v16970_v21 = vpack.c.bf16 %v30248_v55, %v30247_v15  ;;  %v30249_v17 = vand.u32 4294901760, %v21201_v42  ;;  %v30255_v42 = vand.u32 4294901760, %v30163_v16  ;;  %v30256_v55 = vand.u32 4294901760, %v21248_v13 }
 0x422   :  { %16965 = vmatprep.subr.bf16.mxu0 %v30242_v56  ;;  %17125 = vmatprep.subr.bf16.mxu1 %v30172_v24  ;;  %v30250_v56 = vand.u32 4294901760, %v21206_v63  ;;  %v16974_v63 = vpack.c.bf16 %v30254_v46, %v30253_v50  ;;  %v16978_v13 = vpack.c.bf16 %v30260_v36, %v30259_v11  ;;  %v30261_v16 = vand.u32 4294901760, %v21274_v6  ;;  %v30301_v11 = vld [vmem:[#allocation21_spill] sm:$0xff]  ;;  %v30302_v36 = vld [vmem:[#allocation22_spill] sm:$0xff] }
 0x423   :  { %v30267_v6 = vand.u32 4294901760, %v21306_v53  ;;  %v16986_v43 = vpack.c.bf16 %v30272_v25, %v30271_v0  ;;  %v30273_v53 = vand.u32 4294901760, %v21336_v33  ;;  %v16990_v50 = vpack.c.bf16 %v30278_v31, %v30277_v52  ;;  %v22065_v25 = vld [vmem:[%s28702_s1] sm:$0xff] }
 0x424   :  { %v17129_v38 = vpack.c.bf16 %v30250_v56, %v30249_v17  ;;  %v17132_v17 = vpack.c.bf16 %v30256_v55, %v30255_v42  ;;  %v30279_v33 = vand.u32 4294901760, %v21369_v2  ;;  %v16994_v42 = vpack.c.bf16 %v30284_v37, %v30283_v3  ;;  %v22130_v3 = vld [vmem:[%s28702_s1 + $0x40] sm:$0xff] }
 0x425   :  { %16967 = vmatpush1.bf16.msra.mxu0 %v30245_v29  ;;  %17127 = vmatpush3.bf16.msra.mxu1 %v30246_v23  ;;  %v30285_v2 = vand.u32 4294901760, %v30211_v47  ;;  %v30291_v47 = vand.u32 4294901760, %v30219_v44  ;;  %v30298_v44 = vld [vmem:[#allocation18_spill] sm:$0xff] }
 0x426   :  { %16969 = vmatprep.subr.bf16.mxu0 %v16968_v34  ;;  %17128 = vmatprep.subr.bf16.mxu1 %v30172_v24 }
 0x428   :  { %3815 = vmatmul.mubr.f32.vlgmr.msra.gmra.mrb[4].mxu0 %v21739_v39  ;;  %14836 = vmatmul.mubr.f32.vlgmr.msra.gmra.mrb[32].mxu1 %v21739_v39  ;;  %v16976_v39 = vpack.c.bf16 %v30258_v28, %v30257_v54  ;;  %v16998_v54 = vpack.c.bf16 %v30290_v30, %v30289_v59  ;;  %v22164_v59 = vld [vmem:[%s28702_s1 + $0x80] sm:$0xff] }
 0x429   :  { %16971 = vmatpush1.bf16.msra.mxu0 %v16970_v21  ;;  %17130 = vmatpush3.bf16.msra.mxu1 %v17129_v38  ;;  %v30262_v21 = vand.u32 4294901760, %v21279_v19  ;;  %v30264_v38 = vand.u32 4294901760, %v21290_v45  ;;  %v30268_v19 = vand.u32 4294901760, %v21311_v4  ;;  %v30270_v45 = vand.u32 4294901760, %v21321_v51 }
 0x42a   :  { %16973 = vmatprep.subr.bf16.mxu0 %v16972_v48  ;;  %17131 = vmatprep.subr.bf16.mxu1 %v30172_v24  ;;  %v30274_v4 = vand.u32 4294901760, %v21341_v12  ;;  %v30276_v51 = vand.u32 4294901760, %v21351_v57  ;;  %v30280_v12 = vand.u32 4294901760, %v30165_v20  ;;  %v30282_v57 = vand.u32 4294901760, %v30166_v40 }
 0x42b   :  { %3981 = vmatprep.mubr.f32.mxu0 %v30173_v32  ;;  %14870 = vmatprep.mubr.msk.f32.mxu1 %vm19186_vm0, %v30173_v32  ;;  %v17135_v8 = vpack.c.bf16 %v30262_v21, %v30261_v16  ;;  %v16980_v34 = vpack.c.bf16 %v30264_v38, %v30263_v5  ;;  %v17138_v15 = vpack.c.bf16 %v30268_v19, %v30267_v6  ;;  %v30286_v20 = vand.u32 4294901760, %v30210_v35  ;;  %v30304_v16 = vld [vmem:[#allocation24_spill] sm:$0xff]  ;;  %v30305_v21 = vld [vmem:[#allocation46_spill] sm:$0xff]  ;;  %v30308_v38 = vld [vmem:[#allocation51_spill] sm:$0xff] }
 0x42c   :  { %v16984_v56 = vpack.c.bf16 %v30270_v45, %v30269_v22  ;;  %v17141_v58 = vpack.c.bf16 %v30274_v4, %v30273_v53  ;;  %v16988_v48 = vpack.c.bf16 %v30276_v51, %v30275_v49  ;;  %v17144_v46 = vpack.c.bf16 %v30280_v12, %v30279_v33  ;;  %v30307_v5 = vld [vmem:[#allocation48_spill] sm:$0xff]  ;;  %v30313_v6 = vld [vmem:[#allocation10_spill] sm:$0xff]  ;;  %v22075_v53 = vld [vmem:[%s28702_s1 + $0x10] sm:$0xff] }
 0x42d   :  { %16975 = vmatpush1.bf16.msra.mxu0 %v16974_v63  ;;  %17133 = vmatpush3.bf16.msra.mxu1 %v17132_v17  ;;  %v16992_v63 = vpack.c.bf16 %v30282_v57, %v30281_v27  ;;  %v17147_v55 = vpack.c.bf16 %v30286_v20, %v30285_v2  ;;  %v30288_v40 = vand.u32 4294901760, %v21406_v61  ;;  %v30292_v35 = vand.u32 4294901760, %v30218_v10  ;;  %v30293_v61 = vld [vmem:[#allocation17_spill] sm:$0xff]  ;;  %v30297_v10 = vld [vmem:[#allocation54_spill] sm:$0xff]  ;;  %v22082_v49 = vld [vmem:[%s28702_s1 + $0x28] sm:$0xff] }
 0x42e   :  { %16977 = vmatprep.subr.bf16.mxu0 %v16976_v39  ;;  %17134 = vmatprep.subr.bf16.mxu1 %v30172_v24  ;;  %v30300_v39 = vld [vmem:[#allocation19_spill] sm:$0xff]  ;;  %v29049_v4 = vand.u32 4294901760, %v22065_v25  ;;  %v29047_v51 = vand.u32 4294901760, %v22075_v53  ;;  %v29046_v52 = vand.u32 4294901760, %v22082_v49  ;;  %v22106_v33 = vld [vmem:[%s28702_s1 + $0x50] sm:$0xff]  ;;  %v22138_v2 = vld [vmem:[%s28702_s1 + $0x58] sm:$0xff] }
 0x42f   :  { %v16996_v17 = vpack.c.bf16 %v30288_v40, %v30287_v1  ;;  %v17150_v28 = vpack.c.bf16 %v30292_v35, %v30291_v47  ;;  %v29042_v27 = vand.u32 4294901760, %v22106_v33  ;;  %v22120_v57 = vld [vmem:[%s28702_s1 + $0x30] sm:$0xff]  ;;  %v29035_v20 = vand.u32 4294901760, %v22130_v3  ;;  %v22178_v35 = vld [vmem:[%s28702_s1 + $0x60] sm:$0xff] }
 0x430   :  { %v22113_v12 = vpack.c.bf16 %v29046_v52, %v29047_v51  ;;  %v29041_v37 = vand.u32 4294901760, %v22120_v57  ;;  %v29034_v1 = vand.u32 4294901760, %v22138_v2  ;;  %v29032_v47 = vand.u32 4294901760, %v22164_v59 }
 0x431   :  { %16979 = vmatpush1.bf16.msra.mxu0 %v16978_v13  ;;  %17136 = vmatpush3.bf16.msra.mxu1 %v17135_v8  ;;  %v30303_v13 = vld [vmem:[#allocation23_spill] sm:$0xff]  ;;  %v30306_v8 = vld [vmem:[#allocation25_spill] sm:$0xff] }
 0x432   :  { %16981 = vmatprep.subr.bf16.mxu0 %v16980_v34  ;;  %17137 = vmatprep.subr.bf16.mxu1 %v30172_v24  ;;  %v30309_v34 = vld [vmem:[#allocation49_spill] sm:$0xff]  ;;  %30316 = vst [vmem:[#allocation36_spill] sm:$0xff] %v22113_v12  ;;  %v22171_v30 = vpack.c.bf16 %v29034_v1, %v29035_v20  ;;  %v22335_v20 = vld [vmem:[%s28702_s1 + $0xf8] sm:$0xff] }
 0x434   :  { %30319 = vst [vmem:[#allocation27_spill] sm:$0xff] %v22171_v30 }
 0x435   :  { %16983 = vmatpush1.bf16.msra.mxu0 %v16982_v60  ;;  %17139 = vmatpush3.bf16.msra.mxu1 %v17138_v15  ;;  %v30312_v60 = vld [vmem:[#allocation33_spill] sm:$0xff] }
 0x436   :  { %16985 = vmatprep.subr.bf16.mxu0 %v16984_v56  ;;  %17140 = vmatprep.subr.bf16.mxu1 %v30172_v24 }
 0x439   :  { %16987 = vmatpush1.bf16.msra.mxu0 %v16986_v43  ;;  %17142 = vmatpush3.bf16.msra.mxu1 %v17141_v58  ;;  %v22070_v43 = vld [vmem:[%s28702_s1 + $0x18] sm:$0xff] }
 0x43a   :  { %16989 = vmatprep.subr.bf16.mxu0 %v16988_v48  ;;  %17143 = vmatprep.subr.bf16.mxu1 %v30172_v24  ;;  %v29048_v58 = vand.u32 4294901760, %v22070_v43 }
 0x43c   :  { %v22096_v31 = vpack.c.bf16 %v29048_v58, %v29049_v4 }
 0x43d   :  { %16991 = vmatpush1.bf16.msra.mxu0 %v16990_v50  ;;  %17145 = vmatpush3.bf16.msra.mxu1 %v17144_v46  ;;  %v22101_v50 = vld [vmem:[%s28702_s1 + $0x38] sm:$0xff] }
 0x43e   :  { %16993 = vmatprep.subr.bf16.mxu0 %v16992_v63  ;;  %17146 = vmatprep.subr.bf16.mxu1 %v30172_v24  ;;  %30315 = vst [vmem:[#allocation35_spill] sm:$0xff] %v22096_v31  ;;  %v29045_v46 = vand.u32 4294901760, %v22101_v50  ;;  %v22125_v63 = vld [vmem:[%s28702_s1 + $0x48] sm:$0xff] }
 0x441   :  { %16995 = vmatpush1.bf16.msra.mxu0 %v16994_v42  ;;  %17148 = vmatpush3.bf16.msra.mxu1 %v17147_v55  ;;  %v29040_v42 = vand.u32 4294901760, %v22125_v63  ;;  %v22146_v55 = vpack.c.bf16 %v29042_v27, %v29045_v46  ;;  %v22364_v27 = vld [vmem:[%s28702_s1 + $0x100] sm:$0xff]  ;;  %v22372_v46 = vld [vmem:[%s28702_s1 + $0x118] sm:$0xff] }
 0x442   :  { %16997 = vmatprep.subr.bf16.mxu0 %v16996_v17  ;;  %17149 = vmatprep.subr.bf16.mxu1 %v30172_v24  ;;  %v22159_v17 = vld [vmem:[%s28702_s1 + $0x68] sm:$0xff]  ;;  %v29061_v52 = vand.u32 4294901760, %v22364_v27  ;;  %v29060_v58 = vand.u32 4294901760, %v22372_v46 }
 0x443   :  { %30317 = vst [vmem:[#allocation55_spill] sm:$0xff] %v22146_v55  ;;  %v22154_v40 = vpack.c.bf16 %v29040_v42, %v29041_v37  ;;  %v22354_v42 = vld [vmem:[%s28702_s1 + $0xf0] sm:$0xff]  ;;  %v22359_v37 = vld [vmem:[%s28702_s1 + $0x108] sm:$0xff] }
 0x445   :  { %16999 = vmatpush1.bf16.msra.mxu0 %v16998_v54  ;;  %17151 = vmatpush3.bf16.msra.mxu1 %v17150_v28  ;;  %30318 = vst [vmem:[#allocation9_spill] sm:$0xff] %v22154_v40  ;;  %v29033_v54 = vand.u32 4294901760, %v22159_v17  ;;  %v22183_v28 = vld [vmem:[%s28702_s1 + $0x78] sm:$0xff] }
 0x446   :  { %17001 = vmatprep.subr.bf16.mxu0 %v30221_v62  ;;  %17152 = vmatprep.subr.bf16.mxu1 %v30172_v24  ;;  %v30299_v62 = vld [vmem:[#allocation20_spill] sm:$0xff] }
 0x448   :  { %3983 = vmatmul.mubr.f32.vlgmr.msra.gmra.mrb[4].mxu0 %v21729_v26  ;;  %14871 = vmatmul.mubr.f32.vlgmr.msra.gmra.mrb[34].mxu1 %v21729_v26 }
 0x449   :  { %17003 = vmatpush1.bf16.msra.mxu0 %v30293_v61  ;;  %17154 = vmatpush3.bf16.msra.mxu1 %v30294_v41  ;;  %v22188_v61 = vld [vmem:[%s28702_s1 + $0x70] sm:$0xff]  ;;  %v29031_v41 = vand.u32 4294901760, %v22178_v35 }
 0x44a   :  { %17005 = vmatprep.subr.bf16.mxu0 %v30295_v14  ;;  %17155 = vmatprep.subr.bf16.mxu1 %v30172_v24  ;;  %v29030_v14 = vand.u32 4294901760, %v22183_v28 }
 0x44b   :  { %4085 = vmatprep.mubr.f32.mxu0 %v30173_v32  ;;  %14905 = vmatprep.mubr.msk.f32.mxu1 %vm19186_vm0, %v30173_v32 }
 0x44d   :  { %17007 = vmatpush1.bf16.msra.mxu0 %v30296_v9  ;;  %17157 = vmatpush3.bf16.msra.mxu1 %v30297_v10  ;;  %v22196_v9 = vld [vmem:[%s28702_s1 + $0x88] sm:$0xff]  ;;  %v29027_v10 = vand.u32 4294901760, %v22188_v61 }
 0x44e   :  { %17009 = vmatprep.subr.bf16.mxu0 %v30298_v44  ;;  %17158 = vmatprep.subr.bf16.mxu1 %v30172_v24  ;;  %v22204_v44 = vpack.c.bf16 %v29032_v47, %v29033_v54 }
 0x450   :  { %30320 = vst [vmem:[#allocation28_spill] sm:$0xff] %v22204_v44 }
 0x451   :  { %17011 = vmatpush1.bf16.msra.mxu0 %v30299_v62  ;;  %17160 = vmatpush3.bf16.msra.mxu1 %v30300_v39  ;;  %v29026_v62 = vand.u32 4294901760, %v22196_v9 }
 0x452   :  { %17013 = vmatprep.subr.bf16.mxu0 %v30301_v11  ;;  %17161 = vmatprep.subr.bf16.mxu1 %v30172_v24  ;;  %v22212_v11 = vpack.c.bf16 %v29030_v14, %v29031_v41  ;;  %v22314_v14 = vld [vmem:[%s28702_s1 + $0xe8] sm:$0xff] }
 0x453   :  { %v29043_v54 = vand.u32 4294901760, %v22314_v14 }
 0x454   :  { %30321 = vst [vmem:[#allocation29_spill] sm:$0xff] %v22212_v11 }
 0x455   :  { %17015 = vmatpush1.bf16.msra.mxu0 %v30302_v36  ;;  %17163 = vmatpush3.bf16.msra.mxu1 %v30303_v13  ;;  %v22217_v36 = vld [vmem:[%s28702_s1 + $0x98] sm:$0xff]  ;;  %v22222_v13 = vld [vmem:[%s28702_s1 + $0xb0] sm:$0xff] }
 0x456   :  { %17017 = vmatprep.subr.bf16.mxu0 %v30304_v16  ;;  %17164 = vmatprep.subr.bf16.mxu1 %v30172_v24 }
 0x459   :  { %17019 = vmatpush1.bf16.msra.mxu0 %v30305_v21  ;;  %17166 = vmatpush3.bf16.msra.mxu1 %v30306_v8  ;;  %v22231_v8 = vpack.c.bf16 %v29026_v62, %v29027_v10  ;;  %v22301_v62 = vld [vmem:[%s28702_s1 + $0xd8] sm:$0xff]  ;;  %v22306_v10 = vld [vmem:[%s28702_s1 + $0xd0] sm:$0xff] }
 0x45a   :  { %17021 = vmatprep.subr.bf16.mxu0 %v30307_v5  ;;  %17167 = vmatprep.subr.bf16.mxu1 %v30172_v24  ;;  %v29025_v5 = vand.u32 4294901760, %v22217_v36  ;;  %v29044_v41 = vand.u32 4294901760, %v22306_v10 }
 0x45b   :  { %30323 = vst [vmem:[#allocation31_spill] sm:$0xff] %v22231_v8 }
 0x45d   :  { %17023 = vmatpush1.bf16.msra.mxu0 %v30308_v38  ;;  %17169 = vmatpush3.bf16.msra.mxu1 %v30309_v34  ;;  %v29022_v38 = vand.u32 4294901760, %v22222_v13  ;;  %v22238_v34 = vld [vmem:[%s28702_s1 + $0x90] sm:$0xff] }
 0x45e   :  { %17025 = vmatprep.subr.bf16.mxu0 %v30310_v18  ;;  %17170 = vmatprep.subr.bf16.mxu1 %v30172_v24  ;;  %v22243_v18 = vld [vmem:[%s28702_s1 + $0xa8] sm:$0xff] }
 0x461   :  { %17027 = vmatpush1.bf16.msra.mxu0 %v30311_v7  ;;  %17172 = vmatpush3.bf16.msra.mxu1 %v30312_v60  ;;  %v22248_v7 = vld [vmem:[%s28702_s1 + $0xa0] sm:$0xff]  ;;  %v29024_v60 = vand.u32 4294901760, %v22238_v34 }
 0x462   :  { %17029 = vmatprep.subr.bf16.mxu0 %v30313_v6  ;;  %17173 = vmatprep.subr.bf16.mxu1 %v30172_v24  ;;  %v29023_v6 = vand.u32 4294901760, %v22243_v18 }
 0x465   :  { %17031 = vmatpush1.bf16.msra.mxu0 %v30245_v29  ;;  %17175 = vmatpush3.bf16.msra.mxu1 %v30246_v23  ;;  %v22053_v29 = vld [vmem:[%s28702_s1 + $0x8] sm:$0xff]  ;;  %v22058_v23 = vld [vmem:[%s28702_s1 + $0x20] sm:$0xff] }
 0x466   :  { %17368 = vmatprep.subr.bf16.mxu1 %v30172_v24  ;;  %v29050_v0 = vand.u32 4294901760, %v22058_v23 }
 0x468   :  { %4087 = vmatmul.mubr.f32.vlgmr.msra.gmra.mrb[4].mxu0 %v21729_v26  ;;  %14906 = vmatmul.mubr.f32.vlgmr.msra.gmra.mrb[36].mxu1 %v21729_v26  ;;  %v29055_v26 = vand.u32 4294901760, %v22053_v29 }
 0x469   :  { %4909 = vmatprep.mubr.f32.mxu0 %v30173_v32  ;;  %14940 = vmatprep.mubr.msk.f32.mxu1 %vm19186_vm0, %v30173_v32 }
 0x46a   :  { %v22089_v48 = vpack.c.bf16 %v29050_v0, %v29055_v26  ;;  %17370 = vmatpush3.bf16.msra.mxu1 %v22113_v12  ;;  %v22393_v0 = vld [vmem:[%s28702_s1 + $0x128] sm:$0xff]  ;;  %v22412_v26 = vld [vmem:[%s28702_s1 + $0x120] sm:$0xff] }
 0x46b   :  { %17371 = vmatprep.subr.bf16.mxu1 %v30172_v24 }
 0x46c   :  { %30314 = vst [vmem:[#allocation34_spill] sm:$0xff] %v22089_v48  ;;  %17177 = vmatprep.subr.bf16.mxu0 %v22089_v48  ;;  %v30345_v48 = vand.u32 4294901760, %v22125_v63 }
 0x46d   :  { %17179 = vmatpush1.bf16.msra.mxu0 %v22096_v31  ;;  %v30344_v31 = vand.u32 4294901760, %v22120_v57 }
 0x46e   :  { %17181 = vmatprep.subr.bf16.mxu0 %v22146_v55  ;;  %17373 = vmatpush3.bf16.msra.mxu1 %v22171_v30  ;;  %v30343_v55 = vand.u32 4294901760, %v22106_v33  ;;  %v22494_v32 = vsub.f32 %v22125_v63, %v30345_v48  ;;  %v30352_v63 = vand.u32 4294901760, %v22178_v35 }
 0x46f   :  { %17374 = vmatprep.subr.bf16.mxu1 %v30172_v24 }
 0x470   :  { %v22484_v12 = vsub.f32 %v22106_v33, %v30343_v55  ;;  %v30349_v55 = vand.u32 4294901760, %v22159_v17 }
 0x471   :  { %17183 = vmatpush1.bf16.msra.mxu0 %v22154_v40  ;;  %v30337_v40 = vand.u32 4294901760, %v22070_v43 }
 0x472   :  { %17185 = vmatprep.subr.bf16.mxu0 %v22204_v44  ;;  %17376 = vmatpush3.bf16.msra.mxu1 %v22231_v8  ;;  %v30336_v44 = vand.u32 4294901760, %v22065_v25 }
 0x473   :  { %17377 = vmatprep.subr.bf16.mxu1 %v30172_v24 }
 0x474   :  { %v22447_v30 = vsub.f32 %v22065_v25, %v30336_v44  ;;  %v4808_v25 = vld [vmem:[%s28702_s1 + $0x158] sm:$0xff] }
 0x475   :  { %17187 = vmatpush1.bf16.msra.mxu0 %v22212_v11  ;;  %v4869_v44 = vand.u32 4294901760, %v4808_v25 }
 0x49b   :  { %v4180_v19 = vpop.f32.mrb[26].mxu1 }
 0x49c   :  { %v14732_v15 = vpop.f32.mrb[27].mxu1 }
 0x49d   :  { %v29029_v15 = vand.u32 4294901760, %v22248_v7 }
 0x4bb   :  { %v4331_v22 = vpop.f32.mrb[28].mxu1 }
 0x4bc   :  { %v4332_v45 = vadd.f32 %v4331_v22, %v4180_v19  ;;  %v14767_v56 = vpop.f32.mrb[29].mxu1  ;;  %v22256_v19 = vld [vmem:[%s28702_s1 + $0xb8] sm:$0xff]  ;;  %v22264_v22 = vpack.c.bf16 %v29022_v38, %v29025_v5  ;;  %v22296_v5 = vld [vmem:[%s28702_s1 + $0xc0] sm:$0xff] }
 0x4bd   :  { %v22272_v56 = vpack.c.bf16 %v29023_v6, %v29024_v60 }
 0x4be   :  { %30324 = vst [vmem:[#allocation13_spill] sm:$0xff] %v22264_v22  ;;  %17189 = vmatprep.subr.bf16.mxu0 %v22264_v22  ;;  %v30334_v22 = vand.u32 4294901760, %v22058_v23 }
 0x4bf   :  { %30325 = vst [vmem:[#allocation6_spill] sm:$0xff] %v22272_v56  ;;  %17191 = vmatpush1.bf16.msra.mxu0 %v22272_v56 }
 0x4c0   :  { %v22439_v8 = vsub.f32 %v22058_v23, %v30334_v22  ;;  %v30339_v22 = vand.u32 4294901760, %v22082_v49 }
 0x4db   :  { %v4435_v39 = vpop.f32.mrb[30].mxu1 }
 0x4dc   :  { %v22224_v16 = vadd.f32 %v4435_v39, %v4332_v45  ;;  %v14802_v21 = vpop.f32.mrb[31].mxu1  ;;  %v29028_v45 = vand.u32 4294901760, %v22256_v19  ;;  %v22277_v39 = vld [vmem:[%s28702_s1 + $0xc8] sm:$0xff] }
 0x4dd   :  { %v22282_v21 = vld [vmem:[%s28702_s1 + $0xe0] sm:$0xff]  ;;  %v29037_v6 = vand.u32 4294901760, %v22277_v39 }
 0x4de   :  { %30322 = vst [vmem:[#allocation30_spill] sm:$0xff] %v22224_v16  ;;  %v22289_v38 = vpack.c.bf16 %v29028_v45, %v29029_v15  ;;  %v29036_v60 = vand.u32 4294901760, %v22282_v21  ;;  %v29039_v45 = vand.u32 4294901760, %v22296_v5  ;;  %v29038_v15 = vand.u32 4294901760, %v22301_v62 }
 0x4df   :  { %v30346_v16 = vand.u32 4294901760, %v22130_v3 }
 0x4e0   :  { %30326 = vst [vmem:[#allocation11_spill] sm:$0xff] %v22289_v38  ;;  %17379 = vmatpush3.bf16.msra.mxu1 %v22289_v38  ;;  %v22322_v47 = vpack.c.bf16 %v29036_v60, %v29037_v6  ;;  %v22330_v1 = vpack.c.bf16 %v29038_v15, %v29039_v45  ;;  %v22340_v60 = vld [vmem:[%s28702_s1 + $0x110] sm:$0xff]  ;;  %v22347_v6 = vpack.c.bf16 %v29043_v54, %v29044_v41  ;;  %v29052_v15 = vand.u32 4294901760, %v22335_v20 }
 0x4e1   :  { %17380 = vmatprep.subr.bf16.mxu1 %v30172_v24  ;;  %v29051_v45 = vand.u32 4294901760, %v22340_v60  ;;  %v29054_v54 = vand.u32 4294901760, %v22354_v42  ;;  %v29053_v41 = vand.u32 4294901760, %v22359_v37  ;;  %v30333_v38 = vand.u32 4294901760, %v22053_v29 }
 0x4e2   :  { %30327 = vst [vmem:[#allocation44_spill] sm:$0xff] %v22322_v47  ;;  %30328 = vst [vmem:[#allocation45_spill] sm:$0xff] %v22330_v1  ;;  %17193 = vmatprep.subr.bf16.mxu0 %v22322_v47 }
 0x4e3   :  { %30329 = vst [vmem:[#allocation5_spill] sm:$0xff] %v22347_v6  ;;  %17195 = vmatpush1.bf16.msra.mxu0 %v22330_v1  ;;  %v22380_v51 = vpack.c.bf16 %v29051_v45, %v29052_v15  ;;  %v22388_v4 = vpack.c.bf16 %v29053_v41, %v29054_v54  ;;  %v22398_v45 = vld [vmem:[%s28702_s1 + $0x140] sm:$0xff]  ;;  %v22405_v15 = vpack.c.bf16 %v29060_v58, %v29061_v52  ;;  %v4861_v41 = vand.u32 4294901760, %v22393_v0  ;;  %v4806_v1 = vld [vmem:[%s28702_s1 + $0x148] sm:$0xff] }
 0x4e4   :  { %17382 = vmatpush3.bf16.msra.mxu1 %v22347_v6  ;;  %v4865_v54 = vand.u32 4294901760, %v22398_v45  ;;  %v22417_v6 = vld [vmem:[%s28702_s1 + $0x138] sm:$0xff]  ;;  %v4863_v58 = vand.u32 4294901760, %v22412_v26  ;;  %v22434_v56 = vsub.f32 %v22053_v29, %v30333_v38  ;;  %v5708_v11 = vand.u32 4294901760, %v4806_v1 }
 0x4e5   :  { %30330 = vst [vmem:[#allocation47_spill] sm:$0xff] %v22380_v51  ;;  %17383 = vmatprep.subr.bf16.mxu1 %v30172_v24  ;;  %30331 = vst [vmem:[#allocation16_spill] sm:$0xff] %v22388_v4  ;;  %17197 = vmatprep.subr.bf16.mxu0 %v22380_v51  ;;  %v22422_v51 = vld [vmem:[%s28702_s1 + $0x130] sm:$0xff]  ;;  %v4867_v52 = vand.u32 4294901760, %v22417_v6  ;;  %v22452_v29 = vsub.f32 %v22070_v43, %v30337_v40  ;;  %v30338_v38 = vand.u32 4294901760, %v22075_v53 }
 0x4e6   :  { %30332 = vst [vmem:[#allocation3_spill] sm:$0xff] %v22405_v15  ;;  %v5705_v47 = vand.u32 4294901760, %v22422_v51  ;;  %v4811_v43 = vld [vmem:[%s28702_s1 + $0x170] sm:$0xff] }
 0x4e7   :  { %17199 = vmatpush1.bf16.msra.mxu0 %v22388_v4  ;;  %v22442_v4 = vpack.c.bf16 %v4865_v54, %v4861_v41  ;;  %v22457_v23 = vsub.f32 %v22075_v53, %v30338_v38  ;;  %v22472_v40 = vpack.c.bf16 %v4867_v52, %v4863_v58  ;;  %v4873_v38 = vand.u32 4294901760, %v4811_v43 }
 0x4e8   :  { %17385 = vmatpush3.bf16.msra.mxu1 %v22405_v15  ;;  %v22462_v15 = vsub.f32 %v22082_v49, %v30339_v22  ;;  %v22474_v53 = vpack.c.bf16 %v5708_v11, %v5705_v47  ;;  %v30342_v49 = vand.u32 4294901760, %v22101_v50 }
 0x4e9   :  { %30335 = vst [vmem:[#allocation56_spill] sm:$0xff] %v22442_v4  ;;  %17386 = vmatprep.subr.bf16.mxu1 %v30172_v24  ;;  %17201 = vmatprep.subr.bf16.mxu0 %v22442_v4  ;;  %30340 = vst [vmem:[#allocation57_spill] sm:$0xff] %v22472_v40  ;;  %v22489_v4 = vsub.f32 %v22120_v57, %v30344_v31  ;;  %v22509_v31 = vsub.f32 %v22159_v17, %v30349_v55  ;;  %v30350_v57 = vand.u32 4294901760, %v22164_v59 }
 0x4ea   :  { %30341 = vst [vmem:[#allocation8_spill] sm:$0xff] %v22474_v53  ;;  %v22479_v22 = vsub.f32 %v22101_v50, %v30342_v49  ;;  %v22499_v50 = vsub.f32 %v22130_v3, %v30346_v16  ;;  %v30348_v49 = vand.u32 4294901760, %v22138_v2  ;;  %v22520_v3 = vsub.f32 %v22178_v35, %v30352_v63 }
 0x4eb   :  { %v22514_v48 = vsub.f32 %v22164_v59, %v30350_v57  ;;  %17203 = vmatpush1.bf16.msra.mxu0 %v22472_v40  ;;  %v30354_v17 = vand.u32 4294901760, %v22188_v61  ;;  %v30355_v59 = vand.u32 4294901760, %v22196_v9  ;;  %v30356_v35 = vand.u32 4294901760, %v22217_v36 }
 0x4ec   :  { %30347 = vst [vmem:[#allocation37_spill] sm:$0xff] %v22499_v50  ;;  %v22504_v33 = vsub.f32 %v22138_v2, %v30348_v49  ;;  %v30353_v2 = vand.u32 4294901760, %v22183_v28  ;;  %17388 = vmatpush3.bf16.msra.mxu1 %v22474_v53 }
 0x4ed   :  { %30351 = vst [vmem:[#allocation39_spill] sm:$0xff] %v22514_v48  ;;  %v22530_v49 = vsub.f32 %v22188_v61, %v30354_v17  ;;  %v22535_v55 = vsub.f32 %v22196_v9, %v30355_v59  ;;  %v22541_v57 = vsub.f32 %v22217_v36, %v30356_v35  ;;  %v30358_v61 = vand.u32 4294901760, %v22238_v34  ;;  %17389 = vmatprep.subr.bf16.mxu1 %v30172_v24 }
 0x4ee   :  { %v22525_v16 = vsub.f32 %v22183_v28, %v30353_v2  ;;  %v30357_v28 = vand.u32 4294901760, %v22222_v13  ;;  %v30359_v9 = vand.u32 4294901760, %v22243_v18  ;;  %v30360_v36 = vand.u32 4294901760, %v22248_v7 }
 0x4ef   :  { %v22551_v2 = vsub.f32 %v22238_v34, %v30358_v61  ;;  %v30362_v34 = vand.u32 4294901760, %v22277_v39 }
 0x4f0   :  { %v22546_v63 = vsub.f32 %v22222_v13, %v30357_v28  ;;  %v22556_v17 = vsub.f32 %v22243_v18, %v30359_v9  ;;  %v22562_v59 = vsub.f32 %v22248_v7, %v30360_v36  ;;  %v30361_v13 = vand.u32 4294901760, %v22256_v19 }
 0x4f1   :  { %v22572_v28 = vsub.f32 %v22277_v39, %v30362_v34  ;;  %v30363_v18 = vand.u32 4294901760, %v22282_v21  ;;  %v30364_v9 = vand.u32 4294901760, %v22296_v5  ;;  %v30365_v36 = vand.u32 4294901760, %v22301_v62 }
 0x4f2   :  { %v22567_v35 = vsub.f32 %v22256_v19, %v30361_v13  ;;  %v30366_v13 = vand.u32 4294901760, %v22306_v10  ;;  %v30367_v34 = vand.u32 4294901760, %v22314_v14 }
 0x4f3   :  { %v22577_v61 = vsub.f32 %v22282_v21, %v30363_v18  ;;  %v22582_v7 = vsub.f32 %v22296_v5, %v30364_v9  ;;  %v22587_v19 = vsub.f32 %v22301_v62, %v30365_v36  ;;  %v30368_v18 = vand.u32 4294901760, %v22335_v20 }
 0x4f4   :  { %v22592_v39 = vsub.f32 %v22306_v10, %v30366_v13  ;;  %v22597_v21 = vsub.f32 %v22314_v14, %v30367_v34  ;;  %v30369_v9 = vand.u32 4294901760, %v22340_v60  ;;  %v30370_v36 = vand.u32 4294901760, %v22354_v42 }
 0x4f5   :  { %v22602_v5 = vsub.f32 %v22335_v20, %v30368_v18  ;;  %v30371_v13 = vand.u32 4294901760, %v22359_v37  ;;  %v4807_v20 = vld [vmem:[%s28702_s1 + $0x150] sm:$0xff]  ;;  %v30372_v34 = vand.u32 4294901760, %v22364_v27 }
 0x4f6   :  { %v22607_v62 = vsub.f32 %v22340_v60, %v30369_v9  ;;  %v22612_v10 = vsub.f32 %v22354_v42, %v30370_v36  ;;  %v30373_v60 = vand.u32 4294901760, %v22372_v46  ;;  %v22633_v42 = vsub.f32 %v22393_v0, %v4861_v41  ;;  %v4810_v36 = vld [vmem:[%s28702_s1 + $0x168] sm:$0xff] }
 0x4f7   :  { %v22617_v14 = vsub.f32 %v22359_v37, %v30371_v13  ;;  %v22625_v18 = vsub.f32 %v22364_v27, %v30372_v34  ;;  %v22636_v37 = vsub.f32 %v22398_v45, %v4865_v54  ;;  %v4809_v27 = vld [vmem:[%s28702_s1 + $0x160] sm:$0xff]  ;;  %v4812_v13 = vld [vmem:[%s28702_s1 + $0x178] sm:$0xff]  ;;  %v22651_v0 = vsub.f32 %v22417_v6, %v4867_v52 }
 0x4f8   :  { %v22630_v9 = vsub.f32 %v22372_v46, %v30373_v60  ;;  %30375 = vst [vmem:[#allocation40_spill] sm:$0xff] %v22633_v42  ;;  %v22648_v46 = vsub.f32 %v22412_v26, %v4863_v58  ;;  %v22654_v54 = vsub.f32 %v22422_v51, %v5705_v47  ;;  %v22656_v41 = vsub.f32 %v4806_v1, %v5708_v11 }
 0x4f9   :  { %30376 = vst [vmem:[#allocation42_spill] sm:$0xff] %v22636_v37  ;;  %30378 = vst [vmem:[#allocation50_spill] sm:$0xff] %v22651_v0  ;;  %v22658_v45 = vpack.c.bf16 %v4873_v38, %v4869_v44  ;;  %v22660_v34 = vsub.f32 %v4808_v25, %v4869_v44  ;;  %v22662_v60 = vsub.f32 %v4811_v43, %v4873_v38  ;;  %v4871_v53 = vand.u32 4294901760, %v4807_v20 }
 0x4fa   :  { %30374 = vst [vmem:[#allocation38_spill] sm:$0xff] %v22630_v9  ;;  %30377 = vst [vmem:[#allocation41_spill] sm:$0xff] %v22648_v46  ;;  %v4875_v40 = vand.u32 4294901760, %v4810_v36  ;;  %v5711_v37 = vand.u32 4294901760, %v4809_v27  ;;  %v5714_v42 = vand.u32 4294901760, %v4812_v13  ;;  %v29105_v26 = vand.u32 4294901760, %v22434_v56 }
 0x4fb   :  { %30379 = vst [vmem:[#allocation12_spill] sm:$0xff] %v22654_v54  ;;  %30380 = vst [vmem:[#allocation14_spill] sm:$0xff] %v22656_v41  ;;  %17205 = vmatprep.subr.bf16.mxu0 %v22658_v45  ;;  %v22666_v58 = vsub.f32 %v4807_v20, %v4871_v53  ;;  %v29103_v51 = vand.u32 4294901760, %v22439_v8  ;;  %v29104_v52 = vand.u32 4294901760, %v22447_v30  ;;  %v29110_v1 = vand.u32 4294901760, %v22452_v29 }
 0x4fc   :  { %30381 = vst [vmem:[#allocation4_spill] sm:$0xff] %v22658_v45  ;;  %30382 = vst [vmem:[#allocation43_spill] sm:$0xff] %v22660_v34  ;;  %v22671_v47 = vpack.c.bf16 %v4875_v40, %v4871_v53  ;;  %v22673_v11 = vsub.f32 %v4810_v36, %v4875_v40  ;;  %v22675_v6 = vpack.c.bf16 %v5714_v42, %v5711_v37  ;;  %v4524_v40 = vpop.f32.mrb[32].mxu1  ;;  %v29116_v36 = vand.u32 4294901760, %v22479_v22 }
 0x4fd   :  { %30383 = vst [vmem:[#allocation17_spill] sm:$0xff] %v22666_v58  ;;  %v22677_v25 = vsub.f32 %v4809_v27, %v5711_v37  ;;  %v22679_v43 = vsub.f32 %v4812_v13, %v5714_v42  ;;  %v4924_v44 = vsub.f32 %v22434_v56, %v29105_v26  ;;  %v4936_v38 = vsub.f32 %v22439_v8, %v29103_v51  ;;  %v30389_v27 = vld [vmem:[#allocation30_spill] sm:$0xff]  ;;  %v14837_v51 = vpop.f32.mrb[33].mxu1 }
 0x4fe   :  { %30384 = vst [vmem:[#allocation52_spill] sm:$0xff] %v22671_v47  ;;  %30385 = vst [vmem:[#allocation53_spill] sm:$0xff] %v22673_v11  ;;  %v4930_v53 = vsub.f32 %v22447_v30, %v29104_v52  ;;  %17207 = vmatpush1.bf16.msra.mxu0 %v22671_v47  ;;  %17391 = vmatpush3.bf16.msra.mxu1 %v22675_v6  ;;  %v4942_v20 = vsub.f32 %v22452_v29, %v29110_v1  ;;  %v29114_v42 = vand.u32 4294901760, %v22457_v23 }
 0x4ff   :  { %30386 = vst [vmem:[#allocation15_spill] sm:$0xff] %v22675_v6  ;;  %30387 = vst [vmem:[#allocation54_spill] sm:$0xff] %v22677_v25  ;;  %v29115_v37 = vand.u32 4294901760, %v22462_v15  ;;  %v22699_v13 = vadd.f32 %v4524_v40, %v30389_v27  ;;  %v4925_v52 = vand.u32 4294901760, %v4924_v44  ;;  %v4937_v26 = vand.u32 4294901760, %v4936_v38  ;;  %17392 = vmatprep.subr.bf16.mxu1 %v30172_v24 }
 0x500   :  { %30388 = vst [vmem:[#allocation18_spill] sm:$0xff] %v22679_v43  ;;  %v4931_v47 = vand.u32 4294901760, %v4930_v53  ;;  %v4943_v6 = vand.u32 4294901760, %v4942_v20  ;;  %v5763_v1 = vsub.f32 %v22457_v23, %v29114_v42  ;;  %v4948_v40 = vsub.f32 %v22479_v22, %v29116_v36 }
 0x501   :  { %v5770_v45 = vsub.f32 %v22462_v15, %v29115_v37  ;;  %v17208_v27 = vpack.c.bf16 %v4937_v26, %v4925_v52  ;;  %v29117_v51 = vand.u32 4294901760, %v22484_v12  ;;  %v29118_v44 = vand.u32 4294901760, %v22489_v4 }
 0x502   :  { %v29119_v38 = vand.u32 4294901760, %v22494_v32  ;;  %v22714_v53 = vpack.c.bf16 %v4943_v6, %v4931_v47  ;;  %v5764_v20 = vand.u32 4294901760, %v5763_v1  ;;  %v4949_v42 = vand.u32 4294901760, %v4948_v40 }
 0x503   :  { %v5771_v24 = vand.u32 4294901760, %v5770_v45  ;;  %17209 = vmatprep.subr.bf16.mxu0 %v17208_v27  ;;  %v4960_v37 = vsub.f32 %v22484_v12, %v29117_v51  ;;  %v4954_v26 = vsub.f32 %v22489_v4, %v29118_v44  ;;  %v29120_v36 = vand.u32 4294901760, %v22499_v50 }
 0x504   :  { %30390 = vst [vmem:[#allocation20_spill] sm:$0xff] %v22714_v53  ;;  %v4966_v52 = vsub.f32 %v22494_v32, %v29119_v38  ;;  %v29123_v45 = vand.u32 4294901760, %v22504_v33  ;;  %v29124_v1 = vand.u32 4294901760, %v22509_v31  ;;  %v29125_v6 = vand.u32 4294901760, %v22514_v48 }
 0x505   :  { %v22726_v47 = vpack.c.bf16 %v5771_v24, %v5764_v20  ;;  %v4961_v40 = vand.u32 4294901760, %v4960_v37  ;;  %v4955_v27 = vand.u32 4294901760, %v4954_v26  ;;  %v5777_v44 = vsub.f32 %v22499_v50, %v29120_v36 }
 0x506   :  { %v4967_v51 = vand.u32 4294901760, %v4966_v52  ;;  %v5784_v38 = vsub.f32 %v22504_v33, %v29123_v45  ;;  %v4972_v24 = vsub.f32 %v22509_v31, %v29124_v1  ;;  %v4984_v20 = vsub.f32 %v22514_v48, %v29125_v6 }
 0x507   :  { %30391 = vst [vmem:[#allocation19_spill] sm:$0xff] %v22726_v47  ;;  %v29129_v37 = vand.u32 4294901760, %v22520_v3  ;;  %v22744_v26 = vpack.c.bf16 %v4961_v40, %v4949_v42  ;;  %v5778_v47 = vand.u32 4294901760, %v5777_v44  ;;  %v29128_v36 = vand.u32 4294901760, %v22525_v16 }
 0x508   :  { %v22746_v52 = vpack.c.bf16 %v4967_v51, %v4955_v27  ;;  %v5785_v53 = vand.u32 4294901760, %v5784_v38  ;;  %v4973_v50 = vand.u32 4294901760, %v4972_v24  ;;  %v4985_v45 = vand.u32 4294901760, %v4984_v20 }
 0x509   :  { %30392 = vst [vmem:[#allocation21_spill] sm:$0xff] %v22744_v26  ;;  %v4978_v1 = vsub.f32 %v22520_v3, %v29129_v37  ;;  %v4990_v6 = vsub.f32 %v22525_v16, %v29128_v36  ;;  %v29130_v48 = vand.u32 4294901760, %v22530_v49  ;;  %v29131_v42 = vand.u32 4294901760, %v22535_v55 }
 0x50a   :  { %30393 = vst [vmem:[#allocation22_spill] sm:$0xff] %v22746_v52  ;;  %v29132_v51 = vand.u32 4294901760, %v22541_v57  ;;  %v22758_v44 = vpack.c.bf16 %v5785_v53, %v5778_v47  ;;  %v22760_v40 = vpack.c.bf16 %v4985_v45, %v4973_v50  ;;  %v29133_v27 = vand.u32 4294901760, %v22546_v63 }
 0x50b   :  { %v4979_v38 = vand.u32 4294901760, %v4978_v1  ;;  %v4991_v24 = vand.u32 4294901760, %v4990_v6  ;;  %v5791_v20 = vsub.f32 %v22530_v49, %v29130_v48  ;;  %v5798_v36 = vsub.f32 %v22535_v55, %v29131_v42 }
 0x50c   :  { %30394 = vst [vmem:[#allocation23_spill] sm:$0xff] %v22758_v44  ;;  %30395 = vst [vmem:[#allocation24_spill] sm:$0xff] %v22760_v40  ;;  %v4996_v37 = vsub.f32 %v22541_v57, %v29132_v51  ;;  %v5008_v50 = vsub.f32 %v22546_v63, %v29133_v27  ;;  %v29134_v53 = vand.u32 4294901760, %v22551_v2  ;;  %v29135_v47 = vand.u32 4294901760, %v22556_v17 }
 0x50d   :  { %v29136_v45 = vand.u32 4294901760, %v22562_v59  ;;  %v22778_v1 = vpack.c.bf16 %v4991_v24, %v4979_v38  ;;  %v5792_v6 = vand.u32 4294901760, %v5791_v20  ;;  %v5799_v48 = vand.u32 4294901760, %v5798_v36 }
 0x50e   :  { %v4997_v40 = vand.u32 4294901760, %v4996_v37  ;;  %v5009_v42 = vand.u32 4294901760, %v5008_v50  ;;  %v5002_v51 = vsub.f32 %v22551_v2, %v29134_v53  ;;  %v5014_v27 = vsub.f32 %v22556_v17, %v29135_v47 }
 0x50f   :  { %30396 = vst [vmem:[#allocation46_spill] sm:$0xff] %v22778_v1  ;;  %v5805_v44 = vsub.f32 %v22562_v59, %v29136_v45  ;;  %v22789_v52 = vpack.c.bf16 %v5799_v48, %v5792_v6  ;;  %v29137_v38 = vand.u32 4294901760, %v22567_v35  ;;  %v29138_v36 = vand.u32 4294901760, %v22572_v28 }
 0x510   :  { %v29139_v37 = vand.u32 4294901760, %v22577_v61  ;;  %v22794_v24 = vpack.c.bf16 %v5009_v42, %v4997_v40  ;;  %v5003_v20 = vand.u32 4294901760, %v5002_v51  ;;  %v5015_v50 = vand.u32 4294901760, %v5014_v27 }
 0x511   :  { %30397 = vst [vmem:[#allocation25_spill] sm:$0xff] %v22789_v52  ;;  %v5806_v53 = vand.u32 4294901760, %v5805_v44  ;;  %v5812_v47 = vsub.f32 %v22567_v35, %v29137_v38  ;;  %v5020_v48 = vsub.f32 %v22572_v28, %v29138_v36  ;;  %v29140_v45 = vand.u32 4294901760, %v22582_v7 }
 0x512   :  { %30398 = vst [vmem:[#allocation48_spill] sm:$0xff] %v22794_v24  ;;  %v5032_v6 = vsub.f32 %v22577_v61, %v29139_v37  ;;  %v22806_v52 = vpack.c.bf16 %v5015_v50, %v5003_v20  ;;  %v29141_v42 = vand.u32 4294901760, %v22587_v19  ;;  %v29142_v51 = vand.u32 4294901760, %v22592_v39 }
 0x513   :  { %v29143_v44 = vand.u32 4294901760, %v22597_v21  ;;  %v5813_v40 = vand.u32 4294901760, %v5812_v47  ;;  %v5021_v27 = vand.u32 4294901760, %v5020_v48  ;;  %v5026_v36 = vsub.f32 %v22582_v7, %v29140_v45 }
 0x514   :  { %30399 = vst [vmem:[#allocation51_spill] sm:$0xff] %v22806_v52  ;;  %v5033_v38 = vand.u32 4294901760, %v5032_v6  ;;  %v5038_v37 = vsub.f32 %v22587_v19, %v29141_v42  ;;  %v5819_v20 = vsub.f32 %v22592_v39, %v29142_v51  ;;  %v29145_v47 = vand.u32 4294901760, %v22602_v5 }
 0x515   :  { %v5826_v50 = vsub.f32 %v22597_v21, %v29143_v44  ;;  %v22824_v48 = vpack.c.bf16 %v5813_v40, %v5806_v53  ;;  %v5027_v52 = vand.u32 4294901760, %v5026_v36  ;;  %v29144_v45 = vand.u32 4294901760, %v22607_v62 }
 0x516   :  { %v22826_v6 = vpack.c.bf16 %v5033_v38, %v5021_v27  ;;  %v5039_v24 = vand.u32 4294901760, %v5038_v37  ;;  %v5820_v1 = vand.u32 4294901760, %v5819_v20  ;;  %v5044_v51 = vsub.f32 %v22602_v5, %v29145_v47 }
 0x517   :  { %30400 = vst [vmem:[#allocation49_spill] sm:$0xff] %v22824_v48  ;;  %v5827_v42 = vand.u32 4294901760, %v5826_v50  ;;  %v5056_v44 = vsub.f32 %v22607_v62, %v29144_v45  ;;  %v29146_v26 = vand.u32 4294901760, %v22612_v10  ;;  %v29147_v53 = vand.u32 4294901760, %v22617_v14 }
 0x518   :  { %30401 = vst [vmem:[#allocation26_spill] sm:$0xff] %v22826_v6  ;;  %v29148_v38 = vand.u32 4294901760, %v22625_v18  ;;  %v22838_v36 = vpack.c.bf16 %v5039_v24, %v5027_v52  ;;  %v5045_v37 = vand.u32 4294901760, %v5044_v51  ;;  %v29149_v27 = vand.u32 4294901760, %v22630_v9 }
 0x519   :  { %v22840_v40 = vpack.c.bf16 %v5827_v42, %v5820_v1  ;;  %v5057_v20 = vand.u32 4294901760, %v5056_v44  ;;  %v5050_v50 = vsub.f32 %v22612_v10, %v29146_v26  ;;  %v5062_v45 = vsub.f32 %v22617_v14, %v29147_v53  ;;  %v30404_v1 = vld [vmem:[#allocation40_spill] sm:$0xff]  ;;  %v30405_v42 = vld [vmem:[#allocation42_spill] sm:$0xff] }
 0x51a   :  { %30402 = vst [vmem:[#allocation32_spill] sm:$0xff] %v22838_v36  ;;  %v5833_v47 = vsub.f32 %v22625_v18, %v29148_v38  ;;  %v5840_v52 = vsub.f32 %v22630_v9, %v29149_v27  ;;  %v29152_v24 = vand.u32 4294901760, %v30404_v1  ;;  %v29153_v51 = vand.u32 4294901760, %v30405_v42 }
 0x51b   :  { %30403 = vst [vmem:[#allocation33_spill] sm:$0xff] %v22840_v40  ;;  %v29155_v44 = vand.u32 4294901760, %v22648_v46  ;;  %v22858_v40 = vpack.c.bf16 %v5057_v20, %v5045_v37  ;;  %v5051_v26 = vand.u32 4294901760, %v5050_v50  ;;  %v5063_v36 = vand.u32 4294901760, %v5062_v45  ;;  %v4643_v20 = vpop.f32.mrb[34].mxu1 }
 0x51c   :  { %v5834_v6 = vand.u32 4294901760, %v5833_v47  ;;  %v5841_v53 = vand.u32 4294901760, %v5840_v52  ;;  %v5068_v38 = vsub.f32 %v30404_v1, %v29152_v24  ;;  %v5080_v27 = vsub.f32 %v30405_v42, %v29153_v51  ;;  %v14872_v42 = vpop.f32.mrb[35].mxu1 }
 0x51d   :  { %30406 = vst [vmem:[#allocation10_spill] sm:$0xff] %v22858_v40  ;;  %v5074_v48 = vsub.f32 %v22648_v46, %v29155_v44  ;;  %v22869_v9 = vpack.c.bf16 %v5063_v36, %v5051_v26  ;;  %v29158_v37 = vand.u32 4294901760, %v22651_v0  ;;  %v29156_v45 = vand.u32 4294901760, %v22654_v54 }
 0x51e   :  { %v29157_v47 = vand.u32 4294901760, %v22656_v41  ;;  %v22874_v50 = vpack.c.bf16 %v5841_v53, %v5834_v6  ;;  %v5069_v52 = vand.u32 4294901760, %v5068_v38  ;;  %v5081_v24 = vand.u32 4294901760, %v5080_v27 }
 0x51f   :  { %v5075_v40 = vand.u32 4294901760, %v5074_v48  ;;  %v4644_v51 = vadd.f32 %v4643_v20, %v22699_v13  ;;  %v5086_v26 = vsub.f32 %v22651_v0, %v29158_v37  ;;  %v5847_v36 = vsub.f32 %v22654_v54, %v29156_v45 }
 0x520   :  { %30407 = vst [vmem:[#allocation30_spill] sm:$0xff] %v22874_v50  ;;  %v5854_v44 = vsub.f32 %v22656_v41, %v29157_v47  ;;  %v22886_v6 = vpack.c.bf16 %v5081_v24, %v5069_v52  ;;  %v29159_v53 = vand.u32 4294901760, %v22660_v34  ;;  %v29160_v48 = vand.u32 4294901760, %v22662_v60 }
 0x521   :  { %v29161_v13 = vand.u32 4294901760, %v22666_v58  ;;  %v5087_v38 = vand.u32 4294901760, %v5086_v26  ;;  %v5848_v27 = vand.u32 4294901760, %v5847_v36  ;;  %v29164_v20 = vand.u32 4294901760, %v22673_v11 }
 0x522   :  { %30408 = vst [vmem:[#allocation40_spill] sm:$0xff] %v22886_v6  ;;  %v5855_v42 = vand.u32 4294901760, %v5854_v44  ;;  %v5092_v45 = vsub.f32 %v22660_v34, %v29159_v53  ;;  %v5104_v24 = vsub.f32 %v22662_v60, %v29160_v48  ;;  %v29162_v47 = vand.u32 4294901760, %v22677_v25 }
 0x523   :  { %v5098_v52 = vsub.f32 %v22666_v58, %v29161_v13  ;;  %v22902_v37 = vpack.c.bf16 %v5087_v38, %v5075_v40  ;;  %v5110_v44 = vsub.f32 %v22673_v11, %v29164_v20  ;;  %v29163_v36 = vand.u32 4294901760, %v22679_v43  ;;  %v30409_v20 = vld [vmem:[#allocation37_spill] sm:$0xff]  ;;  %v30412_v38 = vld [vmem:[#allocation42_spill] sm:$0xff] }
 0x524   :  { %v22904_v26 = vpack.c.bf16 %v5855_v42, %v5848_v27  ;;  %v5093_v53 = vand.u32 4294901760, %v5092_v45  ;;  %v5105_v6 = vand.u32 4294901760, %v5104_v24  ;;  %v5861_v48 = vsub.f32 %v22677_v25, %v29162_v47  ;;  %v30410_v27 = vld [vmem:[#allocation39_spill] sm:$0xff] }
 0x525   :  { %v5099_v50 = vand.u32 4294901760, %v5098_v52  ;;  %v5111_v13 = vand.u32 4294901760, %v5110_v44  ;;  %v5868_v40 = vsub.f32 %v22679_v43, %v29163_v36  ;;  %v13331_v25 = vld [vmem:[%s28703_s0 + $0x20] sm:$0xf] }
 0x526   :  { %v22920_v42 = vpack.c.bf16 %v5105_v6, %v5093_v53  ;;  %v5862_v45 = vand.u32 4294901760, %v5861_v48  ;;  %v3189_v11 = vunpack.c.l.bf16 %v13331_v25 }
 0x527   :  { %v22926_v44 = vpack.c.bf16 %v5111_v13, %v5099_v50  ;;  %v5869_v47 = vand.u32 4294901760, %v5868_v40  ;;  %v13330_v40 = vld [vmem:[%s28703_s0 + $0x18] sm:$0xff] }
 0x528   :  { %v3187_v36 = vunpack.c.l.bf16 %v13330_v40  ;;  %v3188_v6 = vunpack.c.h.bf16 %v13330_v40 }
 0x529   :  { %v22940_v13 = vpack.c.bf16 %v5869_v47, %v5862_v45  ;;  %v30411_v45 = vld [vmem:[#allocation38_spill] sm:$0xff] }
 0x53b   :  { %v4088_v52 = vpop.f32.mrb[4].mxu0  ;;  %v4730_v24 = vpop.f32.mrb[36].mxu1 }
 0x53c   :  { %v4734_v46 = vadd.f32 %v4088_v52, %v3187_v36  ;;  %v4731_v0 = vadd.f32 %v4730_v24, %v4644_v51  ;;  %v4090_v53 = vpop.f32.mrb[5].mxu0  ;;  %v14907_v54 = vpop.f32.mrb[37].mxu1  ;;  %v19179_v51 = vld [vmem:[%s28704_s2] ss:$0 sm:$0xff] }
 0x53d   :  { %v4741_v48 = vadd.f32 %v4090_v53, %v3188_v6  ;;  %v30413_v6 = vld [vmem:[#allocation7_spill] sm:$0xff] }
 0x53e   :  { %v13332_v41 = vmul.f32 -1.442695, %v4734_v46  ;;  %v4748_v54 = vadd.f32 %v19179_v51, %v4731_v0  ;;  %v30416_v51 = vld [vmem:[#allocation19_spill] sm:$0xff] }
 0x53f   :  { %v13333_v34 = vmul.f32 -1.442695, %v4741_v48 }
 0x540   :  { %19114 = vpow2.f32 %v13332_v41 }
 0x541   :  { %19116 = vpow2.f32 %v13333_v34 }
 0x54a   :  { %v19115_v50 = vpop.eup %19114 }
 0x54b   :  { %v4738_v58 = vadd.f32 1.0, %v19115_v50  ;;  %v19117_v47 = vpop.eup %19116 }
 0x54c   :  { %v4745_v43 = vadd.f32 1.0, %v19117_v47  ;;  %v30415_v47 = vld [vmem:[#allocation20_spill] sm:$0xff] }
 0x54d   :  { %19118 = vrcp.f32 %v4738_v58 }
 0x54e   :  { %19120 = vrcp.f32 %v4745_v43 }
 0x557   :  { %v19119_v46 = vpop.eup %19118 }
 0x558   :  { %v4749_v36 = vmul.f32 %v19119_v46, %v4748_v54  ;;  %v19121_v34 = vpop.eup %19120  ;;  %v30417_v54 = vld [vmem:[#allocation21_spill] sm:$0xff]  ;;  %v30418_v46 = vmov 0.0|0.0  }
 0x559   :  { %v4752_v24 = vsub.f32 1.0, %v19121_v34  ;;  %v4754_v53 = vmul.f32 %v19121_v34, %v30413_v6  ;;  %v30421_v34 = vld [vmem:[#allocation23_spill] sm:$0xff]  ;;  %v30425_v6 = vld [vmem:[#allocation48_spill] sm:$0xff] }
 0x55a   :  { %v4750_v41 = vadd.f32 %v4749_v36, %v3189_v11  ;;  %v30419_v36 = vmov 0.0  }
 0x55c   :  { %19122 = vtanh.f32 %v4750_v41  ;;  %v30420_v41 = vld [vmem:[#allocation22_spill] sm:$0xff] }
 0x566   :  { %v19123_v58 = vpop.eup %19122 }
 0x567   :  { %v4753_v52 = vmul.f32 %v19123_v58, %v4752_v24  ;;  %v30422_v24 = vld [vmem:[#allocation24_spill] sm:$0xff]  ;;  %v30423_v58 = vld [vmem:[#allocation46_spill] sm:$0xff] }
 0x569   :  { %v22980_v48 = vadd.f32 %v4754_v53, %v4753_v52  ;;  %v30424_v52 = vld [vmem:[#allocation25_spill] sm:$0xff]  ;;  %v30426_v53 = vld [vmem:[#allocation51_spill] sm:$0xff] }
 0x56b   :  { %30414 = vst [vmem:[#allocation37_spill] sm:$0xff] %v22980_v48  ;;  %v4756_v25 = vpack.c.bf16 %v22980_v48, %v22980_v48  ;;  %v22985_v50 = vand.u32 4294901760, %v22980_v48 }
 0x56d   :  { %13334 = vst [vmem:[%s28705_s5 + $0x8] sm:$0xf] %v4756_v25  ;;  %v22992_v0 = vsub.f32 %v22980_v48, %v22985_v50  ;;  %v30427_v25 = vld [vmem:[#allocation49_spill] sm:$0xff]  ;;  %v30478_v48 = vld [vmem:[#allocation11_spill] sm:$0xff] }
 0x56f   :  { %v22995_v11 = vand.u32 4294901760, %v22992_v0 }
 0x571   :  { %v4913_v43 = vsub.f32 %v22992_v0, %v22995_v11 }
 0x573   :  { %v4914_v40 = vand.u32 4294901760, %v4913_v43  ;;  %v30428_v43 = vld [vmem:[#allocation26_spill] sm:$0xff] }
 0x575   :  { %4915 = vmatmul.mubr.f32.vlgmr.msra.gmra.mrb[6].mxu0 %v4914_v40  ;;  %14941 = vmatmul.mubr.f32.vlgmr.msra.gmra.mrb[38].mxu1 %v4914_v40  ;;  %v30429_v40 = vld [vmem:[#allocation32_spill] sm:$0xff] }
 0x576   :  { %17211 = vmatpush1.bf16.msra.mxu0 %v30415_v47  ;;  %17394 = vmatpush3.bf16.msra.mxu1 %v30416_v51  ;;  %v30430_v47 = vld [vmem:[#allocation33_spill] sm:$0xff]  ;;  %v30431_v51 = vld [vmem:[#allocation10_spill] sm:$0xff] }
 0x577   :  { %17213 = vmatprep.subr.bf16.mxu0 %v30417_v54  ;;  %17395 = vmatprep.subr.bf16.mxu1 %v30418_v46  ;;  %v30432_v54 = vld [vmem:[#allocation30_spill] sm:$0xff] }
 0x578   :  { %5145 = vmatprep.mubr.f32.mxu0 %v30419_v36  ;;  %14975 = vmatprep.mubr.msk.f32.mxu1 %vm19186_vm0, %v30419_v36 }
 0x57a   :  { %17215 = vmatpush1.bf16.msra.mxu0 %v30420_v41  ;;  %17397 = vmatpush3.bf16.msra.mxu1 %v30421_v34  ;;  %v30433_v41 = vld [vmem:[#allocation40_spill] sm:$0xff]  ;;  %v30440_v34 = vpack.c.bf16 %v30410_v27, %v22509_v31 }
 0x57b   :  { %17217 = vmatprep.subr.bf16.mxu0 %v30422_v24  ;;  %17398 = vmatprep.subr.bf16.mxu1 %v30418_v46  ;;  %v30441_v24 = vpack.c.bf16 %v22525_v16, %v22520_v3 }
 0x57e   :  { %17219 = vmatpush1.bf16.msra.mxu0 %v30423_v58  ;;  %17400 = vmatpush3.bf16.msra.mxu1 %v30424_v52  ;;  %v30442_v58 = vpack.c.bf16 %v22535_v55, %v22530_v49  ;;  %v30443_v52 = vpack.c.bf16 %v22546_v63, %v22541_v57 }
 0x57f   :  { %17221 = vmatprep.subr.bf16.mxu0 %v30425_v6  ;;  %17401 = vmatprep.subr.bf16.mxu1 %v30418_v46  ;;  %v30444_v6 = vpack.c.bf16 %v22556_v17, %v22551_v2 }
 0x582   :  { %17223 = vmatpush1.bf16.msra.mxu0 %v30426_v53  ;;  %17403 = vmatpush3.bf16.msra.mxu1 %v30427_v25  ;;  %v30445_v53 = vpack.c.bf16 %v22567_v35, %v22562_v59  ;;  %v30446_v25 = vpack.c.bf16 %v22577_v61, %v22572_v28 }
 0x583   :  { %17225 = vmatprep.subr.bf16.mxu0 %v30428_v43  ;;  %17404 = vmatprep.subr.bf16.mxu1 %v30418_v46  ;;  %v30447_v43 = vpack.c.bf16 %v22587_v19, %v22582_v7 }
 0x586   :  { %17227 = vmatpush1.bf16.msra.mxu0 %v30429_v40  ;;  %17406 = vmatpush3.bf16.msra.mxu1 %v30430_v47  ;;  %v30448_v40 = vpack.c.bf16 %v22597_v21, %v22592_v39  ;;  %v30449_v47 = vpack.c.bf16 %v22607_v62, %v22602_v5 }
 0x587   :  { %17229 = vmatprep.subr.bf16.mxu0 %v30431_v51  ;;  %17407 = vmatprep.subr.bf16.mxu1 %v30418_v46  ;;  %v30450_v51 = vpack.c.bf16 %v22617_v14, %v22612_v10 }
 0x58a   :  { %17231 = vmatpush1.bf16.msra.mxu0 %v22869_v9  ;;  %17409 = vmatpush3.bf16.msra.mxu1 %v30432_v54  ;;  %v30434_v9 = vpack.c.bf16 %v22439_v8, %v22434_v56  ;;  %v30451_v54 = vpack.c.bf16 %v30411_v45, %v22625_v18 }
 0x58b   :  { %17233 = vmatprep.subr.bf16.mxu0 %v30433_v41  ;;  %17410 = vmatprep.subr.bf16.mxu1 %v30418_v46  ;;  %v30452_v41 = vpack.c.bf16 %v30412_v38, %v30404_v1 }
 0x58e   :  { %17235 = vmatpush1.bf16.msra.mxu0 %v22902_v37  ;;  %17412 = vmatpush3.bf16.msra.mxu1 %v22904_v26  ;;  %v30435_v37 = vpack.c.bf16 %v22452_v29, %v22447_v30  ;;  %v30436_v26 = vpack.c.bf16 %v22462_v15, %v22457_v23 }
 0x58f   :  { %17237 = vmatprep.subr.bf16.mxu0 %v22920_v42  ;;  %17413 = vmatprep.subr.bf16.mxu1 %v30418_v46  ;;  %v30437_v42 = vpack.c.bf16 %v22484_v12, %v22479_v22 }
 0x592   :  { %17239 = vmatpush1.bf16.msra.mxu0 %v22926_v44  ;;  %17415 = vmatpush3.bf16.msra.mxu1 %v22940_v13  ;;  %v30438_v44 = vpack.c.bf16 %v22494_v32, %v22489_v4  ;;  %v30439_v13 = vpack.c.bf16 %v22504_v33, %v30409_v20 }
 0x593   :  { %17241 = vmatprep.subr.bf16.mxu0 %v30434_v9  ;;  %17416 = vmatprep.subr.bf16.mxu1 %v30418_v46  ;;  %v30453_v9 = vld [vmem:[#allocation50_spill] sm:$0xff] }
 0x595   :  { %5147 = vmatmul.mubr.f32.vlgmr.msra.gmra.mrb[6].mxu0 %v22985_v50  ;;  %14976 = vmatmul.mubr.f32.vlgmr.msra.gmra.mrb[40].mxu1 %v22985_v50 }
 0x596   :  { %17243 = vmatpush1.bf16.msra.mxu0 %v30435_v37  ;;  %17418 = vmatpush3.bf16.msra.mxu1 %v30436_v26  ;;  %v30454_v37 = vld [vmem:[#allocation41_spill] sm:$0xff] }
 0x597   :  { %17245 = vmatprep.subr.bf16.mxu0 %v30437_v42  ;;  %17419 = vmatprep.subr.bf16.mxu1 %v30418_v46  ;;  %v30455_v26 = vpack.c.bf16 %v30453_v9, %v30454_v37  ;;  %v30456_v42 = vld [vmem:[#allocation14_spill] sm:$0xff] }
 0x598   :  { %5281 = vmatprep.mubr.f32.mxu0 %v30419_v36  ;;  %15010 = vmatprep.mubr.msk.f32.mxu1 %vm19186_vm0, %v30419_v36 }
 0x59a   :  { %17247 = vmatpush1.bf16.msra.mxu0 %v30438_v44  ;;  %17421 = vmatpush3.bf16.msra.mxu1 %v30439_v13  ;;  %v30457_v44 = vld [vmem:[#allocation12_spill] sm:$0xff] }
 0x59b   :  { %17249 = vmatprep.subr.bf16.mxu0 %v30440_v34  ;;  %17422 = vmatprep.subr.bf16.mxu1 %v30418_v46  ;;  %v30458_v13 = vpack.c.bf16 %v30456_v42, %v30457_v44  ;;  %v30459_v34 = vld [vmem:[#allocation43_spill] sm:$0xff] }
 0x59e   :  { %17251 = vmatpush1.bf16.msra.mxu0 %v30441_v24  ;;  %17424 = vmatpush3.bf16.msra.mxu1 %v30442_v58  ;;  %v30460_v24 = vpack.c.bf16 %v22662_v60, %v30459_v34  ;;  %v30461_v58 = vld [vmem:[#allocation53_spill] sm:$0xff] }
 0x59f   :  { %17253 = vmatprep.subr.bf16.mxu0 %v30443_v52  ;;  %17425 = vmatprep.subr.bf16.mxu1 %v30418_v46  ;;  %v30462_v52 = vld [vmem:[#allocation17_spill] sm:$0xff] }
 0x5a2   :  { %17255 = vmatpush1.bf16.msra.mxu0 %v30444_v6  ;;  %17427 = vmatpush3.bf16.msra.mxu1 %v30445_v53  ;;  %v30463_v6 = vpack.c.bf16 %v30461_v58, %v30462_v52  ;;  %v30464_v53 = vld [vmem:[#allocation18_spill] sm:$0xff] }
 0x5a3   :  { %17257 = vmatprep.subr.bf16.mxu0 %v30446_v25  ;;  %17428 = vmatprep.subr.bf16.mxu1 %v30418_v46  ;;  %v30465_v25 = vld [vmem:[#allocation54_spill] sm:$0xff] }
 0x5a6   :  { %17259 = vmatpush1.bf16.msra.mxu0 %v30447_v43  ;;  %17430 = vmatpush3.bf16.msra.mxu1 %v30448_v40  ;;  %v30466_v43 = vpack.c.bf16 %v30464_v53, %v30465_v25  ;;  %v30467_v40 = vld [vmem:[#allocation34_spill] sm:$0xff] }
 0x5a7   :  { %17261 = vmatprep.subr.bf16.mxu0 %v30449_v47  ;;  %17431 = vmatprep.subr.bf16.mxu1 %v30418_v46  ;;  %v30468_v47 = vld [vmem:[#allocation35_spill] sm:$0xff] }
 0x5aa   :  { %17263 = vmatpush1.bf16.msra.mxu0 %v30450_v51  ;;  %17433 = vmatpush3.bf16.msra.mxu1 %v30451_v54  ;;  %v30469_v51 = vld [vmem:[#allocation36_spill] sm:$0xff]  ;;  %v30470_v54 = vld [vmem:[#allocation55_spill] sm:$0xff] }
 0x5ab   :  { %17265 = vmatprep.subr.bf16.mxu0 %v30452_v41  ;;  %17434 = vmatprep.subr.bf16.mxu1 %v30418_v46  ;;  %v30471_v41 = vld [vmem:[#allocation9_spill] sm:$0xff] }
 0x5ae   :  { %17267 = vmatpush1.bf16.msra.mxu0 %v30455_v26  ;;  %17436 = vmatpush3.bf16.msra.mxu1 %v30458_v13  ;;  %v30472_v26 = vld [vmem:[#allocation27_spill] sm:$0xff]  ;;  %v30473_v13 = vld [vmem:[#allocation28_spill] sm:$0xff] }
 0x5af   :  { %17269 = vmatprep.subr.bf16.mxu0 %v30460_v24  ;;  %17437 = vmatprep.subr.bf16.mxu1 %v30418_v46  ;;  %v30475_v24 = vld [vmem:[#allocation31_spill] sm:$0xff] }
 0x5b2   :  { %17271 = vmatpush1.bf16.msra.mxu0 %v30463_v6  ;;  %17439 = vmatpush3.bf16.msra.mxu1 %v30466_v43  ;;  %v30476_v6 = vld [vmem:[#allocation13_spill] sm:$0xff]  ;;  %v30477_v43 = vld [vmem:[#allocation6_spill] sm:$0xff] }
 0x5b3   :  { %17273 = vmatprep.subr.bf16.mxu0 %v30467_v40  ;;  %17440 = vmatprep.subr.bf16.mxu1 %v30418_v46 }
 0x5b5   :  { %5284 = vmatmul.mubr.f32.vlgmr.msra.gmra.mrb[6].mxu0 %v22992_v0  ;;  %15011 = vmatmul.mubr.f32.vlgmr.msra.gmra.mrb[42].mxu1 %v22992_v0  ;;  %v30474_v0 = vld [vmem:[#allocation29_spill] sm:$0xff] }
 0x5b6   :  { %17275 = vmatpush1.bf16.msra.mxu0 %v30468_v47  ;;  %17442 = vmatpush3.bf16.msra.mxu1 %v30469_v51  ;;  %v30494_v51 = vand.u32 4294901760, %v22452_v29  ;;  %v30500_v29 = vand.u32 4294901760, %v22494_v32  ;;  %v30505_v32 = vand.u32 4294901760, %v22520_v3  ;;  %v30511_v3 = vand.u32 4294901760, %v22551_v2 }
 0x5b7   :  { %17277 = vmatprep.subr.bf16.mxu0 %v30470_v54  ;;  %17443 = vmatprep.subr.bf16.mxu1 %v30418_v46  ;;  %v30479_v54 = vld [vmem:[#allocation44_spill] sm:$0xff]  ;;  %v30517_v2 = vand.u32 4294901760, %v22582_v7  ;;  %v30523_v7 = vand.u32 4294901760, %v22612_v10  ;;  %v30529_v10 = vand.u32 4294901760, %v30454_v37  ;;  %v30535_v37 = vand.u32 4294901760, %v30462_v52  ;;  %v30542_v52 = vld [vmem:[#allocation9_spill] sm:$0xff] }
 0x5b8   :  { %5386 = vmatprep.mubr.f32.mxu0 %v30419_v36  ;;  %15045 = vmatprep.mubr.msk.f32.mxu1 %vm19186_vm0, %v30419_v36 }
 0x5ba   :  { %17279 = vmatpush1.bf16.msra.mxu0 %v30471_v41  ;;  %17445 = vmatpush3.bf16.msra.mxu1 %v30472_v26  ;;  %v30480_v26 = vld [vmem:[#allocation45_spill] sm:$0xff]  ;;  %v30482_v41 = vld [vmem:[#allocation47_spill] sm:$0xff] }
 0x5bb   :  { %17281 = vmatprep.subr.bf16.mxu0 %v30473_v13  ;;  %17446 = vmatprep.subr.bf16.mxu1 %v30418_v46  ;;  %v30481_v13 = vld [vmem:[#allocation5_spill] sm:$0xff] }
 0x5be   :  { %17283 = vmatpush1.bf16.msra.mxu0 %v30474_v0  ;;  %17448 = vmatpush3.bf16.msra.mxu1 %v30475_v24  ;;  %v30483_v24 = vld [vmem:[#allocation16_spill] sm:$0xff] }
 0x5bf   :  { %17285 = vmatprep.subr.bf16.mxu0 %v30476_v6  ;;  %17449 = vmatprep.subr.bf16.mxu1 %v30418_v46  ;;  %v30484_v6 = vld [vmem:[#allocation3_spill] sm:$0xff]  ;;  %v30485_v0 = vld [vmem:[#allocation56_spill] sm:$0xff] }
 0x5c2   :  { %17287 = vmatpush1.bf16.msra.mxu0 %v30477_v43  ;;  %17451 = vmatpush3.bf16.msra.mxu1 %v30478_v48  ;;  %v30486_v48 = vld [vmem:[#allocation57_spill] sm:$0xff]  ;;  %v30488_v43 = vld [vmem:[#allocation4_spill] sm:$0xff] }
 0x5c3   :  { %17289 = vmatprep.subr.bf16.mxu0 %v30479_v54  ;;  %17452 = vmatprep.subr.bf16.mxu1 %v30418_v46  ;;  %v30487_v54 = vld [vmem:[#allocation8_spill] sm:$0xff] }
 0x5c6   :  { %17291 = vmatpush1.bf16.msra.mxu0 %v30480_v26  ;;  %17454 = vmatpush3.bf16.msra.mxu1 %v30481_v13  ;;  %v30490_v13 = vand.u32 4294901760, %v22439_v8  ;;  %v30497_v8 = vand.u32 4294901760, %v22479_v22  ;;  %v30504_v22 = vand.u32 4294901760, %v30410_v27  ;;  %v30509_v27 = vand.u32 4294901760, %v22541_v57 }
 0x5c7   :  { %17293 = vmatprep.subr.bf16.mxu0 %v30482_v41  ;;  %17455 = vmatprep.subr.bf16.mxu1 %v30418_v46  ;;  %v30489_v41 = vand.u32 4294901760, %v22434_v56  ;;  %v30498_v56 = vand.u32 4294901760, %v22484_v12  ;;  %v30503_v12 = vand.u32 4294901760, %v22509_v31  ;;  %v30515_v57 = vand.u32 4294901760, %v22572_v28 }
 0x5c8   :  { %v30521_v28 = vand.u32 4294901760, %v22602_v5  ;;  %v30527_v5 = vand.u32 4294901760, %v30404_v1  ;;  %v30533_v1 = vand.u32 4294901760, %v30459_v34  ;;  %v30540_v34 = vld [vmem:[#allocation36_spill] sm:$0xff] }
 0x5c9   :  { %v17304_v26 = vpack.c.bf16 %v30490_v13, %v30489_v41  ;;  %v17308_v41 = vpack.c.bf16 %v30498_v56, %v30497_v8 }
 0x5ca   :  { %17295 = vmatpush1.bf16.msra.mxu0 %v30483_v24  ;;  %17457 = vmatpush3.bf16.msra.mxu1 %v30484_v6  ;;  %v30491_v24 = vld [vmem:[#allocation52_spill] sm:$0xff]  ;;  %v30492_v6 = vld [vmem:[#allocation15_spill] sm:$0xff] }
 0x5cb   :  { %17297 = vmatprep.subr.bf16.mxu0 %v30485_v0  ;;  %17458 = vmatprep.subr.bf16.mxu1 %v30418_v46  ;;  %v30493_v0 = vand.u32 4294901760, %v22447_v30  ;;  %v30499_v30 = vand.u32 4294901760, %v22489_v4  ;;  %v30506_v4 = vand.u32 4294901760, %v22525_v16  ;;  %v30512_v16 = vand.u32 4294901760, %v22556_v17 }
 0x5cc   :  { %v30518_v17 = vand.u32 4294901760, %v22587_v19  ;;  %v30524_v19 = vand.u32 4294901760, %v22617_v14  ;;  %v30530_v14 = vand.u32 4294901760, %v30453_v9  ;;  %v30536_v9 = vand.u32 4294901760, %v30461_v58  ;;  %v30541_v58 = vld [vmem:[#allocation55_spill] sm:$0xff] }
 0x5cd   :  { %v17318_v13 = vpack.c.bf16 %v30512_v16, %v30511_v3  ;;  %v30556_v3 = vld [vmem:[#allocation56_spill] sm:$0xff]  ;;  %v30557_v16 = vld [vmem:[#allocation57_spill] sm:$0xff] }
 0x5ce   :  { %17299 = vmatpush1.bf16.msra.mxu0 %v30486_v48  ;;  %17460 = vmatpush3.bf16.msra.mxu1 %v30487_v54  ;;  %v17306_v48 = vpack.c.bf16 %v30494_v51, %v30493_v0  ;;  %v30495_v54 = vand.u32 4294901760, %v22457_v23  ;;  %v30501_v23 = vand.u32 4294901760, %v30409_v20  ;;  %v30502_v51 = vand.u32 4294901760, %v22504_v33 }
 0x5cf   :  { %17301 = vmatprep.subr.bf16.mxu0 %v30488_v43  ;;  %17461 = vmatprep.subr.bf16.mxu1 %v30418_v46  ;;  %v30496_v43 = vand.u32 4294901760, %v22462_v15  ;;  %v17310_v15 = vpack.c.bf16 %v30500_v29, %v30499_v30  ;;  %v17314_v33 = vpack.c.bf16 %v30506_v4, %v30505_v32  ;;  %v30507_v20 = vand.u32 4294901760, %v22530_v49  ;;  %v30547_v32 = vld [vmem:[#allocation13_spill] sm:$0xff]  ;;  %v30548_v4 = vld [vmem:[#allocation6_spill] sm:$0xff] }
 0x5d0   :  { %v30513_v49 = vand.u32 4294901760, %v22562_v59  ;;  %v17322_v8 = vpack.c.bf16 %v30518_v17, %v30517_v2  ;;  %v30519_v59 = vand.u32 4294901760, %v22592_v39  ;;  %v17326_v30 = vpack.c.bf16 %v30524_v19, %v30523_v7  ;;  %v23321_v17 = vld [vmem:[%s28702_s1] sm:$0xff] }
 0x5d1   :  { %v17465_v47 = vpack.c.bf16 %v30496_v43, %v30495_v54  ;;  %v17468_v54 = vpack.c.bf16 %v30502_v51, %v30501_v23  ;;  %v30525_v39 = vand.u32 4294901760, %v22625_v18  ;;  %v17330_v23 = vpack.c.bf16 %v30530_v14, %v30529_v10  ;;  %v23386_v10 = vld [vmem:[%s28702_s1 + $0x40] sm:$0xff] }
 0x5d2   :  { %17303 = vmatpush1.bf16.msra.mxu0 %v30491_v24  ;;  %17463 = vmatpush3.bf16.msra.mxu1 %v30492_v6  ;;  %v30531_v18 = vand.u32 4294901760, %v30457_v44  ;;  %v30537_v44 = vand.u32 4294901760, %v30465_v25  ;;  %v30544_v25 = vld [vmem:[#allocation28_spill] sm:$0xff] }
 0x5d3   :  { %17305 = vmatprep.subr.bf16.mxu0 %v17304_v26  ;;  %17464 = vmatprep.subr.bf16.mxu1 %v30418_v46 }
 0x5d5   :  { %5390 = vmatmul.mubr.f32.vlgmr.msra.gmra.mrb[6].mxu0 %v22995_v11  ;;  %15046 = vmatmul.mubr.f32.vlgmr.msra.gmra.mrb[44].mxu1 %v22995_v11  ;;  %v17312_v11 = vpack.c.bf16 %v30504_v22, %v30503_v12  ;;  %v17334_v12 = vpack.c.bf16 %v30536_v9, %v30535_v37  ;;  %v23420_v37 = vld [vmem:[%s28702_s1 + $0x80] sm:$0xff] }
 0x5d6   :  { %17307 = vmatpush1.bf16.msra.mxu0 %v17306_v48  ;;  %17466 = vmatpush3.bf16.msra.mxu1 %v17465_v47  ;;  %v30508_v48 = vand.u32 4294901760, %v22535_v55  ;;  %v30510_v47 = vand.u32 4294901760, %v22546_v63  ;;  %v30514_v55 = vand.u32 4294901760, %v22567_v35  ;;  %v30516_v63 = vand.u32 4294901760, %v22577_v61 }
 0x5d7   :  { %17309 = vmatprep.subr.bf16.mxu0 %v17308_v41  ;;  %17467 = vmatprep.subr.bf16.mxu1 %v30418_v46  ;;  %v30520_v35 = vand.u32 4294901760, %v22597_v21  ;;  %v30522_v61 = vand.u32 4294901760, %v22607_v62  ;;  %v30526_v21 = vand.u32 4294901760, %v30411_v45  ;;  %v30528_v62 = vand.u32 4294901760, %v30412_v38 }
 0x5d8   :  { %5556 = vmatprep.mubr.f32.mxu0 %v30419_v36  ;;  %15080 = vmatprep.mubr.msk.f32.mxu1 %vm19186_vm0, %v30419_v36  ;;  %v17471_v31 = vpack.c.bf16 %v30508_v48, %v30507_v20  ;;  %v17316_v26 = vpack.c.bf16 %v30510_v47, %v30509_v27  ;;  %v17474_v0 = vpack.c.bf16 %v30514_v55, %v30513_v49  ;;  %v30532_v45 = vand.u32 4294901760, %v30456_v42  ;;  %v30550_v20 = vld [vmem:[#allocation44_spill] sm:$0xff]  ;;  %v30551_v48 = vld [vmem:[#allocation45_spill] sm:$0xff]  ;;  %v30553_v27 = vld [vmem:[#allocation47_spill] sm:$0xff] }
 0x5d9   :  { %v17320_v43 = vpack.c.bf16 %v30516_v63, %v30515_v57  ;;  %v17477_v56 = vpack.c.bf16 %v30520_v35, %v30519_v59  ;;  %v17324_v41 = vpack.c.bf16 %v30522_v61, %v30521_v28  ;;  %v17480_v29 = vpack.c.bf16 %v30526_v21, %v30525_v39  ;;  %v30554_v47 = vld [vmem:[#allocation16_spill] sm:$0xff]  ;;  %v23331_v59 = vld [vmem:[%s28702_s1 + $0x10] sm:$0xff] }
 0x5da   :  { %17311 = vmatpush1.bf16.msra.mxu0 %v17310_v15  ;;  %17469 = vmatpush3.bf16.msra.mxu1 %v17468_v54  ;;  %v17328_v15 = vpack.c.bf16 %v30528_v62, %v30527_v5  ;;  %v17483_v51 = vpack.c.bf16 %v30532_v45, %v30531_v18  ;;  %v30534_v38 = vand.u32 4294901760, %v22662_v60  ;;  %v30538_v42 = vand.u32 4294901760, %v30464_v53  ;;  %v30539_v60 = vld [vmem:[#allocation35_spill] sm:$0xff]  ;;  %v30559_v49 = vld [vmem:[#allocation4_spill] sm:$0xff]  ;;  %v23362_v39 = vld [vmem:[%s28702_s1 + $0x50] sm:$0xff] }
 0x5db   :  { %17313 = vmatprep.subr.bf16.mxu0 %v17312_v11  ;;  %17470 = vmatprep.subr.bf16.mxu1 %v30418_v46  ;;  %v30543_v53 = vld [vmem:[#allocation27_spill] sm:$0xff]  ;;  %v29211_v35 = vand.u32 4294901760, %v23321_v17  ;;  %v23338_v28 = vld [vmem:[%s28702_s1 + $0x28] sm:$0xff]  ;;  %v29209_v61 = vand.u32 4294901760, %v23331_v59  ;;  %v29204_v5 = vand.u32 4294901760, %v23362_v39  ;;  %v23376_v62 = vld [vmem:[%s28702_s1 + $0x30] sm:$0xff] }
 0x5dc   :  { %v17332_v54 = vpack.c.bf16 %v30534_v38, %v30533_v1  ;;  %v17486_v22 = vpack.c.bf16 %v30538_v42, %v30537_v44  ;;  %v30546_v11 = vld [vmem:[#allocation31_spill] sm:$0xff]  ;;  %v29208_v7 = vand.u32 4294901760, %v23338_v28  ;;  %v29203_v14 = vand.u32 4294901760, %v23376_v62  ;;  %v23394_v18 = vld [vmem:[%s28702_s1 + $0x58] sm:$0xff] }
 0x5dd   :  { %v29197_v45 = vand.u32 4294901760, %v23386_v10  ;;  %v29196_v1 = vand.u32 4294901760, %v23394_v18  ;;  %v29194_v44 = vand.u32 4294901760, %v23420_v37  ;;  %v23434_v42 = vld [vmem:[%s28702_s1 + $0x60] sm:$0xff] }
 0x5de   :  { %17315 = vmatpush1.bf16.msra.mxu0 %v17314_v33  ;;  %17472 = vmatpush3.bf16.msra.mxu1 %v17471_v31  ;;  %v30549_v33 = vld [vmem:[#allocation11_spill] sm:$0xff]  ;;  %v30552_v31 = vld [vmem:[#allocation5_spill] sm:$0xff]  ;;  %v23369_v21 = vpack.c.bf16 %v29208_v7, %v29209_v61 }
 0x5df   :  { %17317 = vmatprep.subr.bf16.mxu0 %v17316_v26  ;;  %17473 = vmatprep.subr.bf16.mxu1 %v30418_v46  ;;  %v30555_v26 = vld [vmem:[#allocation3_spill] sm:$0xff]  ;;  %v23427_v9 = vpack.c.bf16 %v29196_v1, %v29197_v45  ;;  %v23591_v45 = vld [vmem:[%s28702_s1 + $0xf8] sm:$0xff] }
 0x5e0   :  { %30562 = vst [vmem:[#allocation42_spill] sm:$0xff] %v23369_v21 }
 0x5e1   :  { %30565 = vst [vmem:[#allocation19_spill] sm:$0xff] %v23427_v9 }
 0x5e2   :  { %17319 = vmatpush1.bf16.msra.mxu0 %v17318_v13  ;;  %17475 = vmatpush3.bf16.msra.mxu1 %v17474_v0  ;;  %v30558_v13 = vld [vmem:[#allocation8_spill] sm:$0xff] }
 0x5e3   :  { %17321 = vmatprep.subr.bf16.mxu0 %v17320_v43  ;;  %17476 = vmatprep.subr.bf16.mxu1 %v30418_v46 }
 0x5e6   :  { %17323 = vmatpush1.bf16.msra.mxu0 %v17322_v8  ;;  %17478 = vmatpush3.bf16.msra.mxu1 %v17477_v56  ;;  %v23326_v8 = vld [vmem:[%s28702_s1 + $0x18] sm:$0xff] }
 0x5e7   :  { %17325 = vmatprep.subr.bf16.mxu0 %v17324_v41  ;;  %17479 = vmatprep.subr.bf16.mxu1 %v30418_v46  ;;  %v29210_v56 = vand.u32 4294901760, %v23326_v8 }
 0x5e9   :  { %v23352_v19 = vpack.c.bf16 %v29210_v56, %v29211_v35 }
 0x5ea   :  { %17327 = vmatpush1.bf16.msra.mxu0 %v17326_v30  ;;  %17481 = vmatpush3.bf16.msra.mxu1 %v17480_v29  ;;  %v23357_v30 = vld [vmem:[%s28702_s1 + $0x38] sm:$0xff] }
 0x5eb   :  { %17329 = vmatprep.subr.bf16.mxu0 %v17328_v15  ;;  %17482 = vmatprep.subr.bf16.mxu1 %v30418_v46  ;;  %30561 = vst [vmem:[#allocation38_spill] sm:$0xff] %v23352_v19  ;;  %v29207_v29 = vand.u32 4294901760, %v23357_v30  ;;  %v23381_v15 = vld [vmem:[%s28702_s1 + $0x48] sm:$0xff] }
 0x5ee   :  { %17331 = vmatpush1.bf16.msra.mxu0 %v17330_v23  ;;  %17484 = vmatpush3.bf16.msra.mxu1 %v17483_v51  ;;  %v29202_v23 = vand.u32 4294901760, %v23381_v15  ;;  %v23402_v51 = vpack.c.bf16 %v29204_v5, %v29207_v29  ;;  %v23620_v5 = vld [vmem:[%s28702_s1 + $0x100] sm:$0xff]  ;;  %v23628_v29 = vld [vmem:[%s28702_s1 + $0x118] sm:$0xff] }
 0x5ef   :  { %17333 = vmatprep.subr.bf16.mxu0 %v17332_v54  ;;  %17485 = vmatprep.subr.bf16.mxu1 %v30418_v46  ;;  %v23415_v54 = vld [vmem:[%s28702_s1 + $0x68] sm:$0xff]  ;;  %v29223_v7 = vand.u32 4294901760, %v23620_v5  ;;  %v29222_v56 = vand.u32 4294901760, %v23628_v29 }
 0x5f0   :  { %30563 = vst [vmem:[#allocation7_spill] sm:$0xff] %v23402_v51  ;;  %v23410_v38 = vpack.c.bf16 %v29202_v23, %v29203_v14  ;;  %v23610_v23 = vld [vmem:[%s28702_s1 + $0xf0] sm:$0xff]  ;;  %v23615_v14 = vld [vmem:[%s28702_s1 + $0x108] sm:$0xff] }
 0x5f2   :  { %17335 = vmatpush1.bf16.msra.mxu0 %v17334_v12  ;;  %17487 = vmatpush3.bf16.msra.mxu1 %v17486_v22  ;;  %30564 = vst [vmem:[#allocation20_spill] sm:$0xff] %v23410_v38  ;;  %v29195_v12 = vand.u32 4294901760, %v23415_v54  ;;  %v23439_v22 = vld [vmem:[%s28702_s1 + $0x78] sm:$0xff] }
 0x5f3   :  { %17337 = vmatprep.subr.bf16.mxu0 %v30467_v40  ;;  %17488 = vmatprep.subr.bf16.mxu1 %v30418_v46  ;;  %v30545_v40 = vld [vmem:[#allocation29_spill] sm:$0xff] }
 0x5f5   :  { %5558 = vmatmul.mubr.f32.vlgmr.msra.gmra.mrb[6].mxu0 %v22985_v50  ;;  %15081 = vmatmul.mubr.f32.vlgmr.msra.gmra.mrb[46].mxu1 %v22985_v50 }
 0x5f6   :  { %17339 = vmatpush1.bf16.msra.mxu0 %v30539_v60  ;;  %17490 = vmatpush3.bf16.msra.mxu1 %v30540_v34  ;;  %v23444_v60 = vld [vmem:[%s28702_s1 + $0x70] sm:$0xff]  ;;  %v29193_v34 = vand.u32 4294901760, %v23434_v42 }
 0x5f7   :  { %17341 = vmatprep.subr.bf16.mxu0 %v30541_v58  ;;  %17491 = vmatprep.subr.bf16.mxu1 %v30418_v46  ;;  %v29192_v58 = vand.u32 4294901760, %v23439_v22 }
 0x5f8   :  { %5660 = vmatprep.mubr.f32.mxu0 %v30419_v36  ;;  %15115 = vmatprep.mubr.msk.f32.mxu1 %vm19186_vm0, %v30419_v36 }
 0x5fa   :  { %17343 = vmatpush1.bf16.msra.mxu0 %v30542_v52  ;;  %17493 = vmatpush3.bf16.msra.mxu1 %v30543_v53  ;;  %v23452_v52 = vld [vmem:[%s28702_s1 + $0x88] sm:$0xff]  ;;  %v29189_v53 = vand.u32 4294901760, %v23444_v60 }
 0x5fb   :  { %17345 = vmatprep.subr.bf16.mxu0 %v30544_v25  ;;  %17494 = vmatprep.subr.bf16.mxu1 %v30418_v46  ;;  %v23460_v25 = vpack.c.bf16 %v29194_v44, %v29195_v12 }
 0x5fd   :  { %30566 = vst [vmem:[#allocation21_spill] sm:$0xff] %v23460_v25 }
 0x5fe   :  { %17347 = vmatpush1.bf16.msra.mxu0 %v30545_v40  ;;  %17496 = vmatpush3.bf16.msra.mxu1 %v30546_v11  ;;  %v29188_v40 = vand.u32 4294901760, %v23452_v52 }
 0x5ff   :  { %17349 = vmatprep.subr.bf16.mxu0 %v30547_v32  ;;  %17497 = vmatprep.subr.bf16.mxu1 %v30418_v46  ;;  %v23468_v32 = vpack.c.bf16 %v29192_v58, %v29193_v34  ;;  %v23570_v58 = vld [vmem:[%s28702_s1 + $0xe8] sm:$0xff] }
 0x600   :  { %v29205_v12 = vand.u32 4294901760, %v23570_v58 }
 0x601   :  { %30567 = vst [vmem:[#allocation22_spill] sm:$0xff] %v23468_v32 }
 0x602   :  { %17351 = vmatpush1.bf16.msra.mxu0 %v30548_v4  ;;  %17499 = vmatpush3.bf16.msra.mxu1 %v30549_v33  ;;  %v23473_v4 = vld [vmem:[%s28702_s1 + $0x98] sm:$0xff]  ;;  %v23478_v33 = vld [vmem:[%s28702_s1 + $0xb0] sm:$0xff] }
 0x603   :  { %17353 = vmatprep.subr.bf16.mxu0 %v30550_v20  ;;  %17500 = vmatprep.subr.bf16.mxu1 %v30418_v46 }
 0x606   :  { %17355 = vmatpush1.bf16.msra.mxu0 %v30551_v48  ;;  %17502 = vmatpush3.bf16.msra.mxu1 %v30552_v31  ;;  %v23487_v31 = vpack.c.bf16 %v29188_v40, %v29189_v53  ;;  %v23557_v40 = vld [vmem:[%s28702_s1 + $0xd8] sm:$0xff]  ;;  %v23562_v53 = vld [vmem:[%s28702_s1 + $0xd0] sm:$0xff] }
 0x607   :  { %17357 = vmatprep.subr.bf16.mxu0 %v30553_v27  ;;  %17503 = vmatprep.subr.bf16.mxu1 %v30418_v46  ;;  %v29187_v27 = vand.u32 4294901760, %v23473_v4  ;;  %v29206_v34 = vand.u32 4294901760, %v23562_v53 }
 0x608   :  { %30569 = vst [vmem:[#allocation24_spill] sm:$0xff] %v23487_v31 }
 0x60a   :  { %17359 = vmatpush1.bf16.msra.mxu0 %v30554_v47  ;;  %17505 = vmatpush3.bf16.msra.mxu1 %v30555_v26  ;;  %v29184_v47 = vand.u32 4294901760, %v23478_v33  ;;  %v23494_v26 = vld [vmem:[%s28702_s1 + $0x90] sm:$0xff] }
 0x60b   :  { %17361 = vmatprep.subr.bf16.mxu0 %v30556_v3  ;;  %17506 = vmatprep.subr.bf16.mxu1 %v30418_v46  ;;  %v23499_v3 = vld [vmem:[%s28702_s1 + $0xa8] sm:$0xff] }
 0x60e   :  { %17363 = vmatpush1.bf16.msra.mxu0 %v30557_v16  ;;  %17508 = vmatpush3.bf16.msra.mxu1 %v30558_v13  ;;  %v23504_v16 = vld [vmem:[%s28702_s1 + $0xa0] sm:$0xff]  ;;  %v29186_v13 = vand.u32 4294901760, %v23494_v26 }
 0x60f   :  { %17365 = vmatprep.subr.bf16.mxu0 %v30559_v49  ;;  %17509 = vmatprep.subr.bf16.mxu1 %v30418_v46  ;;  %v29185_v49 = vand.u32 4294901760, %v23499_v3 }
 0x612   :  { %17367 = vmatpush1.bf16.msra.mxu0 %v30491_v24  ;;  %17511 = vmatpush3.bf16.msra.mxu1 %v30492_v6  ;;  %v23309_v24 = vld [vmem:[%s28702_s1 + $0x8] sm:$0xff]  ;;  %v23314_v6 = vld [vmem:[%s28702_s1 + $0x20] sm:$0xff] }
 0x613   :  { %17704 = vmatprep.subr.bf16.mxu1 %v30418_v46  ;;  %v29212_v2 = vand.u32 4294901760, %v23314_v6 }
 0x615   :  { %5662 = vmatmul.mubr.f32.vlgmr.msra.gmra.mrb[6].mxu0 %v22985_v50  ;;  %15116 = vmatmul.mubr.f32.vlgmr.msra.gmra.mrb[48].mxu1 %v22985_v50  ;;  %v29217_v50 = vand.u32 4294901760, %v23309_v24 }
 0x616   :  { %6484 = vmatprep.mubr.f32.mxu0 %v30419_v36  ;;  %15150 = vmatprep.mubr.msk.f32.mxu1 %vm19186_vm0, %v30419_v36 }
 0x617   :  { %v23345_v41 = vpack.c.bf16 %v29212_v2, %v29217_v50  ;;  %17706 = vmatpush3.bf16.msra.mxu1 %v23369_v21  ;;  %v23649_v2 = vld [vmem:[%s28702_s1 + $0x128] sm:$0xff]  ;;  %v23668_v50 = vld [vmem:[%s28702_s1 + $0x120] sm:$0xff] }
 0x618   :  { %17707 = vmatprep.subr.bf16.mxu1 %v30418_v46 }
 0x619   :  { %30560 = vst [vmem:[#allocation39_spill] sm:$0xff] %v23345_v41  ;;  %17513 = vmatprep.subr.bf16.mxu0 %v23345_v41  ;;  %v30591_v41 = vand.u32 4294901760, %v23381_v15 }
 0x61a   :  { %17515 = vmatpush1.bf16.msra.mxu0 %v23352_v19  ;;  %v30590_v19 = vand.u32 4294901760, %v23376_v62 }
 0x61b   :  { %17517 = vmatprep.subr.bf16.mxu0 %v23402_v51  ;;  %17709 = vmatpush3.bf16.msra.mxu1 %v23427_v9  ;;  %v30589_v51 = vand.u32 4294901760, %v23362_v39  ;;  %v23750_v36 = vsub.f32 %v23381_v15, %v30591_v41  ;;  %v30598_v15 = vand.u32 4294901760, %v23434_v42 }
 0x61c   :  { %17710 = vmatprep.subr.bf16.mxu1 %v30418_v46 }
 0x61d   :  { %v23740_v21 = vsub.f32 %v23362_v39, %v30589_v51  ;;  %v30595_v51 = vand.u32 4294901760, %v23415_v54 }
 0x61e   :  { %17519 = vmatpush1.bf16.msra.mxu0 %v23410_v38  ;;  %v30583_v38 = vand.u32 4294901760, %v23326_v8 }
 0x61f   :  { %17521 = vmatprep.subr.bf16.mxu0 %v23460_v25  ;;  %17712 = vmatpush3.bf16.msra.mxu1 %v23487_v31  ;;  %v30582_v25 = vand.u32 4294901760, %v23321_v17 }
 0x620   :  { %17713 = vmatprep.subr.bf16.mxu1 %v30418_v46 }
 0x621   :  { %v23703_v9 = vsub.f32 %v23321_v17, %v30582_v25  ;;  %v6383_v17 = vld [vmem:[%s28702_s1 + $0x158] sm:$0xff] }
 0x622   :  { %17523 = vmatpush1.bf16.msra.mxu0 %v23468_v32  ;;  %v6444_v25 = vand.u32 4294901760, %v6383_v17 }
 0x648   :  { %v5755_v55 = vpop.f32.mrb[38].mxu1 }
 0x649   :  { %v14942_v0 = vpop.f32.mrb[39].mxu1 }
 0x64a   :  { %v29191_v0 = vand.u32 4294901760, %v23504_v16 }
 0x668   :  { %v5906_v57 = vpop.f32.mrb[40].mxu1 }
 0x669   :  { %v5907_v63 = vadd.f32 %v5906_v57, %v5755_v55  ;;  %v14977_v43 = vpop.f32.mrb[41].mxu1  ;;  %v23512_v55 = vld [vmem:[%s28702_s1 + $0xb8] sm:$0xff]  ;;  %v23520_v57 = vpack.c.bf16 %v29184_v47, %v29187_v27  ;;  %v23552_v27 = vld [vmem:[%s28702_s1 + $0xc0] sm:$0xff] }
 0x66a   :  { %v23528_v43 = vpack.c.bf16 %v29185_v49, %v29186_v13 }
 0x66b   :  { %30570 = vst [vmem:[#allocation46_spill] sm:$0xff] %v23520_v57  ;;  %17525 = vmatprep.subr.bf16.mxu0 %v23520_v57  ;;  %v30580_v57 = vand.u32 4294901760, %v23314_v6 }
 0x66c   :  { %30571 = vst [vmem:[#allocation25_spill] sm:$0xff] %v23528_v43  ;;  %17527 = vmatpush1.bf16.msra.mxu0 %v23528_v43 }
 0x66d   :  { %v23695_v31 = vsub.f32 %v23314_v6, %v30580_v57  ;;  %v30585_v57 = vand.u32 4294901760, %v23338_v28 }
 0x688   :  { %v6010_v11 = vpop.f32.mrb[42].mxu1 }
 0x689   :  { %v23480_v20 = vadd.f32 %v6010_v11, %v5907_v63  ;;  %v15012_v48 = vpop.f32.mrb[43].mxu1  ;;  %v29190_v63 = vand.u32 4294901760, %v23512_v55  ;;  %v23533_v11 = vld [vmem:[%s28702_s1 + $0xc8] sm:$0xff] }
 0x68a   :  { %v23538_v48 = vld [vmem:[%s28702_s1 + $0xe0] sm:$0xff]  ;;  %v29199_v49 = vand.u32 4294901760, %v23533_v11 }
 0x68b   :  { %30568 = vst [vmem:[#allocation23_spill] sm:$0xff] %v23480_v20  ;;  %v23545_v47 = vpack.c.bf16 %v29190_v63, %v29191_v0  ;;  %v29198_v13 = vand.u32 4294901760, %v23538_v48  ;;  %v29201_v63 = vand.u32 4294901760, %v23552_v27  ;;  %v29200_v0 = vand.u32 4294901760, %v23557_v40 }
 0x68c   :  { %v30592_v20 = vand.u32 4294901760, %v23386_v10 }
 0x68d   :  { %30572 = vst [vmem:[#allocation48_spill] sm:$0xff] %v23545_v47  ;;  %17715 = vmatpush3.bf16.msra.mxu1 %v23545_v47  ;;  %v23578_v44 = vpack.c.bf16 %v29198_v13, %v29199_v49  ;;  %v23586_v1 = vpack.c.bf16 %v29200_v0, %v29201_v63  ;;  %v23596_v13 = vld [vmem:[%s28702_s1 + $0x110] sm:$0xff]  ;;  %v23603_v49 = vpack.c.bf16 %v29205_v12, %v29206_v34  ;;  %v29214_v0 = vand.u32 4294901760, %v23591_v45 }
 0x68e   :  { %17716 = vmatprep.subr.bf16.mxu1 %v30418_v46  ;;  %v29213_v63 = vand.u32 4294901760, %v23596_v13  ;;  %v29216_v12 = vand.u32 4294901760, %v23610_v23  ;;  %v29215_v34 = vand.u32 4294901760, %v23615_v14  ;;  %v30579_v47 = vand.u32 4294901760, %v23309_v24 }
 0x68f   :  { %30573 = vst [vmem:[#allocation51_spill] sm:$0xff] %v23578_v44  ;;  %30574 = vst [vmem:[#allocation49_spill] sm:$0xff] %v23586_v1  ;;  %17529 = vmatprep.subr.bf16.mxu0 %v23578_v44 }
 0x690   :  { %30575 = vst [vmem:[#allocation26_spill] sm:$0xff] %v23603_v49  ;;  %17531 = vmatpush1.bf16.msra.mxu0 %v23586_v1  ;;  %v23636_v61 = vpack.c.bf16 %v29213_v63, %v29214_v0  ;;  %v23644_v35 = vpack.c.bf16 %v29215_v34, %v29216_v12  ;;  %v23654_v63 = vld [vmem:[%s28702_s1 + $0x140] sm:$0xff]  ;;  %v23661_v0 = vpack.c.bf16 %v29222_v56, %v29223_v7  ;;  %v6436_v34 = vand.u32 4294901760, %v23649_v2  ;;  %v6381_v1 = vld [vmem:[%s28702_s1 + $0x148] sm:$0xff] }
 0x691   :  { %17718 = vmatpush3.bf16.msra.mxu1 %v23603_v49  ;;  %v6440_v12 = vand.u32 4294901760, %v23654_v63  ;;  %v23673_v49 = vld [vmem:[%s28702_s1 + $0x138] sm:$0xff]  ;;  %v6438_v56 = vand.u32 4294901760, %v23668_v50  ;;  %v23690_v43 = vsub.f32 %v23309_v24, %v30579_v47  ;;  %v7283_v32 = vand.u32 4294901760, %v6381_v1 }
 0x692   :  { %30576 = vst [vmem:[#allocation32_spill] sm:$0xff] %v23636_v61  ;;  %17719 = vmatprep.subr.bf16.mxu1 %v30418_v46  ;;  %30577 = vst [vmem:[#allocation33_spill] sm:$0xff] %v23644_v35  ;;  %17533 = vmatprep.subr.bf16.mxu0 %v23636_v61  ;;  %v23678_v61 = vld [vmem:[%s28702_s1 + $0x130] sm:$0xff]  ;;  %v6442_v7 = vand.u32 4294901760, %v23673_v49  ;;  %v23708_v24 = vsub.f32 %v23326_v8, %v30583_v38  ;;  %v30584_v47 = vand.u32 4294901760, %v23331_v59 }
 0x693   :  { %30578 = vst [vmem:[#allocation10_spill] sm:$0xff] %v23661_v0  ;;  %v7280_v44 = vand.u32 4294901760, %v23678_v61  ;;  %v6386_v8 = vld [vmem:[%s28702_s1 + $0x170] sm:$0xff] }
 0x694   :  { %17535 = vmatpush1.bf16.msra.mxu0 %v23644_v35  ;;  %v23698_v35 = vpack.c.bf16 %v6440_v12, %v6436_v34  ;;  %v23713_v6 = vsub.f32 %v23331_v59, %v30584_v47  ;;  %v23728_v38 = vpack.c.bf16 %v6442_v7, %v6438_v56  ;;  %v6448_v47 = vand.u32 4294901760, %v6386_v8 }
 0x695   :  { %17721 = vmatpush3.bf16.msra.mxu1 %v23661_v0  ;;  %v23718_v0 = vsub.f32 %v23338_v28, %v30585_v57  ;;  %v23730_v59 = vpack.c.bf16 %v7283_v32, %v7280_v44  ;;  %v30588_v28 = vand.u32 4294901760, %v23357_v30 }
 0x696   :  { %30581 = vst [vmem:[#allocation30_spill] sm:$0xff] %v23698_v35  ;;  %17722 = vmatprep.subr.bf16.mxu1 %v30418_v46  ;;  %17537 = vmatprep.subr.bf16.mxu0 %v23698_v35  ;;  %30586 = vst [vmem:[#allocation40_spill] sm:$0xff] %v23728_v38  ;;  %v23745_v35 = vsub.f32 %v23376_v62, %v30590_v19  ;;  %v23765_v19 = vsub.f32 %v23415_v54, %v30595_v51  ;;  %v30596_v62 = vand.u32 4294901760, %v23420_v37 }
 0x697   :  { %30587 = vst [vmem:[#allocation50_spill] sm:$0xff] %v23730_v59  ;;  %v23735_v57 = vsub.f32 %v23357_v30, %v30588_v28  ;;  %v23755_v30 = vsub.f32 %v23386_v10, %v30592_v20  ;;  %v30594_v28 = vand.u32 4294901760, %v23394_v18  ;;  %v23776_v10 = vsub.f32 %v23434_v42, %v30598_v15 }
 0x698   :  { %v23770_v41 = vsub.f32 %v23420_v37, %v30596_v62  ;;  %17539 = vmatpush1.bf16.msra.mxu0 %v23728_v38  ;;  %v30600_v54 = vand.u32 4294901760, %v23444_v60  ;;  %v30601_v37 = vand.u32 4294901760, %v23452_v52  ;;  %v30602_v42 = vand.u32 4294901760, %v23473_v4 }
 0x699   :  { %30593 = vst [vmem:[#allocation41_spill] sm:$0xff] %v23755_v30  ;;  %v23760_v39 = vsub.f32 %v23394_v18, %v30594_v28  ;;  %v30599_v18 = vand.u32 4294901760, %v23439_v22  ;;  %17724 = vmatpush3.bf16.msra.mxu1 %v23730_v59 }
 0x69a   :  { %30597 = vst [vmem:[#allocation14_spill] sm:$0xff] %v23770_v41  ;;  %v23786_v28 = vsub.f32 %v23444_v60, %v30600_v54  ;;  %v23791_v51 = vsub.f32 %v23452_v52, %v30601_v37  ;;  %v23797_v62 = vsub.f32 %v23473_v4, %v30602_v42  ;;  %v30604_v60 = vand.u32 4294901760, %v23494_v26  ;;  %17725 = vmatprep.subr.bf16.mxu1 %v30418_v46 }
 0x69b   :  { %v23781_v20 = vsub.f32 %v23439_v22, %v30599_v18  ;;  %v30603_v22 = vand.u32 4294901760, %v23478_v33  ;;  %v30605_v52 = vand.u32 4294901760, %v23499_v3  ;;  %v30606_v4 = vand.u32 4294901760, %v23504_v16 }
 0x69c   :  { %v23807_v18 = vsub.f32 %v23494_v26, %v30604_v60  ;;  %v30608_v26 = vand.u32 4294901760, %v23533_v11 }
 0x69d   :  { %v23802_v15 = vsub.f32 %v23478_v33, %v30603_v22  ;;  %v23812_v54 = vsub.f32 %v23499_v3, %v30605_v52  ;;  %v23818_v37 = vsub.f32 %v23504_v16, %v30606_v4  ;;  %v30607_v33 = vand.u32 4294901760, %v23512_v55 }
 0x69e   :  { %v23828_v22 = vsub.f32 %v23533_v11, %v30608_v26  ;;  %v30609_v3 = vand.u32 4294901760, %v23538_v48  ;;  %v30610_v52 = vand.u32 4294901760, %v23552_v27  ;;  %v30611_v4 = vand.u32 4294901760, %v23557_v40 }
 0x69f   :  { %v23823_v42 = vsub.f32 %v23512_v55, %v30607_v33  ;;  %v30612_v33 = vand.u32 4294901760, %v23562_v53  ;;  %v30613_v26 = vand.u32 4294901760, %v23570_v58 }
 0x6a0   :  { %v23833_v60 = vsub.f32 %v23538_v48, %v30609_v3  ;;  %v23838_v16 = vsub.f32 %v23552_v27, %v30610_v52  ;;  %v23843_v55 = vsub.f32 %v23557_v40, %v30611_v4  ;;  %v30614_v3 = vand.u32 4294901760, %v23591_v45 }
 0x6a1   :  { %v23848_v11 = vsub.f32 %v23562_v53, %v30612_v33  ;;  %v23853_v48 = vsub.f32 %v23570_v58, %v30613_v26  ;;  %v30615_v52 = vand.u32 4294901760, %v23596_v13  ;;  %v30616_v4 = vand.u32 4294901760, %v23610_v23 }
 0x6a2   :  { %v23858_v27 = vsub.f32 %v23591_v45, %v30614_v3  ;;  %v30617_v33 = vand.u32 4294901760, %v23615_v14  ;;  %v6382_v45 = vld [vmem:[%s28702_s1 + $0x150] sm:$0xff]  ;;  %v30618_v26 = vand.u32 4294901760, %v23620_v5 }
 0x6a3   :  { %v23863_v40 = vsub.f32 %v23596_v13, %v30615_v52  ;;  %v23868_v53 = vsub.f32 %v23610_v23, %v30616_v4  ;;  %v30619_v13 = vand.u32 4294901760, %v23628_v29  ;;  %v23889_v23 = vsub.f32 %v23649_v2, %v6436_v34  ;;  %v6385_v4 = vld [vmem:[%s28702_s1 + $0x168] sm:$0xff] }
 0x6a4   :  { %v23873_v58 = vsub.f32 %v23615_v14, %v30617_v33  ;;  %v23881_v3 = vsub.f32 %v23620_v5, %v30618_v26  ;;  %v23892_v14 = vsub.f32 %v23654_v63, %v6440_v12  ;;  %v6384_v5 = vld [vmem:[%s28702_s1 + $0x160] sm:$0xff]  ;;  %v6387_v33 = vld [vmem:[%s28702_s1 + $0x178] sm:$0xff]  ;;  %v23907_v2 = vsub.f32 %v23673_v49, %v6442_v7 }
 0x6a5   :  { %v23886_v52 = vsub.f32 %v23628_v29, %v30619_v13  ;;  %30621 = vst [vmem:[#allocation43_spill] sm:$0xff] %v23889_v23  ;;  %v23904_v29 = vsub.f32 %v23668_v50, %v6438_v56  ;;  %v23910_v12 = vsub.f32 %v23678_v61, %v7280_v44  ;;  %v23912_v34 = vsub.f32 %v6381_v1, %v7283_v32 }
 0x6a6   :  { %30622 = vst [vmem:[#allocation53_spill] sm:$0xff] %v23892_v14  ;;  %30624 = vst [vmem:[#allocation18_spill] sm:$0xff] %v23907_v2  ;;  %v23914_v63 = vpack.c.bf16 %v6448_v47, %v6444_v25  ;;  %v23916_v26 = vsub.f32 %v6383_v17, %v6444_v25  ;;  %v23918_v13 = vsub.f32 %v6386_v8, %v6448_v47  ;;  %v6446_v59 = vand.u32 4294901760, %v6382_v45 }
 0x6a7   :  { %30620 = vst [vmem:[#allocation12_spill] sm:$0xff] %v23886_v52  ;;  %30623 = vst [vmem:[#allocation17_spill] sm:$0xff] %v23904_v29  ;;  %v6450_v38 = vand.u32 4294901760, %v6385_v4  ;;  %v7286_v14 = vand.u32 4294901760, %v6384_v5  ;;  %v7289_v23 = vand.u32 4294901760, %v6387_v33  ;;  %v29267_v50 = vand.u32 4294901760, %v23690_v43 }
 0x6a8   :  { %30625 = vst [vmem:[#allocation54_spill] sm:$0xff] %v23910_v12  ;;  %30626 = vst [vmem:[#allocation34_spill] sm:$0xff] %v23912_v34  ;;  %17541 = vmatprep.subr.bf16.mxu0 %v23914_v63  ;;  %v23922_v56 = vsub.f32 %v6382_v45, %v6446_v59  ;;  %v29265_v61 = vand.u32 4294901760, %v23695_v31  ;;  %v29266_v7 = vand.u32 4294901760, %v23703_v9  ;;  %v29272_v1 = vand.u32 4294901760, %v23708_v24 }
 0x6a9   :  { %30627 = vst [vmem:[#allocation52_spill] sm:$0xff] %v23914_v63  ;;  %30628 = vst [vmem:[#allocation15_spill] sm:$0xff] %v23916_v26  ;;  %v23927_v44 = vpack.c.bf16 %v6450_v38, %v6446_v59  ;;  %v23929_v32 = vsub.f32 %v6385_v4, %v6450_v38  ;;  %v23931_v49 = vpack.c.bf16 %v7289_v23, %v7286_v14  ;;  %v6099_v38 = vpop.f32.mrb[44].mxu1  ;;  %v29278_v4 = vand.u32 4294901760, %v23735_v57 }
 0x6aa   :  { %30629 = vst [vmem:[#allocation35_spill] sm:$0xff] %v23922_v56  ;;  %v23933_v17 = vsub.f32 %v6384_v5, %v7286_v14  ;;  %v23935_v8 = vsub.f32 %v6387_v33, %v7289_v23  ;;  %v6499_v25 = vsub.f32 %v23690_v43, %v29267_v50  ;;  %v6511_v47 = vsub.f32 %v23695_v31, %v29265_v61  ;;  %v30635_v5 = vld [vmem:[#allocation23_spill] sm:$0xff]  ;;  %v15047_v61 = vpop.f32.mrb[45].mxu1 }
 0x6ab   :  { %30630 = vst [vmem:[#allocation36_spill] sm:$0xff] %v23927_v44  ;;  %30631 = vst [vmem:[#allocation55_spill] sm:$0xff] %v23929_v32  ;;  %v6505_v59 = vsub.f32 %v23703_v9, %v29266_v7  ;;  %17543 = vmatpush1.bf16.msra.mxu0 %v23927_v44  ;;  %17727 = vmatpush3.bf16.msra.mxu1 %v23931_v49  ;;  %v6517_v45 = vsub.f32 %v23708_v24, %v29272_v1  ;;  %v29276_v23 = vand.u32 4294901760, %v23713_v6 }
 0x6ac   :  { %30632 = vst [vmem:[#allocation9_spill] sm:$0xff] %v23931_v49  ;;  %30633 = vst [vmem:[#allocation27_spill] sm:$0xff] %v23933_v17  ;;  %v29277_v14 = vand.u32 4294901760, %v23718_v0  ;;  %v23955_v33 = vadd.f32 %v6099_v38, %v30635_v5  ;;  %v6500_v7 = vand.u32 4294901760, %v6499_v25  ;;  %v6512_v50 = vand.u32 4294901760, %v6511_v47  ;;  %17728 = vmatprep.subr.bf16.mxu1 %v30418_v46 }
 0x6ad   :  { %30634 = vst [vmem:[#allocation28_spill] sm:$0xff] %v23935_v8  ;;  %v6506_v44 = vand.u32 4294901760, %v6505_v59  ;;  %v6518_v49 = vand.u32 4294901760, %v6517_v45  ;;  %v7338_v1 = vsub.f32 %v23713_v6, %v29276_v23  ;;  %v6523_v38 = vsub.f32 %v23735_v57, %v29278_v4 }
 0x6ae   :  { %v7345_v63 = vsub.f32 %v23718_v0, %v29277_v14  ;;  %v17544_v5 = vpack.c.bf16 %v6512_v50, %v6500_v7  ;;  %v29279_v61 = vand.u32 4294901760, %v23740_v21  ;;  %v29280_v25 = vand.u32 4294901760, %v23745_v35 }
 0x6af   :  { %v29281_v47 = vand.u32 4294901760, %v23750_v36  ;;  %v23970_v59 = vpack.c.bf16 %v6518_v49, %v6506_v44  ;;  %v7339_v45 = vand.u32 4294901760, %v7338_v1  ;;  %v6524_v23 = vand.u32 4294901760, %v6523_v38 }
 0x6b0   :  { %v7346_v46 = vand.u32 4294901760, %v7345_v63  ;;  %17545 = vmatprep.subr.bf16.mxu0 %v17544_v5  ;;  %v6535_v14 = vsub.f32 %v23740_v21, %v29279_v61  ;;  %v6529_v50 = vsub.f32 %v23745_v35, %v29280_v25  ;;  %v29282_v4 = vand.u32 4294901760, %v23755_v30 }
 0x6b1   :  { %30636 = vst [vmem:[#allocation29_spill] sm:$0xff] %v23970_v59  ;;  %v6541_v7 = vsub.f32 %v23750_v36, %v29281_v47  ;;  %v29285_v63 = vand.u32 4294901760, %v23760_v39  ;;  %v29286_v1 = vand.u32 4294901760, %v23765_v19  ;;  %v29287_v49 = vand.u32 4294901760, %v23770_v41 }
 0x6b2   :  { %v23982_v44 = vpack.c.bf16 %v7346_v46, %v7339_v45  ;;  %v6536_v38 = vand.u32 4294901760, %v6535_v14  ;;  %v6530_v5 = vand.u32 4294901760, %v6529_v50  ;;  %v7352_v25 = vsub.f32 %v23755_v30, %v29282_v4 }
 0x6b3   :  { %v6542_v61 = vand.u32 4294901760, %v6541_v7  ;;  %v7359_v47 = vsub.f32 %v23760_v39, %v29285_v63  ;;  %v6547_v46 = vsub.f32 %v23765_v19, %v29286_v1  ;;  %v6559_v45 = vsub.f32 %v23770_v41, %v29287_v49 }
 0x6b4   :  { %30637 = vst [vmem:[#allocation31_spill] sm:$0xff] %v23982_v44  ;;  %v29291_v14 = vand.u32 4294901760, %v23776_v10  ;;  %v24000_v50 = vpack.c.bf16 %v6536_v38, %v6524_v23  ;;  %v7353_v44 = vand.u32 4294901760, %v7352_v25  ;;  %v29290_v4 = vand.u32 4294901760, %v23781_v20 }
 0x6b5   :  { %v24002_v7 = vpack.c.bf16 %v6542_v61, %v6530_v5  ;;  %v7360_v59 = vand.u32 4294901760, %v7359_v47  ;;  %v6548_v30 = vand.u32 4294901760, %v6547_v46  ;;  %v6560_v63 = vand.u32 4294901760, %v6559_v45 }
 0x6b6   :  { %30638 = vst [vmem:[#allocation13_spill] sm:$0xff] %v24000_v50  ;;  %v6553_v1 = vsub.f32 %v23776_v10, %v29291_v14  ;;  %v6565_v49 = vsub.f32 %v23781_v20, %v29290_v4  ;;  %v29292_v41 = vand.u32 4294901760, %v23786_v28  ;;  %v29293_v23 = vand.u32 4294901760, %v23791_v51 }
 0x6b7   :  { %30639 = vst [vmem:[#allocation6_spill] sm:$0xff] %v24002_v7  ;;  %v29294_v61 = vand.u32 4294901760, %v23797_v62  ;;  %v24014_v25 = vpack.c.bf16 %v7360_v59, %v7353_v44  ;;  %v24016_v38 = vpack.c.bf16 %v6560_v63, %v6548_v30  ;;  %v29295_v5 = vand.u32 4294901760, %v23802_v15 }
 0x6b8   :  { %v6554_v47 = vand.u32 4294901760, %v6553_v1  ;;  %v6566_v46 = vand.u32 4294901760, %v6565_v49  ;;  %v7366_v45 = vsub.f32 %v23786_v28, %v29292_v41  ;;  %v7373_v4 = vsub.f32 %v23791_v51, %v29293_v23 }
 0x6b9   :  { %30640 = vst [vmem:[#allocation11_spill] sm:$0xff] %v24014_v25  ;;  %30641 = vst [vmem:[#allocation44_spill] sm:$0xff] %v24016_v38  ;;  %v6571_v14 = vsub.f32 %v23797_v62, %v29294_v61  ;;  %v6583_v30 = vsub.f32 %v23802_v15, %v29295_v5  ;;  %v29296_v59 = vand.u32 4294901760, %v23807_v18  ;;  %v29297_v44 = vand.u32 4294901760, %v23812_v54 }
 0x6ba   :  { %v29298_v63 = vand.u32 4294901760, %v23818_v37  ;;  %v24034_v1 = vpack.c.bf16 %v6566_v46, %v6554_v47  ;;  %v7367_v49 = vand.u32 4294901760, %v7366_v45  ;;  %v7374_v41 = vand.u32 4294901760, %v7373_v4 }
 0x6bb   :  { %v6572_v38 = vand.u32 4294901760, %v6571_v14  ;;  %v6584_v23 = vand.u32 4294901760, %v6583_v30  ;;  %v6577_v61 = vsub.f32 %v23807_v18, %v29296_v59  ;;  %v6589_v5 = vsub.f32 %v23812_v54, %v29297_v44 }
 0x6bc   :  { %30642 = vst [vmem:[#allocation45_spill] sm:$0xff] %v24034_v1  ;;  %v7380_v25 = vsub.f32 %v23818_v37, %v29298_v63  ;;  %v24045_v7 = vpack.c.bf16 %v7374_v41, %v7367_v49  ;;  %v29299_v47 = vand.u32 4294901760, %v23823_v42  ;;  %v29300_v4 = vand.u32 4294901760, %v23828_v22 }
 0x6bd   :  { %v29301_v14 = vand.u32 4294901760, %v23833_v60  ;;  %v24050_v46 = vpack.c.bf16 %v6584_v23, %v6572_v38  ;;  %v6578_v45 = vand.u32 4294901760, %v6577_v61  ;;  %v6590_v30 = vand.u32 4294901760, %v6589_v5 }
 0x6be   :  { %30643 = vst [vmem:[#allocation5_spill] sm:$0xff] %v24045_v7  ;;  %v7381_v59 = vand.u32 4294901760, %v7380_v25  ;;  %v7387_v44 = vsub.f32 %v23823_v42, %v29299_v47  ;;  %v6595_v41 = vsub.f32 %v23828_v22, %v29300_v4  ;;  %v29302_v63 = vand.u32 4294901760, %v23838_v16 }
 0x6bf   :  { %30644 = vst [vmem:[#allocation47_spill] sm:$0xff] %v24050_v46  ;;  %v6607_v49 = vsub.f32 %v23833_v60, %v29301_v14  ;;  %v24062_v7 = vpack.c.bf16 %v6590_v30, %v6578_v45  ;;  %v29303_v23 = vand.u32 4294901760, %v23843_v55  ;;  %v29304_v61 = vand.u32 4294901760, %v23848_v11 }
 0x6c0   :  { %v29305_v25 = vand.u32 4294901760, %v23853_v48  ;;  %v7388_v38 = vand.u32 4294901760, %v7387_v44  ;;  %v6596_v5 = vand.u32 4294901760, %v6595_v41  ;;  %v6601_v4 = vsub.f32 %v23838_v16, %v29302_v63 }
 0x6c1   :  { %30645 = vst [vmem:[#allocation16_spill] sm:$0xff] %v24062_v7  ;;  %v6608_v47 = vand.u32 4294901760, %v6607_v49  ;;  %v6613_v14 = vsub.f32 %v23843_v55, %v29303_v23  ;;  %v7394_v45 = vsub.f32 %v23848_v11, %v29304_v61  ;;  %v29307_v44 = vand.u32 4294901760, %v23858_v27 }
 0x6c2   :  { %v7401_v30 = vsub.f32 %v23853_v48, %v29305_v25  ;;  %v24080_v41 = vpack.c.bf16 %v7388_v38, %v7381_v59  ;;  %v6602_v7 = vand.u32 4294901760, %v6601_v4  ;;  %v29306_v63 = vand.u32 4294901760, %v23863_v40 }
 0x6c3   :  { %v24082_v49 = vpack.c.bf16 %v6608_v47, %v6596_v5  ;;  %v6614_v46 = vand.u32 4294901760, %v6613_v14  ;;  %v7395_v1 = vand.u32 4294901760, %v7394_v45  ;;  %v6619_v61 = vsub.f32 %v23858_v27, %v29307_v44 }
 0x6c4   :  { %30646 = vst [vmem:[#allocation3_spill] sm:$0xff] %v24080_v41  ;;  %v7402_v23 = vand.u32 4294901760, %v7401_v30  ;;  %v6631_v25 = vsub.f32 %v23863_v40, %v29306_v63  ;;  %v29308_v50 = vand.u32 4294901760, %v23868_v53  ;;  %v29309_v59 = vand.u32 4294901760, %v23873_v58 }
 0x6c5   :  { %30647 = vst [vmem:[#allocation56_spill] sm:$0xff] %v24082_v49  ;;  %v29310_v47 = vand.u32 4294901760, %v23881_v3  ;;  %v24094_v4 = vpack.c.bf16 %v6614_v46, %v6602_v7  ;;  %v6620_v14 = vand.u32 4294901760, %v6619_v61  ;;  %v29311_v5 = vand.u32 4294901760, %v23886_v52 }
 0x6c6   :  { %v24096_v38 = vpack.c.bf16 %v7402_v23, %v7395_v1  ;;  %v6632_v45 = vand.u32 4294901760, %v6631_v25  ;;  %v6625_v30 = vsub.f32 %v23868_v53, %v29308_v50  ;;  %v6637_v63 = vsub.f32 %v23873_v58, %v29309_v59  ;;  %v30650_v1 = vld [vmem:[#allocation43_spill] sm:$0xff]  ;;  %v30651_v23 = vld [vmem:[#allocation53_spill] sm:$0xff] }
 0x6c7   :  { %30648 = vst [vmem:[#allocation57_spill] sm:$0xff] %v24094_v4  ;;  %v7408_v44 = vsub.f32 %v23881_v3, %v29310_v47  ;;  %v7415_v7 = vsub.f32 %v23886_v52, %v29311_v5  ;;  %v29314_v46 = vand.u32 4294901760, %v30650_v1  ;;  %v29315_v61 = vand.u32 4294901760, %v30651_v23 }
 0x6c8   :  { %30649 = vst [vmem:[#allocation8_spill] sm:$0xff] %v24096_v38  ;;  %v29317_v25 = vand.u32 4294901760, %v23904_v29  ;;  %v24114_v38 = vpack.c.bf16 %v6632_v45, %v6620_v14  ;;  %v6626_v50 = vand.u32 4294901760, %v6625_v30  ;;  %v6638_v4 = vand.u32 4294901760, %v6637_v63  ;;  %v6218_v45 = vpop.f32.mrb[46].mxu1 }
 0x6c9   :  { %v7409_v49 = vand.u32 4294901760, %v7408_v44  ;;  %v7416_v59 = vand.u32 4294901760, %v7415_v7  ;;  %v6643_v47 = vsub.f32 %v30650_v1, %v29314_v46  ;;  %v6655_v5 = vsub.f32 %v30651_v23, %v29315_v61  ;;  %v15082_v23 = vpop.f32.mrb[47].mxu1 }
 0x6ca   :  { %30652 = vst [vmem:[#allocation4_spill] sm:$0xff] %v24114_v38  ;;  %v6649_v41 = vsub.f32 %v23904_v29, %v29317_v25  ;;  %v24125_v52 = vpack.c.bf16 %v6638_v4, %v6626_v50  ;;  %v29320_v14 = vand.u32 4294901760, %v23907_v2  ;;  %v29318_v63 = vand.u32 4294901760, %v23910_v12 }
 0x6cb   :  { %v29319_v44 = vand.u32 4294901760, %v23912_v34  ;;  %v24130_v30 = vpack.c.bf16 %v7416_v59, %v7409_v49  ;;  %v6644_v7 = vand.u32 4294901760, %v6643_v47  ;;  %v6656_v46 = vand.u32 4294901760, %v6655_v5 }
 0x6cc   :  { %v6650_v38 = vand.u32 4294901760, %v6649_v41  ;;  %v6219_v61 = vadd.f32 %v6218_v45, %v23955_v33  ;;  %v6661_v50 = vsub.f32 %v23907_v2, %v29320_v14  ;;  %v7422_v4 = vsub.f32 %v23910_v12, %v29318_v63 }
 0x6cd   :  { %30653 = vst [vmem:[#allocation23_spill] sm:$0xff] %v24130_v30  ;;  %v7429_v25 = vsub.f32 %v23912_v34, %v29319_v44  ;;  %v24142_v49 = vpack.c.bf16 %v6656_v46, %v6644_v7  ;;  %v29321_v59 = vand.u32 4294901760, %v23916_v26  ;;  %v29322_v41 = vand.u32 4294901760, %v23918_v13 }
 0x6ce   :  { %v29323_v33 = vand.u32 4294901760, %v23922_v56  ;;  %v6662_v47 = vand.u32 4294901760, %v6661_v50  ;;  %v7423_v5 = vand.u32 4294901760, %v7422_v4  ;;  %v29326_v45 = vand.u32 4294901760, %v23929_v32 }
 0x6cf   :  { %30654 = vst [vmem:[#allocation43_spill] sm:$0xff] %v24142_v49  ;;  %v7430_v23 = vand.u32 4294901760, %v7429_v25  ;;  %v6667_v63 = vsub.f32 %v23916_v26, %v29321_v59  ;;  %v6679_v46 = vsub.f32 %v23918_v13, %v29322_v41  ;;  %v29324_v44 = vand.u32 4294901760, %v23933_v17 }
 0x6d0   :  { %v6673_v7 = vsub.f32 %v23922_v56, %v29323_v33  ;;  %v24158_v14 = vpack.c.bf16 %v6662_v47, %v6650_v38  ;;  %v6685_v25 = vsub.f32 %v23929_v32, %v29326_v45  ;;  %v29325_v4 = vand.u32 4294901760, %v23935_v8  ;;  %v30655_v45 = vld [vmem:[#allocation41_spill] sm:$0xff] }
 0x6d1   :  { %v24160_v50 = vpack.c.bf16 %v7430_v23, %v7423_v5  ;;  %v6668_v59 = vand.u32 4294901760, %v6667_v63  ;;  %v6680_v49 = vand.u32 4294901760, %v6679_v46  ;;  %v7436_v41 = vsub.f32 %v23933_v17, %v29324_v44  ;;  %v30656_v5 = vld [vmem:[#allocation14_spill] sm:$0xff]  ;;  %v30658_v47 = vld [vmem:[#allocation53_spill] sm:$0xff]  ;;  %v13336_v17 = vld [vmem:[%s28703_s0 + $0x2c] sm:$0xf] }
 0x6d2   :  { %v6674_v30 = vand.u32 4294901760, %v6673_v7  ;;  %v6686_v33 = vand.u32 4294901760, %v6685_v25  ;;  %v7443_v38 = vsub.f32 %v23935_v8, %v29325_v4  ;;  %v4764_v32 = vunpack.c.l.bf16 %v13336_v17 }
 0x6d3   :  { %v24176_v23 = vpack.c.bf16 %v6680_v49, %v6668_v59  ;;  %v7437_v63 = vand.u32 4294901760, %v7436_v41 }
 0x6d4   :  { %v24182_v25 = vpack.c.bf16 %v6686_v33, %v6674_v30  ;;  %v7444_v44 = vand.u32 4294901760, %v7443_v38  ;;  %v13335_v38 = vld [vmem:[%s28703_s0 + $0x24] sm:$0xff] }
 0x6d5   :  { %v4762_v4 = vunpack.c.l.bf16 %v13335_v38  ;;  %v4763_v49 = vunpack.c.h.bf16 %v13335_v38 }
 0x6d6   :  { %v24196_v33 = vpack.c.bf16 %v7444_v44, %v7437_v63  ;;  %v30657_v63 = vld [vmem:[#allocation12_spill] sm:$0xff] }
 0x6e8   :  { %v5663_v7 = vpop.f32.mrb[6].mxu0  ;;  %v6305_v46 = vpop.f32.mrb[48].mxu1 }
 0x6e9   :  { %v6309_v29 = vadd.f32 %v5663_v7, %v4762_v4  ;;  %v6306_v2 = vadd.f32 %v6305_v46, %v6219_v61  ;;  %v5665_v59 = vpop.f32.mrb[7].mxu0  ;;  %v15117_v12 = vpop.f32.mrb[49].mxu1  ;;  %v19180_v61 = vld [vmem:[%s28704_s2] ss:$0 sm:$0xff] }
 0x6ea   :  { %v6316_v41 = vadd.f32 %v5665_v59, %v4763_v49  ;;  %v30659_v49 = vld [vmem:[#allocation37_spill] sm:$0xff] }
 0x6eb   :  { %v13337_v34 = vmul.f32 -1.442695, %v6309_v29  ;;  %v6323_v12 = vadd.f32 %v19180_v61, %v6306_v2  ;;  %v30662_v61 = vld [vmem:[#allocation31_spill] sm:$0xff] }
 0x6ec   :  { %v13338_v26 = vmul.f32 -1.442695, %v6316_v41 }
 0x6ed   :  { %19124 = vpow2.f32 %v13337_v34 }
 0x6ee   :  { %19126 = vpow2.f32 %v13338_v26 }
 0x6f7   :  { %v19125_v30 = vpop.eup %19124 }
 0x6f8   :  { %v6313_v56 = vadd.f32 1.0, %v19125_v30  ;;  %v19127_v44 = vpop.eup %19126 }
 0x6f9   :  { %v6320_v8 = vadd.f32 1.0, %v19127_v44  ;;  %v30661_v44 = vld [vmem:[#allocation29_spill] sm:$0xff] }
 0x6fa   :  { %19128 = vrcp.f32 %v6313_v56 }
 0x6fb   :  { %19130 = vrcp.f32 %v6320_v8 }
 0x704   :  { %v19129_v29 = vpop.eup %19128 }
 0x705   :  { %v6324_v4 = vmul.f32 %v19129_v29, %v6323_v12  ;;  %v19131_v26 = vpop.eup %19130  ;;  %v30663_v12 = vld [vmem:[#allocation13_spill] sm:$0xff]  ;;  %v30664_v29 = vmov 0.0|0.0  }
 0x706   :  { %v6327_v46 = vsub.f32 1.0, %v19131_v26  ;;  %v6329_v59 = vmul.f32 %v19131_v26, %v30659_v49  ;;  %v30667_v26 = vld [vmem:[#allocation11_spill] sm:$0xff] }
 0x707   :  { %v6325_v34 = vadd.f32 %v6324_v4, %v4764_v32  ;;  %v30665_v4 = vmov 0.0   ;;  %v30671_v49 = vld [vmem:[#allocation47_spill] sm:$0xff] }
 0x709   :  { %19132 = vtanh.f32 %v6325_v34  ;;  %v30666_v34 = vld [vmem:[#allocation6_spill] sm:$0xff] }
 0x713   :  { %v19133_v56 = vpop.eup %19132 }
 0x714   :  { %v6328_v7 = vmul.f32 %v19133_v56, %v6327_v46  ;;  %v30668_v46 = vld [vmem:[#allocation44_spill] sm:$0xff]  ;;  %v30669_v56 = vld [vmem:[#allocation45_spill] sm:$0xff] }
 0x716   :  { %v24236_v41 = vadd.f32 %v6329_v59, %v6328_v7  ;;  %v30670_v7 = vld [vmem:[#allocation5_spill] sm:$0xff]  ;;  %v30672_v59 = vld [vmem:[#allocation16_spill] sm:$0xff] }
 0x718   :  { %30660 = vst [vmem:[#allocation41_spill] sm:$0xff] %v24236_v41  ;;  %v6331_v17 = vpack.c.bf16 %v24236_v41, %v24236_v41  ;;  %v24241_v30 = vand.u32 4294901760, %v24236_v41 }
 0x71a   :  { %13339 = vst [vmem:[%s28705_s5 + $0xc] sm:$0xf] %v6331_v17  ;;  %v24248_v2 = vsub.f32 %v24236_v41, %v24241_v30  ;;  %v30673_v17 = vld [vmem:[#allocation3_spill] sm:$0xff]  ;;  %v30724_v41 = vld [vmem:[#allocation48_spill] sm:$0xff] }
 0x71c   :  { %v24251_v32 = vand.u32 4294901760, %v24248_v2 }
 0x71e   :  { %v6488_v8 = vsub.f32 %v24248_v2, %v24251_v32 }
 0x720   :  { %v6489_v38 = vand.u32 4294901760, %v6488_v8  ;;  %v30674_v8 = vld [vmem:[#allocation56_spill] sm:$0xff] }
 0x722   :  { %6490 = vmatmul.mubr.f32.vlgmr.msra.gmra.mrb[8].mxu0 %v6489_v38  ;;  %15151 = vmatmul.mubr.f32.vlgmr.msra.gmra.mrb[50].mxu1 %v6489_v38  ;;  %v30675_v38 = vld [vmem:[#allocation57_spill] sm:$0xff] }
 0x723   :  { %17547 = vmatpush1.bf16.msra.mxu0 %v30661_v44  ;;  %17730 = vmatpush3.bf16.msra.mxu1 %v30662_v61  ;;  %v30676_v44 = vld [vmem:[#allocation8_spill] sm:$0xff] }
 0x724   :  { %17549 = vmatprep.subr.bf16.mxu0 %v30663_v12  ;;  %17731 = vmatprep.subr.bf16.mxu1 %v30664_v29  ;;  %v30677_v61 = vld [vmem:[#allocation4_spill] sm:$0xff]  ;;  %v30678_v12 = vld [vmem:[#allocation23_spill] sm:$0xff] }
 0x725   :  { %6720 = vmatprep.mubr.f32.mxu0 %v30665_v4  ;;  %15185 = vmatprep.mubr.msk.f32.mxu1 %vm19186_vm0, %v30665_v4 }
 0x727   :  { %17551 = vmatpush1.bf16.msra.mxu0 %v30666_v34  ;;  %17733 = vmatpush3.bf16.msra.mxu1 %v30667_v26  ;;  %v30679_v34 = vld [vmem:[#allocation43_spill] sm:$0xff]  ;;  %v30686_v26 = vpack.c.bf16 %v30656_v5, %v23765_v19 }
 0x728   :  { %17553 = vmatprep.subr.bf16.mxu0 %v30668_v46  ;;  %17734 = vmatprep.subr.bf16.mxu1 %v30664_v29  ;;  %v30687_v46 = vpack.c.bf16 %v23781_v20, %v23776_v10 }
 0x72b   :  { %17555 = vmatpush1.bf16.msra.mxu0 %v30669_v56  ;;  %17736 = vmatpush3.bf16.msra.mxu1 %v30670_v7  ;;  %v30688_v56 = vpack.c.bf16 %v23791_v51, %v23786_v28  ;;  %v30689_v7 = vpack.c.bf16 %v23802_v15, %v23797_v62 }
 0x72c   :  { %17557 = vmatprep.subr.bf16.mxu0 %v30671_v49  ;;  %17737 = vmatprep.subr.bf16.mxu1 %v30664_v29  ;;  %v30690_v49 = vpack.c.bf16 %v23812_v54, %v23807_v18 }
 0x72f   :  { %17559 = vmatpush1.bf16.msra.mxu0 %v30672_v59  ;;  %17739 = vmatpush3.bf16.msra.mxu1 %v30673_v17  ;;  %v30691_v59 = vpack.c.bf16 %v23823_v42, %v23818_v37  ;;  %v30692_v17 = vpack.c.bf16 %v23833_v60, %v23828_v22 }
 0x730   :  { %17561 = vmatprep.subr.bf16.mxu0 %v30674_v8  ;;  %17740 = vmatprep.subr.bf16.mxu1 %v30664_v29  ;;  %v30693_v8 = vpack.c.bf16 %v23843_v55, %v23838_v16 }
 0x733   :  { %17563 = vmatpush1.bf16.msra.mxu0 %v30675_v38  ;;  %17742 = vmatpush3.bf16.msra.mxu1 %v30676_v44  ;;  %v30694_v38 = vpack.c.bf16 %v23853_v48, %v23848_v11  ;;  %v30695_v44 = vpack.c.bf16 %v23863_v40, %v23858_v27 }
 0x734   :  { %17565 = vmatprep.subr.bf16.mxu0 %v30677_v61  ;;  %17743 = vmatprep.subr.bf16.mxu1 %v30664_v29  ;;  %v30696_v61 = vpack.c.bf16 %v23873_v58, %v23868_v53 }
 0x737   :  { %17567 = vmatpush1.bf16.msra.mxu0 %v24125_v52  ;;  %17745 = vmatpush3.bf16.msra.mxu1 %v30678_v12  ;;  %v30680_v52 = vpack.c.bf16 %v23695_v31, %v23690_v43  ;;  %v30697_v12 = vpack.c.bf16 %v30657_v63, %v23881_v3 }
 0x738   :  { %17569 = vmatprep.subr.bf16.mxu0 %v30679_v34  ;;  %17746 = vmatprep.subr.bf16.mxu1 %v30664_v29  ;;  %v30698_v34 = vpack.c.bf16 %v30658_v47, %v30650_v1 }
 0x73b   :  { %17571 = vmatpush1.bf16.msra.mxu0 %v24158_v14  ;;  %17748 = vmatpush3.bf16.msra.mxu1 %v24160_v50  ;;  %v30681_v14 = vpack.c.bf16 %v23708_v24, %v23703_v9  ;;  %v30682_v50 = vpack.c.bf16 %v23718_v0, %v23713_v6 }
 0x73c   :  { %17573 = vmatprep.subr.bf16.mxu0 %v24176_v23  ;;  %17749 = vmatprep.subr.bf16.mxu1 %v30664_v29  ;;  %v30683_v23 = vpack.c.bf16 %v23740_v21, %v23735_v57 }
 0x73f   :  { %17575 = vmatpush1.bf16.msra.mxu0 %v24182_v25  ;;  %17751 = vmatpush3.bf16.msra.mxu1 %v24196_v33  ;;  %v30684_v25 = vpack.c.bf16 %v23750_v36, %v23745_v35  ;;  %v30685_v33 = vpack.c.bf16 %v23760_v39, %v30655_v45 }
 0x740   :  { %17577 = vmatprep.subr.bf16.mxu0 %v30680_v52  ;;  %17752 = vmatprep.subr.bf16.mxu1 %v30664_v29  ;;  %v30699_v52 = vld [vmem:[#allocation18_spill] sm:$0xff] }
 0x742   :  { %6722 = vmatmul.mubr.f32.vlgmr.msra.gmra.mrb[8].mxu0 %v24241_v30  ;;  %15186 = vmatmul.mubr.f32.vlgmr.msra.gmra.mrb[52].mxu1 %v24241_v30 }
 0x743   :  { %17579 = vmatpush1.bf16.msra.mxu0 %v30681_v14  ;;  %17754 = vmatpush3.bf16.msra.mxu1 %v30682_v50  ;;  %v30700_v14 = vld [vmem:[#allocation17_spill] sm:$0xff] }
 0x744   :  { %17581 = vmatprep.subr.bf16.mxu0 %v30683_v23  ;;  %17755 = vmatprep.subr.bf16.mxu1 %v30664_v29  ;;  %v30701_v50 = vpack.c.bf16 %v30699_v52, %v30700_v14  ;;  %v30702_v23 = vld [vmem:[#allocation34_spill] sm:$0xff] }
 0x745   :  { %6856 = vmatprep.mubr.f32.mxu0 %v30665_v4  ;;  %15220 = vmatprep.mubr.msk.f32.mxu1 %vm19186_vm0, %v30665_v4 }
 0x747   :  { %17583 = vmatpush1.bf16.msra.mxu0 %v30684_v25  ;;  %17757 = vmatpush3.bf16.msra.mxu1 %v30685_v33  ;;  %v30703_v25 = vld [vmem:[#allocation54_spill] sm:$0xff] }
 0x748   :  { %17585 = vmatprep.subr.bf16.mxu0 %v30686_v26  ;;  %17758 = vmatprep.subr.bf16.mxu1 %v30664_v29  ;;  %v30704_v33 = vpack.c.bf16 %v30702_v23, %v30703_v25  ;;  %v30705_v26 = vld [vmem:[#allocation15_spill] sm:$0xff] }
 0x74b   :  { %17587 = vmatpush1.bf16.msra.mxu0 %v30687_v46  ;;  %17760 = vmatpush3.bf16.msra.mxu1 %v30688_v56  ;;  %v30706_v46 = vpack.c.bf16 %v23918_v13, %v30705_v26  ;;  %v30707_v56 = vld [vmem:[#allocation55_spill] sm:$0xff] }
 0x74c   :  { %17589 = vmatprep.subr.bf16.mxu0 %v30689_v7  ;;  %17761 = vmatprep.subr.bf16.mxu1 %v30664_v29  ;;  %v30708_v7 = vld [vmem:[#allocation35_spill] sm:$0xff] }
 0x74f   :  { %17591 = vmatpush1.bf16.msra.mxu0 %v30690_v49  ;;  %17763 = vmatpush3.bf16.msra.mxu1 %v30691_v59  ;;  %v30709_v49 = vpack.c.bf16 %v30707_v56, %v30708_v7  ;;  %v30710_v59 = vld [vmem:[#allocation28_spill] sm:$0xff] }
 0x750   :  { %17593 = vmatprep.subr.bf16.mxu0 %v30692_v17  ;;  %17764 = vmatprep.subr.bf16.mxu1 %v30664_v29  ;;  %v30711_v17 = vld [vmem:[#allocation27_spill] sm:$0xff] }
 0x753   :  { %17595 = vmatpush1.bf16.msra.mxu0 %v30693_v8  ;;  %17766 = vmatpush3.bf16.msra.mxu1 %v30694_v38  ;;  %v30712_v8 = vpack.c.bf16 %v30710_v59, %v30711_v17  ;;  %v30713_v38 = vld [vmem:[#allocation39_spill] sm:$0xff] }
 0x754   :  { %17597 = vmatprep.subr.bf16.mxu0 %v30695_v44  ;;  %17767 = vmatprep.subr.bf16.mxu1 %v30664_v29  ;;  %v30714_v44 = vld [vmem:[#allocation38_spill] sm:$0xff] }
 0x757   :  { %17599 = vmatpush1.bf16.msra.mxu0 %v30696_v61  ;;  %17769 = vmatpush3.bf16.msra.mxu1 %v30697_v12  ;;  %v30715_v61 = vld [vmem:[#allocation42_spill] sm:$0xff]  ;;  %v30716_v12 = vld [vmem:[#allocation7_spill] sm:$0xff] }
 0x758   :  { %17601 = vmatprep.subr.bf16.mxu0 %v30698_v34  ;;  %17770 = vmatprep.subr.bf16.mxu1 %v30664_v29  ;;  %v30717_v34 = vld [vmem:[#allocation20_spill] sm:$0xff] }
 0x75b   :  { %17603 = vmatpush1.bf16.msra.mxu0 %v30701_v50  ;;  %17772 = vmatpush3.bf16.msra.mxu1 %v30704_v33  ;;  %v30718_v50 = vld [vmem:[#allocation19_spill] sm:$0xff]  ;;  %v30719_v33 = vld [vmem:[#allocation21_spill] sm:$0xff] }
 0x75c   :  { %17605 = vmatprep.subr.bf16.mxu0 %v30706_v46  ;;  %17773 = vmatprep.subr.bf16.mxu1 %v30664_v29  ;;  %v30721_v46 = vld [vmem:[#allocation24_spill] sm:$0xff] }
 0x75f   :  { %17607 = vmatpush1.bf16.msra.mxu0 %v30709_v49  ;;  %17775 = vmatpush3.bf16.msra.mxu1 %v30712_v8  ;;  %v30722_v49 = vld [vmem:[#allocation46_spill] sm:$0xff]  ;;  %v30723_v8 = vld [vmem:[#allocation25_spill] sm:$0xff] }
 0x760   :  { %17609 = vmatprep.subr.bf16.mxu0 %v30713_v38  ;;  %17776 = vmatprep.subr.bf16.mxu1 %v30664_v29 }
 0x762   :  { %6859 = vmatmul.mubr.f32.vlgmr.msra.gmra.mrb[8].mxu0 %v24248_v2  ;;  %15221 = vmatmul.mubr.f32.vlgmr.msra.gmra.mrb[54].mxu1 %v24248_v2  ;;  %v30720_v2 = vld [vmem:[#allocation22_spill] sm:$0xff] }
 0x763   :  { %17611 = vmatpush1.bf16.msra.mxu0 %v30714_v44  ;;  %17778 = vmatpush3.bf16.msra.mxu1 %v30715_v61  ;;  %v30740_v61 = vand.u32 4294901760, %v23708_v24  ;;  %v30746_v24 = vand.u32 4294901760, %v23750_v36  ;;  %v30751_v36 = vand.u32 4294901760, %v23776_v10  ;;  %v30757_v10 = vand.u32 4294901760, %v23807_v18 }
 0x764   :  { %17613 = vmatprep.subr.bf16.mxu0 %v30716_v12  ;;  %17779 = vmatprep.subr.bf16.mxu1 %v30664_v29  ;;  %v30725_v12 = vld [vmem:[#allocation51_spill] sm:$0xff]  ;;  %v30763_v18 = vand.u32 4294901760, %v23838_v16  ;;  %v30769_v16 = vand.u32 4294901760, %v23868_v53  ;;  %v30775_v53 = vand.u32 4294901760, %v30700_v14  ;;  %v30781_v14 = vand.u32 4294901760, %v30708_v7  ;;  %v30788_v7 = vld [vmem:[#allocation20_spill] sm:$0xff] }
 0x765   :  { %6961 = vmatprep.mubr.f32.mxu0 %v30665_v4  ;;  %15255 = vmatprep.mubr.msk.f32.mxu1 %vm19186_vm0, %v30665_v4 }
 0x767   :  { %17615 = vmatpush1.bf16.msra.mxu0 %v30717_v34  ;;  %17781 = vmatpush3.bf16.msra.mxu1 %v30718_v50  ;;  %v30726_v50 = vld [vmem:[#allocation49_spill] sm:$0xff]  ;;  %v30728_v34 = vld [vmem:[#allocation32_spill] sm:$0xff] }
 0x768   :  { %17617 = vmatprep.subr.bf16.mxu0 %v30719_v33  ;;  %17782 = vmatprep.subr.bf16.mxu1 %v30664_v29  ;;  %v30727_v33 = vld [vmem:[#allocation26_spill] sm:$0xff] }
 0x76b   :  { %17619 = vmatpush1.bf16.msra.mxu0 %v30720_v2  ;;  %17784 = vmatpush3.bf16.msra.mxu1 %v30721_v46  ;;  %v30729_v46 = vld [vmem:[#allocation33_spill] sm:$0xff]  ;;  %v30731_v2 = vld [vmem:[#allocation30_spill] sm:$0xff] }
 0x76c   :  { %17621 = vmatprep.subr.bf16.mxu0 %v30722_v49  ;;  %17785 = vmatprep.subr.bf16.mxu1 %v30664_v29  ;;  %v30730_v49 = vld [vmem:[#allocation10_spill] sm:$0xff] }
 0x76f   :  { %17623 = vmatpush1.bf16.msra.mxu0 %v30723_v8  ;;  %17787 = vmatpush3.bf16.msra.mxu1 %v30724_v41  ;;  %v30732_v41 = vld [vmem:[#allocation40_spill] sm:$0xff] }
 0x770   :  { %17625 = vmatprep.subr.bf16.mxu0 %v30725_v12  ;;  %17788 = vmatprep.subr.bf16.mxu1 %v30664_v29  ;;  %v30733_v12 = vld [vmem:[#allocation50_spill] sm:$0xff]  ;;  %v30734_v8 = vld [vmem:[#allocation52_spill] sm:$0xff] }
 0x773   :  { %17627 = vmatpush1.bf16.msra.mxu0 %v30726_v50  ;;  %17790 = vmatpush3.bf16.msra.mxu1 %v30727_v33  ;;  %v30736_v33 = vand.u32 4294901760, %v23695_v31  ;;  %v30743_v31 = vand.u32 4294901760, %v23735_v57  ;;  %v30750_v57 = vand.u32 4294901760, %v30656_v5  ;;  %v30755_v5 = vand.u32 4294901760, %v23797_v62 }
 0x774   :  { %17629 = vmatprep.subr.bf16.mxu0 %v30728_v34  ;;  %17791 = vmatprep.subr.bf16.mxu1 %v30664_v29  ;;  %v30735_v34 = vand.u32 4294901760, %v23690_v43  ;;  %v30744_v43 = vand.u32 4294901760, %v23740_v21  ;;  %v30749_v21 = vand.u32 4294901760, %v23765_v19  ;;  %v30761_v62 = vand.u32 4294901760, %v23828_v22 }
 0x775   :  { %v30767_v22 = vand.u32 4294901760, %v23858_v27  ;;  %v30773_v27 = vand.u32 4294901760, %v30650_v1  ;;  %v30779_v1 = vand.u32 4294901760, %v30705_v26  ;;  %v30786_v26 = vld [vmem:[#allocation42_spill] sm:$0xff] }
 0x776   :  { %v17640_v50 = vpack.c.bf16 %v30736_v33, %v30735_v34  ;;  %v17644_v34 = vpack.c.bf16 %v30744_v43, %v30743_v31 }
 0x777   :  { %17631 = vmatpush1.bf16.msra.mxu0 %v30729_v46  ;;  %17793 = vmatpush3.bf16.msra.mxu1 %v30730_v49  ;;  %v30737_v46 = vld [vmem:[#allocation36_spill] sm:$0xff]  ;;  %v30738_v49 = vld [vmem:[#allocation9_spill] sm:$0xff] }
 0x778   :  { %17633 = vmatprep.subr.bf16.mxu0 %v30731_v2  ;;  %17794 = vmatprep.subr.bf16.mxu1 %v30664_v29  ;;  %v30739_v2 = vand.u32 4294901760, %v23703_v9  ;;  %v30745_v9 = vand.u32 4294901760, %v23745_v35  ;;  %v30752_v35 = vand.u32 4294901760, %v23781_v20  ;;  %v30758_v20 = vand.u32 4294901760, %v23812_v54 }
 0x779   :  { %v30764_v54 = vand.u32 4294901760, %v23843_v55  ;;  %v30770_v55 = vand.u32 4294901760, %v23873_v58  ;;  %v30776_v58 = vand.u32 4294901760, %v30699_v52  ;;  %v30782_v52 = vand.u32 4294901760, %v30707_v56  ;;  %v30787_v56 = vld [vmem:[#allocation7_spill] sm:$0xff] }
 0x77a   :  { %v17654_v33 = vpack.c.bf16 %v30758_v20, %v30757_v10  ;;  %v30802_v10 = vld [vmem:[#allocation30_spill] sm:$0xff]  ;;  %v30803_v20 = vld [vmem:[#allocation40_spill] sm:$0xff] }
 0x77b   :  { %17635 = vmatpush1.bf16.msra.mxu0 %v30732_v41  ;;  %17796 = vmatpush3.bf16.msra.mxu1 %v30733_v12  ;;  %v17642_v41 = vpack.c.bf16 %v30740_v61, %v30739_v2  ;;  %v30741_v12 = vand.u32 4294901760, %v23713_v6  ;;  %v30747_v6 = vand.u32 4294901760, %v30655_v45  ;;  %v30748_v61 = vand.u32 4294901760, %v23760_v39 }
 0x77c   :  { %17637 = vmatprep.subr.bf16.mxu0 %v30734_v8  ;;  %17797 = vmatprep.subr.bf16.mxu1 %v30664_v29  ;;  %v30742_v8 = vand.u32 4294901760, %v23718_v0  ;;  %v17646_v0 = vpack.c.bf16 %v30746_v24, %v30745_v9  ;;  %v17650_v39 = vpack.c.bf16 %v30752_v35, %v30751_v36  ;;  %v30753_v45 = vand.u32 4294901760, %v23786_v28  ;;  %v30793_v36 = vld [vmem:[#allocation46_spill] sm:$0xff]  ;;  %v30794_v35 = vld [vmem:[#allocation25_spill] sm:$0xff] }
 0x77d   :  { %v30759_v28 = vand.u32 4294901760, %v23818_v37  ;;  %v17658_v31 = vpack.c.bf16 %v30764_v54, %v30763_v18  ;;  %v30765_v37 = vand.u32 4294901760, %v23848_v11  ;;  %v17662_v9 = vpack.c.bf16 %v30770_v55, %v30769_v16  ;;  %v24577_v54 = vld [vmem:[%s28702_s1] sm:$0xff] }
 0x77e   :  { %v17801_v44 = vpack.c.bf16 %v30742_v8, %v30741_v12  ;;  %v17804_v12 = vpack.c.bf16 %v30748_v61, %v30747_v6  ;;  %v30771_v11 = vand.u32 4294901760, %v23881_v3  ;;  %v17666_v6 = vpack.c.bf16 %v30776_v58, %v30775_v53  ;;  %v24642_v53 = vld [vmem:[%s28702_s1 + $0x40] sm:$0xff] }
 0x77f   :  { %17639 = vmatpush1.bf16.msra.mxu0 %v30737_v46  ;;  %17799 = vmatpush3.bf16.msra.mxu1 %v30738_v49  ;;  %v30777_v3 = vand.u32 4294901760, %v30703_v25  ;;  %v30783_v25 = vand.u32 4294901760, %v30711_v17  ;;  %v30790_v17 = vld [vmem:[#allocation21_spill] sm:$0xff] }
 0x780   :  { %17641 = vmatprep.subr.bf16.mxu0 %v17640_v50  ;;  %17800 = vmatprep.subr.bf16.mxu1 %v30664_v29 }
 0x782   :  { %6965 = vmatmul.mubr.f32.vlgmr.msra.gmra.mrb[8].mxu0 %v24251_v32  ;;  %15256 = vmatmul.mubr.f32.vlgmr.msra.gmra.mrb[56].mxu1 %v24251_v32  ;;  %v17648_v32 = vpack.c.bf16 %v30750_v57, %v30749_v21  ;;  %v17670_v21 = vpack.c.bf16 %v30782_v52, %v30781_v14  ;;  %v24676_v14 = vld [vmem:[%s28702_s1 + $0x80] sm:$0xff] }
 0x783   :  { %17643 = vmatpush1.bf16.msra.mxu0 %v17642_v41  ;;  %17802 = vmatpush3.bf16.msra.mxu1 %v17801_v44  ;;  %v30754_v41 = vand.u32 4294901760, %v23791_v51  ;;  %v30756_v44 = vand.u32 4294901760, %v23802_v15  ;;  %v30760_v51 = vand.u32 4294901760, %v23823_v42  ;;  %v30762_v15 = vand.u32 4294901760, %v23833_v60 }
 0x784   :  { %17645 = vmatprep.subr.bf16.mxu0 %v17644_v34  ;;  %17803 = vmatprep.subr.bf16.mxu1 %v30664_v29  ;;  %v30766_v42 = vand.u32 4294901760, %v23853_v48  ;;  %v30768_v60 = vand.u32 4294901760, %v23863_v40  ;;  %v30772_v48 = vand.u32 4294901760, %v30657_v63  ;;  %v30774_v40 = vand.u32 4294901760, %v30658_v47 }
 0x785   :  { %7131 = vmatprep.mubr.f32.mxu0 %v30665_v4  ;;  %15290 = vmatprep.mubr.msk.f32.mxu1 %vm19186_vm0, %v30665_v4  ;;  %v17807_v19 = vpack.c.bf16 %v30754_v41, %v30753_v45  ;;  %v17652_v50 = vpack.c.bf16 %v30756_v44, %v30755_v5  ;;  %v17810_v2 = vpack.c.bf16 %v30760_v51, %v30759_v28  ;;  %v30778_v63 = vand.u32 4294901760, %v30702_v23  ;;  %v30796_v45 = vld [vmem:[#allocation51_spill] sm:$0xff]  ;;  %v30797_v41 = vld [vmem:[#allocation49_spill] sm:$0xff]  ;;  %v30799_v5 = vld [vmem:[#allocation32_spill] sm:$0xff] }
 0x786   :  { %v17656_v8 = vpack.c.bf16 %v30762_v15, %v30761_v62  ;;  %v17813_v43 = vpack.c.bf16 %v30766_v42, %v30765_v37  ;;  %v17660_v34 = vpack.c.bf16 %v30768_v60, %v30767_v22  ;;  %v17816_v24 = vpack.c.bf16 %v30772_v48, %v30771_v11  ;;  %v30800_v44 = vld [vmem:[#allocation33_spill] sm:$0xff]  ;;  %v30805_v28 = vld [vmem:[#allocation52_spill] sm:$0xff] }
 0x787   :  { %17647 = vmatpush1.bf16.msra.mxu0 %v17646_v0  ;;  %17805 = vmatpush3.bf16.msra.mxu1 %v17804_v12  ;;  %v17664_v0 = vpack.c.bf16 %v30774_v40, %v30773_v27  ;;  %v17819_v61 = vpack.c.bf16 %v30778_v63, %v30777_v3  ;;  %v30780_v47 = vand.u32 4294901760, %v23918_v13  ;;  %v30784_v23 = vand.u32 4294901760, %v30710_v59  ;;  %v30785_v13 = vld [vmem:[#allocation38_spill] sm:$0xff]  ;;  %v30789_v59 = vld [vmem:[#allocation19_spill] sm:$0xff]  ;;  %v24587_v37 = vld [vmem:[%s28702_s1 + $0x10] sm:$0xff] }
 0x788   :  { %17649 = vmatprep.subr.bf16.mxu0 %v17648_v32  ;;  %17806 = vmatprep.subr.bf16.mxu1 %v30664_v29  ;;  %v30792_v32 = vld [vmem:[#allocation24_spill] sm:$0xff]  ;;  %v29373_v42 = vand.u32 4294901760, %v24577_v54  ;;  %v29371_v60 = vand.u32 4294901760, %v24587_v37  ;;  %v24618_v11 = vld [vmem:[%s28702_s1 + $0x50] sm:$0xff]  ;;  %v24650_v3 = vld [vmem:[%s28702_s1 + $0x58] sm:$0xff]  ;;  %v29359_v63 = vand.u32 4294901760, %v24642_v53 }
 0x789   :  { %v17668_v12 = vpack.c.bf16 %v30780_v47, %v30779_v1  ;;  %v17822_v57 = vpack.c.bf16 %v30784_v23, %v30783_v25  ;;  %v24594_v22 = vld [vmem:[%s28702_s1 + $0x28] sm:$0xff]  ;;  %v29366_v27 = vand.u32 4294901760, %v24618_v11  ;;  %v24632_v40 = vld [vmem:[%s28702_s1 + $0x30] sm:$0xff]  ;;  %v29358_v1 = vand.u32 4294901760, %v24650_v3  ;;  %v24690_v23 = vld [vmem:[%s28702_s1 + $0x60] sm:$0xff] }
 0x78a   :  { %v29370_v16 = vand.u32 4294901760, %v24594_v22  ;;  %v29365_v58 = vand.u32 4294901760, %v24632_v40  ;;  %v29356_v25 = vand.u32 4294901760, %v24676_v14 }
 0x78b   :  { %17651 = vmatpush1.bf16.msra.mxu0 %v17650_v39  ;;  %17808 = vmatpush3.bf16.msra.mxu1 %v17807_v19  ;;  %v30795_v39 = vld [vmem:[#allocation48_spill] sm:$0xff]  ;;  %v30798_v19 = vld [vmem:[#allocation26_spill] sm:$0xff]  ;;  %v24683_v52 = vpack.c.bf16 %v29358_v1, %v29359_v63 }
 0x78c   :  { %17653 = vmatprep.subr.bf16.mxu0 %v17652_v50  ;;  %17809 = vmatprep.subr.bf16.mxu1 %v30664_v29  ;;  %v30801_v50 = vld [vmem:[#allocation10_spill] sm:$0xff]  ;;  %v24625_v48 = vpack.c.bf16 %v29370_v16, %v29371_v60 }
 0x78d   :  { %30811 = vst [vmem:[#allocation31_spill] sm:$0xff] %v24683_v52  ;;  %v24847_v63 = vld [vmem:[%s28702_s1 + $0xf8] sm:$0xff] }
 0x78e   :  { %30808 = vst [vmem:[#allocation53_spill] sm:$0xff] %v24625_v48 }
 0x78f   :  { %17655 = vmatpush1.bf16.msra.mxu0 %v17654_v33  ;;  %17811 = vmatpush3.bf16.msra.mxu1 %v17810_v2  ;;  %v30804_v33 = vld [vmem:[#allocation50_spill] sm:$0xff] }
 0x790   :  { %17657 = vmatprep.subr.bf16.mxu0 %v17656_v8  ;;  %17812 = vmatprep.subr.bf16.mxu1 %v30664_v29 }
 0x793   :  { %17659 = vmatpush1.bf16.msra.mxu0 %v17658_v31  ;;  %17814 = vmatpush3.bf16.msra.mxu1 %v17813_v43  ;;  %v24582_v31 = vld [vmem:[%s28702_s1 + $0x18] sm:$0xff] }
 0x794   :  { %17661 = vmatprep.subr.bf16.mxu0 %v17660_v34  ;;  %17815 = vmatprep.subr.bf16.mxu1 %v30664_v29  ;;  %v29372_v43 = vand.u32 4294901760, %v24582_v31 }
 0x796   :  { %v24608_v55 = vpack.c.bf16 %v29372_v43, %v29373_v42 }
 0x797   :  { %17663 = vmatpush1.bf16.msra.mxu0 %v17662_v9  ;;  %17817 = vmatpush3.bf16.msra.mxu1 %v17816_v24  ;;  %v24613_v9 = vld [vmem:[%s28702_s1 + $0x38] sm:$0xff] }
 0x798   :  { %17665 = vmatprep.subr.bf16.mxu0 %v17664_v0  ;;  %17818 = vmatprep.subr.bf16.mxu1 %v30664_v29  ;;  %30807 = vst [vmem:[#allocation12_spill] sm:$0xff] %v24608_v55  ;;  %v29369_v24 = vand.u32 4294901760, %v24613_v9  ;;  %v24637_v0 = vld [vmem:[%s28702_s1 + $0x48] sm:$0xff] }
 0x79b   :  { %17667 = vmatpush1.bf16.msra.mxu0 %v17666_v6  ;;  %17820 = vmatpush3.bf16.msra.mxu1 %v17819_v61  ;;  %v29364_v6 = vand.u32 4294901760, %v24637_v0  ;;  %v24658_v61 = vpack.c.bf16 %v29366_v27, %v29369_v24  ;;  %v24876_v27 = vld [vmem:[%s28702_s1 + $0x100] sm:$0xff]  ;;  %v24884_v24 = vld [vmem:[%s28702_s1 + $0x118] sm:$0xff] }
 0x79c   :  { %17669 = vmatprep.subr.bf16.mxu0 %v17668_v12  ;;  %17821 = vmatprep.subr.bf16.mxu1 %v30664_v29  ;;  %v24671_v12 = vld [vmem:[%s28702_s1 + $0x68] sm:$0xff]  ;;  %v29385_v16 = vand.u32 4294901760, %v24876_v27  ;;  %v29384_v43 = vand.u32 4294901760, %v24884_v24 }
 0x79d   :  { %30809 = vst [vmem:[#allocation37_spill] sm:$0xff] %v24658_v61  ;;  %v24666_v47 = vpack.c.bf16 %v29364_v6, %v29365_v58  ;;  %v24866_v6 = vld [vmem:[%s28702_s1 + $0xf0] sm:$0xff]  ;;  %v24871_v58 = vld [vmem:[%s28702_s1 + $0x108] sm:$0xff] }
 0x79f   :  { %17671 = vmatpush1.bf16.msra.mxu0 %v17670_v21  ;;  %17823 = vmatpush3.bf16.msra.mxu1 %v17822_v57  ;;  %30810 = vst [vmem:[#allocation29_spill] sm:$0xff] %v24666_v47  ;;  %v29357_v21 = vand.u32 4294901760, %v24671_v12  ;;  %v24695_v57 = vld [vmem:[%s28702_s1 + $0x78] sm:$0xff] }
 0x7a0   :  { %17673 = vmatprep.subr.bf16.mxu0 %v30713_v38  ;;  %17824 = vmatprep.subr.bf16.mxu1 %v30664_v29  ;;  %v30791_v38 = vld [vmem:[#allocation22_spill] sm:$0xff] }
 0x7a2   :  { %7133 = vmatmul.mubr.f32.vlgmr.msra.gmra.mrb[8].mxu0 %v24241_v30  ;;  %15291 = vmatmul.mubr.f32.vlgmr.msra.gmra.mrb[58].mxu1 %v24241_v30 }
 0x7a3   :  { %17675 = vmatpush1.bf16.msra.mxu0 %v30785_v13  ;;  %17826 = vmatpush3.bf16.msra.mxu1 %v30786_v26  ;;  %v24700_v13 = vld [vmem:[%s28702_s1 + $0x70] sm:$0xff]  ;;  %v29355_v26 = vand.u32 4294901760, %v24690_v23 }
 0x7a4   :  { %17677 = vmatprep.subr.bf16.mxu0 %v30787_v56  ;;  %17827 = vmatprep.subr.bf16.mxu1 %v30664_v29  ;;  %v29354_v56 = vand.u32 4294901760, %v24695_v57 }
 0x7a5   :  { %7235 = vmatprep.mubr.f32.mxu0 %v30665_v4  ;;  %15325 = vmatprep.mubr.msk.f32.mxu1 %vm19186_vm0, %v30665_v4 }
 0x7a7   :  { %17679 = vmatpush1.bf16.msra.mxu0 %v30788_v7  ;;  %17829 = vmatpush3.bf16.msra.mxu1 %v30789_v59  ;;  %v24708_v7 = vld [vmem:[%s28702_s1 + $0x88] sm:$0xff]  ;;  %v29351_v59 = vand.u32 4294901760, %v24700_v13 }
 0x7a8   :  { %17681 = vmatprep.subr.bf16.mxu0 %v30790_v17  ;;  %17830 = vmatprep.subr.bf16.mxu1 %v30664_v29  ;;  %v24716_v17 = vpack.c.bf16 %v29356_v25, %v29357_v21 }
 0x7aa   :  { %30812 = vst [vmem:[#allocation13_spill] sm:$0xff] %v24716_v17 }
 0x7ab   :  { %17683 = vmatpush1.bf16.msra.mxu0 %v30791_v38  ;;  %17832 = vmatpush3.bf16.msra.mxu1 %v30792_v32  ;;  %v29350_v38 = vand.u32 4294901760, %v24708_v7 }
 0x7ac   :  { %17685 = vmatprep.subr.bf16.mxu0 %v30793_v36  ;;  %17833 = vmatprep.subr.bf16.mxu1 %v30664_v29  ;;  %v24724_v36 = vpack.c.bf16 %v29354_v56, %v29355_v26  ;;  %v24826_v56 = vld [vmem:[%s28702_s1 + $0xe8] sm:$0xff] }
 0x7ad   :  { %v29367_v21 = vand.u32 4294901760, %v24826_v56 }
 0x7ae   :  { %30813 = vst [vmem:[#allocation6_spill] sm:$0xff] %v24724_v36 }
 0x7af   :  { %17687 = vmatpush1.bf16.msra.mxu0 %v30794_v35  ;;  %17835 = vmatpush3.bf16.msra.mxu1 %v30795_v39  ;;  %v24729_v35 = vld [vmem:[%s28702_s1 + $0x98] sm:$0xff]  ;;  %v24734_v39 = vld [vmem:[%s28702_s1 + $0xb0] sm:$0xff] }
 0x7b0   :  { %17689 = vmatprep.subr.bf16.mxu0 %v30796_v45  ;;  %17836 = vmatprep.subr.bf16.mxu1 %v30664_v29 }
 0x7b3   :  { %17691 = vmatpush1.bf16.msra.mxu0 %v30797_v41  ;;  %17838 = vmatpush3.bf16.msra.mxu1 %v30798_v19  ;;  %v24743_v19 = vpack.c.bf16 %v29350_v38, %v29351_v59  ;;  %v24813_v38 = vld [vmem:[%s28702_s1 + $0xd8] sm:$0xff]  ;;  %v24818_v59 = vld [vmem:[%s28702_s1 + $0xd0] sm:$0xff] }
 0x7b4   :  { %17693 = vmatprep.subr.bf16.mxu0 %v30799_v5  ;;  %17839 = vmatprep.subr.bf16.mxu1 %v30664_v29  ;;  %v29349_v5 = vand.u32 4294901760, %v24729_v35  ;;  %v29368_v26 = vand.u32 4294901760, %v24818_v59 }
 0x7b5   :  { %30815 = vst [vmem:[#allocation44_spill] sm:$0xff] %v24743_v19 }
 0x7b7   :  { %17695 = vmatpush1.bf16.msra.mxu0 %v30800_v44  ;;  %17841 = vmatpush3.bf16.msra.mxu1 %v30801_v50  ;;  %v29346_v44 = vand.u32 4294901760, %v24734_v39  ;;  %v24750_v50 = vld [vmem:[%s28702_s1 + $0x90] sm:$0xff] }
 0x7b8   :  { %17697 = vmatprep.subr.bf16.mxu0 %v30802_v10  ;;  %17842 = vmatprep.subr.bf16.mxu1 %v30664_v29  ;;  %v24755_v10 = vld [vmem:[%s28702_s1 + $0xa8] sm:$0xff] }
 0x7bb   :  { %17699 = vmatpush1.bf16.msra.mxu0 %v30803_v20  ;;  %17844 = vmatpush3.bf16.msra.mxu1 %v30804_v33  ;;  %v24760_v20 = vld [vmem:[%s28702_s1 + $0xa0] sm:$0xff]  ;;  %v29348_v33 = vand.u32 4294901760, %v24750_v50 }
 0x7bc   :  { %17701 = vmatprep.subr.bf16.mxu0 %v30805_v28  ;;  %17845 = vmatprep.subr.bf16.mxu1 %v30664_v29  ;;  %v29347_v28 = vand.u32 4294901760, %v24755_v10 }
 0x7bf   :  { %17703 = vmatpush1.bf16.msra.mxu0 %v30737_v46  ;;  %17847 = vmatpush3.bf16.msra.mxu1 %v30738_v49  ;;  %v24565_v46 = vld [vmem:[%s28702_s1 + $0x8] sm:$0xff]  ;;  %v24570_v49 = vld [vmem:[%s28702_s1 + $0x20] sm:$0xff] }
 0x7c0   :  { %18040 = vmatprep.subr.bf16.mxu1 %v30664_v29  ;;  %v29374_v18 = vand.u32 4294901760, %v24570_v49 }
 0x7c2   :  { %7237 = vmatmul.mubr.f32.vlgmr.msra.gmra.mrb[8].mxu0 %v24241_v30  ;;  %15326 = vmatmul.mubr.f32.vlgmr.msra.gmra.mrb[60].mxu1 %v24241_v30  ;;  %v29379_v30 = vand.u32 4294901760, %v24565_v46 }
 0x7c3   :  { %8059 = vmatprep.mubr.f32.mxu0 %v30665_v4  ;;  %15360 = vmatprep.mubr.msk.f32.mxu1 %vm19186_vm0, %v30665_v4 }
 0x7c4   :  { %v24601_v34 = vpack.c.bf16 %v29374_v18, %v29379_v30  ;;  %18042 = vmatpush3.bf16.msra.mxu1 %v24625_v48  ;;  %v24905_v18 = vld [vmem:[%s28702_s1 + $0x128] sm:$0xff]  ;;  %v24924_v30 = vld [vmem:[%s28702_s1 + $0x120] sm:$0xff] }
 0x7c5   :  { %18043 = vmatprep.subr.bf16.mxu1 %v30664_v29 }
 0x7c6   :  { %30806 = vst [vmem:[#allocation14_spill] sm:$0xff] %v24601_v34  ;;  %17849 = vmatprep.subr.bf16.mxu0 %v24601_v34  ;;  %v30837_v34 = vand.u32 4294901760, %v24637_v0 }
 0x7c7   :  { %17851 = vmatpush1.bf16.msra.mxu0 %v24608_v55  ;;  %v30836_v55 = vand.u32 4294901760, %v24632_v40 }
 0x7c8   :  { %17853 = vmatprep.subr.bf16.mxu0 %v24658_v61  ;;  %18045 = vmatpush3.bf16.msra.mxu1 %v24683_v52  ;;  %v30835_v61 = vand.u32 4294901760, %v24618_v11  ;;  %v25006_v4 = vsub.f32 %v24637_v0, %v30837_v34  ;;  %v30844_v0 = vand.u32 4294901760, %v24690_v23 }
 0x7c9   :  { %18046 = vmatprep.subr.bf16.mxu1 %v30664_v29 }
 0x7ca   :  { %v24996_v48 = vsub.f32 %v24618_v11, %v30835_v61  ;;  %v30841_v61 = vand.u32 4294901760, %v24671_v12 }
 0x7cb   :  { %17855 = vmatpush1.bf16.msra.mxu0 %v24666_v47  ;;  %v30829_v47 = vand.u32 4294901760, %v24582_v31 }
 0x7cc   :  { %17857 = vmatprep.subr.bf16.mxu0 %v24716_v17  ;;  %18048 = vmatpush3.bf16.msra.mxu1 %v24743_v19  ;;  %v30828_v17 = vand.u32 4294901760, %v24577_v54 }
 0x7cd   :  { %18049 = vmatprep.subr.bf16.mxu1 %v30664_v29 }
 0x7ce   :  { %v24959_v52 = vsub.f32 %v24577_v54, %v30828_v17  ;;  %v7958_v54 = vld [vmem:[%s28702_s1 + $0x158] sm:$0xff] }
 0x7cf   :  { %17859 = vmatpush1.bf16.msra.mxu0 %v24724_v36  ;;  %v8019_v17 = vand.u32 4294901760, %v7958_v54 }
 0x7f5   :  { %v7330_v51 = vpop.f32.mrb[50].mxu1 }
 0x7f6   :  { %v15152_v2 = vpop.f32.mrb[51].mxu1 }
 0x7f7   :  { %v29353_v2 = vand.u32 4294901760, %v24760_v20 }
 0x815   :  { %v7481_v62 = vpop.f32.mrb[52].mxu1 }
 0x816   :  { %v7482_v15 = vadd.f32 %v7481_v62, %v7330_v51  ;;  %v15187_v8 = vpop.f32.mrb[53].mxu1  ;;  %v24768_v51 = vld [vmem:[%s28702_s1 + $0xb8] sm:$0xff]  ;;  %v24776_v62 = vpack.c.bf16 %v29346_v44, %v29349_v5  ;;  %v24808_v5 = vld [vmem:[%s28702_s1 + $0xc0] sm:$0xff] }
 0x817   :  { %v24784_v8 = vpack.c.bf16 %v29347_v28, %v29348_v33 }
 0x818   :  { %30816 = vst [vmem:[#allocation45_spill] sm:$0xff] %v24776_v62  ;;  %17861 = vmatprep.subr.bf16.mxu0 %v24776_v62  ;;  %v30826_v62 = vand.u32 4294901760, %v24570_v49 }
 0x819   :  { %30817 = vst [vmem:[#allocation5_spill] sm:$0xff] %v24784_v8  ;;  %17863 = vmatpush1.bf16.msra.mxu0 %v24784_v8 }
 0x81a   :  { %v24951_v19 = vsub.f32 %v24570_v49, %v30826_v62  ;;  %v30831_v62 = vand.u32 4294901760, %v24594_v22 }
 0x835   :  { %v7585_v32 = vpop.f32.mrb[54].mxu1 }
 0x836   :  { %v24736_v45 = vadd.f32 %v7585_v32, %v7482_v15  ;;  %v15222_v41 = vpop.f32.mrb[55].mxu1  ;;  %v29352_v15 = vand.u32 4294901760, %v24768_v51  ;;  %v24789_v32 = vld [vmem:[%s28702_s1 + $0xc8] sm:$0xff] }
 0x837   :  { %v24794_v41 = vld [vmem:[%s28702_s1 + $0xe0] sm:$0xff]  ;;  %v29361_v28 = vand.u32 4294901760, %v24789_v32 }
 0x838   :  { %30814 = vst [vmem:[#allocation11_spill] sm:$0xff] %v24736_v45  ;;  %v24801_v44 = vpack.c.bf16 %v29352_v15, %v29353_v2  ;;  %v29360_v33 = vand.u32 4294901760, %v24794_v41  ;;  %v29363_v15 = vand.u32 4294901760, %v24808_v5  ;;  %v29362_v2 = vand.u32 4294901760, %v24813_v38 }
 0x839   :  { %v30838_v45 = vand.u32 4294901760, %v24642_v53 }
 0x83a   :  { %30818 = vst [vmem:[#allocation47_spill] sm:$0xff] %v24801_v44  ;;  %18051 = vmatpush3.bf16.msra.mxu1 %v24801_v44  ;;  %v24834_v25 = vpack.c.bf16 %v29360_v33, %v29361_v28  ;;  %v24842_v1 = vpack.c.bf16 %v29362_v2, %v29363_v15  ;;  %v24852_v33 = vld [vmem:[%s28702_s1 + $0x110] sm:$0xff]  ;;  %v24859_v28 = vpack.c.bf16 %v29367_v21, %v29368_v26  ;;  %v29376_v2 = vand.u32 4294901760, %v24847_v63 }
 0x83b   :  { %18052 = vmatprep.subr.bf16.mxu1 %v30664_v29  ;;  %v29375_v15 = vand.u32 4294901760, %v24852_v33  ;;  %v29378_v21 = vand.u32 4294901760, %v24866_v6  ;;  %v29377_v26 = vand.u32 4294901760, %v24871_v58  ;;  %v30825_v44 = vand.u32 4294901760, %v24565_v46 }
 0x83c   :  { %30819 = vst [vmem:[#allocation16_spill] sm:$0xff] %v24834_v25  ;;  %30820 = vst [vmem:[#allocation3_spill] sm:$0xff] %v24842_v1  ;;  %17865 = vmatprep.subr.bf16.mxu0 %v24834_v25 }
 0x83d   :  { %30821 = vst [vmem:[#allocation56_spill] sm:$0xff] %v24859_v28  ;;  %17867 = vmatpush1.bf16.msra.mxu0 %v24842_v1  ;;  %v24892_v60 = vpack.c.bf16 %v29375_v15, %v29376_v2  ;;  %v24900_v42 = vpack.c.bf16 %v29377_v26, %v29378_v21  ;;  %v24910_v15 = vld [vmem:[%s28702_s1 + $0x140] sm:$0xff]  ;;  %v24917_v2 = vpack.c.bf16 %v29384_v43, %v29385_v16  ;;  %v8011_v26 = vand.u32 4294901760, %v24905_v18  ;;  %v7956_v1 = vld [vmem:[%s28702_s1 + $0x148] sm:$0xff] }
 0x83e   :  { %18054 = vmatpush3.bf16.msra.mxu1 %v24859_v28  ;;  %v8015_v21 = vand.u32 4294901760, %v24910_v15  ;;  %v24929_v28 = vld [vmem:[%s28702_s1 + $0x138] sm:$0xff]  ;;  %v8013_v43 = vand.u32 4294901760, %v24924_v30  ;;  %v24946_v8 = vsub.f32 %v24565_v46, %v30825_v44  ;;  %v8858_v36 = vand.u32 4294901760, %v7956_v1 }
 0x83f   :  { %30822 = vst [vmem:[#allocation57_spill] sm:$0xff] %v24892_v60  ;;  %18055 = vmatprep.subr.bf16.mxu1 %v30664_v29  ;;  %30823 = vst [vmem:[#allocation8_spill] sm:$0xff] %v24900_v42  ;;  %17869 = vmatprep.subr.bf16.mxu0 %v24892_v60  ;;  %v24934_v60 = vld [vmem:[%s28702_s1 + $0x130] sm:$0xff]  ;;  %v8017_v16 = vand.u32 4294901760, %v24929_v28  ;;  %v24964_v46 = vsub.f32 %v24582_v31, %v30829_v47  ;;  %v30830_v44 = vand.u32 4294901760, %v24587_v37 }
 0x840   :  { %30824 = vst [vmem:[#allocation4_spill] sm:$0xff] %v24917_v2  ;;  %v8855_v25 = vand.u32 4294901760, %v24934_v60  ;;  %v7961_v31 = vld [vmem:[%s28702_s1 + $0x170] sm:$0xff] }
 0x841   :  { %17871 = vmatpush1.bf16.msra.mxu0 %v24900_v42  ;;  %v24954_v42 = vpack.c.bf16 %v8015_v21, %v8011_v26  ;;  %v24969_v49 = vsub.f32 %v24587_v37, %v30830_v44  ;;  %v24984_v47 = vpack.c.bf16 %v8017_v16, %v8013_v43  ;;  %v8023_v44 = vand.u32 4294901760, %v7961_v31 }
 0x842   :  { %18057 = vmatpush3.bf16.msra.mxu1 %v24917_v2  ;;  %v24974_v2 = vsub.f32 %v24594_v22, %v30831_v62  ;;  %v24986_v37 = vpack.c.bf16 %v8858_v36, %v8855_v25  ;;  %v30834_v22 = vand.u32 4294901760, %v24613_v9 }
 0x843   :  { %30827 = vst [vmem:[#allocation23_spill] sm:$0xff] %v24954_v42  ;;  %18058 = vmatprep.subr.bf16.mxu1 %v30664_v29  ;;  %17873 = vmatprep.subr.bf16.mxu0 %v24954_v42  ;;  %30832 = vst [vmem:[#allocation43_spill] sm:$0xff] %v24984_v47  ;;  %v25001_v42 = vsub.f32 %v24632_v40, %v30836_v55  ;;  %v25021_v55 = vsub.f32 %v24671_v12, %v30841_v61  ;;  %v30842_v40 = vand.u32 4294901760, %v24676_v14 }
 0x844   :  { %30833 = vst [vmem:[#allocation18_spill] sm:$0xff] %v24986_v37  ;;  %v24991_v62 = vsub.f32 %v24613_v9, %v30834_v22  ;;  %v25011_v9 = vsub.f32 %v24642_v53, %v30838_v45  ;;  %v30840_v22 = vand.u32 4294901760, %v24650_v3  ;;  %v25032_v53 = vsub.f32 %v24690_v23, %v30844_v0 }
 0x845   :  { %v25026_v34 = vsub.f32 %v24676_v14, %v30842_v40  ;;  %17875 = vmatpush1.bf16.msra.mxu0 %v24984_v47  ;;  %v30846_v12 = vand.u32 4294901760, %v24700_v13  ;;  %v30847_v14 = vand.u32 4294901760, %v24708_v7  ;;  %v30848_v23 = vand.u32 4294901760, %v24729_v35 }
 0x846   :  { %30839 = vst [vmem:[#allocation17_spill] sm:$0xff] %v25011_v9  ;;  %v25016_v11 = vsub.f32 %v24650_v3, %v30840_v22  ;;  %v30845_v3 = vand.u32 4294901760, %v24695_v57  ;;  %18060 = vmatpush3.bf16.msra.mxu1 %v24986_v37 }
 0x847   :  { %30843 = vst [vmem:[#allocation34_spill] sm:$0xff] %v25026_v34  ;;  %v25042_v22 = vsub.f32 %v24700_v13, %v30846_v12  ;;  %v25047_v61 = vsub.f32 %v24708_v7, %v30847_v14  ;;  %v25053_v40 = vsub.f32 %v24729_v35, %v30848_v23  ;;  %v30850_v13 = vand.u32 4294901760, %v24750_v50  ;;  %18061 = vmatprep.subr.bf16.mxu1 %v30664_v29 }
 0x848   :  { %v25037_v45 = vsub.f32 %v24695_v57, %v30845_v3  ;;  %v30849_v57 = vand.u32 4294901760, %v24734_v39  ;;  %v30851_v7 = vand.u32 4294901760, %v24755_v10  ;;  %v30852_v35 = vand.u32 4294901760, %v24760_v20 }
 0x849   :  { %v25063_v3 = vsub.f32 %v24750_v50, %v30850_v13  ;;  %v30854_v50 = vand.u32 4294901760, %v24789_v32 }
 0x84a   :  { %v25058_v0 = vsub.f32 %v24734_v39, %v30849_v57  ;;  %v25068_v12 = vsub.f32 %v24755_v10, %v30851_v7  ;;  %v25074_v14 = vsub.f32 %v24760_v20, %v30852_v35  ;;  %v30853_v39 = vand.u32 4294901760, %v24768_v51 }
 0x84b   :  { %v25084_v57 = vsub.f32 %v24789_v32, %v30854_v50  ;;  %v30855_v10 = vand.u32 4294901760, %v24794_v41  ;;  %v30856_v7 = vand.u32 4294901760, %v24808_v5  ;;  %v30857_v35 = vand.u32 4294901760, %v24813_v38 }
 0x84c   :  { %v25079_v23 = vsub.f32 %v24768_v51, %v30853_v39  ;;  %v30858_v39 = vand.u32 4294901760, %v24818_v59  ;;  %v30859_v50 = vand.u32 4294901760, %v24826_v56 }
 0x84d   :  { %v25089_v13 = vsub.f32 %v24794_v41, %v30855_v10  ;;  %v25094_v20 = vsub.f32 %v24808_v5, %v30856_v7  ;;  %v25099_v51 = vsub.f32 %v24813_v38, %v30857_v35  ;;  %v30860_v10 = vand.u32 4294901760, %v24847_v63 }
 0x84e   :  { %v25104_v32 = vsub.f32 %v24818_v59, %v30858_v39  ;;  %v25109_v41 = vsub.f32 %v24826_v56, %v30859_v50  ;;  %v30861_v7 = vand.u32 4294901760, %v24852_v33  ;;  %v30862_v35 = vand.u32 4294901760, %v24866_v6 }
 0x84f   :  { %v25114_v5 = vsub.f32 %v24847_v63, %v30860_v10  ;;  %v30863_v39 = vand.u32 4294901760, %v24871_v58  ;;  %v7957_v63 = vld [vmem:[%s28702_s1 + $0x150] sm:$0xff]  ;;  %v30864_v50 = vand.u32 4294901760, %v24876_v27 }
 0x850   :  { %v25119_v38 = vsub.f32 %v24852_v33, %v30861_v7  ;;  %v25124_v59 = vsub.f32 %v24866_v6, %v30862_v35  ;;  %v30865_v33 = vand.u32 4294901760, %v24884_v24  ;;  %v25145_v6 = vsub.f32 %v24905_v18, %v8011_v26  ;;  %v7960_v35 = vld [vmem:[%s28702_s1 + $0x168] sm:$0xff] }
 0x851   :  { %v25129_v56 = vsub.f32 %v24871_v58, %v30863_v39  ;;  %v25137_v10 = vsub.f32 %v24876_v27, %v30864_v50  ;;  %v25148_v58 = vsub.f32 %v24910_v15, %v8015_v21  ;;  %v7959_v27 = vld [vmem:[%s28702_s1 + $0x160] sm:$0xff]  ;;  %v7962_v39 = vld [vmem:[%s28702_s1 + $0x178] sm:$0xff]  ;;  %v25163_v18 = vsub.f32 %v24929_v28, %v8017_v16 }
 0x852   :  { %v25142_v7 = vsub.f32 %v24884_v24, %v30865_v33  ;;  %30867 = vst [vmem:[#allocation15_spill] sm:$0xff] %v25145_v6  ;;  %v25160_v24 = vsub.f32 %v24924_v30, %v8013_v43  ;;  %v25166_v21 = vsub.f32 %v24934_v60, %v8855_v25  ;;  %v25168_v26 = vsub.f32 %v7956_v1, %v8858_v36 }
 0x853   :  { %30868 = vst [vmem:[#allocation55_spill] sm:$0xff] %v25148_v58  ;;  %30870 = vst [vmem:[#allocation28_spill] sm:$0xff] %v25163_v18  ;;  %v25170_v15 = vpack.c.bf16 %v8023_v44, %v8019_v17  ;;  %v25172_v50 = vsub.f32 %v7958_v54, %v8019_v17  ;;  %v25174_v33 = vsub.f32 %v7961_v31, %v8023_v44  ;;  %v8021_v37 = vand.u32 4294901760, %v7957_v63 }
 0x854   :  { %30866 = vst [vmem:[#allocation54_spill] sm:$0xff] %v25142_v7  ;;  %30869 = vst [vmem:[#allocation35_spill] sm:$0xff] %v25160_v24  ;;  %v8025_v47 = vand.u32 4294901760, %v7960_v35  ;;  %v8861_v58 = vand.u32 4294901760, %v7959_v27  ;;  %v8864_v6 = vand.u32 4294901760, %v7962_v39  ;;  %v29429_v30 = vand.u32 4294901760, %v24946_v8 }
 0x855   :  { %30871 = vst [vmem:[#allocation27_spill] sm:$0xff] %v25166_v21  ;;  %30872 = vst [vmem:[#allocation39_spill] sm:$0xff] %v25168_v26  ;;  %17877 = vmatprep.subr.bf16.mxu0 %v25170_v15  ;;  %v25178_v43 = vsub.f32 %v7957_v63, %v8021_v37  ;;  %v29427_v60 = vand.u32 4294901760, %v24951_v19  ;;  %v29428_v16 = vand.u32 4294901760, %v24959_v52  ;;  %v29434_v1 = vand.u32 4294901760, %v24964_v46 }
 0x856   :  { %30873 = vst [vmem:[#allocation36_spill] sm:$0xff] %v25170_v15  ;;  %30874 = vst [vmem:[#allocation9_spill] sm:$0xff] %v25172_v50  ;;  %v25183_v25 = vpack.c.bf16 %v8025_v47, %v8021_v37  ;;  %v25185_v36 = vsub.f32 %v7960_v35, %v8025_v47  ;;  %v25187_v28 = vpack.c.bf16 %v8864_v6, %v8861_v58  ;;  %v7674_v47 = vpop.f32.mrb[56].mxu1  ;;  %v29440_v35 = vand.u32 4294901760, %v24991_v62 }
 0x857   :  { %30875 = vst [vmem:[#allocation38_spill] sm:$0xff] %v25178_v43  ;;  %v25189_v54 = vsub.f32 %v7959_v27, %v8861_v58  ;;  %v25191_v31 = vsub.f32 %v7962_v39, %v8864_v6  ;;  %v8074_v17 = vsub.f32 %v24946_v8, %v29429_v30  ;;  %v8086_v44 = vsub.f32 %v24951_v19, %v29427_v60  ;;  %v30881_v27 = vld [vmem:[#allocation11_spill] sm:$0xff]  ;;  %v15257_v60 = vpop.f32.mrb[57].mxu1 }
 0x858   :  { %30876 = vst [vmem:[#allocation42_spill] sm:$0xff] %v25183_v25  ;;  %30877 = vst [vmem:[#allocation7_spill] sm:$0xff] %v25185_v36  ;;  %v8080_v37 = vsub.f32 %v24959_v52, %v29428_v16  ;;  %17879 = vmatpush1.bf16.msra.mxu0 %v25183_v25  ;;  %18063 = vmatpush3.bf16.msra.mxu1 %v25187_v28  ;;  %v8092_v63 = vsub.f32 %v24964_v46, %v29434_v1  ;;  %v29438_v6 = vand.u32 4294901760, %v24969_v49 }
 0x859   :  { %30878 = vst [vmem:[#allocation20_spill] sm:$0xff] %v25187_v28  ;;  %30879 = vst [vmem:[#allocation19_spill] sm:$0xff] %v25189_v54  ;;  %v29439_v58 = vand.u32 4294901760, %v24974_v2  ;;  %v25211_v39 = vadd.f32 %v7674_v47, %v30881_v27  ;;  %v8075_v16 = vand.u32 4294901760, %v8074_v17  ;;  %v8087_v30 = vand.u32 4294901760, %v8086_v44  ;;  %18064 = vmatprep.subr.bf16.mxu1 %v30664_v29 }
 0x85a   :  { %30880 = vst [vmem:[#allocation21_spill] sm:$0xff] %v25191_v31  ;;  %v8081_v25 = vand.u32 4294901760, %v8080_v37  ;;  %v8093_v28 = vand.u32 4294901760, %v8092_v63  ;;  %v8913_v1 = vsub.f32 %v24969_v49, %v29438_v6  ;;  %v8098_v47 = vsub.f32 %v24991_v62, %v29440_v35 }
 0x85b   :  { %v8920_v15 = vsub.f32 %v24974_v2, %v29439_v58  ;;  %v17880_v27 = vpack.c.bf16 %v8087_v30, %v8075_v16  ;;  %v29441_v60 = vand.u32 4294901760, %v24996_v48  ;;  %v29442_v17 = vand.u32 4294901760, %v25001_v42 }
 0x85c   :  { %v29443_v44 = vand.u32 4294901760, %v25006_v4  ;;  %v25226_v37 = vpack.c.bf16 %v8093_v28, %v8081_v25  ;;  %v8914_v63 = vand.u32 4294901760, %v8913_v1  ;;  %v8099_v6 = vand.u32 4294901760, %v8098_v47 }
 0x85d   :  { %v8921_v29 = vand.u32 4294901760, %v8920_v15  ;;  %17881 = vmatprep.subr.bf16.mxu0 %v17880_v27  ;;  %v8110_v58 = vsub.f32 %v24996_v48, %v29441_v60  ;;  %v8104_v30 = vsub.f32 %v25001_v42, %v29442_v17  ;;  %v29444_v35 = vand.u32 4294901760, %v25011_v9 }
 0x85e   :  { %30882 = vst [vmem:[#allocation22_spill] sm:$0xff] %v25226_v37  ;;  %v8116_v16 = vsub.f32 %v25006_v4, %v29443_v44  ;;  %v29447_v15 = vand.u32 4294901760, %v25016_v11  ;;  %v29448_v1 = vand.u32 4294901760, %v25021_v55  ;;  %v29449_v28 = vand.u32 4294901760, %v25026_v34 }
 0x85f   :  { %v25238_v25 = vpack.c.bf16 %v8921_v29, %v8914_v63  ;;  %v8111_v47 = vand.u32 4294901760, %v8110_v58  ;;  %v8105_v27 = vand.u32 4294901760, %v8104_v30  ;;  %v8927_v17 = vsub.f32 %v25011_v9, %v29444_v35 }
 0x860   :  { %v8117_v60 = vand.u32 4294901760, %v8116_v16  ;;  %v8934_v44 = vsub.f32 %v25016_v11, %v29447_v15  ;;  %v8122_v29 = vsub.f32 %v25021_v55, %v29448_v1  ;;  %v8134_v63 = vsub.f32 %v25026_v34, %v29449_v28 }
 0x861   :  { %30883 = vst [vmem:[#allocation24_spill] sm:$0xff] %v25238_v25  ;;  %v29453_v58 = vand.u32 4294901760, %v25032_v53  ;;  %v25256_v30 = vpack.c.bf16 %v8111_v47, %v8099_v6  ;;  %v8928_v25 = vand.u32 4294901760, %v8927_v17  ;;  %v29452_v35 = vand.u32 4294901760, %v25037_v45 }
 0x862   :  { %v25258_v16 = vpack.c.bf16 %v8117_v60, %v8105_v27  ;;  %v8935_v37 = vand.u32 4294901760, %v8934_v44  ;;  %v8123_v9 = vand.u32 4294901760, %v8122_v29  ;;  %v8135_v15 = vand.u32 4294901760, %v8134_v63 }
 0x863   :  { %30884 = vst [vmem:[#allocation46_spill] sm:$0xff] %v25256_v30  ;;  %v8128_v1 = vsub.f32 %v25032_v53, %v29453_v58  ;;  %v8140_v28 = vsub.f32 %v25037_v45, %v29452_v35  ;;  %v29454_v34 = vand.u32 4294901760, %v25042_v22  ;;  %v29455_v6 = vand.u32 4294901760, %v25047_v61 }
 0x864   :  { %30885 = vst [vmem:[#allocation25_spill] sm:$0xff] %v25258_v16  ;;  %v29456_v60 = vand.u32 4294901760, %v25053_v40  ;;  %v25270_v17 = vpack.c.bf16 %v8935_v37, %v8928_v25  ;;  %v25272_v47 = vpack.c.bf16 %v8135_v15, %v8123_v9  ;;  %v29457_v27 = vand.u32 4294901760, %v25058_v0 }
 0x865   :  { %v8129_v44 = vand.u32 4294901760, %v8128_v1  ;;  %v8141_v29 = vand.u32 4294901760, %v8140_v28  ;;  %v8941_v63 = vsub.f32 %v25042_v22, %v29454_v34  ;;  %v8948_v35 = vsub.f32 %v25047_v61, %v29455_v6 }
 0x866   :  { %30886 = vst [vmem:[#allocation48_spill] sm:$0xff] %v25270_v17  ;;  %30887 = vst [vmem:[#allocation51_spill] sm:$0xff] %v25272_v47  ;;  %v8146_v58 = vsub.f32 %v25053_v40, %v29456_v60  ;;  %v8158_v9 = vsub.f32 %v25058_v0, %v29457_v27  ;;  %v29458_v37 = vand.u32 4294901760, %v25063_v3  ;;  %v29459_v25 = vand.u32 4294901760, %v25068_v12 }
 0x867   :  { %v29460_v15 = vand.u32 4294901760, %v25074_v14  ;;  %v25290_v1 = vpack.c.bf16 %v8141_v29, %v8129_v44  ;;  %v8942_v28 = vand.u32 4294901760, %v8941_v63  ;;  %v8949_v34 = vand.u32 4294901760, %v8948_v35 }
 0x868   :  { %v8147_v47 = vand.u32 4294901760, %v8146_v58  ;;  %v8159_v6 = vand.u32 4294901760, %v8158_v9  ;;  %v8152_v60 = vsub.f32 %v25063_v3, %v29458_v37  ;;  %v8164_v27 = vsub.f32 %v25068_v12, %v29459_v25 }
 0x869   :  { %30888 = vst [vmem:[#allocation49_spill] sm:$0xff] %v25290_v1  ;;  %v8955_v17 = vsub.f32 %v25074_v14, %v29460_v15  ;;  %v25301_v16 = vpack.c.bf16 %v8949_v34, %v8942_v28  ;;  %v29461_v44 = vand.u32 4294901760, %v25079_v23  ;;  %v29462_v35 = vand.u32 4294901760, %v25084_v57 }
 0x86a   :  { %v29463_v58 = vand.u32 4294901760, %v25089_v13  ;;  %v25306_v29 = vpack.c.bf16 %v8159_v6, %v8147_v47  ;;  %v8153_v63 = vand.u32 4294901760, %v8152_v60  ;;  %v8165_v9 = vand.u32 4294901760, %v8164_v27 }
 0x86b   :  { %30889 = vst [vmem:[#allocation26_spill] sm:$0xff] %v25301_v16  ;;  %v8956_v37 = vand.u32 4294901760, %v8955_v17  ;;  %v8962_v25 = vsub.f32 %v25079_v23, %v29461_v44  ;;  %v8170_v34 = vsub.f32 %v25084_v57, %v29462_v35  ;;  %v29464_v15 = vand.u32 4294901760, %v25094_v20 }
 0x86c   :  { %30890 = vst [vmem:[#allocation32_spill] sm:$0xff] %v25306_v29  ;;  %v8182_v28 = vsub.f32 %v25089_v13, %v29463_v58  ;;  %v25318_v16 = vpack.c.bf16 %v8165_v9, %v8153_v63  ;;  %v29465_v6 = vand.u32 4294901760, %v25099_v51  ;;  %v29466_v60 = vand.u32 4294901760, %v25104_v32 }
 0x86d   :  { %v29467_v17 = vand.u32 4294901760, %v25109_v41  ;;  %v8963_v47 = vand.u32 4294901760, %v8962_v25  ;;  %v8171_v27 = vand.u32 4294901760, %v8170_v34  ;;  %v8176_v35 = vsub.f32 %v25094_v20, %v29464_v15 }
 0x86e   :  { %30891 = vst [vmem:[#allocation33_spill] sm:$0xff] %v25318_v16  ;;  %v8183_v44 = vand.u32 4294901760, %v8182_v28  ;;  %v8188_v58 = vsub.f32 %v25099_v51, %v29465_v6  ;;  %v8969_v63 = vsub.f32 %v25104_v32, %v29466_v60  ;;  %v29469_v25 = vand.u32 4294901760, %v25114_v5 }
 0x86f   :  { %v8976_v9 = vsub.f32 %v25109_v41, %v29467_v17  ;;  %v25336_v34 = vpack.c.bf16 %v8963_v47, %v8956_v37  ;;  %v8177_v16 = vand.u32 4294901760, %v8176_v35  ;;  %v29468_v15 = vand.u32 4294901760, %v25119_v38 }
 0x870   :  { %v25338_v28 = vpack.c.bf16 %v8183_v44, %v8171_v27  ;;  %v8189_v29 = vand.u32 4294901760, %v8188_v58  ;;  %v8970_v1 = vand.u32 4294901760, %v8969_v63  ;;  %v8194_v60 = vsub.f32 %v25114_v5, %v29469_v25 }
 0x871   :  { %30892 = vst [vmem:[#allocation10_spill] sm:$0xff] %v25336_v34  ;;  %v8977_v6 = vand.u32 4294901760, %v8976_v9  ;;  %v8206_v17 = vsub.f32 %v25119_v38, %v29468_v15  ;;  %v29470_v30 = vand.u32 4294901760, %v25124_v59  ;;  %v29471_v37 = vand.u32 4294901760, %v25129_v56 }
 0x872   :  { %30893 = vst [vmem:[#allocation30_spill] sm:$0xff] %v25338_v28  ;;  %v29472_v44 = vand.u32 4294901760, %v25137_v10  ;;  %v25350_v35 = vpack.c.bf16 %v8189_v29, %v8177_v16  ;;  %v8195_v58 = vand.u32 4294901760, %v8194_v60  ;;  %v29473_v27 = vand.u32 4294901760, %v25142_v7 }
 0x873   :  { %v25352_v47 = vpack.c.bf16 %v8977_v6, %v8970_v1  ;;  %v8207_v63 = vand.u32 4294901760, %v8206_v17  ;;  %v8200_v9 = vsub.f32 %v25124_v59, %v29470_v30  ;;  %v8212_v15 = vsub.f32 %v25129_v56, %v29471_v37  ;;  %v30896_v1 = vld [vmem:[#allocation15_spill] sm:$0xff] }
 0x874   :  { %30894 = vst [vmem:[#allocation40_spill] sm:$0xff] %v25350_v35  ;;  %v8983_v25 = vsub.f32 %v25137_v10, %v29472_v44  ;;  %v8990_v16 = vsub.f32 %v25142_v7, %v29473_v27  ;;  %v29476_v29 = vand.u32 4294901760, %v30896_v1  ;;  %v30897_v6 = vld [vmem:[#allocation55_spill] sm:$0xff]  ;;  %v29479_v17 = vand.u32 4294901760, %v25160_v24 }
 0x875   :  { %30895 = vst [vmem:[#allocation50_spill] sm:$0xff] %v25352_v47  ;;  %v29477_v60 = vand.u32 4294901760, %v30897_v6  ;;  %v25370_v47 = vpack.c.bf16 %v8207_v63, %v8195_v58  ;;  %v8201_v30 = vand.u32 4294901760, %v8200_v9  ;;  %v8213_v35 = vand.u32 4294901760, %v8212_v15  ;;  %v7793_v63 = vpop.f32.mrb[58].mxu1 }
 0x876   :  { %v8984_v28 = vand.u32 4294901760, %v8983_v25  ;;  %v8991_v37 = vand.u32 4294901760, %v8990_v16  ;;  %v8218_v44 = vsub.f32 %v30896_v1, %v29476_v29  ;;  %v8224_v34 = vsub.f32 %v25160_v24, %v29479_v17 }
 0x877   :  { %30898 = vst [vmem:[#allocation52_spill] sm:$0xff] %v25370_v47  ;;  %v8230_v27 = vsub.f32 %v30897_v6, %v29477_v60  ;;  %v25381_v7 = vpack.c.bf16 %v8213_v35, %v8201_v30  ;;  %v29482_v58 = vand.u32 4294901760, %v25163_v18  ;;  %v29480_v15 = vand.u32 4294901760, %v25166_v21  ;;  %v15292_v6 = vpop.f32.mrb[59].mxu1 }
 0x878   :  { %v29481_v25 = vand.u32 4294901760, %v25168_v26  ;;  %v25386_v9 = vpack.c.bf16 %v8991_v37, %v8984_v28  ;;  %v8219_v16 = vand.u32 4294901760, %v8218_v44  ;;  %v8225_v47 = vand.u32 4294901760, %v8224_v34 }
 0x879   :  { %v8231_v29 = vand.u32 4294901760, %v8230_v27  ;;  %v7794_v60 = vadd.f32 %v7793_v63, %v25211_v39  ;;  %v8236_v30 = vsub.f32 %v25163_v18, %v29482_v58  ;;  %v8997_v35 = vsub.f32 %v25166_v21, %v29480_v15 }
 0x87a   :  { %30899 = vst [vmem:[#allocation11_spill] sm:$0xff] %v25386_v9  ;;  %v9004_v17 = vsub.f32 %v25168_v26, %v29481_v25  ;;  %v29483_v37 = vand.u32 4294901760, %v25172_v50  ;;  %v29484_v34 = vand.u32 4294901760, %v25174_v33  ;;  %v29485_v39 = vand.u32 4294901760, %v25178_v43 }
 0x87b   :  { %v25398_v28 = vpack.c.bf16 %v8231_v29, %v8219_v16  ;;  %v8237_v44 = vand.u32 4294901760, %v8236_v30  ;;  %v8998_v27 = vand.u32 4294901760, %v8997_v35  ;;  %v29488_v63 = vand.u32 4294901760, %v25185_v36 }
 0x87c   :  { %v9005_v6 = vand.u32 4294901760, %v9004_v17  ;;  %v8242_v15 = vsub.f32 %v25172_v50, %v29483_v37  ;;  %v8254_v29 = vsub.f32 %v25174_v33, %v29484_v34  ;;  %v8248_v16 = vsub.f32 %v25178_v43, %v29485_v39 }
 0x87d   :  { %30900 = vst [vmem:[#allocation15_spill] sm:$0xff] %v25398_v28  ;;  %v29486_v25 = vand.u32 4294901760, %v25189_v54  ;;  %v25414_v58 = vpack.c.bf16 %v8237_v44, %v8225_v47  ;;  %v8260_v17 = vsub.f32 %v25185_v36, %v29488_v63  ;;  %v29487_v35 = vand.u32 4294901760, %v25191_v31  ;;  %v30901_v63 = vld [vmem:[#allocation17_spill] sm:$0xff]  ;;  %v30904_v44 = vld [vmem:[#allocation55_spill] sm:$0xff] }
 0x87e   :  { %v25416_v30 = vpack.c.bf16 %v9005_v6, %v8998_v27  ;;  %v8243_v37 = vand.u32 4294901760, %v8242_v15  ;;  %v8255_v28 = vand.u32 4294901760, %v8254_v29  ;;  %v8249_v9 = vand.u32 4294901760, %v8248_v16  ;;  %v30902_v27 = vld [vmem:[#allocation34_spill] sm:$0xff] }
 0x87f   :  { %v9011_v34 = vsub.f32 %v25189_v54, %v29486_v25  ;;  %v8261_v39 = vand.u32 4294901760, %v8260_v17  ;;  %v9018_v47 = vsub.f32 %v25191_v31, %v29487_v35  ;;  %v13341_v54 = vld [vmem:[%s28703_s0 + $0x38] sm:$0xf] }
 0x880   :  { %v25432_v6 = vpack.c.bf16 %v8255_v28, %v8243_v37  ;;  %v6339_v36 = vunpack.c.l.bf16 %v13341_v54 }
 0x881   :  { %v9012_v15 = vand.u32 4294901760, %v9011_v34  ;;  %v25438_v17 = vpack.c.bf16 %v8261_v39, %v8249_v9  ;;  %v9019_v25 = vand.u32 4294901760, %v9018_v47  ;;  %v13340_v47 = vld [vmem:[%s28703_s0 + $0x30] sm:$0xff] }
 0x882   :  { %v6337_v35 = vunpack.c.l.bf16 %v13340_v47  ;;  %v6338_v28 = vunpack.c.h.bf16 %v13340_v47 }
 0x883   :  { %v25452_v39 = vpack.c.bf16 %v9019_v25, %v9012_v15  ;;  %v30903_v15 = vld [vmem:[#allocation54_spill] sm:$0xff] }
 0x895   :  { %v7238_v16 = vpop.f32.mrb[8].mxu0  ;;  %v7880_v29 = vpop.f32.mrb[60].mxu1 }
 0x896   :  { %v7884_v24 = vadd.f32 %v7238_v16, %v6337_v35  ;;  %v7881_v18 = vadd.f32 %v7880_v29, %v7794_v60  ;;  %v7240_v37 = vpop.f32.mrb[9].mxu0  ;;  %v15327_v21 = vpop.f32.mrb[61].mxu1  ;;  %v19181_v60 = vld [vmem:[%s28704_s2] ss:$0 sm:$0xff] }
 0x897   :  { %v7891_v34 = vadd.f32 %v7240_v37, %v6338_v28  ;;  %v30905_v28 = vld [vmem:[#allocation41_spill] sm:$0xff] }
 0x898   :  { %v13342_v26 = vmul.f32 -1.442695, %v7884_v24  ;;  %v7898_v21 = vadd.f32 %v19181_v60, %v7881_v18  ;;  %v30908_v60 = vld [vmem:[#allocation24_spill] sm:$0xff] }
 0x899   :  { %v13343_v50 = vmul.f32 -1.442695, %v7891_v34 }
 0x89a   :  { %19134 = vpow2.f32 %v13342_v26 }
 0x89b   :  { %19136 = vpow2.f32 %v13343_v50 }
 0x8a4   :  { %v19135_v9 = vpop.eup %19134 }
 0x8a5   :  { %v7888_v43 = vadd.f32 1.0, %v19135_v9  ;;  %v19137_v25 = vpop.eup %19136 }
 0x8a6   :  { %v7895_v31 = vadd.f32 1.0, %v19137_v25  ;;  %v30907_v25 = vld [vmem:[#allocation22_spill] sm:$0xff] }
 0x8a7   :  { %19138 = vrcp.f32 %v7888_v43 }
 0x8a8   :  { %19140 = vrcp.f32 %v7895_v31 }
 0x8b1   :  { %v19139_v24 = vpop.eup %19138 }
 0x8b2   :  { %v7899_v35 = vmul.f32 %v19139_v24, %v7898_v21  ;;  %v19141_v50 = vpop.eup %19140  ;;  %v30909_v21 = vld [vmem:[#allocation46_spill] sm:$0xff]  ;;  %v30910_v24 = vmov 0.0|0.0  }
 0x8b3   :  { %v7902_v29 = vsub.f32 1.0, %v19141_v50  ;;  %v7904_v37 = vmul.f32 %v19141_v50, %v30905_v28  ;;  %v30913_v50 = vld [vmem:[#allocation48_spill] sm:$0xff] }
 0x8b4   :  { %v7900_v26 = vadd.f32 %v7899_v35, %v6339_v36  ;;  %v30911_v35 = vmov 0.0   ;;  %v30917_v28 = vld [vmem:[#allocation32_spill] sm:$0xff] }
 0x8b6   :  { %19142 = vtanh.f32 %v7900_v26  ;;  %v30912_v26 = vld [vmem:[#allocation25_spill] sm:$0xff] }
 0x8c0   :  { %v19143_v43 = vpop.eup %19142 }
 0x8c1   :  { %v7903_v16 = vmul.f32 %v19143_v43, %v7902_v29  ;;  %v30914_v29 = vld [vmem:[#allocation51_spill] sm:$0xff]  ;;  %v30915_v43 = vld [vmem:[#allocation49_spill] sm:$0xff] }
 0x8c3   :  { %v25492_v34 = vadd.f32 %v7904_v37, %v7903_v16  ;;  %v30916_v16 = vld [vmem:[#allocation26_spill] sm:$0xff]  ;;  %v30918_v37 = vld [vmem:[#allocation33_spill] sm:$0xff] }
 0x8c5   :  { %30906 = vst [vmem:[#allocation17_spill] sm:$0xff] %v25492_v34  ;;  %v7906_v54 = vpack.c.bf16 %v25492_v34, %v25492_v34  ;;  %v25497_v9 = vand.u32 4294901760, %v25492_v34 }
 0x8c7   :  { %13344 = vst [vmem:[%s28705_s5 + $0x10] sm:$0xf] %v7906_v54  ;;  %v25504_v18 = vsub.f32 %v25492_v34, %v25497_v9  ;;  %v30919_v54 = vld [vmem:[#allocation10_spill] sm:$0xff]  ;;  %v30970_v34 = vld [vmem:[#allocation47_spill] sm:$0xff] }
 0x8c9   :  { %v25507_v36 = vand.u32 4294901760, %v25504_v18 }
 0x8cb   :  { %v8063_v31 = vsub.f32 %v25504_v18, %v25507_v36 }
 0x8cd   :  { %v8064_v47 = vand.u32 4294901760, %v8063_v31  ;;  %v30920_v31 = vld [vmem:[#allocation30_spill] sm:$0xff] }
 0x8cf   :  { %8065 = vmatmul.mubr.f32.vlgmr.msra.gmra.mrb[10].mxu0 %v8064_v47  ;;  %15361 = vmatmul.mubr.f32.vlgmr.msra.gmra.mrb[62].mxu1 %v8064_v47  ;;  %v30921_v47 = vld [vmem:[#allocation40_spill] sm:$0xff] }
 0x8d0   :  { %17883 = vmatpush1.bf16.msra.mxu0 %v30907_v25  ;;  %18066 = vmatpush3.bf16.msra.mxu1 %v30908_v60  ;;  %v30922_v25 = vld [vmem:[#allocation50_spill] sm:$0xff]  ;;  %v30923_v60 = vld [vmem:[#allocation52_spill] sm:$0xff] }
 0x8d1   :  { %17885 = vmatprep.subr.bf16.mxu0 %v30909_v21  ;;  %18067 = vmatprep.subr.bf16.mxu1 %v30910_v24  ;;  %v30924_v21 = vld [vmem:[#allocation11_spill] sm:$0xff] }
 0x8d2   :  { %8295 = vmatprep.mubr.f32.mxu0 %v30911_v35  ;;  %15395 = vmatprep.mubr.msk.f32.mxu1 %vm19186_vm0, %v30911_v35 }
 0x8d4   :  { %17887 = vmatpush1.bf16.msra.mxu0 %v30912_v26  ;;  %18069 = vmatpush3.bf16.msra.mxu1 %v30913_v50  ;;  %v30925_v26 = vld [vmem:[#allocation15_spill] sm:$0xff]  ;;  %v30932_v50 = vpack.c.bf16 %v30902_v27, %v25021_v55 }
 0x8d5   :  { %17889 = vmatprep.subr.bf16.mxu0 %v30914_v29  ;;  %18070 = vmatprep.subr.bf16.mxu1 %v30910_v24  ;;  %v30933_v29 = vpack.c.bf16 %v25037_v45, %v25032_v53 }
 0x8d8   :  { %17891 = vmatpush1.bf16.msra.mxu0 %v30915_v43  ;;  %18072 = vmatpush3.bf16.msra.mxu1 %v30916_v16  ;;  %v30934_v43 = vpack.c.bf16 %v25047_v61, %v25042_v22  ;;  %v30935_v16 = vpack.c.bf16 %v25058_v0, %v25053_v40 }
 0x8d9   :  { %17893 = vmatprep.subr.bf16.mxu0 %v30917_v28  ;;  %18073 = vmatprep.subr.bf16.mxu1 %v30910_v24  ;;  %v30936_v28 = vpack.c.bf16 %v25068_v12, %v25063_v3 }
 0x8dc   :  { %17895 = vmatpush1.bf16.msra.mxu0 %v30918_v37  ;;  %18075 = vmatpush3.bf16.msra.mxu1 %v30919_v54  ;;  %v30937_v37 = vpack.c.bf16 %v25079_v23, %v25074_v14  ;;  %v30938_v54 = vpack.c.bf16 %v25089_v13, %v25084_v57 }
 0x8dd   :  { %17897 = vmatprep.subr.bf16.mxu0 %v30920_v31  ;;  %18076 = vmatprep.subr.bf16.mxu1 %v30910_v24  ;;  %v30939_v31 = vpack.c.bf16 %v25099_v51, %v25094_v20 }
 0x8e0   :  { %17899 = vmatpush1.bf16.msra.mxu0 %v30921_v47  ;;  %18078 = vmatpush3.bf16.msra.mxu1 %v30922_v25  ;;  %v30940_v47 = vpack.c.bf16 %v25109_v41, %v25104_v32  ;;  %v30941_v25 = vpack.c.bf16 %v25119_v38, %v25114_v5 }
 0x8e1   :  { %17901 = vmatprep.subr.bf16.mxu0 %v30923_v60  ;;  %18079 = vmatprep.subr.bf16.mxu1 %v30910_v24  ;;  %v30942_v60 = vpack.c.bf16 %v25129_v56, %v25124_v59 }
 0x8e4   :  { %17903 = vmatpush1.bf16.msra.mxu0 %v25381_v7  ;;  %18081 = vmatpush3.bf16.msra.mxu1 %v30924_v21  ;;  %v30926_v7 = vpack.c.bf16 %v24951_v19, %v24946_v8  ;;  %v30943_v21 = vpack.c.bf16 %v30903_v15, %v25137_v10 }
 0x8e5   :  { %17905 = vmatprep.subr.bf16.mxu0 %v30925_v26  ;;  %18082 = vmatprep.subr.bf16.mxu1 %v30910_v24  ;;  %v30944_v26 = vpack.c.bf16 %v30904_v44, %v30896_v1 }
 0x8e8   :  { %17907 = vmatpush1.bf16.msra.mxu0 %v25414_v58  ;;  %18084 = vmatpush3.bf16.msra.mxu1 %v25416_v30  ;;  %v30927_v58 = vpack.c.bf16 %v24964_v46, %v24959_v52  ;;  %v30928_v30 = vpack.c.bf16 %v24974_v2, %v24969_v49 }
 0x8e9   :  { %17909 = vmatprep.subr.bf16.mxu0 %v25432_v6  ;;  %18085 = vmatprep.subr.bf16.mxu1 %v30910_v24  ;;  %v30929_v6 = vpack.c.bf16 %v24996_v48, %v24991_v62 }
 0x8ec   :  { %17911 = vmatpush1.bf16.msra.mxu0 %v25438_v17  ;;  %18087 = vmatpush3.bf16.msra.mxu1 %v25452_v39  ;;  %v30930_v17 = vpack.c.bf16 %v25006_v4, %v25001_v42  ;;  %v30931_v39 = vpack.c.bf16 %v25016_v11, %v30901_v63 }
 0x8ed   :  { %17913 = vmatprep.subr.bf16.mxu0 %v30926_v7  ;;  %18088 = vmatprep.subr.bf16.mxu1 %v30910_v24  ;;  %v30945_v7 = vld [vmem:[#allocation28_spill] sm:$0xff] }
 0x8ef   :  { %8297 = vmatmul.mubr.f32.vlgmr.msra.gmra.mrb[10].mxu0 %v25497_v9  ;;  %15396 = vmatmul.mubr.f32.vlgmr.msra.gmra.mrb[64].mxu1 %v25497_v9 }
 0x8f0   :  { %17915 = vmatpush1.bf16.msra.mxu0 %v30927_v58  ;;  %18090 = vmatpush3.bf16.msra.mxu1 %v30928_v30  ;;  %v30946_v58 = vld [vmem:[#allocation35_spill] sm:$0xff] }
 0x8f1   :  { %17917 = vmatprep.subr.bf16.mxu0 %v30929_v6  ;;  %18091 = vmatprep.subr.bf16.mxu1 %v30910_v24  ;;  %v30947_v30 = vpack.c.bf16 %v30945_v7, %v30946_v58  ;;  %v30948_v6 = vld [vmem:[#allocation39_spill] sm:$0xff] }
 0x8f2   :  { %8431 = vmatprep.mubr.f32.mxu0 %v30911_v35  ;;  %15430 = vmatprep.mubr.msk.f32.mxu1 %vm19186_vm0, %v30911_v35 }
 0x8f4   :  { %17919 = vmatpush1.bf16.msra.mxu0 %v30930_v17  ;;  %18093 = vmatpush3.bf16.msra.mxu1 %v30931_v39  ;;  %v30949_v17 = vld [vmem:[#allocation27_spill] sm:$0xff] }
 0x8f5   :  { %17921 = vmatprep.subr.bf16.mxu0 %v30932_v50  ;;  %18094 = vmatprep.subr.bf16.mxu1 %v30910_v24  ;;  %v30950_v39 = vpack.c.bf16 %v30948_v6, %v30949_v17  ;;  %v30951_v50 = vld [vmem:[#allocation9_spill] sm:$0xff] }
 0x8f8   :  { %17923 = vmatpush1.bf16.msra.mxu0 %v30933_v29  ;;  %18096 = vmatpush3.bf16.msra.mxu1 %v30934_v43  ;;  %v30952_v29 = vpack.c.bf16 %v25174_v33, %v30951_v50  ;;  %v30953_v43 = vld [vmem:[#allocation7_spill] sm:$0xff] }
 0x8f9   :  { %17925 = vmatprep.subr.bf16.mxu0 %v30935_v16  ;;  %18097 = vmatprep.subr.bf16.mxu1 %v30910_v24  ;;  %v30954_v16 = vld [vmem:[#allocation38_spill] sm:$0xff] }
 0x8fc   :  { %17927 = vmatpush1.bf16.msra.mxu0 %v30936_v28  ;;  %18099 = vmatpush3.bf16.msra.mxu1 %v30937_v37  ;;  %v30955_v28 = vpack.c.bf16 %v30953_v43, %v30954_v16  ;;  %v30956_v37 = vld [vmem:[#allocation21_spill] sm:$0xff] }
 0x8fd   :  { %17929 = vmatprep.subr.bf16.mxu0 %v30938_v54  ;;  %18100 = vmatprep.subr.bf16.mxu1 %v30910_v24  ;;  %v30957_v54 = vld [vmem:[#allocation19_spill] sm:$0xff] }
 0x900   :  { %17931 = vmatpush1.bf16.msra.mxu0 %v30939_v31  ;;  %18102 = vmatpush3.bf16.msra.mxu1 %v30940_v47  ;;  %v30958_v31 = vpack.c.bf16 %v30956_v37, %v30957_v54  ;;  %v30959_v47 = vld [vmem:[#allocation14_spill] sm:$0xff] }
 0x901   :  { %17933 = vmatprep.subr.bf16.mxu0 %v30941_v25  ;;  %18103 = vmatprep.subr.bf16.mxu1 %v30910_v24  ;;  %v30960_v25 = vld [vmem:[#allocation12_spill] sm:$0xff] }
 0x904   :  { %17935 = vmatpush1.bf16.msra.mxu0 %v30942_v60  ;;  %18105 = vmatpush3.bf16.msra.mxu1 %v30943_v21  ;;  %v30961_v60 = vld [vmem:[#allocation53_spill] sm:$0xff] }
 0x905   :  { %17937 = vmatprep.subr.bf16.mxu0 %v30944_v26  ;;  %18106 = vmatprep.subr.bf16.mxu1 %v30910_v24  ;;  %v30962_v21 = vld [vmem:[#allocation37_spill] sm:$0xff] }
 0x906   :  { %v30963_v26 = vld [vmem:[#allocation29_spill] sm:$0xff] }
 0x908   :  { %17939 = vmatpush1.bf16.msra.mxu0 %v30947_v30  ;;  %18108 = vmatpush3.bf16.msra.mxu1 %v30950_v39  ;;  %v30964_v30 = vld [vmem:[#allocation31_spill] sm:$0xff]  ;;  %v30965_v39 = vld [vmem:[#allocation13_spill] sm:$0xff] }
 0x909   :  { %17941 = vmatprep.subr.bf16.mxu0 %v30952_v29  ;;  %18109 = vmatprep.subr.bf16.mxu1 %v30910_v24  ;;  %v30967_v29 = vld [vmem:[#allocation44_spill] sm:$0xff] }
 0x90c   :  { %17943 = vmatpush1.bf16.msra.mxu0 %v30955_v28  ;;  %18111 = vmatpush3.bf16.msra.mxu1 %v30958_v31  ;;  %v30968_v28 = vld [vmem:[#allocation45_spill] sm:$0xff] }
 0x90d   :  { %17945 = vmatprep.subr.bf16.mxu0 %v30959_v47  ;;  %18112 = vmatprep.subr.bf16.mxu1 %v30910_v24  ;;  %v30969_v31 = vld [vmem:[#allocation5_spill] sm:$0xff] }
 0x90f   :  { %8434 = vmatmul.mubr.f32.vlgmr.msra.gmra.mrb[10].mxu0 %v25504_v18  ;;  %15431 = vmatmul.mubr.f32.vlgmr.msra.gmra.mrb[66].mxu1 %v25504_v18  ;;  %v30966_v18 = vld [vmem:[#allocation6_spill] sm:$0xff] }
 0x910   :  { %17947 = vmatpush1.bf16.msra.mxu0 %v30960_v25  ;;  %18114 = vmatpush3.bf16.msra.mxu1 %v30961_v60  ;;  %v30986_v60 = vand.u32 4294901760, %v24964_v46  ;;  %v30992_v46 = vand.u32 4294901760, %v25006_v4  ;;  %v30997_v4 = vand.u32 4294901760, %v25032_v53  ;;  %v31003_v53 = vand.u32 4294901760, %v25063_v3 }
 0x911   :  { %17949 = vmatprep.subr.bf16.mxu0 %v30962_v21  ;;  %18115 = vmatprep.subr.bf16.mxu1 %v30910_v24  ;;  %v30971_v21 = vld [vmem:[#allocation16_spill] sm:$0xff]  ;;  %v31009_v3 = vand.u32 4294901760, %v25094_v20  ;;  %v31015_v20 = vand.u32 4294901760, %v25124_v59  ;;  %v31021_v59 = vand.u32 4294901760, %v30946_v58  ;;  %v31027_v58 = vand.u32 4294901760, %v30954_v16  ;;  %v31034_v16 = vld [vmem:[#allocation29_spill] sm:$0xff] }
 0x912   :  { %8536 = vmatprep.mubr.f32.mxu0 %v30911_v35  ;;  %15465 = vmatprep.mubr.msk.f32.mxu1 %vm19186_vm0, %v30911_v35 }
 0x914   :  { %17951 = vmatpush1.bf16.msra.mxu0 %v30963_v26  ;;  %18117 = vmatpush3.bf16.msra.mxu1 %v30964_v30  ;;  %v30972_v30 = vld [vmem:[#allocation3_spill] sm:$0xff]  ;;  %v30974_v26 = vld [vmem:[#allocation57_spill] sm:$0xff] }
 0x915   :  { %17953 = vmatprep.subr.bf16.mxu0 %v30965_v39  ;;  %18118 = vmatprep.subr.bf16.mxu1 %v30910_v24  ;;  %v30973_v39 = vld [vmem:[#allocation56_spill] sm:$0xff] }
 0x918   :  { %17955 = vmatpush1.bf16.msra.mxu0 %v30966_v18  ;;  %18120 = vmatpush3.bf16.msra.mxu1 %v30967_v29  ;;  %v30975_v29 = vld [vmem:[#allocation8_spill] sm:$0xff]  ;;  %v30977_v18 = vld [vmem:[#allocation23_spill] sm:$0xff] }
 0x919   :  { %17957 = vmatprep.subr.bf16.mxu0 %v30968_v28  ;;  %18121 = vmatprep.subr.bf16.mxu1 %v30910_v24  ;;  %v30976_v28 = vld [vmem:[#allocation4_spill] sm:$0xff] }
 0x91c   :  { %17959 = vmatpush1.bf16.msra.mxu0 %v30969_v31  ;;  %18123 = vmatpush3.bf16.msra.mxu1 %v30970_v34  ;;  %v30978_v34 = vld [vmem:[#allocation43_spill] sm:$0xff]  ;;  %v30980_v31 = vld [vmem:[#allocation36_spill] sm:$0xff] }
 0x91d   :  { %17961 = vmatprep.subr.bf16.mxu0 %v30971_v21  ;;  %18124 = vmatprep.subr.bf16.mxu1 %v30910_v24  ;;  %v30979_v21 = vld [vmem:[#allocation18_spill] sm:$0xff] }
 0x920   :  { %17963 = vmatpush1.bf16.msra.mxu0 %v30972_v30  ;;  %18126 = vmatpush3.bf16.msra.mxu1 %v30973_v39  ;;  %v30982_v39 = vand.u32 4294901760, %v24951_v19  ;;  %v30989_v19 = vand.u32 4294901760, %v24991_v62  ;;  %v30996_v62 = vand.u32 4294901760, %v30902_v27  ;;  %v31001_v27 = vand.u32 4294901760, %v25053_v40 }
 0x921   :  { %17965 = vmatprep.subr.bf16.mxu0 %v30974_v26  ;;  %18127 = vmatprep.subr.bf16.mxu1 %v30910_v24  ;;  %v30981_v26 = vand.u32 4294901760, %v24946_v8  ;;  %v30990_v8 = vand.u32 4294901760, %v24996_v48  ;;  %v30995_v48 = vand.u32 4294901760, %v25021_v55  ;;  %v31007_v40 = vand.u32 4294901760, %v25084_v57 }
 0x922   :  { %v31013_v57 = vand.u32 4294901760, %v25114_v5  ;;  %v31019_v5 = vand.u32 4294901760, %v30896_v1  ;;  %v31025_v1 = vand.u32 4294901760, %v30951_v50  ;;  %v31032_v50 = vld [vmem:[#allocation53_spill] sm:$0xff] }
 0x923   :  { %v17976_v30 = vpack.c.bf16 %v30982_v39, %v30981_v26  ;;  %v17980_v26 = vpack.c.bf16 %v30990_v8, %v30989_v19 }
 0x924   :  { %17967 = vmatpush1.bf16.msra.mxu0 %v30975_v29  ;;  %18129 = vmatpush3.bf16.msra.mxu1 %v30976_v28  ;;  %v30983_v29 = vld [vmem:[#allocation42_spill] sm:$0xff]  ;;  %v30984_v28 = vld [vmem:[#allocation20_spill] sm:$0xff] }
 0x925   :  { %17969 = vmatprep.subr.bf16.mxu0 %v30977_v18  ;;  %18130 = vmatprep.subr.bf16.mxu1 %v30910_v24  ;;  %v30985_v18 = vand.u32 4294901760, %v24959_v52  ;;  %v30991_v52 = vand.u32 4294901760, %v25001_v42  ;;  %v30998_v42 = vand.u32 4294901760, %v25037_v45  ;;  %v31004_v45 = vand.u32 4294901760, %v25068_v12 }
 0x926   :  { %v31010_v12 = vand.u32 4294901760, %v25099_v51  ;;  %v31016_v51 = vand.u32 4294901760, %v25129_v56  ;;  %v31022_v56 = vand.u32 4294901760, %v30945_v7  ;;  %v31028_v7 = vand.u32 4294901760, %v30953_v43  ;;  %v31033_v43 = vld [vmem:[#allocation37_spill] sm:$0xff] }
 0x927   :  { %v17990_v39 = vpack.c.bf16 %v31004_v45, %v31003_v53  ;;  %v31048_v53 = vld [vmem:[#allocation23_spill] sm:$0xff] }
 0x928   :  { %17971 = vmatpush1.bf16.msra.mxu0 %v30978_v34  ;;  %18132 = vmatpush3.bf16.msra.mxu1 %v30979_v21  ;;  %v17978_v34 = vpack.c.bf16 %v30986_v60, %v30985_v18  ;;  %v30987_v21 = vand.u32 4294901760, %v24969_v49  ;;  %v30993_v49 = vand.u32 4294901760, %v30901_v63  ;;  %v30994_v60 = vand.u32 4294901760, %v25016_v11  ;;  %v31049_v45 = vld [vmem:[#allocation43_spill] sm:$0xff] }
 0x929   :  { %17973 = vmatprep.subr.bf16.mxu0 %v30980_v31  ;;  %18133 = vmatprep.subr.bf16.mxu1 %v30910_v24  ;;  %v30988_v31 = vand.u32 4294901760, %v24974_v2  ;;  %v17982_v2 = vpack.c.bf16 %v30992_v46, %v30991_v52  ;;  %v17986_v11 = vpack.c.bf16 %v30998_v42, %v30997_v4  ;;  %v30999_v63 = vand.u32 4294901760, %v25042_v22  ;;  %v31039_v4 = vld [vmem:[#allocation45_spill] sm:$0xff] }
 0x92a   :  { %v31005_v22 = vand.u32 4294901760, %v25074_v14  ;;  %v17994_v19 = vpack.c.bf16 %v31010_v12, %v31009_v3  ;;  %v31011_v14 = vand.u32 4294901760, %v25104_v32  ;;  %v17998_v52 = vpack.c.bf16 %v31016_v51, %v31015_v20  ;;  %v31040_v42 = vld [vmem:[#allocation5_spill] sm:$0xff]  ;;  %v25833_v12 = vld [vmem:[%s28702_s1] sm:$0xff] }
 0x92b   :  { %v18137_v25 = vpack.c.bf16 %v30988_v31, %v30987_v21  ;;  %v18140_v21 = vpack.c.bf16 %v30994_v60, %v30993_v49  ;;  %v31017_v32 = vand.u32 4294901760, %v25137_v10  ;;  %v18002_v49 = vpack.c.bf16 %v31022_v56, %v31021_v59  ;;  %v25898_v59 = vld [vmem:[%s28702_s1 + $0x40] sm:$0xff] }
 0x92c   :  { %17975 = vmatpush1.bf16.msra.mxu0 %v30983_v29  ;;  %18135 = vmatpush3.bf16.msra.mxu1 %v30984_v28  ;;  %v31023_v10 = vand.u32 4294901760, %v30949_v17  ;;  %v31029_v17 = vand.u32 4294901760, %v30957_v54  ;;  %v31036_v54 = vld [vmem:[#allocation13_spill] sm:$0xff] }
 0x92d   :  { %17977 = vmatprep.subr.bf16.mxu0 %v17976_v30  ;;  %18136 = vmatprep.subr.bf16.mxu1 %v30910_v24 }
 0x92f   :  { %8540 = vmatmul.mubr.f32.vlgmr.msra.gmra.mrb[10].mxu0 %v25507_v36  ;;  %15466 = vmatmul.mubr.f32.vlgmr.msra.gmra.mrb[68].mxu1 %v25507_v36  ;;  %v17984_v36 = vpack.c.bf16 %v30996_v62, %v30995_v48  ;;  %v18006_v48 = vpack.c.bf16 %v31028_v7, %v31027_v58  ;;  %v25932_v58 = vld [vmem:[%s28702_s1 + $0x80] sm:$0xff] }
 0x930   :  { %17979 = vmatpush1.bf16.msra.mxu0 %v17978_v34  ;;  %18138 = vmatpush3.bf16.msra.mxu1 %v18137_v25  ;;  %v31000_v34 = vand.u32 4294901760, %v25047_v61  ;;  %v31002_v25 = vand.u32 4294901760, %v25058_v0  ;;  %v31006_v61 = vand.u32 4294901760, %v25079_v23  ;;  %v31008_v0 = vand.u32 4294901760, %v25089_v13 }
 0x931   :  { %17981 = vmatprep.subr.bf16.mxu0 %v17980_v26  ;;  %18139 = vmatprep.subr.bf16.mxu1 %v30910_v24  ;;  %v31012_v23 = vand.u32 4294901760, %v25109_v41  ;;  %v31014_v13 = vand.u32 4294901760, %v25119_v38  ;;  %v31018_v41 = vand.u32 4294901760, %v30903_v15  ;;  %v31020_v38 = vand.u32 4294901760, %v30904_v44 }
 0x932   :  { %8706 = vmatprep.mubr.f32.mxu0 %v30911_v35  ;;  %15500 = vmatprep.mubr.msk.f32.mxu1 %vm19186_vm0, %v30911_v35  ;;  %v18143_v55 = vpack.c.bf16 %v31000_v34, %v30999_v63  ;;  %v17988_v30 = vpack.c.bf16 %v31002_v25, %v31001_v27  ;;  %v18146_v18 = vpack.c.bf16 %v31006_v61, %v31005_v22  ;;  %v31024_v15 = vand.u32 4294901760, %v30948_v6  ;;  %v31042_v63 = vld [vmem:[#allocation16_spill] sm:$0xff]  ;;  %v31043_v34 = vld [vmem:[#allocation3_spill] sm:$0xff]  ;;  %v31045_v27 = vld [vmem:[#allocation57_spill] sm:$0xff] }
 0x933   :  { %v17992_v31 = vpack.c.bf16 %v31008_v0, %v31007_v40  ;;  %v18149_v8 = vpack.c.bf16 %v31012_v23, %v31011_v14  ;;  %v17996_v26 = vpack.c.bf16 %v31014_v13, %v31013_v57  ;;  %v18152_v46 = vpack.c.bf16 %v31018_v41, %v31017_v32  ;;  %v31046_v25 = vld [vmem:[#allocation8_spill] sm:$0xff]  ;;  %v25843_v14 = vld [vmem:[%s28702_s1 + $0x10] sm:$0xff] }
 0x934   :  { %17983 = vmatpush1.bf16.msra.mxu0 %v17982_v2  ;;  %18141 = vmatpush3.bf16.msra.mxu1 %v18140_v21  ;;  %v18000_v2 = vpack.c.bf16 %v31020_v38, %v31019_v5  ;;  %v18155_v60 = vpack.c.bf16 %v31024_v15, %v31023_v10  ;;  %v31026_v44 = vand.u32 4294901760, %v25174_v33  ;;  %v31030_v6 = vand.u32 4294901760, %v30956_v37  ;;  %v31031_v33 = vld [vmem:[#allocation12_spill] sm:$0xff]  ;;  %v31035_v37 = vld [vmem:[#allocation31_spill] sm:$0xff]  ;;  %v25874_v32 = vld [vmem:[%s28702_s1 + $0x50] sm:$0xff] }
 0x935   :  { %17985 = vmatprep.subr.bf16.mxu0 %v17984_v36  ;;  %18142 = vmatprep.subr.bf16.mxu1 %v30910_v24  ;;  %v31038_v36 = vld [vmem:[#allocation44_spill] sm:$0xff]  ;;  %v29535_v23 = vand.u32 4294901760, %v25833_v12  ;;  %v29533_v13 = vand.u32 4294901760, %v25843_v14  ;;  %v29528_v5 = vand.u32 4294901760, %v25874_v32  ;;  %v25888_v38 = vld [vmem:[%s28702_s1 + $0x30] sm:$0xff]  ;;  %v25906_v10 = vld [vmem:[%s28702_s1 + $0x58] sm:$0xff] }
 0x936   :  { %v18004_v21 = vpack.c.bf16 %v31026_v44, %v31025_v1  ;;  %v18158_v62 = vpack.c.bf16 %v31030_v6, %v31029_v17  ;;  %v31051_v22 = vld [vmem:[#allocation36_spill] sm:$0xff]  ;;  %v29527_v56 = vand.u32 4294901760, %v25888_v38  ;;  %v29521_v15 = vand.u32 4294901760, %v25898_v59  ;;  %v25946_v6 = vld [vmem:[%s28702_s1 + $0x60] sm:$0xff] }
 0x937   :  { %v25850_v57 = vld [vmem:[%s28702_s1 + $0x28] sm:$0xff]  ;;  %v29520_v1 = vand.u32 4294901760, %v25906_v10  ;;  %v29518_v17 = vand.u32 4294901760, %v25932_v58 }
 0x938   :  { %17987 = vmatpush1.bf16.msra.mxu0 %v17986_v11  ;;  %18144 = vmatpush3.bf16.msra.mxu1 %v18143_v55  ;;  %v31041_v11 = vld [vmem:[#allocation47_spill] sm:$0xff]  ;;  %v31044_v55 = vld [vmem:[#allocation56_spill] sm:$0xff]  ;;  %v29532_v20 = vand.u32 4294901760, %v25850_v57 }
 0x939   :  { %17989 = vmatprep.subr.bf16.mxu0 %v17988_v30  ;;  %18145 = vmatprep.subr.bf16.mxu1 %v30910_v24  ;;  %v31047_v30 = vld [vmem:[#allocation4_spill] sm:$0xff]  ;;  %v25939_v7 = vpack.c.bf16 %v29520_v1, %v29521_v15  ;;  %v26103_v15 = vld [vmem:[%s28702_s1 + $0xf8] sm:$0xff] }
 0x93a   :  { %v25881_v41 = vpack.c.bf16 %v29532_v20, %v29533_v13 }
 0x93b   :  { %31057 = vst [vmem:[#allocation24_spill] sm:$0xff] %v25939_v7 }
 0x93c   :  { %17991 = vmatpush1.bf16.msra.mxu0 %v17990_v39  ;;  %18147 = vmatpush3.bf16.msra.mxu1 %v18146_v18  ;;  %v31050_v39 = vld [vmem:[#allocation18_spill] sm:$0xff]  ;;  %31054 = vst [vmem:[#allocation55_spill] sm:$0xff] %v25881_v41 }
 0x93d   :  { %17993 = vmatprep.subr.bf16.mxu0 %v17992_v31  ;;  %18148 = vmatprep.subr.bf16.mxu1 %v30910_v24 }
 0x940   :  { %17995 = vmatpush1.bf16.msra.mxu0 %v17994_v19  ;;  %18150 = vmatpush3.bf16.msra.mxu1 %v18149_v8  ;;  %v25838_v19 = vld [vmem:[%s28702_s1 + $0x18] sm:$0xff] }
 0x941   :  { %17997 = vmatprep.subr.bf16.mxu0 %v17996_v26  ;;  %18151 = vmatprep.subr.bf16.mxu1 %v30910_v24  ;;  %v29534_v8 = vand.u32 4294901760, %v25838_v19 }
 0x943   :  { %v25864_v51 = vpack.c.bf16 %v29534_v8, %v29535_v23 }
 0x944   :  { %17999 = vmatpush1.bf16.msra.mxu0 %v17998_v52  ;;  %18153 = vmatpush3.bf16.msra.mxu1 %v18152_v46  ;;  %v25869_v52 = vld [vmem:[%s28702_s1 + $0x38] sm:$0xff] }
 0x945   :  { %18001 = vmatprep.subr.bf16.mxu0 %v18000_v2  ;;  %18154 = vmatprep.subr.bf16.mxu1 %v30910_v24  ;;  %31053 = vst [vmem:[#allocation54_spill] sm:$0xff] %v25864_v51  ;;  %v29531_v46 = vand.u32 4294901760, %v25869_v52  ;;  %v25893_v2 = vld [vmem:[%s28702_s1 + $0x48] sm:$0xff] }
 0x948   :  { %18003 = vmatpush1.bf16.msra.mxu0 %v18002_v49  ;;  %18156 = vmatpush3.bf16.msra.mxu1 %v18155_v60  ;;  %v29526_v49 = vand.u32 4294901760, %v25893_v2  ;;  %v25914_v60 = vpack.c.bf16 %v29528_v5, %v29531_v46  ;;  %v26132_v5 = vld [vmem:[%s28702_s1 + $0x100] sm:$0xff]  ;;  %v26140_v46 = vld [vmem:[%s28702_s1 + $0x118] sm:$0xff] }
 0x949   :  { %18005 = vmatprep.subr.bf16.mxu0 %v18004_v21  ;;  %18157 = vmatprep.subr.bf16.mxu1 %v30910_v24  ;;  %v25927_v21 = vld [vmem:[%s28702_s1 + $0x68] sm:$0xff]  ;;  %v29547_v20 = vand.u32 4294901760, %v26132_v5  ;;  %v29546_v8 = vand.u32 4294901760, %v26140_v46 }
 0x94a   :  { %31055 = vst [vmem:[#allocation41_spill] sm:$0xff] %v25914_v60  ;;  %v25922_v44 = vpack.c.bf16 %v29526_v49, %v29527_v56  ;;  %v26122_v49 = vld [vmem:[%s28702_s1 + $0xf0] sm:$0xff]  ;;  %v26127_v56 = vld [vmem:[%s28702_s1 + $0x108] sm:$0xff] }
 0x94c   :  { %18007 = vmatpush1.bf16.msra.mxu0 %v18006_v48  ;;  %18159 = vmatpush3.bf16.msra.mxu1 %v18158_v62  ;;  %31056 = vst [vmem:[#allocation22_spill] sm:$0xff] %v25922_v44  ;;  %v29519_v48 = vand.u32 4294901760, %v25927_v21  ;;  %v25951_v62 = vld [vmem:[%s28702_s1 + $0x78] sm:$0xff] }
 0x94d   :  { %18009 = vmatprep.subr.bf16.mxu0 %v30959_v47  ;;  %18160 = vmatprep.subr.bf16.mxu1 %v30910_v24  ;;  %v31037_v47 = vld [vmem:[#allocation6_spill] sm:$0xff] }
 0x94f   :  { %8708 = vmatmul.mubr.f32.vlgmr.msra.gmra.mrb[10].mxu0 %v25497_v9  ;;  %15501 = vmatmul.mubr.f32.vlgmr.msra.gmra.mrb[70].mxu1 %v25497_v9 }
 0x950   :  { %18011 = vmatpush1.bf16.msra.mxu0 %v31031_v33  ;;  %18162 = vmatpush3.bf16.msra.mxu1 %v31032_v50  ;;  %v25956_v33 = vld [vmem:[%s28702_s1 + $0x70] sm:$0xff]  ;;  %v29517_v50 = vand.u32 4294901760, %v25946_v6 }
 0x951   :  { %18013 = vmatprep.subr.bf16.mxu0 %v31033_v43  ;;  %18163 = vmatprep.subr.bf16.mxu1 %v30910_v24  ;;  %v29516_v43 = vand.u32 4294901760, %v25951_v62 }
 0x952   :  { %8810 = vmatprep.mubr.f32.mxu0 %v30911_v35  ;;  %15535 = vmatprep.mubr.msk.f32.mxu1 %vm19186_vm0, %v30911_v35 }
 0x954   :  { %18015 = vmatpush1.bf16.msra.mxu0 %v31034_v16  ;;  %18165 = vmatpush3.bf16.msra.mxu1 %v31035_v37  ;;  %v25964_v16 = vld [vmem:[%s28702_s1 + $0x88] sm:$0xff]  ;;  %v29513_v37 = vand.u32 4294901760, %v25956_v33 }
 0x955   :  { %18017 = vmatprep.subr.bf16.mxu0 %v31036_v54  ;;  %18166 = vmatprep.subr.bf16.mxu1 %v30910_v24  ;;  %v25972_v54 = vpack.c.bf16 %v29518_v17, %v29519_v48 }
 0x957   :  { %31058 = vst [vmem:[#allocation46_spill] sm:$0xff] %v25972_v54 }
 0x958   :  { %18019 = vmatpush1.bf16.msra.mxu0 %v31037_v47  ;;  %18168 = vmatpush3.bf16.msra.mxu1 %v31038_v36  ;;  %v29512_v47 = vand.u32 4294901760, %v25964_v16 }
 0x959   :  { %18021 = vmatprep.subr.bf16.mxu0 %v31039_v4  ;;  %18169 = vmatprep.subr.bf16.mxu1 %v30910_v24  ;;  %v25980_v4 = vpack.c.bf16 %v29516_v43, %v29517_v50  ;;  %v26082_v43 = vld [vmem:[%s28702_s1 + $0xe8] sm:$0xff] }
 0x95a   :  { %v29529_v48 = vand.u32 4294901760, %v26082_v43 }
 0x95b   :  { %31059 = vst [vmem:[#allocation25_spill] sm:$0xff] %v25980_v4 }
 0x95c   :  { %18023 = vmatpush1.bf16.msra.mxu0 %v31040_v42  ;;  %18171 = vmatpush3.bf16.msra.mxu1 %v31041_v11  ;;  %v25985_v42 = vld [vmem:[%s28702_s1 + $0x98] sm:$0xff]  ;;  %v25990_v11 = vld [vmem:[%s28702_s1 + $0xb0] sm:$0xff] }
 0x95d   :  { %18025 = vmatprep.subr.bf16.mxu0 %v31042_v63  ;;  %18172 = vmatprep.subr.bf16.mxu1 %v30910_v24 }
 0x960   :  { %18027 = vmatpush1.bf16.msra.mxu0 %v31043_v34  ;;  %18174 = vmatpush3.bf16.msra.mxu1 %v31044_v55  ;;  %v25999_v55 = vpack.c.bf16 %v29512_v47, %v29513_v37  ;;  %v26069_v47 = vld [vmem:[%s28702_s1 + $0xd8] sm:$0xff]  ;;  %v26074_v37 = vld [vmem:[%s28702_s1 + $0xd0] sm:$0xff] }
 0x961   :  { %18029 = vmatprep.subr.bf16.mxu0 %v31045_v27  ;;  %18175 = vmatprep.subr.bf16.mxu1 %v30910_v24  ;;  %v29511_v27 = vand.u32 4294901760, %v25985_v42  ;;  %v29530_v50 = vand.u32 4294901760, %v26074_v37 }
 0x962   :  { %31061 = vst [vmem:[#allocation51_spill] sm:$0xff] %v25999_v55 }
 0x964   :  { %18031 = vmatpush1.bf16.msra.mxu0 %v31046_v25  ;;  %18177 = vmatpush3.bf16.msra.mxu1 %v31047_v30  ;;  %v29508_v25 = vand.u32 4294901760, %v25990_v11  ;;  %v26006_v30 = vld [vmem:[%s28702_s1 + $0x90] sm:$0xff] }
 0x965   :  { %18033 = vmatprep.subr.bf16.mxu0 %v31048_v53  ;;  %18178 = vmatprep.subr.bf16.mxu1 %v30910_v24  ;;  %v26011_v53 = vld [vmem:[%s28702_s1 + $0xa8] sm:$0xff] }
 0x968   :  { %18035 = vmatpush1.bf16.msra.mxu0 %v31049_v45  ;;  %18180 = vmatpush3.bf16.msra.mxu1 %v31050_v39  ;;  %v26016_v45 = vld [vmem:[%s28702_s1 + $0xa0] sm:$0xff]  ;;  %v29510_v39 = vand.u32 4294901760, %v26006_v30 }
 0x969   :  { %18037 = vmatprep.subr.bf16.mxu0 %v31051_v22  ;;  %18181 = vmatprep.subr.bf16.mxu1 %v30910_v24  ;;  %v29509_v22 = vand.u32 4294901760, %v26011_v53 }
 0x96c   :  { %18039 = vmatpush1.bf16.msra.mxu0 %v30983_v29  ;;  %18183 = vmatpush3.bf16.msra.mxu1 %v30984_v28  ;;  %v25821_v29 = vld [vmem:[%s28702_s1 + $0x8] sm:$0xff]  ;;  %v25826_v28 = vld [vmem:[%s28702_s1 + $0x20] sm:$0xff] }
 0x96d   :  { %18376 = vmatprep.subr.bf16.mxu1 %v30910_v24  ;;  %v29536_v3 = vand.u32 4294901760, %v25826_v28 }
 0x96f   :  { %8812 = vmatmul.mubr.f32.vlgmr.msra.gmra.mrb[10].mxu0 %v25497_v9  ;;  %15536 = vmatmul.mubr.f32.vlgmr.msra.gmra.mrb[72].mxu1 %v25497_v9  ;;  %v29541_v9 = vand.u32 4294901760, %v25821_v29 }
 0x970   :  { %9634 = vmatprep.mubr.f32.mxu0 %v30911_v35  ;;  %15570 = vmatprep.mubr.msk.f32.mxu1 %vm19186_vm0, %v30911_v35 }
 0x971   :  { %v25857_v26 = vpack.c.bf16 %v29536_v3, %v29541_v9  ;;  %18378 = vmatpush3.bf16.msra.mxu1 %v25881_v41  ;;  %v26161_v3 = vld [vmem:[%s28702_s1 + $0x128] sm:$0xff]  ;;  %v26180_v9 = vld [vmem:[%s28702_s1 + $0x120] sm:$0xff] }
 0x972   :  { %18379 = vmatprep.subr.bf16.mxu1 %v30910_v24 }
 0x973   :  { %31052 = vst [vmem:[#allocation34_spill] sm:$0xff] %v25857_v26  ;;  %18185 = vmatprep.subr.bf16.mxu0 %v25857_v26  ;;  %v31083_v26 = vand.u32 4294901760, %v25893_v2 }
 0x974   :  { %18187 = vmatpush1.bf16.msra.mxu0 %v25864_v51  ;;  %v31082_v51 = vand.u32 4294901760, %v25888_v38 }
 0x975   :  { %18189 = vmatprep.subr.bf16.mxu0 %v25914_v60  ;;  %18381 = vmatpush3.bf16.msra.mxu1 %v25939_v7  ;;  %v31081_v60 = vand.u32 4294901760, %v25874_v32  ;;  %v26262_v35 = vsub.f32 %v25893_v2, %v31083_v26  ;;  %v31090_v2 = vand.u32 4294901760, %v25946_v6 }
 0x976   :  { %18382 = vmatprep.subr.bf16.mxu1 %v30910_v24 }
 0x977   :  { %v26252_v41 = vsub.f32 %v25874_v32, %v31081_v60  ;;  %v31087_v60 = vand.u32 4294901760, %v25927_v21 }
 0x978   :  { %18191 = vmatpush1.bf16.msra.mxu0 %v25922_v44  ;;  %v31075_v44 = vand.u32 4294901760, %v25838_v19 }
 0x979   :  { %18193 = vmatprep.subr.bf16.mxu0 %v25972_v54  ;;  %18384 = vmatpush3.bf16.msra.mxu1 %v25999_v55  ;;  %v31074_v54 = vand.u32 4294901760, %v25833_v12 }
 0x97a   :  { %18385 = vmatprep.subr.bf16.mxu1 %v30910_v24 }
 0x97b   :  { %v26215_v7 = vsub.f32 %v25833_v12, %v31074_v54  ;;  %v9533_v12 = vld [vmem:[%s28702_s1 + $0x158] sm:$0xff] }
 0x97c   :  { %18195 = vmatpush1.bf16.msra.mxu0 %v25980_v4  ;;  %v9594_v54 = vand.u32 4294901760, %v9533_v12 }
 0x9a2   :  { %v8905_v61 = vpop.f32.mrb[62].mxu1 }
 0x9a3   :  { %v15362_v18 = vpop.f32.mrb[63].mxu1 }
 0x9a4   :  { %v29515_v18 = vand.u32 4294901760, %v26016_v45 }
 0x9c2   :  { %v9056_v40 = vpop.f32.mrb[64].mxu1 }
 0x9c3   :  { %v9057_v0 = vadd.f32 %v9056_v40, %v8905_v61  ;;  %v15397_v31 = vpop.f32.mrb[65].mxu1  ;;  %v26024_v61 = vld [vmem:[%s28702_s1 + $0xb8] sm:$0xff]  ;;  %v26032_v40 = vpack.c.bf16 %v29508_v25, %v29511_v27  ;;  %v26064_v27 = vld [vmem:[%s28702_s1 + $0xc0] sm:$0xff] }
 0x9c4   :  { %v26040_v31 = vpack.c.bf16 %v29509_v22, %v29510_v39 }
 0x9c5   :  { %31062 = vst [vmem:[#allocation49_spill] sm:$0xff] %v26032_v40  ;;  %18197 = vmatprep.subr.bf16.mxu0 %v26032_v40  ;;  %v31072_v40 = vand.u32 4294901760, %v25826_v28 }
 0x9c6   :  { %31063 = vst [vmem:[#allocation26_spill] sm:$0xff] %v26040_v31  ;;  %18199 = vmatpush1.bf16.msra.mxu0 %v26040_v31 }
 0x9c7   :  { %v26207_v55 = vsub.f32 %v25826_v28, %v31072_v40  ;;  %v31077_v40 = vand.u32 4294901760, %v25850_v57 }
 0x9e2   :  { %v9160_v36 = vpop.f32.mrb[66].mxu1 }
 0x9e3   :  { %v25992_v63 = vadd.f32 %v9160_v36, %v9057_v0  ;;  %v15432_v34 = vpop.f32.mrb[67].mxu1  ;;  %v29514_v0 = vand.u32 4294901760, %v26024_v61  ;;  %v26045_v36 = vld [vmem:[%s28702_s1 + $0xc8] sm:$0xff] }
 0x9e4   :  { %v26050_v34 = vld [vmem:[%s28702_s1 + $0xe0] sm:$0xff]  ;;  %v29523_v22 = vand.u32 4294901760, %v26045_v36 }
 0x9e5   :  { %31060 = vst [vmem:[#allocation48_spill] sm:$0xff] %v25992_v63  ;;  %v26057_v25 = vpack.c.bf16 %v29514_v0, %v29515_v18  ;;  %v29522_v39 = vand.u32 4294901760, %v26050_v34  ;;  %v29525_v0 = vand.u32 4294901760, %v26064_v27  ;;  %v29524_v18 = vand.u32 4294901760, %v26069_v47 }
 0x9e6   :  { %v31084_v63 = vand.u32 4294901760, %v25898_v59 }
 0x9e7   :  { %31064 = vst [vmem:[#allocation32_spill] sm:$0xff] %v26057_v25  ;;  %18387 = vmatpush3.bf16.msra.mxu1 %v26057_v25  ;;  %v26090_v17 = vpack.c.bf16 %v29522_v39, %v29523_v22  ;;  %v26098_v1 = vpack.c.bf16 %v29524_v18, %v29525_v0  ;;  %v26108_v39 = vld [vmem:[%s28702_s1 + $0x110] sm:$0xff]  ;;  %v26115_v22 = vpack.c.bf16 %v29529_v48, %v29530_v50  ;;  %v29538_v18 = vand.u32 4294901760, %v26103_v15 }
 0x9e8   :  { %18388 = vmatprep.subr.bf16.mxu1 %v30910_v24  ;;  %v29537_v0 = vand.u32 4294901760, %v26108_v39  ;;  %v29540_v48 = vand.u32 4294901760, %v26122_v49  ;;  %v29539_v50 = vand.u32 4294901760, %v26127_v56  ;;  %v31071_v25 = vand.u32 4294901760, %v25821_v29 }
 0x9e9   :  { %31065 = vst [vmem:[#allocation33_spill] sm:$0xff] %v26090_v17  ;;  %31066 = vst [vmem:[#allocation10_spill] sm:$0xff] %v26098_v1  ;;  %18201 = vmatprep.subr.bf16.mxu0 %v26090_v17 }
 0x9ea   :  { %31067 = vst [vmem:[#allocation30_spill] sm:$0xff] %v26115_v22  ;;  %18203 = vmatpush1.bf16.msra.mxu0 %v26098_v1  ;;  %v26148_v13 = vpack.c.bf16 %v29537_v0, %v29538_v18  ;;  %v26156_v23 = vpack.c.bf16 %v29539_v50, %v29540_v48  ;;  %v26166_v0 = vld [vmem:[%s28702_s1 + $0x140] sm:$0xff]  ;;  %v26173_v18 = vpack.c.bf16 %v29546_v8, %v29547_v20  ;;  %v9586_v50 = vand.u32 4294901760, %v26161_v3  ;;  %v9531_v1 = vld [vmem:[%s28702_s1 + $0x148] sm:$0xff] }
 0x9eb   :  { %18390 = vmatpush3.bf16.msra.mxu1 %v26115_v22  ;;  %v9590_v48 = vand.u32 4294901760, %v26166_v0  ;;  %v26185_v22 = vld [vmem:[%s28702_s1 + $0x138] sm:$0xff]  ;;  %v9588_v8 = vand.u32 4294901760, %v26180_v9  ;;  %v26202_v31 = vsub.f32 %v25821_v29, %v31071_v25  ;;  %v10433_v4 = vand.u32 4294901760, %v9531_v1 }
 0x9ec   :  { %31068 = vst [vmem:[#allocation40_spill] sm:$0xff] %v26148_v13  ;;  %18391 = vmatprep.subr.bf16.mxu1 %v30910_v24  ;;  %31069 = vst [vmem:[#allocation50_spill] sm:$0xff] %v26156_v23  ;;  %18205 = vmatprep.subr.bf16.mxu0 %v26148_v13  ;;  %v26190_v13 = vld [vmem:[%s28702_s1 + $0x130] sm:$0xff]  ;;  %v9592_v20 = vand.u32 4294901760, %v26185_v22  ;;  %v26220_v29 = vsub.f32 %v25838_v19, %v31075_v44  ;;  %v31076_v25 = vand.u32 4294901760, %v25843_v14 }
 0x9ed   :  { %31070 = vst [vmem:[#allocation52_spill] sm:$0xff] %v26173_v18  ;;  %v10430_v17 = vand.u32 4294901760, %v26190_v13  ;;  %v9536_v19 = vld [vmem:[%s28702_s1 + $0x170] sm:$0xff] }
 0x9ee   :  { %18207 = vmatpush1.bf16.msra.mxu0 %v26156_v23  ;;  %v26210_v23 = vpack.c.bf16 %v9590_v48, %v9586_v50  ;;  %v26225_v28 = vsub.f32 %v25843_v14, %v31076_v25  ;;  %v26240_v44 = vpack.c.bf16 %v9592_v20, %v9588_v8  ;;  %v9598_v25 = vand.u32 4294901760, %v9536_v19 }
 0x9ef   :  { %18393 = vmatpush3.bf16.msra.mxu1 %v26173_v18  ;;  %v26230_v18 = vsub.f32 %v25850_v57, %v31077_v40  ;;  %v26242_v14 = vpack.c.bf16 %v10433_v4, %v10430_v17  ;;  %v31080_v57 = vand.u32 4294901760, %v25869_v52 }
 0x9f0   :  { %31073 = vst [vmem:[#allocation11_spill] sm:$0xff] %v26210_v23  ;;  %18394 = vmatprep.subr.bf16.mxu1 %v30910_v24  ;;  %18209 = vmatprep.subr.bf16.mxu0 %v26210_v23  ;;  %31078 = vst [vmem:[#allocation15_spill] sm:$0xff] %v26240_v44  ;;  %v26257_v23 = vsub.f32 %v25888_v38, %v31082_v51  ;;  %v26277_v51 = vsub.f32 %v25927_v21, %v31087_v60  ;;  %v31088_v38 = vand.u32 4294901760, %v25932_v58 }
 0x9f1   :  { %31079 = vst [vmem:[#allocation28_spill] sm:$0xff] %v26242_v14  ;;  %v26247_v40 = vsub.f32 %v25869_v52, %v31080_v57  ;;  %v26267_v52 = vsub.f32 %v25898_v59, %v31084_v63  ;;  %v31086_v57 = vand.u32 4294901760, %v25906_v10  ;;  %v26288_v59 = vsub.f32 %v25946_v6, %v31090_v2 }
 0x9f2   :  { %v26282_v26 = vsub.f32 %v25932_v58, %v31088_v38  ;;  %18211 = vmatpush1.bf16.msra.mxu0 %v26240_v44  ;;  %v31092_v21 = vand.u32 4294901760, %v25956_v33  ;;  %v31093_v58 = vand.u32 4294901760, %v25964_v16  ;;  %v31094_v6 = vand.u32 4294901760, %v25985_v42 }
 0x9f3   :  { %31085 = vst [vmem:[#allocation35_spill] sm:$0xff] %v26267_v52  ;;  %v26272_v32 = vsub.f32 %v25906_v10, %v31086_v57  ;;  %v31091_v10 = vand.u32 4294901760, %v25951_v62  ;;  %18396 = vmatpush3.bf16.msra.mxu1 %v26242_v14 }
 0x9f4   :  { %31089 = vst [vmem:[#allocation39_spill] sm:$0xff] %v26282_v26  ;;  %v26298_v57 = vsub.f32 %v25956_v33, %v31092_v21  ;;  %v26303_v60 = vsub.f32 %v25964_v16, %v31093_v58  ;;  %v26309_v38 = vsub.f32 %v25985_v42, %v31094_v6  ;;  %v31096_v33 = vand.u32 4294901760, %v26006_v30  ;;  %18397 = vmatprep.subr.bf16.mxu1 %v30910_v24 }
 0x9f5   :  { %v26293_v63 = vsub.f32 %v25951_v62, %v31091_v10  ;;  %v31095_v62 = vand.u32 4294901760, %v25990_v11  ;;  %v31097_v16 = vand.u32 4294901760, %v26011_v53  ;;  %v31098_v42 = vand.u32 4294901760, %v26016_v45 }
 0x9f6   :  { %v26319_v10 = vsub.f32 %v26006_v30, %v31096_v33  ;;  %v31100_v30 = vand.u32 4294901760, %v26045_v36 }
 0x9f7   :  { %v26314_v2 = vsub.f32 %v25990_v11, %v31095_v62  ;;  %v26324_v21 = vsub.f32 %v26011_v53, %v31097_v16  ;;  %v26330_v58 = vsub.f32 %v26016_v45, %v31098_v42  ;;  %v31099_v11 = vand.u32 4294901760, %v26024_v61 }
 0x9f8   :  { %v26340_v62 = vsub.f32 %v26045_v36, %v31100_v30  ;;  %v31101_v53 = vand.u32 4294901760, %v26050_v34  ;;  %v31102_v16 = vand.u32 4294901760, %v26064_v27  ;;  %v31103_v42 = vand.u32 4294901760, %v26069_v47 }
 0x9f9   :  { %v26335_v6 = vsub.f32 %v26024_v61, %v31099_v11  ;;  %v31104_v11 = vand.u32 4294901760, %v26074_v37  ;;  %v31105_v30 = vand.u32 4294901760, %v26082_v43 }
 0x9fa   :  { %v26345_v33 = vsub.f32 %v26050_v34, %v31101_v53  ;;  %v26350_v45 = vsub.f32 %v26064_v27, %v31102_v16  ;;  %v26355_v61 = vsub.f32 %v26069_v47, %v31103_v42  ;;  %v31106_v53 = vand.u32 4294901760, %v26103_v15 }
 0x9fb   :  { %v26360_v36 = vsub.f32 %v26074_v37, %v31104_v11  ;;  %v26365_v34 = vsub.f32 %v26082_v43, %v31105_v30  ;;  %v31107_v16 = vand.u32 4294901760, %v26108_v39  ;;  %v31108_v42 = vand.u32 4294901760, %v26122_v49 }
 0x9fc   :  { %v26370_v27 = vsub.f32 %v26103_v15, %v31106_v53  ;;  %v31109_v11 = vand.u32 4294901760, %v26127_v56  ;;  %v9532_v15 = vld [vmem:[%s28702_s1 + $0x150] sm:$0xff]  ;;  %v31110_v30 = vand.u32 4294901760, %v26132_v5 }
 0x9fd   :  { %v26375_v47 = vsub.f32 %v26108_v39, %v31107_v16  ;;  %v26380_v37 = vsub.f32 %v26122_v49, %v31108_v42  ;;  %v31111_v39 = vand.u32 4294901760, %v26140_v46  ;;  %v26401_v49 = vsub.f32 %v26161_v3, %v9586_v50  ;;  %v9535_v42 = vld [vmem:[%s28702_s1 + $0x168] sm:$0xff] }
 0x9fe   :  { %v26385_v43 = vsub.f32 %v26127_v56, %v31109_v11  ;;  %v26393_v53 = vsub.f32 %v26132_v5, %v31110_v30  ;;  %v26404_v56 = vsub.f32 %v26166_v0, %v9590_v48  ;;  %v9534_v5 = vld [vmem:[%s28702_s1 + $0x160] sm:$0xff]  ;;  %v9537_v11 = vld [vmem:[%s28702_s1 + $0x178] sm:$0xff]  ;;  %v26419_v3 = vsub.f32 %v26185_v22, %v9592_v20 }
 0x9ff   :  { %v26398_v16 = vsub.f32 %v26140_v46, %v31111_v39  ;;  %31113 = vst [vmem:[#allocation9_spill] sm:$0xff] %v26401_v49  ;;  %v26416_v46 = vsub.f32 %v26180_v9, %v9588_v8  ;;  %v26422_v48 = vsub.f32 %v26190_v13, %v10430_v17  ;;  %v26424_v50 = vsub.f32 %v9531_v1, %v10433_v4 }
 0xa00   :  { %31114 = vst [vmem:[#allocation7_spill] sm:$0xff] %v26404_v56  ;;  %31116 = vst [vmem:[#allocation21_spill] sm:$0xff] %v26419_v3  ;;  %v26426_v0 = vpack.c.bf16 %v9598_v25, %v9594_v54  ;;  %v26428_v30 = vsub.f32 %v9533_v12, %v9594_v54  ;;  %v26430_v39 = vsub.f32 %v9536_v19, %v9598_v25  ;;  %v9596_v14 = vand.u32 4294901760, %v9532_v15 }
 0xa01   :  { %31112 = vst [vmem:[#allocation27_spill] sm:$0xff] %v26398_v16  ;;  %31115 = vst [vmem:[#allocation38_spill] sm:$0xff] %v26416_v46  ;;  %v9600_v44 = vand.u32 4294901760, %v9535_v42  ;;  %v10436_v56 = vand.u32 4294901760, %v9534_v5  ;;  %v10439_v49 = vand.u32 4294901760, %v9537_v11  ;;  %v29591_v9 = vand.u32 4294901760, %v26202_v31 }
 0xa02   :  { %31117 = vst [vmem:[#allocation19_spill] sm:$0xff] %v26422_v48  ;;  %31118 = vst [vmem:[#allocation14_spill] sm:$0xff] %v26424_v50  ;;  %18213 = vmatprep.subr.bf16.mxu0 %v26426_v0  ;;  %v26434_v8 = vsub.f32 %v9532_v15, %v9596_v14  ;;  %v29589_v13 = vand.u32 4294901760, %v26207_v55  ;;  %v29590_v20 = vand.u32 4294901760, %v26215_v7  ;;  %v29596_v1 = vand.u32 4294901760, %v26220_v29 }
 0xa03   :  { %31119 = vst [vmem:[#allocation42_spill] sm:$0xff] %v26426_v0  ;;  %31120 = vst [vmem:[#allocation20_spill] sm:$0xff] %v26428_v30  ;;  %v26439_v17 = vpack.c.bf16 %v9600_v44, %v9596_v14  ;;  %v26441_v4 = vsub.f32 %v9535_v42, %v9600_v44  ;;  %v26443_v22 = vpack.c.bf16 %v10439_v49, %v10436_v56  ;;  %v9249_v44 = vpop.f32.mrb[68].mxu1  ;;  %v29602_v42 = vand.u32 4294901760, %v26247_v40 }
 0xa04   :  { %31121 = vst [vmem:[#allocation12_spill] sm:$0xff] %v26434_v8  ;;  %v26445_v12 = vsub.f32 %v9534_v5, %v10436_v56  ;;  %v26447_v19 = vsub.f32 %v9537_v11, %v10439_v49  ;;  %v9649_v54 = vsub.f32 %v26202_v31, %v29591_v9  ;;  %v9661_v25 = vsub.f32 %v26207_v55, %v29589_v13  ;;  %v31127_v5 = vld [vmem:[#allocation48_spill] sm:$0xff]  ;;  %v15467_v13 = vpop.f32.mrb[69].mxu1 }
 0xa05   :  { %31122 = vst [vmem:[#allocation53_spill] sm:$0xff] %v26439_v17  ;;  %31123 = vst [vmem:[#allocation37_spill] sm:$0xff] %v26441_v4  ;;  %v9655_v14 = vsub.f32 %v26215_v7, %v29590_v20  ;;  %18215 = vmatpush1.bf16.msra.mxu0 %v26439_v17  ;;  %18399 = vmatpush3.bf16.msra.mxu1 %v26443_v22  ;;  %v9667_v15 = vsub.f32 %v26220_v29, %v29596_v1  ;;  %v29600_v49 = vand.u32 4294901760, %v26225_v28 }
 0xa06   :  { %31124 = vst [vmem:[#allocation29_spill] sm:$0xff] %v26443_v22  ;;  %31125 = vst [vmem:[#allocation31_spill] sm:$0xff] %v26445_v12  ;;  %v29601_v56 = vand.u32 4294901760, %v26230_v18  ;;  %v26467_v11 = vadd.f32 %v9249_v44, %v31127_v5  ;;  %v9650_v20 = vand.u32 4294901760, %v9649_v54  ;;  %v9662_v9 = vand.u32 4294901760, %v9661_v25  ;;  %18400 = vmatprep.subr.bf16.mxu1 %v30910_v24 }
 0xa07   :  { %31126 = vst [vmem:[#allocation13_spill] sm:$0xff] %v26447_v19  ;;  %v9656_v17 = vand.u32 4294901760, %v9655_v14  ;;  %v9668_v22 = vand.u32 4294901760, %v9667_v15  ;;  %v10488_v1 = vsub.f32 %v26225_v28, %v29600_v49  ;;  %v9673_v44 = vsub.f32 %v26247_v40, %v29602_v42 }
 0xa08   :  { %v10495_v0 = vsub.f32 %v26230_v18, %v29601_v56  ;;  %v18216_v5 = vpack.c.bf16 %v9662_v9, %v9650_v20  ;;  %v29603_v13 = vand.u32 4294901760, %v26252_v41  ;;  %v29604_v54 = vand.u32 4294901760, %v26257_v23 }
 0xa09   :  { %v29605_v25 = vand.u32 4294901760, %v26262_v35  ;;  %v26482_v14 = vpack.c.bf16 %v9668_v22, %v9656_v17  ;;  %v10489_v15 = vand.u32 4294901760, %v10488_v1  ;;  %v9674_v49 = vand.u32 4294901760, %v9673_v44 }
 0xa0a   :  { %v10496_v24 = vand.u32 4294901760, %v10495_v0  ;;  %18217 = vmatprep.subr.bf16.mxu0 %v18216_v5  ;;  %v9685_v56 = vsub.f32 %v26252_v41, %v29603_v13  ;;  %v9679_v9 = vsub.f32 %v26257_v23, %v29604_v54  ;;  %v29606_v42 = vand.u32 4294901760, %v26267_v52 }
 0xa0b   :  { %31128 = vst [vmem:[#allocation6_spill] sm:$0xff] %v26482_v14  ;;  %v9691_v20 = vsub.f32 %v26262_v35, %v29605_v25  ;;  %v29609_v0 = vand.u32 4294901760, %v26272_v32  ;;  %v29610_v1 = vand.u32 4294901760, %v26277_v51  ;;  %v29611_v22 = vand.u32 4294901760, %v26282_v26 }
 0xa0c   :  { %v26494_v17 = vpack.c.bf16 %v10496_v24, %v10489_v15  ;;  %v9686_v44 = vand.u32 4294901760, %v9685_v56  ;;  %v9680_v5 = vand.u32 4294901760, %v9679_v9  ;;  %v10502_v54 = vsub.f32 %v26267_v52, %v29606_v42 }
 0xa0d   :  { %v9692_v13 = vand.u32 4294901760, %v9691_v20  ;;  %v10509_v25 = vsub.f32 %v26272_v32, %v29609_v0  ;;  %v9697_v24 = vsub.f32 %v26277_v51, %v29610_v1  ;;  %v9709_v15 = vsub.f32 %v26282_v26, %v29611_v22 }
 0xa0e   :  { %31129 = vst [vmem:[#allocation44_spill] sm:$0xff] %v26494_v17  ;;  %v29615_v56 = vand.u32 4294901760, %v26288_v59  ;;  %v26512_v9 = vpack.c.bf16 %v9686_v44, %v9674_v49  ;;  %v10503_v17 = vand.u32 4294901760, %v10502_v54  ;;  %v29614_v42 = vand.u32 4294901760, %v26293_v63 }
 0xa0f   :  { %v26514_v20 = vpack.c.bf16 %v9692_v13, %v9680_v5  ;;  %v10510_v14 = vand.u32 4294901760, %v10509_v25  ;;  %v9698_v52 = vand.u32 4294901760, %v9697_v24  ;;  %v9710_v0 = vand.u32 4294901760, %v9709_v15 }
 0xa10   :  { %31130 = vst [vmem:[#allocation45_spill] sm:$0xff] %v26512_v9  ;;  %v9703_v1 = vsub.f32 %v26288_v59, %v29615_v56  ;;  %v9715_v22 = vsub.f32 %v26293_v63, %v29614_v42  ;;  %v29616_v26 = vand.u32 4294901760, %v26298_v57  ;;  %v29617_v49 = vand.u32 4294901760, %v26303_v60 }
 0xa11   :  { %31131 = vst [vmem:[#allocation5_spill] sm:$0xff] %v26514_v20  ;;  %v29618_v13 = vand.u32 4294901760, %v26309_v38  ;;  %v26526_v54 = vpack.c.bf16 %v10510_v14, %v10503_v17  ;;  %v26528_v44 = vpack.c.bf16 %v9710_v0, %v9698_v52  ;;  %v29619_v5 = vand.u32 4294901760, %v26314_v2 }
 0xa12   :  { %v9704_v25 = vand.u32 4294901760, %v9703_v1  ;;  %v9716_v24 = vand.u32 4294901760, %v9715_v22  ;;  %v10516_v15 = vsub.f32 %v26298_v57, %v29616_v26  ;;  %v10523_v42 = vsub.f32 %v26303_v60, %v29617_v49 }
 0xa13   :  { %31132 = vst [vmem:[#allocation47_spill] sm:$0xff] %v26526_v54  ;;  %31133 = vst [vmem:[#allocation16_spill] sm:$0xff] %v26528_v44  ;;  %v9721_v56 = vsub.f32 %v26309_v38, %v29618_v13  ;;  %v9733_v52 = vsub.f32 %v26314_v2, %v29619_v5  ;;  %v29620_v14 = vand.u32 4294901760, %v26319_v10  ;;  %v29621_v17 = vand.u32 4294901760, %v26324_v21 }
 0xa14   :  { %v29622_v0 = vand.u32 4294901760, %v26330_v58  ;;  %v26546_v1 = vpack.c.bf16 %v9716_v24, %v9704_v25  ;;  %v10517_v22 = vand.u32 4294901760, %v10516_v15  ;;  %v10524_v26 = vand.u32 4294901760, %v10523_v42 }
 0xa15   :  { %v9722_v44 = vand.u32 4294901760, %v9721_v56  ;;  %v9734_v49 = vand.u32 4294901760, %v9733_v52  ;;  %v9727_v13 = vsub.f32 %v26319_v10, %v29620_v14  ;;  %v9739_v5 = vsub.f32 %v26324_v21, %v29621_v17 }
 0xa16   :  { %31134 = vst [vmem:[#allocation3_spill] sm:$0xff] %v26546_v1  ;;  %v10530_v54 = vsub.f32 %v26330_v58, %v29622_v0  ;;  %v26557_v20 = vpack.c.bf16 %v10524_v26, %v10517_v22  ;;  %v29623_v25 = vand.u32 4294901760, %v26335_v6  ;;  %v29624_v42 = vand.u32 4294901760, %v26340_v62 }
 0xa17   :  { %v29625_v56 = vand.u32 4294901760, %v26345_v33  ;;  %v26562_v24 = vpack.c.bf16 %v9734_v49, %v9722_v44  ;;  %v9728_v15 = vand.u32 4294901760, %v9727_v13  ;;  %v9740_v52 = vand.u32 4294901760, %v9739_v5 }
 0xa18   :  { %31135 = vst [vmem:[#allocation56_spill] sm:$0xff] %v26557_v20  ;;  %v10531_v14 = vand.u32 4294901760, %v10530_v54  ;;  %v10537_v17 = vsub.f32 %v26335_v6, %v29623_v25  ;;  %v9745_v26 = vsub.f32 %v26340_v62, %v29624_v42  ;;  %v29626_v0 = vand.u32 4294901760, %v26350_v45 }
 0xa19   :  { %31136 = vst [vmem:[#allocation57_spill] sm:$0xff] %v26562_v24  ;;  %v9757_v22 = vsub.f32 %v26345_v33, %v29625_v56  ;;  %v26574_v20 = vpack.c.bf16 %v9740_v52, %v9728_v15  ;;  %v29627_v49 = vand.u32 4294901760, %v26355_v61  ;;  %v29628_v13 = vand.u32 4294901760, %v26360_v36 }
 0xa1a   :  { %v29629_v54 = vand.u32 4294901760, %v26365_v34  ;;  %v10538_v44 = vand.u32 4294901760, %v10537_v17  ;;  %v9746_v5 = vand.u32 4294901760, %v9745_v26  ;;  %v9751_v42 = vsub.f32 %v26350_v45, %v29626_v0 }
 0xa1b   :  { %31137 = vst [vmem:[#allocation8_spill] sm:$0xff] %v26574_v20  ;;  %v9758_v25 = vand.u32 4294901760, %v9757_v22  ;;  %v9763_v56 = vsub.f32 %v26355_v61, %v29627_v49  ;;  %v10544_v15 = vsub.f32 %v26360_v36, %v29628_v13  ;;  %v29631_v17 = vand.u32 4294901760, %v26370_v27 }
 0xa1c   :  { %v10551_v52 = vsub.f32 %v26365_v34, %v29629_v54  ;;  %v26592_v26 = vpack.c.bf16 %v10538_v44, %v10531_v14  ;;  %v9752_v20 = vand.u32 4294901760, %v9751_v42  ;;  %v29630_v0 = vand.u32 4294901760, %v26375_v47 }
 0xa1d   :  { %v26594_v22 = vpack.c.bf16 %v9758_v25, %v9746_v5  ;;  %v9764_v24 = vand.u32 4294901760, %v9763_v56  ;;  %v10545_v1 = vand.u32 4294901760, %v10544_v15  ;;  %v9769_v13 = vsub.f32 %v26370_v27, %v29631_v17 }
 0xa1e   :  { %31138 = vst [vmem:[#allocation4_spill] sm:$0xff] %v26592_v26  ;;  %v10552_v49 = vand.u32 4294901760, %v10551_v52  ;;  %v9781_v54 = vsub.f32 %v26375_v47, %v29630_v0  ;;  %v29632_v9 = vand.u32 4294901760, %v26380_v37  ;;  %v29633_v14 = vand.u32 4294901760, %v26385_v43 }
 0xa1f   :  { %31139 = vst [vmem:[#allocation23_spill] sm:$0xff] %v26594_v22  ;;  %v29634_v25 = vand.u32 4294901760, %v26393_v53  ;;  %v26606_v42 = vpack.c.bf16 %v9764_v24, %v9752_v20  ;;  %v9770_v56 = vand.u32 4294901760, %v9769_v13  ;;  %v29635_v5 = vand.u32 4294901760, %v26398_v16 }
 0xa20   :  { %v26608_v44 = vpack.c.bf16 %v10552_v49, %v10545_v1  ;;  %v9782_v15 = vand.u32 4294901760, %v9781_v54  ;;  %v9775_v52 = vsub.f32 %v26380_v37, %v29632_v9  ;;  %v9787_v0 = vsub.f32 %v26385_v43, %v29633_v14  ;;  %v31142_v1 = vld [vmem:[#allocation9_spill] sm:$0xff]  ;;  %v31143_v49 = vld [vmem:[#allocation7_spill] sm:$0xff] }
 0xa21   :  { %31140 = vst [vmem:[#allocation43_spill] sm:$0xff] %v26606_v42  ;;  %v10558_v17 = vsub.f32 %v26393_v53, %v29634_v25  ;;  %v10565_v20 = vsub.f32 %v26398_v16, %v29635_v5  ;;  %v29638_v24 = vand.u32 4294901760, %v31142_v1  ;;  %v29639_v13 = vand.u32 4294901760, %v31143_v49 }
 0xa22   :  { %31141 = vst [vmem:[#allocation18_spill] sm:$0xff] %v26608_v44  ;;  %v29641_v54 = vand.u32 4294901760, %v26416_v46  ;;  %v26626_v44 = vpack.c.bf16 %v9782_v15, %v9770_v56  ;;  %v9776_v9 = vand.u32 4294901760, %v9775_v52  ;;  %v9788_v42 = vand.u32 4294901760, %v9787_v0  ;;  %v9368_v15 = vpop.f32.mrb[70].mxu1 }
 0xa23   :  { %v10559_v22 = vand.u32 4294901760, %v10558_v17  ;;  %v10566_v14 = vand.u32 4294901760, %v10565_v20  ;;  %v9793_v25 = vsub.f32 %v31142_v1, %v29638_v24  ;;  %v9805_v5 = vsub.f32 %v31143_v49, %v29639_v13  ;;  %v15502_v49 = vpop.f32.mrb[71].mxu1 }
 0xa24   :  { %31144 = vst [vmem:[#allocation36_spill] sm:$0xff] %v26626_v44  ;;  %v9799_v26 = vsub.f32 %v26416_v46, %v29641_v54  ;;  %v26637_v16 = vpack.c.bf16 %v9788_v42, %v9776_v9  ;;  %v29644_v56 = vand.u32 4294901760, %v26419_v3  ;;  %v29642_v0 = vand.u32 4294901760, %v26422_v48 }
 0xa25   :  { %v29643_v17 = vand.u32 4294901760, %v26424_v50  ;;  %v26642_v52 = vpack.c.bf16 %v10566_v14, %v10559_v22  ;;  %v9794_v20 = vand.u32 4294901760, %v9793_v25  ;;  %v9806_v24 = vand.u32 4294901760, %v9805_v5 }
 0xa26   :  { %v9800_v44 = vand.u32 4294901760, %v9799_v26  ;;  %v9369_v13 = vadd.f32 %v9368_v15, %v26467_v11  ;;  %v9811_v9 = vsub.f32 %v26419_v3, %v29644_v56  ;;  %v10572_v42 = vsub.f32 %v26422_v48, %v29642_v0 }
 0xa27   :  { %31145 = vst [vmem:[#allocation48_spill] sm:$0xff] %v26642_v52  ;;  %v10579_v54 = vsub.f32 %v26424_v50, %v29643_v17  ;;  %v26654_v22 = vpack.c.bf16 %v9806_v24, %v9794_v20  ;;  %v29645_v14 = vand.u32 4294901760, %v26428_v30  ;;  %v29646_v26 = vand.u32 4294901760, %v26430_v39 }
 0xa28   :  { %v29647_v11 = vand.u32 4294901760, %v26434_v8  ;;  %v9812_v25 = vand.u32 4294901760, %v9811_v9  ;;  %v10573_v5 = vand.u32 4294901760, %v10572_v42  ;;  %v29650_v15 = vand.u32 4294901760, %v26441_v4 }
 0xa29   :  { %31146 = vst [vmem:[#allocation9_spill] sm:$0xff] %v26654_v22  ;;  %v10580_v49 = vand.u32 4294901760, %v10579_v54  ;;  %v9817_v0 = vsub.f32 %v26428_v30, %v29645_v14  ;;  %v9829_v24 = vsub.f32 %v26430_v39, %v29646_v26  ;;  %v29648_v17 = vand.u32 4294901760, %v26445_v12 }
 0xa2a   :  { %v9823_v20 = vsub.f32 %v26434_v8, %v29647_v11  ;;  %v26670_v56 = vpack.c.bf16 %v9812_v25, %v9800_v44  ;;  %v9835_v54 = vsub.f32 %v26441_v4, %v29650_v15  ;;  %v29649_v42 = vand.u32 4294901760, %v26447_v19  ;;  %v31147_v15 = vld [vmem:[#allocation35_spill] sm:$0xff] }
 0xa2b   :  { %v26672_v9 = vpack.c.bf16 %v10580_v49, %v10573_v5  ;;  %v9818_v14 = vand.u32 4294901760, %v9817_v0  ;;  %v9830_v22 = vand.u32 4294901760, %v9829_v24  ;;  %v10586_v26 = vsub.f32 %v26445_v12, %v29648_v17  ;;  %v31148_v5 = vld [vmem:[#allocation39_spill] sm:$0xff] }
 0xa2c   :  { %v9824_v52 = vand.u32 4294901760, %v9823_v20  ;;  %v9836_v11 = vand.u32 4294901760, %v9835_v54  ;;  %v10593_v44 = vsub.f32 %v26447_v19, %v29649_v42  ;;  %v31150_v25 = vld [vmem:[#allocation7_spill] sm:$0xff] }
 0xa2d   :  { %v26688_v49 = vpack.c.bf16 %v9830_v22, %v9818_v14  ;;  %v10587_v0 = vand.u32 4294901760, %v10586_v26  ;;  %v13346_v12 = vld [vmem:[%s28703_s0 + $0x44] sm:$0xf] }
 0xa2e   :  { %v26694_v54 = vpack.c.bf16 %v9836_v11, %v9824_v52  ;;  %v10594_v17 = vand.u32 4294901760, %v10593_v44  ;;  %v13345_v44 = vld [vmem:[%s28703_s0 + $0x3c] sm:$0xff]  ;;  %v7914_v4 = vunpack.c.l.bf16 %v13346_v12 }
 0xa2f   :  { %v7912_v42 = vunpack.c.l.bf16 %v13345_v44  ;;  %v7913_v22 = vunpack.c.h.bf16 %v13345_v44 }
 0xa30   :  { %v26708_v11 = vpack.c.bf16 %v10594_v17, %v10587_v0  ;;  %v31149_v0 = vld [vmem:[#allocation27_spill] sm:$0xff] }
 0xa42   :  { %v8813_v20 = vpop.f32.mrb[10].mxu0  ;;  %v9455_v24 = vpop.f32.mrb[72].mxu1 }
 0xa43   :  { %v9459_v46 = vadd.f32 %v8813_v20, %v7912_v42  ;;  %v9456_v3 = vadd.f32 %v9455_v24, %v9369_v13  ;;  %v8815_v14 = vpop.f32.mrb[11].mxu0  ;;  %v15537_v48 = vpop.f32.mrb[73].mxu1  ;;  %v19182_v13 = vld [vmem:[%s28704_s2] ss:$0 sm:$0xff] }
 0xa44   :  { %v9466_v26 = vadd.f32 %v8815_v14, %v7913_v22  ;;  %v31151_v22 = vld [vmem:[#allocation17_spill] sm:$0xff] }
 0xa45   :  { %v13347_v50 = vmul.f32 -1.442695, %v9459_v46  ;;  %v9473_v48 = vadd.f32 %v19182_v13, %v9456_v3  ;;  %v31154_v13 = vld [vmem:[#allocation44_spill] sm:$0xff] }
 0xa46   :  { %v13348_v30 = vmul.f32 -1.442695, %v9466_v26 }
 0xa47   :  { %19144 = vpow2.f32 %v13347_v50 }
 0xa48   :  { %19146 = vpow2.f32 %v13348_v30 }
 0xa51   :  { %v19145_v52 = vpop.eup %19144 }
 0xa52   :  { %v9463_v8 = vadd.f32 1.0, %v19145_v52  ;;  %v19147_v17 = vpop.eup %19146 }
 0xa53   :  { %v9470_v19 = vadd.f32 1.0, %v19147_v17  ;;  %v31153_v17 = vld [vmem:[#allocation6_spill] sm:$0xff] }
 0xa54   :  { %19148 = vrcp.f32 %v9463_v8 }
 0xa55   :  { %19150 = vrcp.f32 %v9470_v19 }
 0xa5e   :  { %v19149_v46 = vpop.eup %19148 }
 0xa5f   :  { %v9474_v42 = vmul.f32 %v19149_v46, %v9473_v48  ;;  %v19151_v30 = vpop.eup %19150  ;;  %v31155_v48 = vld [vmem:[#allocation45_spill] sm:$0xff]  ;;  %v31156_v46 = vmov 0.0|0.0  }
 0xa60   :  { %v9477_v24 = vsub.f32 1.0, %v19151_v30  ;;  %v9479_v14 = vmul.f32 %v19151_v30, %v31151_v22  ;;  %v31159_v30 = vld [vmem:[#allocation47_spill] sm:$0xff]  ;;  %v31163_v22 = vld [vmem:[#allocation57_spill] sm:$0xff] }
 0xa61   :  { %v9475_v50 = vadd.f32 %v9474_v42, %v7914_v4  ;;  %v31157_v42 = vmov 0.0  }
 0xa63   :  { %19152 = vtanh.f32 %v9475_v50  ;;  %v31158_v50 = vld [vmem:[#allocation5_spill] sm:$0xff] }
 0xa6d   :  { %v19153_v8 = vpop.eup %19152 }
 0xa6e   :  { %v9478_v20 = vmul.f32 %v19153_v8, %v9477_v24  ;;  %v31160_v24 = vld [vmem:[#allocation16_spill] sm:$0xff]  ;;  %v31161_v8 = vld [vmem:[#allocation3_spill] sm:$0xff] }
 0xa70   :  { %v26748_v26 = vadd.f32 %v9479_v14, %v9478_v20  ;;  %v31162_v20 = vld [vmem:[#allocation56_spill] sm:$0xff] }
 0xa71   :  { %v31164_v14 = vld [vmem:[#allocation8_spill] sm:$0xff] }
 0xa72   :  { %31152 = vst [vmem:[#allocation35_spill] sm:$0xff] %v26748_v26  ;;  %v9481_v12 = vpack.c.bf16 %v26748_v26, %v26748_v26  ;;  %v26753_v52 = vand.u32 4294901760, %v26748_v26 }
 0xa74   :  { %13349 = vst [vmem:[%s28705_s5 + $0x14] sm:$0xf] %v9481_v12  ;;  %v26760_v3 = vsub.f32 %v26748_v26, %v26753_v52  ;;  %v31165_v12 = vld [vmem:[#allocation4_spill] sm:$0xff] }
 0xa75   :  { %v31216_v26 = vld [vmem:[#allocation32_spill] sm:$0xff] }
 0xa76   :  { %v26763_v4 = vand.u32 4294901760, %v26760_v3 }
 0xa78   :  { %v9638_v19 = vsub.f32 %v26760_v3, %v26763_v4 }
 0xa7a   :  { %v9639_v44 = vand.u32 4294901760, %v9638_v19  ;;  %v31166_v19 = vld [vmem:[#allocation23_spill] sm:$0xff] }
 0xa7c   :  { %9640 = vmatmul.mubr.f32.vlgmr.msra.gmra.mrb[12].mxu0 %v9639_v44  ;;  %15571 = vmatmul.mubr.f32.vlgmr.msra.gmra.mrb[74].mxu1 %v9639_v44  ;;  %v31167_v44 = vld [vmem:[#allocation43_spill] sm:$0xff] }
 0xa7d   :  { %18219 = vmatpush1.bf16.msra.mxu0 %v31153_v17  ;;  %18402 = vmatpush3.bf16.msra.mxu1 %v31154_v13  ;;  %v31168_v17 = vld [vmem:[#allocation18_spill] sm:$0xff]  ;;  %v31169_v13 = vld [vmem:[#allocation36_spill] sm:$0xff] }
 0xa7e   :  { %18221 = vmatprep.subr.bf16.mxu0 %v31155_v48  ;;  %18403 = vmatprep.subr.bf16.mxu1 %v31156_v46  ;;  %v31170_v48 = vld [vmem:[#allocation48_spill] sm:$0xff] }
 0xa7f   :  { %9870 = vmatprep.mubr.f32.mxu0 %v31157_v42  ;;  %15605 = vmatprep.mubr.msk.f32.mxu1 %vm19186_vm0, %v31157_v42 }
 0xa81   :  { %18223 = vmatpush1.bf16.msra.mxu0 %v31158_v50  ;;  %18405 = vmatpush3.bf16.msra.mxu1 %v31159_v30  ;;  %v31171_v50 = vld [vmem:[#allocation9_spill] sm:$0xff]  ;;  %v31178_v30 = vpack.c.bf16 %v31148_v5, %v26277_v51 }
 0xa82   :  { %18225 = vmatprep.subr.bf16.mxu0 %v31160_v24  ;;  %18406 = vmatprep.subr.bf16.mxu1 %v31156_v46  ;;  %v31179_v24 = vpack.c.bf16 %v26293_v63, %v26288_v59 }
 0xa85   :  { %18227 = vmatpush1.bf16.msra.mxu0 %v31161_v8  ;;  %18408 = vmatpush3.bf16.msra.mxu1 %v31162_v20  ;;  %v31180_v8 = vpack.c.bf16 %v26303_v60, %v26298_v57  ;;  %v31181_v20 = vpack.c.bf16 %v26314_v2, %v26309_v38 }
 0xa86   :  { %18229 = vmatprep.subr.bf16.mxu0 %v31163_v22  ;;  %18409 = vmatprep.subr.bf16.mxu1 %v31156_v46  ;;  %v31182_v22 = vpack.c.bf16 %v26324_v21, %v26319_v10 }
 0xa89   :  { %18231 = vmatpush1.bf16.msra.mxu0 %v31164_v14  ;;  %18411 = vmatpush3.bf16.msra.mxu1 %v31165_v12  ;;  %v31183_v14 = vpack.c.bf16 %v26335_v6, %v26330_v58  ;;  %v31184_v12 = vpack.c.bf16 %v26345_v33, %v26340_v62 }
 0xa8a   :  { %18233 = vmatprep.subr.bf16.mxu0 %v31166_v19  ;;  %18412 = vmatprep.subr.bf16.mxu1 %v31156_v46  ;;  %v31185_v19 = vpack.c.bf16 %v26355_v61, %v26350_v45 }
 0xa8d   :  { %18235 = vmatpush1.bf16.msra.mxu0 %v31167_v44  ;;  %18414 = vmatpush3.bf16.msra.mxu1 %v31168_v17  ;;  %v31186_v44 = vpack.c.bf16 %v26365_v34, %v26360_v36  ;;  %v31187_v17 = vpack.c.bf16 %v26375_v47, %v26370_v27 }
 0xa8e   :  { %18237 = vmatprep.subr.bf16.mxu0 %v31169_v13  ;;  %18415 = vmatprep.subr.bf16.mxu1 %v31156_v46  ;;  %v31188_v13 = vpack.c.bf16 %v26385_v43, %v26380_v37 }
 0xa91   :  { %18239 = vmatpush1.bf16.msra.mxu0 %v26637_v16  ;;  %18417 = vmatpush3.bf16.msra.mxu1 %v31170_v48  ;;  %v31172_v16 = vpack.c.bf16 %v26207_v55, %v26202_v31  ;;  %v31189_v48 = vpack.c.bf16 %v31149_v0, %v26393_v53 }
 0xa92   :  { %18241 = vmatprep.subr.bf16.mxu0 %v31171_v50  ;;  %18418 = vmatprep.subr.bf16.mxu1 %v31156_v46  ;;  %v31190_v50 = vpack.c.bf16 %v31150_v25, %v31142_v1 }
 0xa95   :  { %18243 = vmatpush1.bf16.msra.mxu0 %v26670_v56  ;;  %18420 = vmatpush3.bf16.msra.mxu1 %v26672_v9  ;;  %v31173_v56 = vpack.c.bf16 %v26220_v29, %v26215_v7  ;;  %v31174_v9 = vpack.c.bf16 %v26230_v18, %v26225_v28 }
 0xa96   :  { %18245 = vmatprep.subr.bf16.mxu0 %v26688_v49  ;;  %18421 = vmatprep.subr.bf16.mxu1 %v31156_v46  ;;  %v31175_v49 = vpack.c.bf16 %v26252_v41, %v26247_v40 }
 0xa99   :  { %18247 = vmatpush1.bf16.msra.mxu0 %v26694_v54  ;;  %18423 = vmatpush3.bf16.msra.mxu1 %v26708_v11  ;;  %v31176_v54 = vpack.c.bf16 %v26262_v35, %v26257_v23  ;;  %v31177_v11 = vpack.c.bf16 %v26272_v32, %v31147_v15 }
 0xa9a   :  { %18249 = vmatprep.subr.bf16.mxu0 %v31172_v16  ;;  %18424 = vmatprep.subr.bf16.mxu1 %v31156_v46  ;;  %v31191_v16 = vld [vmem:[#allocation21_spill] sm:$0xff] }
 0xa9c   :  { %9872 = vmatmul.mubr.f32.vlgmr.msra.gmra.mrb[12].mxu0 %v26753_v52  ;;  %15606 = vmatmul.mubr.f32.vlgmr.msra.gmra.mrb[76].mxu1 %v26753_v52 }
 0xa9d   :  { %18251 = vmatpush1.bf16.msra.mxu0 %v31173_v56  ;;  %18426 = vmatpush3.bf16.msra.mxu1 %v31174_v9  ;;  %v31192_v56 = vld [vmem:[#allocation38_spill] sm:$0xff] }
 0xa9e   :  { %18253 = vmatprep.subr.bf16.mxu0 %v31175_v49  ;;  %18427 = vmatprep.subr.bf16.mxu1 %v31156_v46  ;;  %v31193_v9 = vpack.c.bf16 %v31191_v16, %v31192_v56  ;;  %v31194_v49 = vld [vmem:[#allocation14_spill] sm:$0xff] }
 0xa9f   :  { %10006 = vmatprep.mubr.f32.mxu0 %v31157_v42  ;;  %15640 = vmatprep.mubr.msk.f32.mxu1 %vm19186_vm0, %v31157_v42 }
 0xaa1   :  { %18255 = vmatpush1.bf16.msra.mxu0 %v31176_v54  ;;  %18429 = vmatpush3.bf16.msra.mxu1 %v31177_v11  ;;  %v31195_v54 = vld [vmem:[#allocation19_spill] sm:$0xff] }
 0xaa2   :  { %18257 = vmatprep.subr.bf16.mxu0 %v31178_v30  ;;  %18430 = vmatprep.subr.bf16.mxu1 %v31156_v46  ;;  %v31196_v11 = vpack.c.bf16 %v31194_v49, %v31195_v54  ;;  %v31197_v30 = vld [vmem:[#allocation20_spill] sm:$0xff] }
 0xaa5   :  { %18259 = vmatpush1.bf16.msra.mxu0 %v31179_v24  ;;  %18432 = vmatpush3.bf16.msra.mxu1 %v31180_v8  ;;  %v31198_v24 = vpack.c.bf16 %v26430_v39, %v31197_v30  ;;  %v31199_v8 = vld [vmem:[#allocation37_spill] sm:$0xff] }
 0xaa6   :  { %18261 = vmatprep.subr.bf16.mxu0 %v31181_v20  ;;  %18433 = vmatprep.subr.bf16.mxu1 %v31156_v46  ;;  %v31200_v20 = vld [vmem:[#allocation12_spill] sm:$0xff] }
 0xaa9   :  { %18263 = vmatpush1.bf16.msra.mxu0 %v31182_v22  ;;  %18435 = vmatpush3.bf16.msra.mxu1 %v31183_v14  ;;  %v31201_v22 = vpack.c.bf16 %v31199_v8, %v31200_v20  ;;  %v31202_v14 = vld [vmem:[#allocation13_spill] sm:$0xff] }
 0xaaa   :  { %18265 = vmatprep.subr.bf16.mxu0 %v31184_v12  ;;  %18436 = vmatprep.subr.bf16.mxu1 %v31156_v46  ;;  %v31203_v12 = vld [vmem:[#allocation31_spill] sm:$0xff] }
 0xaad   :  { %18267 = vmatpush1.bf16.msra.mxu0 %v31185_v19  ;;  %18438 = vmatpush3.bf16.msra.mxu1 %v31186_v44  ;;  %v31204_v19 = vpack.c.bf16 %v31202_v14, %v31203_v12  ;;  %v31205_v44 = vld [vmem:[#allocation34_spill] sm:$0xff] }
 0xaae   :  { %18269 = vmatprep.subr.bf16.mxu0 %v31187_v17  ;;  %18439 = vmatprep.subr.bf16.mxu1 %v31156_v46  ;;  %v31206_v17 = vld [vmem:[#allocation54_spill] sm:$0xff] }
 0xab1   :  { %18271 = vmatpush1.bf16.msra.mxu0 %v31188_v13  ;;  %18441 = vmatpush3.bf16.msra.mxu1 %v31189_v48  ;;  %v31207_v13 = vld [vmem:[#allocation55_spill] sm:$0xff]  ;;  %v31208_v48 = vld [vmem:[#allocation41_spill] sm:$0xff] }
 0xab2   :  { %18273 = vmatprep.subr.bf16.mxu0 %v31190_v50  ;;  %18442 = vmatprep.subr.bf16.mxu1 %v31156_v46  ;;  %v31209_v50 = vld [vmem:[#allocation22_spill] sm:$0xff] }
 0xab5   :  { %18275 = vmatpush1.bf16.msra.mxu0 %v31193_v9  ;;  %18444 = vmatpush3.bf16.msra.mxu1 %v31196_v11  ;;  %v31210_v9 = vld [vmem:[#allocation24_spill] sm:$0xff]  ;;  %v31211_v11 = vld [vmem:[#allocation46_spill] sm:$0xff] }
 0xab6   :  { %18277 = vmatprep.subr.bf16.mxu0 %v31198_v24  ;;  %18445 = vmatprep.subr.bf16.mxu1 %v31156_v46  ;;  %v31213_v24 = vld [vmem:[#allocation51_spill] sm:$0xff] }
 0xab9   :  { %18279 = vmatpush1.bf16.msra.mxu0 %v31201_v22  ;;  %18447 = vmatpush3.bf16.msra.mxu1 %v31204_v19  ;;  %v31214_v22 = vld [vmem:[#allocation49_spill] sm:$0xff]  ;;  %v31215_v19 = vld [vmem:[#allocation26_spill] sm:$0xff] }
 0xaba   :  { %18281 = vmatprep.subr.bf16.mxu0 %v31205_v44  ;;  %18448 = vmatprep.subr.bf16.mxu1 %v31156_v46 }
 0xabc   :  { %10009 = vmatmul.mubr.f32.vlgmr.msra.gmra.mrb[12].mxu0 %v26760_v3  ;;  %15641 = vmatmul.mubr.f32.vlgmr.msra.gmra.mrb[78].mxu1 %v26760_v3  ;;  %v31212_v3 = vld [vmem:[#allocation25_spill] sm:$0xff] }
 0xabd   :  { %18283 = vmatpush1.bf16.msra.mxu0 %v31206_v17  ;;  %18450 = vmatpush3.bf16.msra.mxu1 %v31207_v13  ;;  %v31232_v13 = vand.u32 4294901760, %v26220_v29  ;;  %v31238_v29 = vand.u32 4294901760, %v26262_v35  ;;  %v31243_v35 = vand.u32 4294901760, %v26288_v59  ;;  %v31249_v59 = vand.u32 4294901760, %v26319_v10 }
 0xabe   :  { %18285 = vmatprep.subr.bf16.mxu0 %v31208_v48  ;;  %18451 = vmatprep.subr.bf16.mxu1 %v31156_v46  ;;  %v31217_v48 = vld [vmem:[#allocation33_spill] sm:$0xff]  ;;  %v31255_v10 = vand.u32 4294901760, %v26350_v45  ;;  %v31261_v45 = vand.u32 4294901760, %v26380_v37  ;;  %v31267_v37 = vand.u32 4294901760, %v31192_v56  ;;  %v31273_v56 = vand.u32 4294901760, %v31200_v20  ;;  %v31280_v20 = vld [vmem:[#allocation22_spill] sm:$0xff] }
 0xabf   :  { %10111 = vmatprep.mubr.f32.mxu0 %v31157_v42  ;;  %15675 = vmatprep.mubr.msk.f32.mxu1 %vm19186_vm0, %v31157_v42 }
 0xac1   :  { %18287 = vmatpush1.bf16.msra.mxu0 %v31209_v50  ;;  %18453 = vmatpush3.bf16.msra.mxu1 %v31210_v9  ;;  %v31218_v9 = vld [vmem:[#allocation10_spill] sm:$0xff]  ;;  %v31220_v50 = vld [vmem:[#allocation40_spill] sm:$0xff] }
 0xac2   :  { %18289 = vmatprep.subr.bf16.mxu0 %v31211_v11  ;;  %18454 = vmatprep.subr.bf16.mxu1 %v31156_v46  ;;  %v31219_v11 = vld [vmem:[#allocation30_spill] sm:$0xff] }
 0xac5   :  { %18291 = vmatpush1.bf16.msra.mxu0 %v31212_v3  ;;  %18456 = vmatpush3.bf16.msra.mxu1 %v31213_v24  ;;  %v31221_v24 = vld [vmem:[#allocation50_spill] sm:$0xff]  ;;  %v31223_v3 = vld [vmem:[#allocation11_spill] sm:$0xff] }
 0xac6   :  { %18293 = vmatprep.subr.bf16.mxu0 %v31214_v22  ;;  %18457 = vmatprep.subr.bf16.mxu1 %v31156_v46  ;;  %v31222_v22 = vld [vmem:[#allocation52_spill] sm:$0xff] }
 0xac9   :  { %18295 = vmatpush1.bf16.msra.mxu0 %v31215_v19  ;;  %18459 = vmatpush3.bf16.msra.mxu1 %v31216_v26  ;;  %v31224_v26 = vld [vmem:[#allocation15_spill] sm:$0xff]  ;;  %v31226_v19 = vld [vmem:[#allocation42_spill] sm:$0xff] }
 0xaca   :  { %18297 = vmatprep.subr.bf16.mxu0 %v31217_v48  ;;  %18460 = vmatprep.subr.bf16.mxu1 %v31156_v46  ;;  %v31225_v48 = vld [vmem:[#allocation28_spill] sm:$0xff] }
 0xacd   :  { %18299 = vmatpush1.bf16.msra.mxu0 %v31218_v9  ;;  %18462 = vmatpush3.bf16.msra.mxu1 %v31219_v11  ;;  %v31228_v11 = vand.u32 4294901760, %v26207_v55  ;;  %v31235_v55 = vand.u32 4294901760, %v26247_v40  ;;  %v31242_v40 = vand.u32 4294901760, %v31148_v5  ;;  %v31247_v5 = vand.u32 4294901760, %v26309_v38 }
 0xace   :  { %18301 = vmatprep.subr.bf16.mxu0 %v31220_v50  ;;  %18463 = vmatprep.subr.bf16.mxu1 %v31156_v46  ;;  %v31227_v50 = vand.u32 4294901760, %v26202_v31  ;;  %v31236_v31 = vand.u32 4294901760, %v26252_v41  ;;  %v31241_v41 = vand.u32 4294901760, %v26277_v51  ;;  %v31253_v38 = vand.u32 4294901760, %v26340_v62 }
 0xacf   :  { %v31259_v62 = vand.u32 4294901760, %v26370_v27  ;;  %v31265_v27 = vand.u32 4294901760, %v31142_v1  ;;  %v31271_v1 = vand.u32 4294901760, %v31197_v30  ;;  %v31278_v30 = vld [vmem:[#allocation55_spill] sm:$0xff] }
 0xad0   :  { %v18312_v9 = vpack.c.bf16 %v31228_v11, %v31227_v50  ;;  %v18316_v50 = vpack.c.bf16 %v31236_v31, %v31235_v55 }
 0xad1   :  { %18303 = vmatpush1.bf16.msra.mxu0 %v31221_v24  ;;  %18465 = vmatpush3.bf16.msra.mxu1 %v31222_v22  ;;  %v31229_v24 = vld [vmem:[#allocation53_spill] sm:$0xff] }
 0xad2   :  { %18305 = vmatprep.subr.bf16.mxu0 %v31223_v3  ;;  %18466 = vmatprep.subr.bf16.mxu1 %v31156_v46  ;;  %v31230_v22 = vld [vmem:[#allocation29_spill] sm:$0xff]  ;;  %v31231_v3 = vand.u32 4294901760, %v26215_v7  ;;  %v31237_v7 = vand.u32 4294901760, %v26257_v23  ;;  %v31244_v23 = vand.u32 4294901760, %v26293_v63  ;;  %v31250_v63 = vand.u32 4294901760, %v26324_v21 }
 0xad3   :  { %v31256_v21 = vand.u32 4294901760, %v26355_v61  ;;  %v31262_v61 = vand.u32 4294901760, %v26385_v43  ;;  %v31268_v43 = vand.u32 4294901760, %v31191_v16  ;;  %v31274_v16 = vand.u32 4294901760, %v31199_v8  ;;  %v31279_v8 = vld [vmem:[#allocation41_spill] sm:$0xff] }
 0xad4   :  { %v18326_v11 = vpack.c.bf16 %v31250_v63, %v31249_v59  ;;  %v31294_v59 = vld [vmem:[#allocation11_spill] sm:$0xff] }
 0xad5   :  { %18307 = vmatpush1.bf16.msra.mxu0 %v31224_v26  ;;  %18468 = vmatpush3.bf16.msra.mxu1 %v31225_v48  ;;  %v18314_v26 = vpack.c.bf16 %v31232_v13, %v31231_v3  ;;  %v31233_v48 = vand.u32 4294901760, %v26225_v28  ;;  %v31239_v28 = vand.u32 4294901760, %v31147_v15  ;;  %v31240_v13 = vand.u32 4294901760, %v26272_v32  ;;  %v31295_v63 = vld [vmem:[#allocation15_spill] sm:$0xff] }
 0xad6   :  { %18309 = vmatprep.subr.bf16.mxu0 %v31226_v19  ;;  %18469 = vmatprep.subr.bf16.mxu1 %v31156_v46  ;;  %v31234_v19 = vand.u32 4294901760, %v26230_v18  ;;  %v18318_v18 = vpack.c.bf16 %v31238_v29, %v31237_v7  ;;  %v18322_v32 = vpack.c.bf16 %v31244_v23, %v31243_v35  ;;  %v31245_v15 = vand.u32 4294901760, %v26298_v57  ;;  %v31285_v35 = vld [vmem:[#allocation49_spill] sm:$0xff]  ;;  %v31286_v23 = vld [vmem:[#allocation26_spill] sm:$0xff] }
 0xad7   :  { %v31251_v57 = vand.u32 4294901760, %v26330_v58  ;;  %v18330_v55 = vpack.c.bf16 %v31256_v21, %v31255_v10  ;;  %v31257_v58 = vand.u32 4294901760, %v26360_v36  ;;  %v18334_v7 = vpack.c.bf16 %v31262_v61, %v31261_v45  ;;  %v27089_v21 = vld [vmem:[%s28702_s1] sm:$0xff] }
 0xad8   :  { %v18473_v17 = vpack.c.bf16 %v31234_v19, %v31233_v48  ;;  %v18476_v48 = vpack.c.bf16 %v31240_v13, %v31239_v28  ;;  %v31263_v36 = vand.u32 4294901760, %v26393_v53  ;;  %v18338_v28 = vpack.c.bf16 %v31268_v43, %v31267_v37  ;;  %v27154_v37 = vld [vmem:[%s28702_s1 + $0x40] sm:$0xff] }
 0xad9   :  { %18311 = vmatpush1.bf16.msra.mxu0 %v31229_v24  ;;  %18471 = vmatpush3.bf16.msra.mxu1 %v31230_v22  ;;  %v31269_v53 = vand.u32 4294901760, %v31195_v54  ;;  %v31275_v54 = vand.u32 4294901760, %v31203_v12  ;;  %v31282_v12 = vld [vmem:[#allocation46_spill] sm:$0xff] }
 0xada   :  { %18313 = vmatprep.subr.bf16.mxu0 %v18312_v9  ;;  %18472 = vmatprep.subr.bf16.mxu1 %v31156_v46 }
 0xadc   :  { %10115 = vmatmul.mubr.f32.vlgmr.msra.gmra.mrb[12].mxu0 %v26763_v4  ;;  %15676 = vmatmul.mubr.f32.vlgmr.msra.gmra.mrb[80].mxu1 %v26763_v4  ;;  %v18320_v4 = vpack.c.bf16 %v31242_v40, %v31241_v41  ;;  %v18342_v41 = vpack.c.bf16 %v31274_v16, %v31273_v56  ;;  %v27188_v56 = vld [vmem:[%s28702_s1 + $0x80] sm:$0xff] }
 0xadd   :  { %18315 = vmatpush1.bf16.msra.mxu0 %v18314_v26  ;;  %18474 = vmatpush3.bf16.msra.mxu1 %v18473_v17  ;;  %v31246_v26 = vand.u32 4294901760, %v26303_v60  ;;  %v31248_v17 = vand.u32 4294901760, %v26314_v2  ;;  %v31252_v60 = vand.u32 4294901760, %v26335_v6  ;;  %v31254_v2 = vand.u32 4294901760, %v26345_v33 }
 0xade   :  { %18317 = vmatprep.subr.bf16.mxu0 %v18316_v50  ;;  %18475 = vmatprep.subr.bf16.mxu1 %v31156_v46  ;;  %v31258_v6 = vand.u32 4294901760, %v26365_v34  ;;  %v31260_v33 = vand.u32 4294901760, %v26375_v47  ;;  %v31264_v34 = vand.u32 4294901760, %v31149_v0  ;;  %v31266_v47 = vand.u32 4294901760, %v31150_v25 }
 0xadf   :  { %10281 = vmatprep.mubr.f32.mxu0 %v31157_v42  ;;  %15710 = vmatprep.mubr.msk.f32.mxu1 %vm19186_vm0, %v31157_v42  ;;  %v18479_v51 = vpack.c.bf16 %v31246_v26, %v31245_v15  ;;  %v18324_v9 = vpack.c.bf16 %v31248_v17, %v31247_v5  ;;  %v18482_v3 = vpack.c.bf16 %v31252_v60, %v31251_v57  ;;  %v31270_v0 = vand.u32 4294901760, %v31194_v49  ;;  %v31288_v15 = vld [vmem:[#allocation33_spill] sm:$0xff]  ;;  %v31289_v26 = vld [vmem:[#allocation10_spill] sm:$0xff]  ;;  %v31291_v5 = vld [vmem:[#allocation40_spill] sm:$0xff] }
 0xae0   :  { %v18328_v19 = vpack.c.bf16 %v31254_v2, %v31253_v38  ;;  %v18485_v31 = vpack.c.bf16 %v31258_v6, %v31257_v58  ;;  %v18332_v50 = vpack.c.bf16 %v31260_v33, %v31259_v62  ;;  %v18488_v29 = vpack.c.bf16 %v31264_v34, %v31263_v36  ;;  %v31292_v17 = vld [vmem:[#allocation50_spill] sm:$0xff]  ;;  %v27099_v58 = vld [vmem:[%s28702_s1 + $0x10] sm:$0xff]  ;;  %v27106_v62 = vld [vmem:[%s28702_s1 + $0x28] sm:$0xff] }
 0xae1   :  { %18319 = vmatpush1.bf16.msra.mxu0 %v18318_v18  ;;  %18477 = vmatpush3.bf16.msra.mxu1 %v18476_v48  ;;  %v18336_v18 = vpack.c.bf16 %v31266_v47, %v31265_v27  ;;  %v18491_v13 = vpack.c.bf16 %v31270_v0, %v31269_v53  ;;  %v31272_v25 = vand.u32 4294901760, %v26430_v39  ;;  %v31276_v49 = vand.u32 4294901760, %v31202_v14  ;;  %v31277_v39 = vld [vmem:[#allocation54_spill] sm:$0xff]  ;;  %v31281_v14 = vld [vmem:[#allocation24_spill] sm:$0xff]  ;;  %v27130_v36 = vld [vmem:[%s28702_s1 + $0x50] sm:$0xff] }
 0xae2   :  { %18321 = vmatprep.subr.bf16.mxu0 %v18320_v4  ;;  %18478 = vmatprep.subr.bf16.mxu1 %v31156_v46  ;;  %v31284_v4 = vld [vmem:[#allocation51_spill] sm:$0xff]  ;;  %v31297_v57 = vld [vmem:[#allocation42_spill] sm:$0xff]  ;;  %v29697_v6 = vand.u32 4294901760, %v27089_v21  ;;  %v29695_v33 = vand.u32 4294901760, %v27099_v58  ;;  %v29694_v45 = vand.u32 4294901760, %v27106_v62  ;;  %v29690_v27 = vand.u32 4294901760, %v27130_v36 }
 0xae3   :  { %v18340_v48 = vpack.c.bf16 %v31272_v25, %v31271_v1  ;;  %v18494_v40 = vpack.c.bf16 %v31276_v49, %v31275_v54  ;;  %v27144_v47 = vld [vmem:[%s28702_s1 + $0x30] sm:$0xff]  ;;  %v27162_v53 = vld [vmem:[%s28702_s1 + $0x58] sm:$0xff]  ;;  %v29683_v0 = vand.u32 4294901760, %v27154_v37  ;;  %v29680_v54 = vand.u32 4294901760, %v27188_v56  ;;  %v27202_v49 = vld [vmem:[%s28702_s1 + $0x60] sm:$0xff] }
 0xae4   :  { %v27137_v34 = vpack.c.bf16 %v29694_v45, %v29695_v33  ;;  %v29689_v43 = vand.u32 4294901760, %v27144_v47  ;;  %v29682_v1 = vand.u32 4294901760, %v27162_v53 }
 0xae5   :  { %18323 = vmatpush1.bf16.msra.mxu0 %v18322_v32  ;;  %18480 = vmatpush3.bf16.msra.mxu1 %v18479_v51  ;;  %v31287_v32 = vld [vmem:[#allocation32_spill] sm:$0xff]  ;;  %v31290_v51 = vld [vmem:[#allocation30_spill] sm:$0xff] }
 0xae6   :  { %18325 = vmatprep.subr.bf16.mxu0 %v18324_v9  ;;  %18481 = vmatprep.subr.bf16.mxu1 %v31156_v46  ;;  %v31293_v9 = vld [vmem:[#allocation52_spill] sm:$0xff]  ;;  %31300 = vst [vmem:[#allocation7_spill] sm:$0xff] %v27137_v34  ;;  %v27195_v16 = vpack.c.bf16 %v29682_v1, %v29683_v0  ;;  %v27359_v0 = vld [vmem:[%s28702_s1 + $0xf8] sm:$0xff] }
 0xae8   :  { %31303 = vst [vmem:[#allocation44_spill] sm:$0xff] %v27195_v16 }
 0xae9   :  { %18327 = vmatpush1.bf16.msra.mxu0 %v18326_v11  ;;  %18483 = vmatpush3.bf16.msra.mxu1 %v18482_v3  ;;  %v31296_v11 = vld [vmem:[#allocation28_spill] sm:$0xff] }
 0xaea   :  { %18329 = vmatprep.subr.bf16.mxu0 %v18328_v19  ;;  %18484 = vmatprep.subr.bf16.mxu1 %v31156_v46 }
 0xaed   :  { %18331 = vmatpush1.bf16.msra.mxu0 %v18330_v55  ;;  %18486 = vmatpush3.bf16.msra.mxu1 %v18485_v31  ;;  %v27094_v55 = vld [vmem:[%s28702_s1 + $0x18] sm:$0xff] }
 0xaee   :  { %18333 = vmatprep.subr.bf16.mxu0 %v18332_v50  ;;  %18487 = vmatprep.subr.bf16.mxu1 %v31156_v46  ;;  %v29696_v31 = vand.u32 4294901760, %v27094_v55 }
 0xaf0   :  { %v27120_v61 = vpack.c.bf16 %v29696_v31, %v29697_v6 }
 0xaf1   :  { %18335 = vmatpush1.bf16.msra.mxu0 %v18334_v7  ;;  %18489 = vmatpush3.bf16.msra.mxu1 %v18488_v29  ;;  %v27125_v7 = vld [vmem:[%s28702_s1 + $0x38] sm:$0xff] }
 0xaf2   :  { %18337 = vmatprep.subr.bf16.mxu0 %v18336_v18  ;;  %18490 = vmatprep.subr.bf16.mxu1 %v31156_v46  ;;  %31299 = vst [vmem:[#allocation27_spill] sm:$0xff] %v27120_v61  ;;  %v29693_v29 = vand.u32 4294901760, %v27125_v7  ;;  %v27149_v18 = vld [vmem:[%s28702_s1 + $0x48] sm:$0xff] }
 0xaf5   :  { %18339 = vmatpush1.bf16.msra.mxu0 %v18338_v28  ;;  %18492 = vmatpush3.bf16.msra.mxu1 %v18491_v13  ;;  %v29688_v28 = vand.u32 4294901760, %v27149_v18  ;;  %v27170_v13 = vpack.c.bf16 %v29690_v27, %v29693_v29  ;;  %v27388_v27 = vld [vmem:[%s28702_s1 + $0x100] sm:$0xff]  ;;  %v27396_v29 = vld [vmem:[%s28702_s1 + $0x118] sm:$0xff] }
 0xaf6   :  { %18341 = vmatprep.subr.bf16.mxu0 %v18340_v48  ;;  %18493 = vmatprep.subr.bf16.mxu1 %v31156_v46  ;;  %v27183_v48 = vld [vmem:[%s28702_s1 + $0x68] sm:$0xff]  ;;  %v29709_v45 = vand.u32 4294901760, %v27388_v27  ;;  %v29708_v31 = vand.u32 4294901760, %v27396_v29 }
 0xaf7   :  { %31301 = vst [vmem:[#allocation17_spill] sm:$0xff] %v27170_v13  ;;  %v27178_v25 = vpack.c.bf16 %v29688_v28, %v29689_v43  ;;  %v27378_v28 = vld [vmem:[%s28702_s1 + $0xf0] sm:$0xff]  ;;  %v27383_v43 = vld [vmem:[%s28702_s1 + $0x108] sm:$0xff] }
 0xaf9   :  { %18343 = vmatpush1.bf16.msra.mxu0 %v18342_v41  ;;  %18495 = vmatpush3.bf16.msra.mxu1 %v18494_v40  ;;  %31302 = vst [vmem:[#allocation6_spill] sm:$0xff] %v27178_v25  ;;  %v29681_v41 = vand.u32 4294901760, %v27183_v48  ;;  %v27207_v40 = vld [vmem:[%s28702_s1 + $0x78] sm:$0xff] }
 0xafa   :  { %18345 = vmatprep.subr.bf16.mxu0 %v31205_v44  ;;  %18496 = vmatprep.subr.bf16.mxu1 %v31156_v46  ;;  %v31283_v44 = vld [vmem:[#allocation25_spill] sm:$0xff] }
 0xafc   :  { %10283 = vmatmul.mubr.f32.vlgmr.msra.gmra.mrb[12].mxu0 %v26753_v52  ;;  %15711 = vmatmul.mubr.f32.vlgmr.msra.gmra.mrb[82].mxu1 %v26753_v52 }
 0xafd   :  { %18347 = vmatpush1.bf16.msra.mxu0 %v31277_v39  ;;  %18498 = vmatpush3.bf16.msra.mxu1 %v31278_v30  ;;  %v27212_v39 = vld [vmem:[%s28702_s1 + $0x70] sm:$0xff]  ;;  %v29679_v30 = vand.u32 4294901760, %v27202_v49 }
 0xafe   :  { %18349 = vmatprep.subr.bf16.mxu0 %v31279_v8  ;;  %18499 = vmatprep.subr.bf16.mxu1 %v31156_v46  ;;  %v29678_v8 = vand.u32 4294901760, %v27207_v40 }
 0xaff   :  { %10385 = vmatprep.mubr.f32.mxu0 %v31157_v42  ;;  %15745 = vmatprep.mubr.msk.f32.mxu1 %vm19186_vm0, %v31157_v42 }
 0xb01   :  { %18351 = vmatpush1.bf16.msra.mxu0 %v31280_v20  ;;  %18501 = vmatpush3.bf16.msra.mxu1 %v31281_v14  ;;  %v27220_v20 = vld [vmem:[%s28702_s1 + $0x88] sm:$0xff]  ;;  %v29675_v14 = vand.u32 4294901760, %v27212_v39 }
 0xb02   :  { %18353 = vmatprep.subr.bf16.mxu0 %v31282_v12  ;;  %18502 = vmatprep.subr.bf16.mxu1 %v31156_v46  ;;  %v27228_v12 = vpack.c.bf16 %v29680_v54, %v29681_v41 }
 0xb04   :  { %31304 = vst [vmem:[#allocation45_spill] sm:$0xff] %v27228_v12 }
 0xb05   :  { %18355 = vmatpush1.bf16.msra.mxu0 %v31283_v44  ;;  %18504 = vmatpush3.bf16.msra.mxu1 %v31284_v4  ;;  %v29674_v44 = vand.u32 4294901760, %v27220_v20 }
 0xb06   :  { %18357 = vmatprep.subr.bf16.mxu0 %v31285_v35  ;;  %18505 = vmatprep.subr.bf16.mxu1 %v31156_v46  ;;  %v27236_v35 = vpack.c.bf16 %v29678_v8, %v29679_v30  ;;  %v27338_v8 = vld [vmem:[%s28702_s1 + $0xe8] sm:$0xff] }
 0xb07   :  { %v29691_v41 = vand.u32 4294901760, %v27338_v8 }
 0xb08   :  { %31305 = vst [vmem:[#allocation5_spill] sm:$0xff] %v27236_v35 }
 0xb09   :  { %18359 = vmatpush1.bf16.msra.mxu0 %v31286_v23  ;;  %18507 = vmatpush3.bf16.msra.mxu1 %v31287_v32  ;;  %v27241_v23 = vld [vmem:[%s28702_s1 + $0x98] sm:$0xff]  ;;  %v27246_v32 = vld [vmem:[%s28702_s1 + $0xb0] sm:$0xff] }
 0xb0a   :  { %18361 = vmatprep.subr.bf16.mxu0 %v31288_v15  ;;  %18508 = vmatprep.subr.bf16.mxu1 %v31156_v46 }
 0xb0d   :  { %18363 = vmatpush1.bf16.msra.mxu0 %v31289_v26  ;;  %18510 = vmatpush3.bf16.msra.mxu1 %v31290_v51  ;;  %v27255_v51 = vpack.c.bf16 %v29674_v44, %v29675_v14  ;;  %v27325_v44 = vld [vmem:[%s28702_s1 + $0xd8] sm:$0xff]  ;;  %v27330_v14 = vld [vmem:[%s28702_s1 + $0xd0] sm:$0xff] }
 0xb0e   :  { %18365 = vmatprep.subr.bf16.mxu0 %v31291_v5  ;;  %18511 = vmatprep.subr.bf16.mxu1 %v31156_v46  ;;  %v29673_v5 = vand.u32 4294901760, %v27241_v23  ;;  %v29692_v30 = vand.u32 4294901760, %v27330_v14 }
 0xb0f   :  { %31307 = vst [vmem:[#allocation16_spill] sm:$0xff] %v27255_v51 }
 0xb11   :  { %18367 = vmatpush1.bf16.msra.mxu0 %v31292_v17  ;;  %18513 = vmatpush3.bf16.msra.mxu1 %v31293_v9  ;;  %v29670_v17 = vand.u32 4294901760, %v27246_v32  ;;  %v27262_v9 = vld [vmem:[%s28702_s1 + $0x90] sm:$0xff] }
 0xb12   :  { %18369 = vmatprep.subr.bf16.mxu0 %v31294_v59  ;;  %18514 = vmatprep.subr.bf16.mxu1 %v31156_v46  ;;  %v27267_v59 = vld [vmem:[%s28702_s1 + $0xa8] sm:$0xff] }
 0xb15   :  { %18371 = vmatpush1.bf16.msra.mxu0 %v31295_v63  ;;  %18516 = vmatpush3.bf16.msra.mxu1 %v31296_v11  ;;  %v27272_v63 = vld [vmem:[%s28702_s1 + $0xa0] sm:$0xff]  ;;  %v29672_v11 = vand.u32 4294901760, %v27262_v9 }
 0xb16   :  { %18373 = vmatprep.subr.bf16.mxu0 %v31297_v57  ;;  %18517 = vmatprep.subr.bf16.mxu1 %v31156_v46  ;;  %v29671_v57 = vand.u32 4294901760, %v27267_v59 }
 0xb19   :  { %18375 = vmatpush1.bf16.msra.mxu0 %v31229_v24  ;;  %18519 = vmatpush3.bf16.msra.mxu1 %v31230_v22  ;;  %v27077_v24 = vld [vmem:[%s28702_s1 + $0x8] sm:$0xff]  ;;  %v27082_v22 = vld [vmem:[%s28702_s1 + $0x20] sm:$0xff] }
 0xb1a   :  { %18712 = vmatprep.subr.bf16.mxu1 %v31156_v46  ;;  %v29698_v10 = vand.u32 4294901760, %v27082_v22 }
 0xb1c   :  { %10387 = vmatmul.mubr.f32.vlgmr.msra.gmra.mrb[12].mxu0 %v26753_v52  ;;  %15746 = vmatmul.mubr.f32.vlgmr.msra.gmra.mrb[84].mxu1 %v26753_v52  ;;  %v29703_v52 = vand.u32 4294901760, %v27077_v24 }
 0xb1d   :  { %11209 = vmatprep.mubr.f32.mxu0 %v31157_v42  ;;  %15780 = vmatprep.mubr.msk.f32.mxu1 %vm19186_vm0, %v31157_v42 }
 0xb1e   :  { %v27113_v50 = vpack.c.bf16 %v29698_v10, %v29703_v52  ;;  %18714 = vmatpush3.bf16.msra.mxu1 %v27137_v34  ;;  %v27417_v10 = vld [vmem:[%s28702_s1 + $0x128] sm:$0xff]  ;;  %v27436_v52 = vld [vmem:[%s28702_s1 + $0x120] sm:$0xff] }
 0xb1f   :  { %18715 = vmatprep.subr.bf16.mxu1 %v31156_v46 }
 0xb20   :  { %31298 = vst [vmem:[#allocation39_spill] sm:$0xff] %v27113_v50  ;;  %18521 = vmatprep.subr.bf16.mxu0 %v27113_v50  ;;  %v31329_v50 = vand.u32 4294901760, %v27149_v18 }
 0xb21   :  { %18523 = vmatpush1.bf16.msra.mxu0 %v27120_v61  ;;  %v31328_v61 = vand.u32 4294901760, %v27144_v47 }
 0xb22   :  { %18525 = vmatprep.subr.bf16.mxu0 %v27170_v13  ;;  %18717 = vmatpush3.bf16.msra.mxu1 %v27195_v16  ;;  %v31327_v13 = vand.u32 4294901760, %v27130_v36  ;;  %v27518_v42 = vsub.f32 %v27149_v18, %v31329_v50  ;;  %v31336_v18 = vand.u32 4294901760, %v27202_v49 }
 0xb23   :  { %18718 = vmatprep.subr.bf16.mxu1 %v31156_v46 }
 0xb24   :  { %v27508_v34 = vsub.f32 %v27130_v36, %v31327_v13  ;;  %v31333_v13 = vand.u32 4294901760, %v27183_v48 }
 0xb25   :  { %18527 = vmatpush1.bf16.msra.mxu0 %v27178_v25  ;;  %v31321_v25 = vand.u32 4294901760, %v27094_v55 }
 0xb26   :  { %18529 = vmatprep.subr.bf16.mxu0 %v27228_v12  ;;  %18720 = vmatpush3.bf16.msra.mxu1 %v27255_v51  ;;  %v31320_v12 = vand.u32 4294901760, %v27089_v21 }
 0xb27   :  { %18721 = vmatprep.subr.bf16.mxu1 %v31156_v46 }
 0xb28   :  { %v27471_v16 = vsub.f32 %v27089_v21, %v31320_v12  ;;  %v11108_v21 = vld [vmem:[%s28702_s1 + $0x158] sm:$0xff] }
 0xb29   :  { %18531 = vmatpush1.bf16.msra.mxu0 %v27236_v35  ;;  %v11169_v12 = vand.u32 4294901760, %v11108_v21 }
 0xb4f   :  { %v10480_v60 = vpop.f32.mrb[74].mxu1 }
 0xb50   :  { %v15572_v3 = vpop.f32.mrb[75].mxu1 }
 0xb51   :  { %v29677_v3 = vand.u32 4294901760, %v27272_v63 }
 0xb6f   :  { %v10631_v38 = vpop.f32.mrb[76].mxu1 }
 0xb70   :  { %v10632_v2 = vadd.f32 %v10631_v38, %v10480_v60  ;;  %v15607_v19 = vpop.f32.mrb[77].mxu1  ;;  %v27280_v60 = vld [vmem:[%s28702_s1 + $0xb8] sm:$0xff]  ;;  %v27288_v38 = vpack.c.bf16 %v29670_v17, %v29673_v5  ;;  %v27320_v5 = vld [vmem:[%s28702_s1 + $0xc0] sm:$0xff] }
 0xb71   :  { %v27296_v19 = vpack.c.bf16 %v29671_v57, %v29672_v11 }
 0xb72   :  { %31308 = vst [vmem:[#allocation3_spill] sm:$0xff] %v27288_v38  ;;  %18533 = vmatprep.subr.bf16.mxu0 %v27288_v38  ;;  %v31318_v38 = vand.u32 4294901760, %v27082_v22 }
 0xb73   :  { %31309 = vst [vmem:[#allocation56_spill] sm:$0xff] %v27296_v19  ;;  %18535 = vmatpush1.bf16.msra.mxu0 %v27296_v19 }
 0xb74   :  { %v27463_v51 = vsub.f32 %v27082_v22, %v31318_v38  ;;  %v31323_v38 = vand.u32 4294901760, %v27106_v62 }
 0xb8f   :  { %v10735_v4 = vpop.f32.mrb[78].mxu1 }
 0xb90   :  { %v27248_v15 = vadd.f32 %v10735_v4, %v10632_v2  ;;  %v15642_v26 = vpop.f32.mrb[79].mxu1  ;;  %v29676_v2 = vand.u32 4294901760, %v27280_v60  ;;  %v27301_v4 = vld [vmem:[%s28702_s1 + $0xc8] sm:$0xff] }
 0xb91   :  { %v27306_v26 = vld [vmem:[%s28702_s1 + $0xe0] sm:$0xff]  ;;  %v29685_v57 = vand.u32 4294901760, %v27301_v4 }
 0xb92   :  { %31306 = vst [vmem:[#allocation47_spill] sm:$0xff] %v27248_v15  ;;  %v27313_v17 = vpack.c.bf16 %v29676_v2, %v29677_v3  ;;  %v29684_v11 = vand.u32 4294901760, %v27306_v26  ;;  %v29687_v2 = vand.u32 4294901760, %v27320_v5  ;;  %v29686_v3 = vand.u32 4294901760, %v27325_v44 }
 0xb93   :  { %v31330_v15 = vand.u32 4294901760, %v27154_v37 }
 0xb94   :  { %31310 = vst [vmem:[#allocation57_spill] sm:$0xff] %v27313_v17  ;;  %18723 = vmatpush3.bf16.msra.mxu1 %v27313_v17  ;;  %v27346_v54 = vpack.c.bf16 %v29684_v11, %v29685_v57  ;;  %v27354_v1 = vpack.c.bf16 %v29686_v3, %v29687_v2  ;;  %v27364_v11 = vld [vmem:[%s28702_s1 + $0x110] sm:$0xff]  ;;  %v27371_v57 = vpack.c.bf16 %v29691_v41, %v29692_v30  ;;  %v29700_v3 = vand.u32 4294901760, %v27359_v0 }
 0xb95   :  { %18724 = vmatprep.subr.bf16.mxu1 %v31156_v46  ;;  %v29699_v2 = vand.u32 4294901760, %v27364_v11  ;;  %v29702_v41 = vand.u32 4294901760, %v27378_v28  ;;  %v29701_v30 = vand.u32 4294901760, %v27383_v43  ;;  %v31317_v17 = vand.u32 4294901760, %v27077_v24 }
 0xb96   :  { %31311 = vst [vmem:[#allocation8_spill] sm:$0xff] %v27346_v54  ;;  %31312 = vst [vmem:[#allocation4_spill] sm:$0xff] %v27354_v1  ;;  %18537 = vmatprep.subr.bf16.mxu0 %v27346_v54 }
 0xb97   :  { %31313 = vst [vmem:[#allocation23_spill] sm:$0xff] %v27371_v57  ;;  %18539 = vmatpush1.bf16.msra.mxu0 %v27354_v1  ;;  %v27404_v33 = vpack.c.bf16 %v29699_v2, %v29700_v3  ;;  %v27412_v6 = vpack.c.bf16 %v29701_v30, %v29702_v41  ;;  %v27422_v2 = vld [vmem:[%s28702_s1 + $0x140] sm:$0xff]  ;;  %v27429_v3 = vpack.c.bf16 %v29708_v31, %v29709_v45  ;;  %v11161_v30 = vand.u32 4294901760, %v27417_v10  ;;  %v11106_v1 = vld [vmem:[%s28702_s1 + $0x148] sm:$0xff] }
 0xb98   :  { %18726 = vmatpush3.bf16.msra.mxu1 %v27371_v57  ;;  %v11165_v41 = vand.u32 4294901760, %v27422_v2  ;;  %v27441_v57 = vld [vmem:[%s28702_s1 + $0x138] sm:$0xff]  ;;  %v11163_v31 = vand.u32 4294901760, %v27436_v52  ;;  %v27458_v19 = vsub.f32 %v27077_v24, %v31317_v17  ;;  %v12008_v35 = vand.u32 4294901760, %v11106_v1 }
 0xb99   :  { %31314 = vst [vmem:[#allocation43_spill] sm:$0xff] %v27404_v33  ;;  %18727 = vmatprep.subr.bf16.mxu1 %v31156_v46  ;;  %31315 = vst [vmem:[#allocation18_spill] sm:$0xff] %v27412_v6  ;;  %18541 = vmatprep.subr.bf16.mxu0 %v27404_v33  ;;  %v27446_v33 = vld [vmem:[%s28702_s1 + $0x130] sm:$0xff]  ;;  %v11167_v45 = vand.u32 4294901760, %v27441_v57  ;;  %v27476_v24 = vsub.f32 %v27094_v55, %v31321_v25  ;;  %v31322_v17 = vand.u32 4294901760, %v27099_v58 }
 0xb9a   :  { %31316 = vst [vmem:[#allocation36_spill] sm:$0xff] %v27429_v3  ;;  %v12005_v54 = vand.u32 4294901760, %v27446_v33  ;;  %v11111_v55 = vld [vmem:[%s28702_s1 + $0x170] sm:$0xff] }
 0xb9b   :  { %18543 = vmatpush1.bf16.msra.mxu0 %v27412_v6  ;;  %v27466_v6 = vpack.c.bf16 %v11165_v41, %v11161_v30  ;;  %v27481_v22 = vsub.f32 %v27099_v58, %v31322_v17  ;;  %v27496_v25 = vpack.c.bf16 %v11167_v45, %v11163_v31  ;;  %v11173_v17 = vand.u32 4294901760, %v11111_v55 }
 0xb9c   :  { %18729 = vmatpush3.bf16.msra.mxu1 %v27429_v3  ;;  %v27486_v3 = vsub.f32 %v27106_v62, %v31323_v38  ;;  %v27498_v58 = vpack.c.bf16 %v12008_v35, %v12005_v54  ;;  %v31326_v62 = vand.u32 4294901760, %v27125_v7 }
 0xb9d   :  { %31319 = vst [vmem:[#allocation48_spill] sm:$0xff] %v27466_v6  ;;  %18730 = vmatprep.subr.bf16.mxu1 %v31156_v46  ;;  %18545 = vmatprep.subr.bf16.mxu0 %v27466_v6  ;;  %31324 = vst [vmem:[#allocation9_spill] sm:$0xff] %v27496_v25  ;;  %v27513_v6 = vsub.f32 %v27144_v47, %v31328_v61  ;;  %v27533_v61 = vsub.f32 %v27183_v48, %v31333_v13  ;;  %v31334_v47 = vand.u32 4294901760, %v27188_v56 }
 0xb9e   :  { %31325 = vst [vmem:[#allocation21_spill] sm:$0xff] %v27498_v58  ;;  %v27503_v38 = vsub.f32 %v27125_v7, %v31326_v62  ;;  %v27523_v7 = vsub.f32 %v27154_v37, %v31330_v15  ;;  %v31332_v62 = vand.u32 4294901760, %v27162_v53  ;;  %v27544_v37 = vsub.f32 %v27202_v49, %v31336_v18 }
 0xb9f   :  { %v27538_v50 = vsub.f32 %v27188_v56, %v31334_v47  ;;  %18547 = vmatpush1.bf16.msra.mxu0 %v27496_v25  ;;  %v31338_v48 = vand.u32 4294901760, %v27212_v39  ;;  %v31339_v56 = vand.u32 4294901760, %v27220_v20  ;;  %v31340_v49 = vand.u32 4294901760, %v27241_v23 }
 0xba0   :  { %31331 = vst [vmem:[#allocation38_spill] sm:$0xff] %v27523_v7  ;;  %v27528_v36 = vsub.f32 %v27162_v53, %v31332_v62  ;;  %v31337_v53 = vand.u32 4294901760, %v27207_v40  ;;  %18732 = vmatpush3.bf16.msra.mxu1 %v27498_v58 }
 0xba1   :  { %31335 = vst [vmem:[#allocation14_spill] sm:$0xff] %v27538_v50  ;;  %v27554_v62 = vsub.f32 %v27212_v39, %v31338_v48  ;;  %v27559_v13 = vsub.f32 %v27220_v20, %v31339_v56  ;;  %v27565_v47 = vsub.f32 %v27241_v23, %v31340_v49  ;;  %v31342_v39 = vand.u32 4294901760, %v27262_v9  ;;  %18733 = vmatprep.subr.bf16.mxu1 %v31156_v46 }
 0xba2   :  { %v27549_v15 = vsub.f32 %v27207_v40, %v31337_v53  ;;  %v31341_v40 = vand.u32 4294901760, %v27246_v32  ;;  %v31343_v20 = vand.u32 4294901760, %v27267_v59  ;;  %v31344_v23 = vand.u32 4294901760, %v27272_v63 }
 0xba3   :  { %v27575_v53 = vsub.f32 %v27262_v9, %v31342_v39  ;;  %v31346_v9 = vand.u32 4294901760, %v27301_v4 }
 0xba4   :  { %v27570_v18 = vsub.f32 %v27246_v32, %v31341_v40  ;;  %v27580_v48 = vsub.f32 %v27267_v59, %v31343_v20  ;;  %v27586_v56 = vsub.f32 %v27272_v63, %v31344_v23  ;;  %v31345_v32 = vand.u32 4294901760, %v27280_v60 }
 0xba5   :  { %v27596_v40 = vsub.f32 %v27301_v4, %v31346_v9  ;;  %v31347_v59 = vand.u32 4294901760, %v27306_v26  ;;  %v31348_v20 = vand.u32 4294901760, %v27320_v5  ;;  %v31349_v23 = vand.u32 4294901760, %v27325_v44 }
 0xba6   :  { %v27591_v49 = vsub.f32 %v27280_v60, %v31345_v32  ;;  %v31350_v32 = vand.u32 4294901760, %v27330_v14  ;;  %v31351_v9 = vand.u32 4294901760, %v27338_v8 }
 0xba7   :  { %v27601_v39 = vsub.f32 %v27306_v26, %v31347_v59  ;;  %v27606_v63 = vsub.f32 %v27320_v5, %v31348_v20  ;;  %v27611_v60 = vsub.f32 %v27325_v44, %v31349_v23  ;;  %v31352_v59 = vand.u32 4294901760, %v27359_v0 }
 0xba8   :  { %v27616_v4 = vsub.f32 %v27330_v14, %v31350_v32  ;;  %v27621_v26 = vsub.f32 %v27338_v8, %v31351_v9  ;;  %v31353_v20 = vand.u32 4294901760, %v27364_v11  ;;  %v31354_v23 = vand.u32 4294901760, %v27378_v28 }
 0xba9   :  { %v27626_v5 = vsub.f32 %v27359_v0, %v31352_v59  ;;  %v31355_v32 = vand.u32 4294901760, %v27383_v43  ;;  %v11107_v0 = vld [vmem:[%s28702_s1 + $0x150] sm:$0xff]  ;;  %v31356_v9 = vand.u32 4294901760, %v27388_v27 }
 0xbaa   :  { %v27631_v44 = vsub.f32 %v27364_v11, %v31353_v20  ;;  %v27636_v14 = vsub.f32 %v27378_v28, %v31354_v23  ;;  %v31357_v11 = vand.u32 4294901760, %v27396_v29  ;;  %v27657_v28 = vsub.f32 %v27417_v10, %v11161_v30  ;;  %v11110_v23 = vld [vmem:[%s28702_s1 + $0x168] sm:$0xff] }
 0xbab   :  { %v27641_v8 = vsub.f32 %v27383_v43, %v31355_v32  ;;  %v27649_v59 = vsub.f32 %v27388_v27, %v31356_v9  ;;  %v27660_v43 = vsub.f32 %v27422_v2, %v11165_v41  ;;  %v11109_v27 = vld [vmem:[%s28702_s1 + $0x160] sm:$0xff]  ;;  %v11112_v32 = vld [vmem:[%s28702_s1 + $0x178] sm:$0xff]  ;;  %v27675_v10 = vsub.f32 %v27441_v57, %v11167_v45 }
 0xbac   :  { %v27654_v20 = vsub.f32 %v27396_v29, %v31357_v11  ;;  %31359 = vst [vmem:[#allocation20_spill] sm:$0xff] %v27657_v28  ;;  %v27672_v29 = vsub.f32 %v27436_v52, %v11163_v31  ;;  %v27678_v41 = vsub.f32 %v27446_v33, %v12005_v54  ;;  %v27680_v30 = vsub.f32 %v11106_v1, %v12008_v35 }
 0xbad   :  { %31360 = vst [vmem:[#allocation37_spill] sm:$0xff] %v27660_v43  ;;  %31362 = vst [vmem:[#allocation13_spill] sm:$0xff] %v27675_v10  ;;  %v27682_v2 = vpack.c.bf16 %v11173_v17, %v11169_v12  ;;  %v27684_v9 = vsub.f32 %v11108_v21, %v11169_v12  ;;  %v27686_v11 = vsub.f32 %v11111_v55, %v11173_v17  ;;  %v11171_v58 = vand.u32 4294901760, %v11107_v0 }
 0xbae   :  { %31358 = vst [vmem:[#allocation19_spill] sm:$0xff] %v27654_v20  ;;  %31361 = vst [vmem:[#allocation12_spill] sm:$0xff] %v27672_v29  ;;  %v11175_v25 = vand.u32 4294901760, %v11110_v23  ;;  %v12011_v43 = vand.u32 4294901760, %v11109_v27  ;;  %v12014_v28 = vand.u32 4294901760, %v11112_v32  ;;  %v29753_v52 = vand.u32 4294901760, %v27458_v19 }
 0xbaf   :  { %31363 = vst [vmem:[#allocation31_spill] sm:$0xff] %v27678_v41  ;;  %31364 = vst [vmem:[#allocation34_spill] sm:$0xff] %v27680_v30  ;;  %18549 = vmatprep.subr.bf16.mxu0 %v27682_v2  ;;  %v27690_v31 = vsub.f32 %v11107_v0, %v11171_v58  ;;  %v29751_v33 = vand.u32 4294901760, %v27463_v51  ;;  %v29752_v45 = vand.u32 4294901760, %v27471_v16  ;;  %v29758_v1 = vand.u32 4294901760, %v27476_v24 }
 0xbb0   :  { %31365 = vst [vmem:[#allocation53_spill] sm:$0xff] %v27682_v2  ;;  %31366 = vst [vmem:[#allocation29_spill] sm:$0xff] %v27684_v9  ;;  %v27695_v54 = vpack.c.bf16 %v11175_v25, %v11171_v58  ;;  %v27697_v35 = vsub.f32 %v11110_v23, %v11175_v25  ;;  %v27699_v57 = vpack.c.bf16 %v12014_v28, %v12011_v43  ;;  %v10824_v25 = vpop.f32.mrb[80].mxu1  ;;  %v29764_v23 = vand.u32 4294901760, %v27503_v38 }
 0xbb1   :  { %31367 = vst [vmem:[#allocation54_spill] sm:$0xff] %v27690_v31  ;;  %v27701_v21 = vsub.f32 %v11109_v27, %v12011_v43  ;;  %v27703_v55 = vsub.f32 %v11112_v32, %v12014_v28  ;;  %v11224_v12 = vsub.f32 %v27458_v19, %v29753_v52  ;;  %v11236_v17 = vsub.f32 %v27463_v51, %v29751_v33  ;;  %v31373_v27 = vld [vmem:[#allocation47_spill] sm:$0xff]  ;;  %v15677_v33 = vpop.f32.mrb[81].mxu1 }
 0xbb2   :  { %31368 = vst [vmem:[#allocation55_spill] sm:$0xff] %v27695_v54  ;;  %31369 = vst [vmem:[#allocation41_spill] sm:$0xff] %v27697_v35  ;;  %v11230_v58 = vsub.f32 %v27471_v16, %v29752_v45  ;;  %18551 = vmatpush1.bf16.msra.mxu0 %v27695_v54  ;;  %18735 = vmatpush3.bf16.msra.mxu1 %v27699_v57  ;;  %v11242_v0 = vsub.f32 %v27476_v24, %v29758_v1  ;;  %v29762_v28 = vand.u32 4294901760, %v27481_v22 }
 0xbb3   :  { %31370 = vst [vmem:[#allocation22_spill] sm:$0xff] %v27699_v57  ;;  %31371 = vst [vmem:[#allocation24_spill] sm:$0xff] %v27701_v21  ;;  %v29763_v43 = vand.u32 4294901760, %v27486_v3  ;;  %v27723_v32 = vadd.f32 %v10824_v25, %v31373_v27  ;;  %v11225_v45 = vand.u32 4294901760, %v11224_v12  ;;  %v11237_v52 = vand.u32 4294901760, %v11236_v17  ;;  %18736 = vmatprep.subr.bf16.mxu1 %v31156_v46 }
 0xbb4   :  { %31372 = vst [vmem:[#allocation46_spill] sm:$0xff] %v27703_v55  ;;  %v11231_v54 = vand.u32 4294901760, %v11230_v58  ;;  %v11243_v57 = vand.u32 4294901760, %v11242_v0  ;;  %v12063_v1 = vsub.f32 %v27481_v22, %v29762_v28  ;;  %v11248_v25 = vsub.f32 %v27503_v38, %v29764_v23 }
 0xbb5   :  { %v12070_v2 = vsub.f32 %v27486_v3, %v29763_v43  ;;  %v18552_v27 = vpack.c.bf16 %v11237_v52, %v11225_v45  ;;  %v29765_v33 = vand.u32 4294901760, %v27508_v34  ;;  %v29766_v12 = vand.u32 4294901760, %v27513_v6 }
 0xbb6   :  { %v29767_v17 = vand.u32 4294901760, %v27518_v42  ;;  %v27738_v58 = vpack.c.bf16 %v11243_v57, %v11231_v54  ;;  %v12064_v0 = vand.u32 4294901760, %v12063_v1  ;;  %v11249_v28 = vand.u32 4294901760, %v11248_v25 }
 0xbb7   :  { %v12071_v46 = vand.u32 4294901760, %v12070_v2  ;;  %18553 = vmatprep.subr.bf16.mxu0 %v18552_v27  ;;  %v11260_v43 = vsub.f32 %v27508_v34, %v29765_v33  ;;  %v11254_v52 = vsub.f32 %v27513_v6, %v29766_v12  ;;  %v29768_v23 = vand.u32 4294901760, %v27523_v7 }
 0xbb8   :  { %31374 = vst [vmem:[#allocation25_spill] sm:$0xff] %v27738_v58  ;;  %v11266_v45 = vsub.f32 %v27518_v42, %v29767_v17  ;;  %v29771_v2 = vand.u32 4294901760, %v27528_v36  ;;  %v29772_v1 = vand.u32 4294901760, %v27533_v61  ;;  %v29773_v57 = vand.u32 4294901760, %v27538_v50 }
 0xbb9   :  { %v27750_v54 = vpack.c.bf16 %v12071_v46, %v12064_v0  ;;  %v11261_v25 = vand.u32 4294901760, %v11260_v43  ;;  %v11255_v27 = vand.u32 4294901760, %v11254_v52  ;;  %v12077_v12 = vsub.f32 %v27523_v7, %v29768_v23 }
 0xbba   :  { %v11267_v33 = vand.u32 4294901760, %v11266_v45  ;;  %v12084_v17 = vsub.f32 %v27528_v36, %v29771_v2  ;;  %v11272_v46 = vsub.f32 %v27533_v61, %v29772_v1  ;;  %v11284_v0 = vsub.f32 %v27538_v50, %v29773_v57 }
 0xbbb   :  { %31375 = vst [vmem:[#allocation51_spill] sm:$0xff] %v27750_v54  ;;  %v29777_v43 = vand.u32 4294901760, %v27544_v37  ;;  %v27768_v52 = vpack.c.bf16 %v11261_v25, %v11249_v28  ;;  %v12078_v54 = vand.u32 4294901760, %v12077_v12  ;;  %v29776_v23 = vand.u32 4294901760, %v27549_v15 }
 0xbbc   :  { %v27770_v45 = vpack.c.bf16 %v11267_v33, %v11255_v27  ;;  %v12085_v58 = vand.u32 4294901760, %v12084_v17  ;;  %v11273_v7 = vand.u32 4294901760, %v11272_v46  ;;  %v11285_v2 = vand.u32 4294901760, %v11284_v0 }
 0xbbd   :  { %31376 = vst [vmem:[#allocation49_spill] sm:$0xff] %v27768_v52  ;;  %v11278_v1 = vsub.f32 %v27544_v37, %v29777_v43  ;;  %v11290_v57 = vsub.f32 %v27549_v15, %v29776_v23  ;;  %v29778_v50 = vand.u32 4294901760, %v27554_v62  ;;  %v29779_v28 = vand.u32 4294901760, %v27559_v13 }
 0xbbe   :  { %31377 = vst [vmem:[#allocation26_spill] sm:$0xff] %v27770_v45  ;;  %v29780_v33 = vand.u32 4294901760, %v27565_v47  ;;  %v27782_v12 = vpack.c.bf16 %v12085_v58, %v12078_v54  ;;  %v27784_v25 = vpack.c.bf16 %v11285_v2, %v11273_v7  ;;  %v29781_v27 = vand.u32 4294901760, %v27570_v18 }
 0xbbf   :  { %v11279_v17 = vand.u32 4294901760, %v11278_v1  ;;  %v11291_v46 = vand.u32 4294901760, %v11290_v57  ;;  %v12091_v0 = vsub.f32 %v27554_v62, %v29778_v50  ;;  %v12098_v23 = vsub.f32 %v27559_v13, %v29779_v28 }
 0xbc0   :  { %31378 = vst [vmem:[#allocation32_spill] sm:$0xff] %v27782_v12  ;;  %31379 = vst [vmem:[#allocation33_spill] sm:$0xff] %v27784_v25  ;;  %v11296_v43 = vsub.f32 %v27565_v47, %v29780_v33  ;;  %v11308_v7 = vsub.f32 %v27570_v18, %v29781_v27  ;;  %v29782_v58 = vand.u32 4294901760, %v27575_v53  ;;  %v29783_v54 = vand.u32 4294901760, %v27580_v48 }
 0xbc1   :  { %v29784_v2 = vand.u32 4294901760, %v27586_v56  ;;  %v27802_v1 = vpack.c.bf16 %v11291_v46, %v11279_v17  ;;  %v12092_v57 = vand.u32 4294901760, %v12091_v0  ;;  %v12099_v50 = vand.u32 4294901760, %v12098_v23 }
 0xbc2   :  { %v11297_v25 = vand.u32 4294901760, %v11296_v43  ;;  %v11309_v28 = vand.u32 4294901760, %v11308_v7  ;;  %v11302_v33 = vsub.f32 %v27575_v53, %v29782_v58  ;;  %v11314_v27 = vsub.f32 %v27580_v48, %v29783_v54 }
 0xbc3   :  { %31380 = vst [vmem:[#allocation10_spill] sm:$0xff] %v27802_v1  ;;  %v12105_v12 = vsub.f32 %v27586_v56, %v29784_v2  ;;  %v27813_v45 = vpack.c.bf16 %v12099_v50, %v12092_v57  ;;  %v29785_v17 = vand.u32 4294901760, %v27591_v49  ;;  %v29786_v23 = vand.u32 4294901760, %v27596_v40 }
 0xbc4   :  { %v29787_v43 = vand.u32 4294901760, %v27601_v39  ;;  %v27818_v46 = vpack.c.bf16 %v11309_v28, %v11297_v25  ;;  %v11303_v0 = vand.u32 4294901760, %v11302_v33  ;;  %v11315_v7 = vand.u32 4294901760, %v11314_v27 }
 0xbc5   :  { %31381 = vst [vmem:[#allocation30_spill] sm:$0xff] %v27813_v45  ;;  %v12106_v58 = vand.u32 4294901760, %v12105_v12  ;;  %v12112_v54 = vsub.f32 %v27591_v49, %v29785_v17  ;;  %v11320_v50 = vsub.f32 %v27596_v40, %v29786_v23  ;;  %v29788_v2 = vand.u32 4294901760, %v27606_v63 }
 0xbc6   :  { %31382 = vst [vmem:[#allocation40_spill] sm:$0xff] %v27818_v46  ;;  %v11332_v57 = vsub.f32 %v27601_v39, %v29787_v43  ;;  %v27830_v45 = vpack.c.bf16 %v11315_v7, %v11303_v0  ;;  %v29789_v28 = vand.u32 4294901760, %v27611_v60  ;;  %v29790_v33 = vand.u32 4294901760, %v27616_v4 }
 0xbc7   :  { %v29791_v12 = vand.u32 4294901760, %v27621_v26  ;;  %v12113_v25 = vand.u32 4294901760, %v12112_v54  ;;  %v11321_v27 = vand.u32 4294901760, %v11320_v50  ;;  %v11326_v23 = vsub.f32 %v27606_v63, %v29788_v2 }
 0xbc8   :  { %31383 = vst [vmem:[#allocation50_spill] sm:$0xff] %v27830_v45  ;;  %v11333_v17 = vand.u32 4294901760, %v11332_v57  ;;  %v11338_v43 = vsub.f32 %v27611_v60, %v29789_v28  ;;  %v12119_v0 = vsub.f32 %v27616_v4, %v29790_v33  ;;  %v29793_v54 = vand.u32 4294901760, %v27626_v5 }
 0xbc9   :  { %v12126_v7 = vsub.f32 %v27621_v26, %v29791_v12  ;;  %v27848_v50 = vpack.c.bf16 %v12113_v25, %v12106_v58  ;;  %v11327_v45 = vand.u32 4294901760, %v11326_v23  ;;  %v29792_v2 = vand.u32 4294901760, %v27631_v44 }
 0xbca   :  { %v27850_v57 = vpack.c.bf16 %v11333_v17, %v11321_v27  ;;  %v11339_v46 = vand.u32 4294901760, %v11338_v43  ;;  %v12120_v1 = vand.u32 4294901760, %v12119_v0  ;;  %v11344_v33 = vsub.f32 %v27626_v5, %v29793_v54 }
 0xbcb   :  { %31384 = vst [vmem:[#allocation52_spill] sm:$0xff] %v27848_v50  ;;  %v12127_v28 = vand.u32 4294901760, %v12126_v7  ;;  %v11356_v12 = vsub.f32 %v27631_v44, %v29792_v2  ;;  %v29794_v52 = vand.u32 4294901760, %v27636_v14  ;;  %v29795_v58 = vand.u32 4294901760, %v27641_v8 }
 0xbcc   :  { %31385 = vst [vmem:[#allocation11_spill] sm:$0xff] %v27850_v57  ;;  %v29796_v17 = vand.u32 4294901760, %v27649_v59  ;;  %v27862_v23 = vpack.c.bf16 %v11339_v46, %v11327_v45  ;;  %v11345_v43 = vand.u32 4294901760, %v11344_v33  ;;  %v29797_v27 = vand.u32 4294901760, %v27654_v20 }
 0xbcd   :  { %v27864_v25 = vpack.c.bf16 %v12127_v28, %v12120_v1  ;;  %v11357_v0 = vand.u32 4294901760, %v11356_v12  ;;  %v11350_v7 = vsub.f32 %v27636_v14, %v29794_v52  ;;  %v11362_v2 = vsub.f32 %v27641_v8, %v29795_v58  ;;  %v31388_v1 = vld [vmem:[#allocation20_spill] sm:$0xff]  ;;  %v31389_v28 = vld [vmem:[#allocation37_spill] sm:$0xff] }
 0xbce   :  { %31386 = vst [vmem:[#allocation15_spill] sm:$0xff] %v27862_v23  ;;  %v12133_v54 = vsub.f32 %v27649_v59, %v29796_v17  ;;  %v12140_v45 = vsub.f32 %v27654_v20, %v29797_v27  ;;  %v29800_v46 = vand.u32 4294901760, %v31388_v1  ;;  %v29801_v33 = vand.u32 4294901760, %v31389_v28 }
 0xbcf   :  { %31387 = vst [vmem:[#allocation28_spill] sm:$0xff] %v27864_v25  ;;  %v29803_v12 = vand.u32 4294901760, %v27672_v29  ;;  %v27882_v25 = vpack.c.bf16 %v11357_v0, %v11345_v43  ;;  %v11351_v52 = vand.u32 4294901760, %v11350_v7  ;;  %v11363_v23 = vand.u32 4294901760, %v11362_v2  ;;  %v10943_v0 = vpop.f32.mrb[82].mxu1 }
 0xbd0   :  { %v12134_v57 = vand.u32 4294901760, %v12133_v54  ;;  %v12141_v58 = vand.u32 4294901760, %v12140_v45  ;;  %v11368_v17 = vsub.f32 %v31388_v1, %v29800_v46  ;;  %v11380_v27 = vsub.f32 %v31389_v28, %v29801_v33  ;;  %v15712_v28 = vpop.f32.mrb[83].mxu1 }
 0xbd1   :  { %31390 = vst [vmem:[#allocation42_spill] sm:$0xff] %v27882_v25  ;;  %v11374_v50 = vsub.f32 %v27672_v29, %v29803_v12  ;;  %v27893_v20 = vpack.c.bf16 %v11363_v23, %v11351_v52  ;;  %v29806_v43 = vand.u32 4294901760, %v27675_v10  ;;  %v29804_v2 = vand.u32 4294901760, %v27678_v41 }
 0xbd2   :  { %v29805_v54 = vand.u32 4294901760, %v27680_v30  ;;  %v27898_v7 = vpack.c.bf16 %v12141_v58, %v12134_v57  ;;  %v11369_v45 = vand.u32 4294901760, %v11368_v17  ;;  %v11381_v46 = vand.u32 4294901760, %v11380_v27 }
 0xbd3   :  { %v11375_v25 = vand.u32 4294901760, %v11374_v50  ;;  %v10944_v33 = vadd.f32 %v10943_v0, %v27723_v32  ;;  %v11386_v52 = vsub.f32 %v27675_v10, %v29806_v43  ;;  %v12147_v23 = vsub.f32 %v27678_v41, %v29804_v2 }
 0xbd4   :  { %31391 = vst [vmem:[#allocation47_spill] sm:$0xff] %v27898_v7  ;;  %v12154_v12 = vsub.f32 %v27680_v30, %v29805_v54  ;;  %v27910_v57 = vpack.c.bf16 %v11381_v46, %v11369_v45  ;;  %v29807_v58 = vand.u32 4294901760, %v27684_v9  ;;  %v29808_v50 = vand.u32 4294901760, %v27686_v11 }
 0xbd5   :  { %v29809_v32 = vand.u32 4294901760, %v27690_v31  ;;  %v11387_v17 = vand.u32 4294901760, %v11386_v52  ;;  %v12148_v27 = vand.u32 4294901760, %v12147_v23  ;;  %v29812_v0 = vand.u32 4294901760, %v27697_v35 }
 0xbd6   :  { %31392 = vst [vmem:[#allocation20_spill] sm:$0xff] %v27910_v57  ;;  %v12155_v28 = vand.u32 4294901760, %v12154_v12  ;;  %v11392_v2 = vsub.f32 %v27684_v9, %v29807_v58  ;;  %v11404_v46 = vsub.f32 %v27686_v11, %v29808_v50  ;;  %v29810_v54 = vand.u32 4294901760, %v27701_v21 }
 0xbd7   :  { %v11398_v45 = vsub.f32 %v27690_v31, %v29809_v32  ;;  %v27926_v43 = vpack.c.bf16 %v11387_v17, %v11375_v25  ;;  %v11410_v12 = vsub.f32 %v27697_v35, %v29812_v0  ;;  %v29811_v23 = vand.u32 4294901760, %v27703_v55  ;;  %v31393_v0 = vld [vmem:[#allocation38_spill] sm:$0xff]  ;;  %v31396_v17 = vld [vmem:[#allocation37_spill] sm:$0xff] }
 0xbd8   :  { %v27928_v52 = vpack.c.bf16 %v12155_v28, %v12148_v27  ;;  %v11393_v58 = vand.u32 4294901760, %v11392_v2  ;;  %v11405_v57 = vand.u32 4294901760, %v11404_v46  ;;  %v12161_v50 = vsub.f32 %v27701_v21, %v29810_v54  ;;  %v31394_v27 = vld [vmem:[#allocation14_spill] sm:$0xff]  ;;  %v13351_v21 = vld [vmem:[%s28703_s0 + $0x50] sm:$0xf] }
 0xbd9   :  { %v11399_v7 = vand.u32 4294901760, %v11398_v45  ;;  %v11411_v32 = vand.u32 4294901760, %v11410_v12  ;;  %v12168_v25 = vsub.f32 %v27703_v55, %v29811_v23  ;;  %v9489_v35 = vunpack.c.l.bf16 %v13351_v21 }
 0xbda   :  { %v27944_v28 = vpack.c.bf16 %v11405_v57, %v11393_v58  ;;  %v12162_v2 = vand.u32 4294901760, %v12161_v50 }
 0xbdb   :  { %v27950_v12 = vpack.c.bf16 %v11411_v32, %v11399_v7  ;;  %v12169_v54 = vand.u32 4294901760, %v12168_v25  ;;  %v13350_v25 = vld [vmem:[%s28703_s0 + $0x48] sm:$0xff] }
 0xbdc   :  { %v9487_v23 = vunpack.c.l.bf16 %v13350_v25  ;;  %v9488_v57 = vunpack.c.h.bf16 %v13350_v25 }
 0xbdd   :  { %v27964_v32 = vpack.c.bf16 %v12169_v54, %v12162_v2  ;;  %v31395_v2 = vld [vmem:[#allocation19_spill] sm:$0xff] }
 0xbef   :  { %v10388_v45 = vpop.f32.mrb[12].mxu0  ;;  %v11030_v46 = vpop.f32.mrb[84].mxu1 }
 0xbf0   :  { %v11034_v29 = vadd.f32 %v10388_v45, %v9487_v23  ;;  %v11031_v10 = vadd.f32 %v11030_v46, %v10944_v33  ;;  %v10390_v58 = vpop.f32.mrb[13].mxu0  ;;  %v15747_v41 = vpop.f32.mrb[85].mxu1  ;;  %v28003_v33 = vld [vmem:[%s28704_s2] ss:$0 sm:$0xff] }
 0xbf1   :  { %v11041_v50 = vadd.f32 %v10390_v58, %v9488_v57  ;;  %31397 = vst [vmem:[#allocation38_spill] sm:$0xff] %v28003_v33  ;;  %v31398_v57 = vld [vmem:[#allocation35_spill] sm:$0xff] }
 0xbf2   :  { %v13352_v30 = vmul.f32 -1.442695, %v11034_v29  ;;  %v11048_v29 = vadd.f32 %v28003_v33, %v11031_v10  ;;  %v31463_v33 = vld [vmem:[#allocation57_spill] sm:$0xff] }
 0xbf3   :  { %v13353_v9 = vmul.f32 -1.442695, %v11041_v50 }
 0xbf4   :  { %19154 = vpow2.f32 %v13352_v30 }
 0xbf5   :  { %19156 = vpow2.f32 %v13353_v9 }
 0xbfe   :  { %v19155_v7 = vpop.eup %19154 }
 0xbff   :  { %v11038_v31 = vadd.f32 1.0, %v19155_v7  ;;  %v19157_v54 = vpop.eup %19156 }
 0xc00   :  { %v11045_v55 = vadd.f32 1.0, %v19157_v54  ;;  %v31400_v54 = vld [vmem:[#allocation25_spill] sm:$0xff] }
 0xc01   :  { %19158 = vrcp.f32 %v11038_v31 }
 0xc02   :  { %19160 = vrcp.f32 %v11045_v55 }
 0xc0b   :  { %v19159_v41 = vpop.eup %19158 }
 0xc0c   :  { %v11049_v30 = vmul.f32 %v19159_v41, %v11048_v29  ;;  %v19161_v31 = vpop.eup %19160  ;;  %v31401_v29 = vld [vmem:[#allocation51_spill] sm:$0xff]  ;;  %v31402_v41 = vld [vmem:[#allocation49_spill] sm:$0xff] }
 0xc0d   :  { %v11052_v23 = vsub.f32 1.0, %v19161_v31  ;;  %v11054_v58 = vmul.f32 %v19161_v31, %v31398_v57  ;;  %v31405_v31 = vld [vmem:[#allocation26_spill] sm:$0xff] }
 0xc0e   :  { %v11050_v9 = vadd.f32 %v11049_v30, %v9489_v35  ;;  %v31403_v30 = vmov 0.0|0.0   ;;  %v31409_v57 = vld [vmem:[#allocation30_spill] sm:$0xff] }
 0xc10   :  { %19162 = vtanh.f32 %v11050_v9  ;;  %v31404_v9 = vmov 0.0  }
 0xc1a   :  { %v19163_v46 = vpop.eup %19162 }
 0xc1b   :  { %v11053_v45 = vmul.f32 %v19163_v46, %v11052_v23  ;;  %v31406_v23 = vld [vmem:[#allocation32_spill] sm:$0xff]  ;;  %v31407_v46 = vld [vmem:[#allocation33_spill] sm:$0xff] }
 0xc1d   :  { %v28007_v50 = vadd.f32 %v11054_v58, %v11053_v45  ;;  %v31408_v45 = vld [vmem:[#allocation10_spill] sm:$0xff]  ;;  %v31410_v58 = vld [vmem:[#allocation40_spill] sm:$0xff] }
 0xc1f   :  { %31399 = vst [vmem:[#allocation14_spill] sm:$0xff] %v28007_v50  ;;  %v11056_v21 = vpack.c.bf16 %v28007_v50, %v28007_v50  ;;  %v28012_v7 = vand.u32 4294901760, %v28007_v50 }
 0xc21   :  { %13354 = vst [vmem:[%s28705_s5 + $0x18] sm:$0xf] %v11056_v21  ;;  %v28019_v10 = vsub.f32 %v28007_v50, %v28012_v7  ;;  %v31411_v21 = vld [vmem:[#allocation50_spill] sm:$0xff]  ;;  %v31462_v50 = vld [vmem:[#allocation56_spill] sm:$0xff] }
 0xc23   :  { %v28022_v35 = vand.u32 4294901760, %v28019_v10 }
 0xc25   :  { %v11213_v55 = vsub.f32 %v28019_v10, %v28022_v35 }
 0xc27   :  { %v11214_v25 = vand.u32 4294901760, %v11213_v55  ;;  %v31412_v55 = vld [vmem:[#allocation52_spill] sm:$0xff] }
 0xc29   :  { %11215 = vmatmul.mubr.f32.vlgmr.msra.gmra.mrb[14].mxu0 %v11214_v25  ;;  %15781 = vmatmul.mubr.f32.vlgmr.msra.gmra.mrb[86].mxu1 %v11214_v25  ;;  %v31413_v25 = vld [vmem:[#allocation11_spill] sm:$0xff] }
 0xc2a   :  { %18555 = vmatpush1.bf16.msra.mxu0 %v31400_v54  ;;  %18738 = vmatpush3.bf16.msra.mxu1 %v31401_v29  ;;  %v31414_v54 = vld [vmem:[#allocation15_spill] sm:$0xff]  ;;  %v31415_v29 = vld [vmem:[#allocation28_spill] sm:$0xff] }
 0xc2b   :  { %18557 = vmatprep.subr.bf16.mxu0 %v31402_v41  ;;  %18739 = vmatprep.subr.bf16.mxu1 %v31403_v30  ;;  %v31416_v41 = vld [vmem:[#allocation42_spill] sm:$0xff] }
 0xc2c   :  { %11445 = vmatprep.mubr.f32.mxu0 %v31404_v9  ;;  %15815 = vmatprep.mubr.msk.f32.mxu1 %vm19186_vm0, %v31404_v9 }
 0xc2e   :  { %18559 = vmatpush1.bf16.msra.mxu0 %v31405_v31  ;;  %18741 = vmatpush3.bf16.msra.mxu1 %v31406_v23  ;;  %v31417_v31 = vld [vmem:[#allocation47_spill] sm:$0xff]  ;;  %v31418_v23 = vld [vmem:[#allocation20_spill] sm:$0xff] }
 0xc2f   :  { %18561 = vmatprep.subr.bf16.mxu0 %v31407_v46  ;;  %18742 = vmatprep.subr.bf16.mxu1 %v31403_v30  ;;  %v31425_v46 = vpack.c.bf16 %v31394_v27, %v27533_v61 }
 0xc32   :  { %18563 = vmatpush1.bf16.msra.mxu0 %v31408_v45  ;;  %18744 = vmatpush3.bf16.msra.mxu1 %v31409_v57  ;;  %v31426_v45 = vpack.c.bf16 %v27549_v15, %v27544_v37  ;;  %v31427_v57 = vpack.c.bf16 %v27559_v13, %v27554_v62 }
 0xc33   :  { %18565 = vmatprep.subr.bf16.mxu0 %v31410_v58  ;;  %18745 = vmatprep.subr.bf16.mxu1 %v31403_v30  ;;  %v31428_v58 = vpack.c.bf16 %v27570_v18, %v27565_v47 }
 0xc36   :  { %18567 = vmatpush1.bf16.msra.mxu0 %v31411_v21  ;;  %18747 = vmatpush3.bf16.msra.mxu1 %v31412_v55  ;;  %v31429_v21 = vpack.c.bf16 %v27580_v48, %v27575_v53  ;;  %v31430_v55 = vpack.c.bf16 %v27591_v49, %v27586_v56 }
 0xc37   :  { %18569 = vmatprep.subr.bf16.mxu0 %v31413_v25  ;;  %18748 = vmatprep.subr.bf16.mxu1 %v31403_v30  ;;  %v31431_v25 = vpack.c.bf16 %v27601_v39, %v27596_v40 }
 0xc3a   :  { %18571 = vmatpush1.bf16.msra.mxu0 %v31414_v54  ;;  %18750 = vmatpush3.bf16.msra.mxu1 %v31415_v29  ;;  %v31432_v54 = vpack.c.bf16 %v27611_v60, %v27606_v63  ;;  %v31433_v29 = vpack.c.bf16 %v27621_v26, %v27616_v4 }
 0xc3b   :  { %18573 = vmatprep.subr.bf16.mxu0 %v31416_v41  ;;  %18751 = vmatprep.subr.bf16.mxu1 %v31403_v30  ;;  %v31434_v41 = vpack.c.bf16 %v27631_v44, %v27626_v5 }
 0xc3e   :  { %18575 = vmatpush1.bf16.msra.mxu0 %v27893_v20  ;;  %18753 = vmatpush3.bf16.msra.mxu1 %v31417_v31  ;;  %v31419_v20 = vpack.c.bf16 %v27463_v51, %v27458_v19  ;;  %v31435_v31 = vpack.c.bf16 %v27641_v8, %v27636_v14 }
 0xc3f   :  { %18577 = vmatprep.subr.bf16.mxu0 %v31418_v23  ;;  %18754 = vmatprep.subr.bf16.mxu1 %v31403_v30  ;;  %v31436_v23 = vpack.c.bf16 %v31395_v2, %v27649_v59 }
 0xc42   :  { %18579 = vmatpush1.bf16.msra.mxu0 %v27926_v43  ;;  %18756 = vmatpush3.bf16.msra.mxu1 %v27928_v52  ;;  %v31420_v43 = vpack.c.bf16 %v27476_v24, %v27471_v16  ;;  %v31421_v52 = vpack.c.bf16 %v27486_v3, %v27481_v22 }
 0xc43   :  { %18581 = vmatprep.subr.bf16.mxu0 %v27944_v28  ;;  %18757 = vmatprep.subr.bf16.mxu1 %v31403_v30  ;;  %v31422_v28 = vpack.c.bf16 %v27508_v34, %v27503_v38 }
 0xc46   :  { %18583 = vmatpush1.bf16.msra.mxu0 %v27950_v12  ;;  %18759 = vmatpush3.bf16.msra.mxu1 %v27964_v32  ;;  %v31423_v12 = vpack.c.bf16 %v27518_v42, %v27513_v6  ;;  %v31424_v32 = vpack.c.bf16 %v27528_v36, %v31393_v0 }
 0xc47   :  { %18585 = vmatprep.subr.bf16.mxu0 %v31419_v20  ;;  %18760 = vmatprep.subr.bf16.mxu1 %v31403_v30  ;;  %v31437_v20 = vpack.c.bf16 %v31396_v17, %v31388_v1 }
 0xc49   :  { %11447 = vmatmul.mubr.f32.vlgmr.msra.gmra.mrb[14].mxu0 %v28012_v7  ;;  %15816 = vmatmul.mubr.f32.vlgmr.msra.gmra.mrb[88].mxu1 %v28012_v7 }
 0xc4a   :  { %18587 = vmatpush1.bf16.msra.mxu0 %v31420_v43  ;;  %18762 = vmatpush3.bf16.msra.mxu1 %v31421_v52  ;;  %v31438_v43 = vld [vmem:[#allocation13_spill] sm:$0xff]  ;;  %v31439_v52 = vld [vmem:[#allocation12_spill] sm:$0xff] }
 0xc4b   :  { %18589 = vmatprep.subr.bf16.mxu0 %v31422_v28  ;;  %18763 = vmatprep.subr.bf16.mxu1 %v31403_v30  ;;  %v31440_v28 = vpack.c.bf16 %v31438_v43, %v31439_v52 }
 0xc4c   :  { %11581 = vmatprep.mubr.f32.mxu0 %v31404_v9  ;;  %15850 = vmatprep.mubr.msk.f32.mxu1 %vm19186_vm0, %v31404_v9 }
 0xc4e   :  { %18591 = vmatpush1.bf16.msra.mxu0 %v31423_v12  ;;  %18765 = vmatpush3.bf16.msra.mxu1 %v31424_v32  ;;  %v31441_v12 = vld [vmem:[#allocation34_spill] sm:$0xff]  ;;  %v31442_v32 = vld [vmem:[#allocation31_spill] sm:$0xff] }
 0xc4f   :  { %18593 = vmatprep.subr.bf16.mxu0 %v31425_v46  ;;  %18766 = vmatprep.subr.bf16.mxu1 %v31403_v30  ;;  %v31443_v46 = vpack.c.bf16 %v31441_v12, %v31442_v32 }
 0xc52   :  { %18595 = vmatpush1.bf16.msra.mxu0 %v31426_v45  ;;  %18768 = vmatpush3.bf16.msra.mxu1 %v31427_v57  ;;  %v31444_v45 = vld [vmem:[#allocation29_spill] sm:$0xff] }
 0xc53   :  { %18597 = vmatprep.subr.bf16.mxu0 %v31428_v58  ;;  %18769 = vmatprep.subr.bf16.mxu1 %v31403_v30  ;;  %v31445_v57 = vpack.c.bf16 %v27686_v11, %v31444_v45  ;;  %v31446_v58 = vld [vmem:[#allocation41_spill] sm:$0xff] }
 0xc56   :  { %18599 = vmatpush1.bf16.msra.mxu0 %v31429_v21  ;;  %18771 = vmatpush3.bf16.msra.mxu1 %v31430_v55  ;;  %v31447_v21 = vld [vmem:[#allocation54_spill] sm:$0xff] }
 0xc57   :  { %18601 = vmatprep.subr.bf16.mxu0 %v31431_v25  ;;  %18772 = vmatprep.subr.bf16.mxu1 %v31403_v30  ;;  %v31448_v55 = vpack.c.bf16 %v31446_v58, %v31447_v21  ;;  %v31449_v25 = vld [vmem:[#allocation46_spill] sm:$0xff] }
 0xc5a   :  { %18603 = vmatpush1.bf16.msra.mxu0 %v31432_v54  ;;  %18774 = vmatpush3.bf16.msra.mxu1 %v31433_v29  ;;  %v31450_v54 = vld [vmem:[#allocation24_spill] sm:$0xff] }
 0xc5b   :  { %18605 = vmatprep.subr.bf16.mxu0 %v31434_v41  ;;  %18775 = vmatprep.subr.bf16.mxu1 %v31403_v30  ;;  %v31451_v29 = vpack.c.bf16 %v31449_v25, %v31450_v54  ;;  %v31452_v41 = vld [vmem:[#allocation39_spill] sm:$0xff] }
 0xc5e   :  { %18607 = vmatpush1.bf16.msra.mxu0 %v31435_v31  ;;  %18777 = vmatpush3.bf16.msra.mxu1 %v31436_v23  ;;  %v31453_v31 = vld [vmem:[#allocation27_spill] sm:$0xff] }
 0xc5f   :  { %18609 = vmatprep.subr.bf16.mxu0 %v31437_v20  ;;  %18778 = vmatprep.subr.bf16.mxu1 %v31403_v30  ;;  %v31454_v23 = vld [vmem:[#allocation7_spill] sm:$0xff]  ;;  %v31455_v20 = vld [vmem:[#allocation17_spill] sm:$0xff] }
 0xc62   :  { %18611 = vmatpush1.bf16.msra.mxu0 %v31440_v28  ;;  %18780 = vmatpush3.bf16.msra.mxu1 %v31443_v46  ;;  %v31456_v28 = vld [vmem:[#allocation6_spill] sm:$0xff]  ;;  %v31457_v46 = vld [vmem:[#allocation44_spill] sm:$0xff] }
 0xc63   :  { %18613 = vmatprep.subr.bf16.mxu0 %v31445_v57  ;;  %18781 = vmatprep.subr.bf16.mxu1 %v31403_v30  ;;  %v31458_v57 = vld [vmem:[#allocation45_spill] sm:$0xff] }
 0xc66   :  { %18615 = vmatpush1.bf16.msra.mxu0 %v31448_v55  ;;  %18783 = vmatpush3.bf16.msra.mxu1 %v31451_v29  ;;  %v31460_v55 = vld [vmem:[#allocation16_spill] sm:$0xff]  ;;  %v31461_v29 = vld [vmem:[#allocation3_spill] sm:$0xff] }
 0xc67   :  { %18617 = vmatprep.subr.bf16.mxu0 %v31452_v41  ;;  %18784 = vmatprep.subr.bf16.mxu1 %v31403_v30 }
 0xc69   :  { %11584 = vmatmul.mubr.f32.vlgmr.msra.gmra.mrb[14].mxu0 %v28019_v10  ;;  %15851 = vmatmul.mubr.f32.vlgmr.msra.gmra.mrb[90].mxu1 %v28019_v10  ;;  %v31459_v10 = vld [vmem:[#allocation5_spill] sm:$0xff] }
 0xc6a   :  { %18619 = vmatpush1.bf16.msra.mxu0 %v31453_v31  ;;  %18786 = vmatpush3.bf16.msra.mxu1 %v31454_v23  ;;  %v31479_v23 = vand.u32 4294901760, %v27476_v24  ;;  %v31485_v24 = vand.u32 4294901760, %v27518_v42  ;;  %v31490_v42 = vand.u32 4294901760, %v27544_v37  ;;  %v31496_v37 = vand.u32 4294901760, %v27575_v53 }
 0xc6b   :  { %18621 = vmatprep.subr.bf16.mxu0 %v31455_v20  ;;  %18787 = vmatprep.subr.bf16.mxu1 %v31403_v30  ;;  %v31464_v20 = vld [vmem:[#allocation8_spill] sm:$0xff]  ;;  %v31502_v53 = vand.u32 4294901760, %v27606_v63  ;;  %v31508_v63 = vand.u32 4294901760, %v27636_v14  ;;  %v31514_v14 = vand.u32 4294901760, %v31439_v52  ;;  %v31520_v52 = vand.u32 4294901760, %v31447_v21  ;;  %v31527_v21 = vld [vmem:[#allocation6_spill] sm:$0xff] }
 0xc6c   :  { %11686 = vmatprep.mubr.f32.mxu0 %v31404_v9  ;;  %15885 = vmatprep.mubr.msk.f32.mxu1 %vm19186_vm0, %v31404_v9 }
 0xc6e   :  { %18623 = vmatpush1.bf16.msra.mxu0 %v31456_v28  ;;  %18789 = vmatpush3.bf16.msra.mxu1 %v31457_v46  ;;  %v31465_v46 = vld [vmem:[#allocation4_spill] sm:$0xff]  ;;  %v31467_v28 = vld [vmem:[#allocation43_spill] sm:$0xff] }
 0xc6f   :  { %18625 = vmatprep.subr.bf16.mxu0 %v31458_v57  ;;  %18790 = vmatprep.subr.bf16.mxu1 %v31403_v30  ;;  %v31466_v57 = vld [vmem:[#allocation23_spill] sm:$0xff] }
 0xc72   :  { %18627 = vmatpush1.bf16.msra.mxu0 %v31459_v10  ;;  %18792 = vmatpush3.bf16.msra.mxu1 %v31460_v55  ;;  %v31468_v55 = vld [vmem:[#allocation18_spill] sm:$0xff]  ;;  %v31470_v10 = vld [vmem:[#allocation48_spill] sm:$0xff] }
 0xc73   :  { %18629 = vmatprep.subr.bf16.mxu0 %v31461_v29  ;;  %18793 = vmatprep.subr.bf16.mxu1 %v31403_v30  ;;  %v31469_v29 = vld [vmem:[#allocation36_spill] sm:$0xff] }
 0xc76   :  { %18631 = vmatpush1.bf16.msra.mxu0 %v31462_v50  ;;  %18795 = vmatpush3.bf16.msra.mxu1 %v31463_v33  ;;  %v31471_v33 = vld [vmem:[#allocation9_spill] sm:$0xff] }
 0xc77   :  { %18633 = vmatprep.subr.bf16.mxu0 %v31464_v20  ;;  %18796 = vmatprep.subr.bf16.mxu1 %v31403_v30  ;;  %v31472_v20 = vld [vmem:[#allocation21_spill] sm:$0xff] }
 0xc78   :  { %v31473_v50 = vld [vmem:[#allocation53_spill] sm:$0xff] }
 0xc7a   :  { %18635 = vmatpush1.bf16.msra.mxu0 %v31465_v46  ;;  %18798 = vmatpush3.bf16.msra.mxu1 %v31466_v57  ;;  %v31475_v57 = vand.u32 4294901760, %v27463_v51  ;;  %v31482_v51 = vand.u32 4294901760, %v27503_v38  ;;  %v31489_v38 = vand.u32 4294901760, %v31394_v27  ;;  %v31494_v27 = vand.u32 4294901760, %v27565_v47 }
 0xc7b   :  { %18637 = vmatprep.subr.bf16.mxu0 %v31467_v28  ;;  %18799 = vmatprep.subr.bf16.mxu1 %v31403_v30  ;;  %v31474_v28 = vand.u32 4294901760, %v27458_v19  ;;  %v31483_v19 = vand.u32 4294901760, %v27508_v34  ;;  %v31488_v34 = vand.u32 4294901760, %v27533_v61  ;;  %v31500_v47 = vand.u32 4294901760, %v27596_v40 }
 0xc7c   :  { %v31506_v40 = vand.u32 4294901760, %v27626_v5  ;;  %v31512_v5 = vand.u32 4294901760, %v31388_v1  ;;  %v31518_v1 = vand.u32 4294901760, %v31444_v45  ;;  %v31525_v45 = vld [vmem:[#allocation7_spill] sm:$0xff] }
 0xc7d   :  { %v18648_v46 = vpack.c.bf16 %v31475_v57, %v31474_v28  ;;  %v18652_v28 = vpack.c.bf16 %v31483_v19, %v31482_v51 }
 0xc7e   :  { %18639 = vmatpush1.bf16.msra.mxu0 %v31468_v55  ;;  %18801 = vmatpush3.bf16.msra.mxu1 %v31469_v29  ;;  %v31476_v55 = vld [vmem:[#allocation55_spill] sm:$0xff]  ;;  %v31477_v29 = vld [vmem:[#allocation22_spill] sm:$0xff] }
 0xc7f   :  { %18641 = vmatprep.subr.bf16.mxu0 %v31470_v10  ;;  %18802 = vmatprep.subr.bf16.mxu1 %v31403_v30  ;;  %v31478_v10 = vand.u32 4294901760, %v27471_v16  ;;  %v31484_v16 = vand.u32 4294901760, %v27513_v6  ;;  %v31491_v6 = vand.u32 4294901760, %v27549_v15  ;;  %v31497_v15 = vand.u32 4294901760, %v27580_v48 }
 0xc80   :  { %v31503_v48 = vand.u32 4294901760, %v27611_v60  ;;  %v31509_v60 = vand.u32 4294901760, %v27641_v8  ;;  %v31515_v8 = vand.u32 4294901760, %v31438_v43  ;;  %v31521_v43 = vand.u32 4294901760, %v31446_v58  ;;  %v31526_v58 = vld [vmem:[#allocation17_spill] sm:$0xff] }
 0xc82   :  { %18643 = vmatpush1.bf16.msra.mxu0 %v31471_v33  ;;  %18804 = vmatpush3.bf16.msra.mxu1 %v31472_v20  ;;  %v18650_v33 = vpack.c.bf16 %v31479_v23, %v31478_v10  ;;  %v31480_v20 = vand.u32 4294901760, %v27481_v22  ;;  %v31486_v22 = vand.u32 4294901760, %v31393_v0  ;;  %v31492_v0 = vand.u32 4294901760, %v27554_v62 }
 0xc83   :  { %18645 = vmatprep.subr.bf16.mxu0 %v31473_v50  ;;  %18805 = vmatprep.subr.bf16.mxu1 %v31403_v30  ;;  %v31481_v50 = vand.u32 4294901760, %v27486_v3  ;;  %v18654_v3 = vpack.c.bf16 %v31485_v24, %v31484_v16  ;;  %v31498_v62 = vand.u32 4294901760, %v27586_v56  ;;  %v18666_v51 = vpack.c.bf16 %v31503_v48, %v31502_v53 }
 0xc84   :  { %v31504_v56 = vand.u32 4294901760, %v27616_v4  ;;  %v18670_v16 = vpack.c.bf16 %v31509_v60, %v31508_v63  ;;  %v31510_v4 = vand.u32 4294901760, %v27649_v59  ;;  %v31516_v59 = vand.u32 4294901760, %v31442_v32 }
 0xc85   :  { %v18809_v31 = vpack.c.bf16 %v31481_v50, %v31480_v20  ;;  %v31487_v50 = vand.u32 4294901760, %v27528_v36  ;;  %v18658_v36 = vpack.c.bf16 %v31491_v6, %v31490_v42  ;;  %v31522_v32 = vand.u32 4294901760, %v31450_v54  ;;  %v31529_v54 = vld [vmem:[#allocation45_spill] sm:$0xff]  ;;  %v31532_v42 = vld [vmem:[#allocation3_spill] sm:$0xff]  ;;  %v31533_v6 = vld [vmem:[#allocation56_spill] sm:$0xff] }
 0xc86   :  { %18647 = vmatpush1.bf16.msra.mxu0 %v31476_v55  ;;  %18807 = vmatpush3.bf16.msra.mxu1 %v31477_v29 }
 0xc87   :  { %18649 = vmatprep.subr.bf16.mxu0 %v18648_v46  ;;  %18808 = vmatprep.subr.bf16.mxu1 %v31403_v30  ;;  %v18812_v23 = vpack.c.bf16 %v31487_v50, %v31486_v22  ;;  %v18662_v46 = vpack.c.bf16 %v31497_v15, %v31496_v37  ;;  %v18674_v22 = vpack.c.bf16 %v31515_v8, %v31514_v14  ;;  %v31541_v37 = vld [vmem:[#allocation48_spill] sm:$0xff]  ;;  %v31542_v15 = vld [vmem:[#allocation9_spill] sm:$0xff] }
 0xc89   :  { %11690 = vmatmul.mubr.f32.vlgmr.msra.gmra.mrb[14].mxu0 %v28022_v35  ;;  %15886 = vmatmul.mubr.f32.vlgmr.msra.gmra.mrb[92].mxu1 %v28022_v35  ;;  %v18656_v35 = vpack.c.bf16 %v31489_v38, %v31488_v34  ;;  %v18678_v34 = vpack.c.bf16 %v31521_v43, %v31520_v52 }
 0xc8a   :  { %18651 = vmatpush1.bf16.msra.mxu0 %v18650_v33  ;;  %18810 = vmatpush3.bf16.msra.mxu1 %v18809_v31  ;;  %v31493_v33 = vand.u32 4294901760, %v27559_v13  ;;  %v31495_v31 = vand.u32 4294901760, %v27570_v18  ;;  %v31499_v13 = vand.u32 4294901760, %v27591_v49  ;;  %v31501_v18 = vand.u32 4294901760, %v27601_v39 }
 0xc8b   :  { %18653 = vmatprep.subr.bf16.mxu0 %v18652_v28  ;;  %18811 = vmatprep.subr.bf16.mxu1 %v31403_v30  ;;  %v31505_v49 = vand.u32 4294901760, %v27621_v26  ;;  %v31507_v39 = vand.u32 4294901760, %v27631_v44  ;;  %v31511_v26 = vand.u32 4294901760, %v31395_v2  ;;  %v31513_v44 = vand.u32 4294901760, %v31396_v17 }
 0xc8c   :  { %11856 = vmatprep.mubr.f32.mxu0 %v31404_v9  ;;  %15920 = vmatprep.mubr.msk.f32.mxu1 %vm19186_vm0, %v31404_v9  ;;  %v18815_v61 = vpack.c.bf16 %v31493_v33, %v31492_v0  ;;  %v18660_v20 = vpack.c.bf16 %v31495_v31, %v31494_v27  ;;  %v18818_v57 = vpack.c.bf16 %v31499_v13, %v31498_v62  ;;  %v31517_v2 = vand.u32 4294901760, %v31441_v12  ;;  %v31535_v0 = vld [vmem:[#allocation8_spill] sm:$0xff]  ;;  %v31538_v27 = vld [vmem:[#allocation43_spill] sm:$0xff]  ;;  %v31539_v31 = vld [vmem:[#allocation18_spill] sm:$0xff] }
 0xc8d   :  { %v18664_v10 = vpack.c.bf16 %v31501_v18, %v31500_v47  ;;  %v18821_v19 = vpack.c.bf16 %v31505_v49, %v31504_v56  ;;  %v18668_v28 = vpack.c.bf16 %v31507_v39, %v31506_v40  ;;  %v18824_v24 = vpack.c.bf16 %v31511_v26, %v31510_v4  ;;  %v31536_v33 = vld [vmem:[#allocation4_spill] sm:$0xff]  ;;  %v31544_v62 = vld [vmem:[#allocation53_spill] sm:$0xff]  ;;  %v12641_v56 = vld [vmem:[%s28706_s4 + $0x18] sm:$0xff] }
 0xc8e   :  { %18655 = vmatpush1.bf16.msra.mxu0 %v18654_v3  ;;  %18813 = vmatpush3.bf16.msra.mxu1 %v18812_v23  ;;  %v18672_v3 = vpack.c.bf16 %v31513_v44, %v31512_v5  ;;  %v18827_v50 = vpack.c.bf16 %v31517_v2, %v31516_v59  ;;  %v31519_v17 = vand.u32 4294901760, %v27686_v11  ;;  %v31523_v12 = vand.u32 4294901760, %v31449_v25  ;;  %v31524_v11 = vld [vmem:[#allocation27_spill] sm:$0xff]  ;;  %v31528_v25 = vld [vmem:[#allocation44_spill] sm:$0xff]  ;;  %v12644_v5 = vld [vmem:[%s28706_s4 + $0x30] sm:$0xff] }
 0xc8f   :  { %18657 = vmatprep.subr.bf16.mxu0 %v18656_v35  ;;  %18814 = vmatprep.subr.bf16.mxu1 %v31403_v30  ;;  %v31531_v35 = vld [vmem:[#allocation16_spill] sm:$0xff]  ;;  %v12642_v39 = vld [vmem:[%s28706_s4 + $0x20] sm:$0xff]  ;;  %v12645_v44 = vld [vmem:[%s28706_s4 + $0x38] sm:$0xff] }
 0xc90   :  { %v18676_v23 = vpack.c.bf16 %v31519_v17, %v31518_v1  ;;  %v18830_v38 = vpack.c.bf16 %v31523_v12, %v31522_v32  ;;  %v12668_v63 = vand.u32 4294901760, %v12642_v39  ;;  %v12677_v14 = vand.u32 4294901760, %v12645_v44  ;;  %v12647_v59 = vld [vmem:[%s28706_s4 + $0x48] sm:$0xff]  ;;  %v12648_v17 = vld [vmem:[%s28706_s4 + $0x50] sm:$0xff] }
 0xc91   :  { %v12686_v52 = vand.u32 4294901760, %v12648_v17 }
 0xc92   :  { %18659 = vmatpush1.bf16.msra.mxu0 %v18658_v36  ;;  %18816 = vmatpush3.bf16.msra.mxu1 %v18815_v61  ;;  %v31534_v36 = vld [vmem:[#allocation57_spill] sm:$0xff]  ;;  %v31537_v61 = vld [vmem:[#allocation23_spill] sm:$0xff] }
 0xc93   :  { %18661 = vmatprep.subr.bf16.mxu0 %v18660_v20  ;;  %18817 = vmatprep.subr.bf16.mxu1 %v31403_v30  ;;  %v31540_v20 = vld [vmem:[#allocation36_spill] sm:$0xff] }
 0xc96   :  { %18663 = vmatpush1.bf16.msra.mxu0 %v18662_v46  ;;  %18819 = vmatpush3.bf16.msra.mxu1 %v18818_v57  ;;  %v31543_v46 = vld [vmem:[#allocation21_spill] sm:$0xff] }
 0xc97   :  { %18665 = vmatprep.subr.bf16.mxu0 %v18664_v10  ;;  %18820 = vmatprep.subr.bf16.mxu1 %v31403_v30 }
 0xc9a   :  { %18667 = vmatpush1.bf16.msra.mxu0 %v18666_v51  ;;  %18822 = vmatpush3.bf16.msra.mxu1 %v18821_v19  ;;  %v12665_v19 = vand.u32 4294901760, %v12641_v56 }
 0xc9b   :  { %18669 = vmatprep.subr.bf16.mxu0 %v18668_v28  ;;  %18823 = vmatprep.subr.bf16.mxu1 %v31403_v30  ;;  %v12643_v28 = vld [vmem:[%s28706_s4 + $0x28] sm:$0xff] }
 0xc9c   :  { %v12671_v60 = vand.u32 4294901760, %v12643_v28 }
 0xc9e   :  { %18671 = vmatpush1.bf16.msra.mxu0 %v18670_v16  ;;  %18825 = vmatpush3.bf16.msra.mxu1 %v18824_v24  ;;  %v28358_v4 = vpack.c.bf16 %v12671_v60, %v12668_v63 }
 0xc9f   :  { %18673 = vmatprep.subr.bf16.mxu0 %v18672_v3  ;;  %18826 = vmatprep.subr.bf16.mxu1 %v31403_v30  ;;  %v12674_v3 = vand.u32 4294901760, %v12644_v5 }
 0xca1   :  { %v28370_v8 = vpack.c.bf16 %v12677_v14, %v12674_v3 }
 0xca2   :  { %18675 = vmatpush1.bf16.msra.mxu0 %v18674_v22  ;;  %18828 = vmatpush3.bf16.msra.mxu1 %v18827_v50  ;;  %v12646_v22 = vld [vmem:[%s28706_s4 + $0x40] sm:$0xff]  ;;  %v12683_v50 = vand.u32 4294901760, %v12647_v59 }
 0xca3   :  { %18677 = vmatprep.subr.bf16.mxu0 %v18676_v23  ;;  %18829 = vmatprep.subr.bf16.mxu1 %v31403_v30  ;;  %v12680_v2 = vand.u32 4294901760, %v12646_v22  ;;  %v12649_v23 = vld [vmem:[%s28706_s4 + $0x58] sm:$0xff] }
 0xca4   :  { %v12689_v43 = vand.u32 4294901760, %v12649_v23 }
 0xca5   :  { %v28380_v1 = vpack.c.bf16 %v12683_v50, %v12680_v2 }
 0xca6   :  { %18679 = vmatpush1.bf16.msra.mxu0 %v18678_v34  ;;  %18831 = vmatpush3.bf16.msra.mxu1 %v18830_v38  ;;  %v28396_v38 = vsub.f32 %v12641_v56, %v12665_v19 }
 0xca7   :  { %18681 = vmatprep.subr.bf16.mxu0 %v31452_v41  ;;  %18832 = vmatprep.subr.bf16.mxu1 %v31403_v30  ;;  %v31530_v41 = vld [vmem:[#allocation5_spill] sm:$0xff] }
 0xca9   :  { %11858 = vmatmul.mubr.f32.vlgmr.msra.gmra.mrb[14].mxu0 %v28012_v7  ;;  %15921 = vmatmul.mubr.f32.vlgmr.msra.gmra.mrb[94].mxu1 %v28012_v7 }
 0xcaa   :  { %18683 = vmatpush1.bf16.msra.mxu0 %v31524_v11  ;;  %18834 = vmatpush3.bf16.msra.mxu1 %v31525_v45  ;;  %v12650_v11 = vld [vmem:[%s28706_s4 + $0x60] sm:$0xff]  ;;  %v12651_v45 = vld [vmem:[%s28706_s4 + $0x68] sm:$0xff] }
 0xcab   :  { %18685 = vmatprep.subr.bf16.mxu0 %v31526_v58  ;;  %18835 = vmatprep.subr.bf16.mxu1 %v31403_v30  ;;  %v12652_v58 = vld [vmem:[%s28706_s4 + $0x70] sm:$0xff] }
 0xcac   :  { %11960 = vmatprep.mubr.f32.mxu0 %v31404_v9  ;;  %15955 = vmatprep.mubr.msk.f32.mxu1 %vm19186_vm0, %v31404_v9 }
 0xcae   :  { %18687 = vmatpush1.bf16.msra.mxu0 %v31527_v21  ;;  %18837 = vmatpush3.bf16.msra.mxu1 %v31528_v25  ;;  %v28407_v21 = vsub.f32 %v12642_v39, %v12668_v63  ;;  %v28409_v25 = vsub.f32 %v12643_v28, %v12671_v60 }
 0xcaf   :  { %18689 = vmatprep.subr.bf16.mxu0 %v31529_v54  ;;  %18838 = vmatprep.subr.bf16.mxu1 %v31403_v30  ;;  %v28411_v54 = vsub.f32 %v12644_v5, %v12674_v3 }
 0xcb0   :  { %v29844_v63 = vand.u32 4294901760, %v28407_v21  ;;  %v29843_v60 = vand.u32 4294901760, %v28409_v25 }
 0xcb2   :  { %18691 = vmatpush1.bf16.msra.mxu0 %v31530_v41  ;;  %18840 = vmatpush3.bf16.msra.mxu1 %v31531_v35  ;;  %v28413_v41 = vsub.f32 %v12645_v44, %v12677_v14  ;;  %v12653_v35 = vld [vmem:[%s28706_s4 + $0x78] sm:$0xff]  ;;  %v12785_v5 = vsub.f32 %v28409_v25, %v29843_v60  ;;  %v29842_v14 = vand.u32 4294901760, %v28411_v54 }
 0xcb3   :  { %18693 = vmatprep.subr.bf16.mxu0 %v31532_v42  ;;  %18841 = vmatprep.subr.bf16.mxu1 %v31403_v30  ;;  %v28418_v42 = vsub.f32 %v12646_v22, %v12680_v2  ;;  %v13356_v60 = vld [vmem:[%s28703_s0 + $0x5c] sm:$0xf] }
 0xcb4   :  { %v12786_v3 = vand.u32 4294901760, %v12785_v5  ;;  %v29841_v22 = vand.u32 4294901760, %v28413_v41 }
 0xcb6   :  { %18695 = vmatpush1.bf16.msra.mxu0 %v31533_v6  ;;  %18843 = vmatpush3.bf16.msra.mxu1 %v31534_v36  ;;  %v28420_v6 = vsub.f32 %v12647_v59, %v12683_v50  ;;  %v28422_v36 = vpack.c.bf16 %v12689_v43, %v12686_v52 }
 0xcb7   :  { %18697 = vmatprep.subr.bf16.mxu0 %v31535_v0  ;;  %18844 = vmatprep.subr.bf16.mxu1 %v31403_v30  ;;  %v28424_v0 = vsub.f32 %v12648_v17, %v12686_v52  ;;  %v12799_v52 = vsub.f32 %v28413_v41, %v29841_v22 }
 0xcba   :  { %18699 = vmatpush1.bf16.msra.mxu0 %v31536_v33  ;;  %18846 = vmatpush3.bf16.msra.mxu1 %v31537_v61  ;;  %v28426_v33 = vsub.f32 %v12649_v23, %v12689_v43  ;;  %v12692_v61 = vand.u32 4294901760, %v12650_v11  ;;  %v12792_v23 = vsub.f32 %v28411_v54, %v29842_v14 }
 0xcbb   :  { %18701 = vmatprep.subr.bf16.mxu0 %v31538_v27  ;;  %18847 = vmatprep.subr.bf16.mxu1 %v31403_v30  ;;  %v12695_v27 = vand.u32 4294901760, %v12651_v45 }
 0xcbc   :  { %v12793_v43 = vand.u32 4294901760, %v12792_v23 }
 0xcbe   :  { %18703 = vmatpush1.bf16.msra.mxu0 %v31539_v31  ;;  %18849 = vmatpush3.bf16.msra.mxu1 %v31540_v20  ;;  %v12698_v31 = vand.u32 4294901760, %v12652_v58  ;;  %v12701_v20 = vand.u32 4294901760, %v12653_v35 }
 0xcbf   :  { %18705 = vmatprep.subr.bf16.mxu0 %v31541_v37  ;;  %18850 = vmatprep.subr.bf16.mxu1 %v31403_v30  ;;  %v28430_v37 = vpack.c.bf16 %v12695_v27, %v12692_v61 }
 0xcc2   :  { %18707 = vmatpush1.bf16.msra.mxu0 %v31542_v15  ;;  %18852 = vmatpush3.bf16.msra.mxu1 %v31543_v46  ;;  %v28432_v15 = vsub.f32 %v12650_v11, %v12692_v61  ;;  %v28434_v46 = vsub.f32 %v12651_v45, %v12695_v27  ;;  %v12800_v11 = vand.u32 4294901760, %v12799_v52  ;;  %v29840_v45 = vand.u32 4294901760, %v28418_v42 }
 0xcc3   :  { %18709 = vmatprep.subr.bf16.mxu0 %v31544_v62  ;;  %18853 = vmatprep.subr.bf16.mxu1 %v31403_v30  ;;  %v28436_v62 = vsub.f32 %v12652_v58, %v12698_v31  ;;  %v29839_v58 = vand.u32 4294901760, %v28420_v6 }
 0xcc5   :  { %v12813_v61 = vsub.f32 %v28420_v6, %v29839_v58 }
 0xcc6   :  { %18711 = vmatpush1.bf16.msra.mxu0 %v31476_v55  ;;  %18855 = vmatpush3.bf16.msra.mxu1 %v31477_v29  ;;  %v12638_v55 = vld [vmem:[%s28706_s4] sm:$0xff]  ;;  %v12639_v29 = vld [vmem:[%s28706_s4 + $0x8] sm:$0xff] }
 0xcc7   :  { %18856 = vmatprep.subr.bf16.mxu0 %v31403_v30  ;;  %v12656_v53 = vand.u32 4294901760, %v12638_v55  ;;  %v12659_v48 = vand.u32 4294901760, %v12639_v29 }
 0xcc9   :  { %11962 = vmatmul.mubr.f32.vlgmr.msra.gmra.mrb[14].mxu0 %v28012_v7  ;;  %15956 = vmatmul.mubr.f32.vlgmr.msra.gmra.mrb[96].mxu1 %v28012_v7  ;;  %v28338_v51 = vpack.c.bf16 %v12659_v48, %v12656_v53  ;;  %v12640_v7 = vld [vmem:[%s28706_s4 + $0x10] sm:$0xff]  ;;  %v28390_v34 = vsub.f32 %v12638_v55, %v12656_v53  ;;  %v28392_v32 = vsub.f32 %v12639_v29, %v12659_v48 }
 0xcca   :  { %15990 = vmatprep.mubr.msk.f32.mxu0 %vm19186_vm0, %v31404_v9  ;;  %v12662_v49 = vand.u32 4294901760, %v12640_v7 }
 0xccb   :  { %18858 = vmatpush3.bf16.msra.mxu0 %v28338_v51 }
 0xccc   :  { %18859 = vmatprep.subr.bf16.mxu0 %v31403_v30  ;;  %v28348_v40 = vpack.c.bf16 %v12665_v19, %v12662_v49  ;;  %v28394_v12 = vsub.f32 %v12640_v7, %v12662_v49  ;;  %v29845_v7 = vand.u32 4294901760, %v28396_v38 }
 0xcce   :  { %v12763_v48 = vand.u32 4294901760, %v28394_v12  ;;  %v12771_v19 = vsub.f32 %v28396_v38, %v29845_v7  ;;  %v11064_v7 = vunpack.c.l.bf16 %v13356_v60 }
 0xccf   :  { %18861 = vmatpush3.bf16.msra.mxu0 %v28348_v40 }
 0xcd0   :  { %18862 = vmatprep.subr.bf16.mxu0 %v31403_v30  ;;  %v12764_v49 = vsub.f32 %v28394_v12, %v12763_v48  ;;  %v12772_v28 = vand.u32 4294901760, %v12771_v19 }
 0xcd2   :  { %v12765_v39 = vand.u32 4294901760, %v12764_v49 }
 0xcd3   :  { %18864 = vmatpush3.bf16.msra.mxu0 %v28358_v4 }
 0xcd4   :  { %18865 = vmatprep.subr.bf16.mxu0 %v31403_v30 }
 0xcd7   :  { %18867 = vmatpush3.bf16.msra.mxu0 %v28370_v8 }
 0xcd8   :  { %18868 = vmatprep.subr.bf16.mxu0 %v31403_v30 }
 0xcdb   :  { %18870 = vmatpush3.bf16.msra.mxu0 %v28380_v1 }
 0xcdc   :  { %18871 = vmatprep.subr.bf16.mxu0 %v31403_v30 }
 0xcdf   :  { %18873 = vmatpush3.bf16.msra.mxu0 %v28422_v36 }
 0xce0   :  { %18874 = vmatprep.subr.bf16.mxu0 %v31403_v30 }
 0xce3   :  { %18876 = vmatpush3.bf16.msra.mxu0 %v28430_v37 }
 0xce4   :  { %18877 = vmatprep.subr.bf16.mxu0 %v31403_v30 }
 0xcfc   :  { %v12055_v13 = vpop.f32.mrb[86].mxu1 }
 0xcfd   :  { %v15782_v57 = vpop.f32.mrb[87].mxu1 }
 0xcfe   :  { %v12749_v57 = vand.u32 4294901760, %v28390_v34 }
 0xd1c   :  { %v12206_v47 = vpop.f32.mrb[88].mxu1 }
 0xd1d   :  { %v12207_v18 = vadd.f32 %v12206_v47, %v12055_v13  ;;  %v15817_v10 = vpop.f32.mrb[89].mxu1  ;;  %v28438_v13 = vsub.f32 %v12653_v35, %v12701_v20  ;;  %v12756_v47 = vand.u32 4294901760, %v28392_v32  ;;  %v28487_v35 = vpack.c.bf16 %v12800_v11, %v12793_v43 }
 0xd1e   :  { %v12750_v10 = vsub.f32 %v28390_v34, %v12749_v57 }
 0xd1f   :  { %v12757_v55 = vsub.f32 %v28392_v32, %v12756_v47  ;;  %v29833_v23 = vand.u32 4294901760, %v28438_v13 }
 0xd20   :  { %v12751_v29 = vand.u32 4294901760, %v12750_v10  ;;  %v29837_v10 = vand.u32 4294901760, %v28426_v33 }
 0xd21   :  { %v12758_v53 = vand.u32 4294901760, %v12757_v55  ;;  %v12855_v11 = vsub.f32 %v28438_v13, %v29833_v23 }
 0xd23   :  { %v28455_v56 = vpack.c.bf16 %v12758_v53, %v12751_v29  ;;  %v12827_v53 = vsub.f32 %v28426_v33, %v29837_v10 }
 0xd25   :  { %v12828_v19 = vand.u32 4294901760, %v12827_v53 }
 0xd3c   :  { %v12310_v16 = vpop.f32.mrb[90].mxu1 }
 0xd3d   :  { %v28360_v26 = vadd.f32 %v12310_v16, %v12207_v18  ;;  %v15852_v24 = vpop.f32.mrb[91].mxu1  ;;  %v28443_v18 = vpack.c.bf16 %v12701_v20, %v12698_v31  ;;  %v28466_v16 = vpack.c.bf16 %v12772_v28, %v12765_v39  ;;  %v12814_v31 = vand.u32 4294901760, %v12813_v61 }
 0xd3e   :  { %v12778_v24 = vsub.f32 %v28407_v21, %v29844_v63  ;;  %v29838_v20 = vand.u32 4294901760, %v28424_v0  ;;  %v29836_v39 = vand.u32 4294901760, %v28432_v15  ;;  %v29835_v28 = vand.u32 4294901760, %v28434_v46 }
 0xd3f   :  { %18879 = vmatpush3.bf16.msra.mxu0 %v28443_v18  ;;  %v12856_v61 = vand.u32 4294901760, %v12855_v11  ;;  %v18926_v11 = vpack.c.bf16 %v28438_v13, %v28436_v62 }
 0xd40   :  { %18880 = vmatprep.subr.bf16.mxu0 %v31403_v30  ;;  %v12779_v44 = vand.u32 4294901760, %v12778_v24  ;;  %v12820_v29 = vsub.f32 %v28424_v0, %v29838_v20  ;;  %v12834_v5 = vsub.f32 %v28432_v15, %v29836_v39 }
 0xd42   :  { %v28477_v17 = vpack.c.bf16 %v12786_v3, %v12779_v44  ;;  %v12821_v49 = vand.u32 4294901760, %v12820_v29  ;;  %v12841_v44 = vsub.f32 %v28434_v46, %v29835_v28  ;;  %v12835_v3 = vand.u32 4294901760, %v12834_v5 }
 0xd43   :  { %v18908_v29 = vpack.c.bf16 %v28396_v38, %v28394_v12  ;;  %v31551_v12 = vand.u32 4294901760, %v28413_v41 }
 0xd44   :  { %v28507_v24 = vpack.c.bf16 %v12828_v19, %v12821_v49  ;;  %v18911_v49 = vpack.c.bf16 %v28409_v25, %v28407_v21 }
 0xd5c   :  { %v12399_v59 = vpop.f32.mrb[92].mxu1 }
 0xd5d   :  { %v12400_v2 = vadd.f32 %v12399_v59, %v28360_v26  ;;  %v15887_v50 = vpop.f32.mrb[93].mxu1  ;;  %v12806_v26 = vsub.f32 %v28418_v42, %v29840_v45  ;;  %v12842_v59 = vand.u32 4294901760, %v12841_v44  ;;  %v18914_v44 = vpack.c.bf16 %v28413_v41, %v28411_v54 }
 0xd5e   :  { %v29834_v50 = vand.u32 4294901760, %v28436_v62  ;;  %v31557_v41 = vand.u32 4294901760, %v28434_v46 }
 0xd5f   :  { %v12807_v27 = vand.u32 4294901760, %v12806_v26  ;;  %v28517_v52 = vpack.c.bf16 %v12842_v59, %v12835_v3  ;;  %v18917_v3 = vpack.c.bf16 %v28420_v6, %v28418_v42  ;;  %v18920_v59 = vpack.c.bf16 %v28426_v33, %v28424_v0 }
 0xd60   :  { %v12848_v43 = vsub.f32 %v28436_v62, %v29834_v50 }
 0xd61   :  { %v28497_v55 = vpack.c.bf16 %v12814_v31, %v12807_v27  ;;  %v18905_v31 = vpack.c.bf16 %v28392_v32, %v28390_v34  ;;  %v31548_v34 = vand.u32 4294901760, %v28407_v21  ;;  %v31549_v32 = vand.u32 4294901760, %v28409_v25 }
 0xd62   :  { %v12849_v26 = vand.u32 4294901760, %v12848_v43  ;;  %v18923_v43 = vpack.c.bf16 %v28434_v46, %v28432_v15  ;;  %v31554_v21 = vand.u32 4294901760, %v28424_v0  ;;  %v31555_v25 = vand.u32 4294901760, %v28426_v33 }
 0xd64   :  { %v28525_v27 = vpack.c.bf16 %v12856_v61, %v12849_v26 }
 0xd7c   :  { %v12518_v53 = vpop.f32.mrb[94].mxu1 }
 0xd7d   :  { %v12519_v19 = vadd.f32 %v12518_v53, %v12400_v2  ;;  %v15922_v5 = vpop.f32.mrb[95].mxu1  ;;  %v13355_v2 = vld [vmem:[%s28703_s0 + $0x54] sm:$0xff] }
 0xd7e   :  { %v11062_v26 = vunpack.c.l.bf16 %v13355_v2  ;;  %v11063_v5 = vunpack.c.h.bf16 %v13355_v2  ;;  %v31545_v2 = vld [vmem:[#allocation38_spill] sm:$0xff] }
 0xd9c   :  { %v11963_v61 = vpop.f32.mrb[14].mxu0  ;;  %v12605_v53 = vpop.f32.mrb[96].mxu1 }
 0xd9d   :  { %v12609_v23 = vadd.f32 %v11963_v61, %v11062_v26  ;;  %v12606_v50 = vadd.f32 %v12605_v53, %v12519_v19  ;;  %v11965_v28 = vpop.f32.mrb[15].mxu0  ;;  %v15957_v39 = vpop.f32.mrb[97].mxu1 }
 0xd9e   :  { %v12616_v20 = vadd.f32 %v11965_v28, %v11063_v5 }
 0xd9f   :  { %v13357_v10 = vmul.f32 -1.442695, %v12609_v23  ;;  %v12623_v26 = vadd.f32 %v31545_v2, %v12606_v50 }
 0xda0   :  { %v13358_v58 = vmul.f32 -1.442695, %v12616_v20 }
 0xda1   :  { %19164 = vpow2.f32 %v13357_v10 }
 0xda2   :  { %19166 = vpow2.f32 %v13358_v58 }
 0xdab   :  { %v19165_v45 = vpop.eup %19164 }
 0xdac   :  { %v12613_v22 = vadd.f32 1.0, %v19165_v45  ;;  %v19167_v14 = vpop.eup %19166  ;;  %v31546_v45 = vld [vmem:[#allocation14_spill] sm:$0xff] }
 0xdad   :  { %v12620_v63 = vadd.f32 1.0, %v19167_v14 }
 0xdae   :  { %19168 = vrcp.f32 %v12613_v22 }
 0xdaf   :  { %19170 = vrcp.f32 %v12620_v63 }
 0xdb8   :  { %v19169_v19 = vpop.eup %19168 }
 0xdb9   :  { %v12624_v61 = vmul.f32 %v19169_v19, %v12623_v26  ;;  %v19171_v10 = vpop.eup %19170 }
 0xdba   :  { %v12627_v20 = vsub.f32 1.0, %v19171_v10  ;;  %v12629_v22 = vmul.f32 %v19171_v10, %v31546_v45 }
 0xdbb   :  { %v12625_v39 = vadd.f32 %v12624_v61, %v11064_v7 }
 0xdbd   :  { %19172 = vtanh.f32 %v12625_v39 }
 0xdc7   :  { %v19173_v58 = vpop.eup %19172 }
 0xdc8   :  { %v12628_v28 = vmul.f32 %v19173_v58, %v12627_v20 }
 0xdca   :  { %v12630_v23 = vadd.f32 %v12629_v22, %v12628_v28 }
 0xdcc   :  { %v12631_v53 = vpack.c.bf16 %v12630_v23, %v12630_v23  ;;  %v28551_v5 = vand.u32 4294901760, %v12630_v23 }
 0xdce   :  { %13359 = vst [vmem:[%s28705_s5 + $0x1c] sm:$0xf] %v12631_v53  ;;  %v12737_v60 = vsub.f32 %v12630_v23, %v28551_v5 }
 0xdd0   :  { %v12738_v14 = vand.u32 4294901760, %v12737_v60 }
 0xdd2   :  { %v12739_v63 = vsub.f32 %v12737_v60, %v12738_v14 }
 0xdd4   :  { %v12740_v7 = vand.u32 4294901760, %v12739_v63 }
 0xdd6   :  { %15991 = vmatmul.mubr.f32.vlgmr.msra.gmra.mrb[16].mxu0 %v12740_v7 }
 0xdd7   :  { %18882 = vmatpush3.bf16.msra.mxu0 %v28455_v56  ;;  %16025 = vmatprep.mubr.msk.f32.mxu0 %vm19186_vm0, %v31404_v9  ;;  %v18953_v56 = vpack.c.bf16 %v12756_v47, %v12749_v57  ;;  %v18959_v57 = vpack.c.bf16 %v31549_v32, %v31548_v34  ;;  %v31550_v47 = vand.u32 4294901760, %v28411_v54  ;;  %v31556_v54 = vand.u32 4294901760, %v28432_v15 }
 0xdd8   :  { %18883 = vmatprep.subr.bf16.mxu0 %v31403_v30 }
 0xdd9   :  { %v18971_v50 = vpack.c.bf16 %v31557_v41, %v31556_v54 }
 0xddb   :  { %18885 = vmatpush3.bf16.msra.mxu0 %v28466_v16  ;;  %v31547_v16 = vand.u32 4294901760, %v28396_v38  ;;  %v18962_v38 = vpack.c.bf16 %v31551_v12, %v31550_v47 }
 0xddc   :  { %18886 = vmatprep.subr.bf16.mxu0 %v31403_v30 }
 0xddf   :  { %18888 = vmatpush3.bf16.msra.mxu0 %v28477_v17  ;;  %v18956_v17 = vpack.c.bf16 %v31547_v16, %v12763_v48  ;;  %v31552_v48 = vand.u32 4294901760, %v28418_v42  ;;  %v31558_v42 = vand.u32 4294901760, %v28436_v62 }
 0xde0   :  { %18889 = vmatprep.subr.bf16.mxu0 %v31403_v30 }
 0xde3   :  { %18891 = vmatpush3.bf16.msra.mxu0 %v28487_v35  ;;  %v31553_v35 = vand.u32 4294901760, %v28420_v6  ;;  %v31559_v6 = vand.u32 4294901760, %v28438_v13 }
 0xde4   :  { %18892 = vmatprep.subr.bf16.mxu0 %v31403_v30 }
 0xde7   :  { %18894 = vmatpush3.bf16.msra.mxu0 %v28497_v55  ;;  %v18965_v55 = vpack.c.bf16 %v31553_v35, %v31552_v48 }
 0xde8   :  { %18895 = vmatprep.subr.bf16.mxu0 %v31403_v30 }
 0xdeb   :  { %18897 = vmatpush3.bf16.msra.mxu0 %v28507_v24  ;;  %v18968_v24 = vpack.c.bf16 %v31555_v25, %v31554_v21 }
 0xdec   :  { %18898 = vmatprep.subr.bf16.mxu0 %v31403_v30 }
 0xdef   :  { %18900 = vmatpush3.bf16.msra.mxu0 %v28517_v52  ;;  %v18974_v52 = vpack.c.bf16 %v31559_v6, %v31558_v42 }
 0xdf0   :  { %18901 = vmatprep.subr.bf16.mxu0 %v31403_v30 }
 0xdf3   :  { %18903 = vmatpush3.bf16.msra.mxu0 %v28525_v27 }
 0xdf4   :  { %18904 = vmatprep.subr.bf16.mxu0 %v31403_v30 }
 0xdf6   :  { %16026 = vmatmul.mubr.f32.vlgmr.msra.gmra.mrb[16].mxu0 %v28551_v5 }
 0xdf7   :  { %18906 = vmatpush3.bf16.msra.mxu0 %v18905_v31  ;;  %16060 = vmatprep.mubr.msk.f32.mxu0 %vm19186_vm0, %v31404_v9 }
 0xdf8   :  { %18907 = vmatprep.subr.bf16.mxu0 %v31403_v30 }
 0xdfb   :  { %18909 = vmatpush3.bf16.msra.mxu0 %v18908_v29 }
 0xdfc   :  { %18910 = vmatprep.subr.bf16.mxu0 %v31403_v30 }
 0xdff   :  { %18912 = vmatpush3.bf16.msra.mxu0 %v18911_v49 }
 0xe00   :  { %18913 = vmatprep.subr.bf16.mxu0 %v31403_v30 }
 0xe03   :  { %18915 = vmatpush3.bf16.msra.mxu0 %v18914_v44 }
 0xe04   :  { %18916 = vmatprep.subr.bf16.mxu0 %v31403_v30 }
 0xe07   :  { %18918 = vmatpush3.bf16.msra.mxu0 %v18917_v3 }
 0xe08   :  { %18919 = vmatprep.subr.bf16.mxu0 %v31403_v30 }
 0xe0b   :  { %18921 = vmatpush3.bf16.msra.mxu0 %v18920_v59 }
 0xe0c   :  { %18922 = vmatprep.subr.bf16.mxu0 %v31403_v30 }
 0xe0f   :  { %18924 = vmatpush3.bf16.msra.mxu0 %v18923_v43 }
 0xe10   :  { %18925 = vmatprep.subr.bf16.mxu0 %v31403_v30 }
 0xe13   :  { %18927 = vmatpush3.bf16.msra.mxu0 %v18926_v11 }
 0xe14   :  { %18928 = vmatprep.subr.bf16.mxu0 %v31403_v30 }
 0xe16   :  { %16061 = vmatmul.mubr.f32.vlgmr.msra.gmra.mrb[16].mxu0 %v12737_v60 }
 0xe17   :  { %18930 = vmatpush3.bf16.msra.mxu0 %v28338_v51  ;;  %16095 = vmatprep.mubr.msk.f32.mxu0 %vm19186_vm0, %v31404_v9 }
 0xe18   :  { %18931 = vmatprep.subr.bf16.mxu0 %v31403_v30 }
 0xe1b   :  { %18933 = vmatpush3.bf16.msra.mxu0 %v28348_v40 }
 0xe1c   :  { %18934 = vmatprep.subr.bf16.mxu0 %v31403_v30 }
 0xe1f   :  { %18936 = vmatpush3.bf16.msra.mxu0 %v28358_v4 }
 0xe20   :  { %18937 = vmatprep.subr.bf16.mxu0 %v31403_v30 }
 0xe23   :  { %18939 = vmatpush3.bf16.msra.mxu0 %v28370_v8 }
 0xe24   :  { %18940 = vmatprep.subr.bf16.mxu0 %v31403_v30 }
 0xe27   :  { %18942 = vmatpush3.bf16.msra.mxu0 %v28380_v1 }
 0xe28   :  { %18943 = vmatprep.subr.bf16.mxu0 %v31403_v30 }
 0xe2b   :  { %18945 = vmatpush3.bf16.msra.mxu0 %v28422_v36 }
 0xe2c   :  { %18946 = vmatprep.subr.bf16.mxu0 %v31403_v30 }
 0xe2f   :  { %18948 = vmatpush3.bf16.msra.mxu0 %v28430_v37 }
 0xe30   :  { %18949 = vmatprep.subr.bf16.mxu0 %v31403_v30 }
 0xe33   :  { %18951 = vmatpush3.bf16.msra.mxu0 %v28443_v18 }
 0xe34   :  { %18952 = vmatprep.subr.bf16.mxu0 %v31403_v30 }
 0xe36   :  { %16096 = vmatmul.mubr.f32.vlgmr.msra.gmra.mrb[16].mxu0 %v12738_v14 }
 0xe37   :  { %18954 = vmatpush3.bf16.msra.mxu0 %v18953_v56  ;;  %16130 = vmatprep.mubr.msk.f32.mxu0 %vm19186_vm0, %v31404_v9 }
 0xe38   :  { %18955 = vmatprep.subr.bf16.mxu0 %v31403_v30 }
 0xe3b   :  { %18957 = vmatpush3.bf16.msra.mxu0 %v18956_v17 }
 0xe3c   :  { %18958 = vmatprep.subr.bf16.mxu0 %v31403_v30 }
 0xe3f   :  { %18960 = vmatpush3.bf16.msra.mxu0 %v18959_v57 }
 0xe40   :  { %18961 = vmatprep.subr.bf16.mxu0 %v31403_v30 }
 0xe43   :  { %18963 = vmatpush3.bf16.msra.mxu0 %v18962_v38 }
 0xe44   :  { %18964 = vmatprep.subr.bf16.mxu0 %v31403_v30 }
 0xe47   :  { %18966 = vmatpush3.bf16.msra.mxu0 %v18965_v55 }
 0xe48   :  { %18967 = vmatprep.subr.bf16.mxu0 %v31403_v30 }
 0xe4b   :  { %18969 = vmatpush3.bf16.msra.mxu0 %v18968_v24 }
 0xe4c   :  { %18970 = vmatprep.subr.bf16.mxu0 %v31403_v30 }
 0xe4f   :  { %18972 = vmatpush3.bf16.msra.mxu0 %v18971_v50 }
 0xe50   :  { %18973 = vmatprep.subr.bf16.mxu0 %v31403_v30 }
 0xe53   :  { %18975 = vmatpush3.bf16.msra.mxu0 %v18974_v52 }
 0xe54   :  { %18976 = vmatprep.subr.bf16.mxu0 %v31403_v30 }
 0xe56   :  { %16131 = vmatmul.mubr.f32.vlgmr.msra.gmra.mrb[16].mxu0 %v28551_v5 }
 0xe57   :  { %18978 = vmatpush3.bf16.msra.mxu0 %v28338_v51  ;;  %16165 = vmatprep.mubr.msk.f32.mxu0 %vm19186_vm0, %v31404_v9  ;;  %v12654_v9 = vld [vmem:[%s28707_s3] sm:$0xff] }
 0xe58   :  { %18979 = vmatprep.subr.bf16.mxu0 %v31403_v30 }
 0xe5b   :  { %18981 = vmatpush3.bf16.msra.mxu0 %v28348_v40 }
 0xe5c   :  { %18982 = vmatprep.subr.bf16.mxu0 %v31403_v30 }
 0xe5f   :  { %18984 = vmatpush3.bf16.msra.mxu0 %v28358_v4 }
 0xe60   :  { %18985 = vmatprep.subr.bf16.mxu0 %v31403_v30 }
 0xe63   :  { %18987 = vmatpush3.bf16.msra.mxu0 %v28370_v8 }
 0xe64   :  { %18988 = vmatprep.subr.bf16.mxu0 %v31403_v30 }
 0xe67   :  { %18990 = vmatpush3.bf16.msra.mxu0 %v28380_v1 }
 0xe68   :  { %18991 = vmatprep.subr.bf16.mxu0 %v31403_v30 }
 0xe6b   :  { %18993 = vmatpush3.bf16.msra.mxu0 %v28422_v36 }
 0xe6c   :  { %18994 = vmatprep.subr.bf16.mxu0 %v31403_v30 }
 0xe6f   :  { %18996 = vmatpush3.bf16.msra.mxu0 %v28430_v37 }
 0xe70   :  { %18997 = vmatprep.subr.bf16.mxu0 %v31403_v30 }
 0xe73   :  { %18999 = vmatpush3.bf16.msra.mxu0 %v28443_v18 }
 0xe76   :  { %16166 = vmatmul.mubr.f32.vlgmr.msra.gmra.mrb[16].mxu0 %v28551_v5 }
 0xf49   :  { %v13292_v51 = vpop.f32.mrb[16].mxu0 }
 0xf4a   :  { %v19002_v40 = vadd.f32 %v13292_v51, %v12654_v9  ;;  %v16167_v4 = vpop.f32.mrb[17].mxu0 }
 0xf4c   :  { %v13298_v8 = vsel %vm13296_vm1, %v19002_v40, -inf  ;;  %13297 = vst.msk [vmem:[%s28708_s7] sm:$0xff] %vm13296_vm1, %v19002_v40 }
 0xf4d   :  { %13299 = vmax.xlane.f32.xlu0 %v13298_v8 }
 0xfda   :  { %v13300_v30 = vpop.xlane.xlu0 %13299 }
 0xfdb   :  { %v13301_v1 = vsub.f32 %v19002_v40, %v13300_v30 }
 0xfdd   :  { %v13302_v36 = vmul.f32 1.442695, %v13301_v1 }
 0xfdf   :  { %19174 = vpow2.f32 %v13302_v36 }
 0xfe9   :  { %v19175_v0 = vpop.eup %19174 }
 0xfea   :  { %v13304_v33 = vsel %vm13296_vm1, %v19175_v0, 0.0 }
 0xfeb   :  { %13305 = vadd.xlane.f32.xlu0 %v13304_v33 }
0x1078   :  { %v13306_v37 = vpop.xlane.xlu0 %13305 }
0x1079   :  { %19176 = vrcp.f32 %v13306_v37 }
0x1083   :  { %v19177_v15 = vpop.eup %19176 }
0x1084   :  { %v13308_v46 = vmul.f32 %v19177_v15, %v19175_v0 }
0x1086   :  { %13309 = vst.msk [vmem:[%s28709_s6] sm:$0xff] %vm13296_vm1, %v13308_v46 }

</bundles_post_ra>
